<compile_context>
chip_gen: v6e
topology: v6e:2x2x1
jax: 0.10.0
libtpu: 0.0.40
codegen_flags: <defaults>
</compile_context>

<pallas_src>
import jax
import jax.numpy as jnp
from jax.experimental import pallas as pl
from jax.experimental.pallas import tpu as pltpu

EPS = 1e-5  # PyTorch BatchNorm1d default eps

# --------------------------------------------------------------------------
# Parameter slab layout: every weight/bias is a (rows, Cout) block, grouped by
# Cout width into 4 row-stacked slabs.  (name -> (slab_width, row_off, rows))
# --------------------------------------------------------------------------
_CH = (("c1", 3, 16), ("c2", 16, 32), ("c3", 32, 64), ("c4", 64, 128),
       ("c5", 128, 64), ("c6", 64, 32), ("c7", 32, 16))
_SLAB_WIDTHS = (16, 32, 64, 128)


def _make_entries():
    ents = []
    for name, cin, cout in _CH:
        ents.append((name + "_w1", 7 * cin, cout))
        ents.append((name + "_w2", 7 * cout, cout))
    for name, ch in (("u1", 128), ("u2", 64), ("u3", 32)):
        ents.append((name + "_w", ch, ch // 2))
        ents.append((name + "_b", 1, ch // 2))
    ents.append(("out_w", 7 * 16, 16))   # real Cout = 3, zero-padded to 16 lanes
    ents.append(("out_b", 1, 16))
    return tuple(ents)


_ENTRIES = _make_entries()


def _build_layout():
    layout = {}
    sizes = {w: 0 for w in _SLAB_WIDTHS}
    for name, rows, width in _ENTRIES:
        layout[name] = (width, sizes[width], rows)
        sizes[width] += rows
    # round slab row counts up to a sublane multiple (pad rows are zeros)
    sizes = {w: ((r + 7) // 8) * 8 for w, r in sizes.items()}
    return layout, sizes


_LAYOUT, _SLAB_ROWS = _build_layout()


# --------------------------------------------------------------------------
# The single fused kernel: whole forward pass, all activations VMEM-resident.
# --------------------------------------------------------------------------
def _unet_kernel(x_ref, w16_ref, w32_ref, w64_hbm, w128_hbm, o_ref,
                 pad_ref, w64_ref, w128_ref, dma_sem):
    # Start HBM->VMEM DMAs for the two big weight slabs now; they complete
    # while the 16/32-wide encoder blocks compute.
    cp64 = pltpu.make_async_copy(w64_hbm, w64_ref, dma_sem.at[0])
    cp128 = pltpu.make_async_copy(w128_hbm, w128_ref, dma_sem.at[1])
    cp64.start()
    cp128.start()

    slabs = {16: w16_ref, 32: w32_ref, 64: w64_ref, 128: w128_ref}

    def getw(name, ncols=None):
        width, off, rows = _LAYOUT[name]
        w = slabs[width][off:off + rows, :]
        return w if (ncols is None or ncols == width) else w[:, :ncols]

    n, L, cin0 = x_ref.shape

    def conv7(x, length, w, bias=None, relu=False):
        """'same' Conv1d(k=7, pad=3).  The zero-padded activation is staged in
        a VMEM scratch ref; the 7 tap windows are plain loads; the whole batch
        contracts against the weight in ONE MXU matmul."""
        nl, cin = x.shape
        pad_ref[:, 0:3, 0:cin] = jnp.zeros((n, 3, cin), jnp.float32)
        pad_ref[:, 3 + length:6 + length, 0:cin] = jnp.zeros((n, 3, cin),
                                                             jnp.float32)
        pad_ref[:, 3:3 + length, 0:cin] = x.reshape(n, length, cin)
        cols = jnp.concatenate(
            [pad_ref[:, k:k + length, 0:cin] for k in range(7)], axis=2)
        y = jnp.dot(cols.reshape(nl, 7 * cin), w,
                    preferred_element_type=jnp.float32)
        if bias is not None:
            y = y + bias
        if relu:
            y = jnp.maximum(y, 0.0)
        return y

    def bn(x):
        """Training-mode BatchNorm1d: per-channel stats over (N, L), biased
        variance in one pass, gamma=1 / beta=0 baked in."""
        inv_cnt = 1.0 / x.shape[0]
        mean = jnp.sum(x, axis=0, keepdims=True) * inv_cnt
        var = jnp.sum(x * x, axis=0, keepdims=True) * inv_cnt - mean * mean
        return (x - mean) * jax.lax.rsqrt(var + EPS)

    def conv_block(x, length, w1, w2):
        # Conv(bias=False) -> ReLU -> BN -> Conv(bias=False) -> ReLU -> BN
        x = bn(conv7(x, length, w1, relu=True))
        x = bn(conv7(x, length, w2, relu=True))
        return x

    def pool2(x):
        """MaxPool1d(2, 2) along length: pair rows via reshape, one maximum."""
        nl, c = x.shape
        xr = x.reshape(nl // 2, 2, c)
        return jnp.maximum(xr[:, 0, :], xr[:, 1, :])

    def upsample_cat(x, lx, skip, lskip, w, b):
        """UpSample: 1x1 conv first (commutes with nearest upsampling), then
        nearest x2 via broadcast+reshape, optional F.pad, channel concat."""
        y = jnp.dot(x, w, preferred_element_type=jnp.float32) + b
        nl, c2 = y.shape
        up = jnp.broadcast_to(y[:, None, :], (nl, 2, c2)).reshape(2 * nl, c2)
        if 2 * lx < lskip:                    # F.pad branch (trailing zeros)
            up = jnp.concatenate(
                [up.reshape(n, 2 * lx, c2),
                 jnp.zeros((n, lskip - 2 * lx, c2), jnp.float32)],
                axis=1).reshape(n * lskip, c2)
        assert up.shape[0] == skip.shape[0]
        return jnp.concatenate([up, skip], axis=1)

    x = x_ref[...].reshape(n * L, cin0)                       # (N*L, 3)

    # ----- Encoder -----
    f1 = conv_block(x, L, getw("c1_w1"), getw("c1_w2"))               # (N*L,   16)
    f2 = conv_block(pool2(f1), L // 2, getw("c2_w1"), getw("c2_w2"))  # (N*L/2, 32)
    cp64.wait()     # 64-wide slab (c3 / c5 / u1) now resident in VMEM
    f3 = conv_block(pool2(f2), L // 4, getw("c3_w1"), getw("c3_w2"))  # (N*L/4, 64)
    cp128.wait()    # 128-wide slab (c4) now resident in VMEM
    f4 = conv_block(pool2(f3), L // 8, getw("c4_w1"), getw("c4_w2"))  # (N*L/8, 128)

    # ----- Decoder -----
    o1 = conv_block(
        upsample_cat(f4, L // 8, f3, L // 4, getw("u1_w"), getw("u1_b")),
        L // 4, getw("c5_w1"), getw("c5_w2"))
    o2 = conv_block(
        upsample_cat(o1, L // 4, f2, L // 2, getw("u2_w"), getw("u2_b")),
        L // 2, getw("c6_w1"), getw("c6_w2"))
    o3 = conv_block(
        upsample_cat(o2, L // 2, f1, L, getw("u3_w"), getw("u3_b")),
        L, getw("c7_w1"), getw("c7_w2"))

    # Final conv (eta already folded into weight & bias); squeeze(1) is a no-op.
    out = conv7(o3, L, getw("out_w", 3), bias=getw("out_b", 3))       # (N*L, 3)
    o_ref[...] = out.reshape(n, L, 3)


# --------------------------------------------------------------------------
# Wrapper: NCL (PyTorch) layout at the boundary, channels-last inside.
# --------------------------------------------------------------------------
def _pack_params(params):
    """Fold eta into the final conv and pack all weights/biases into 4 slabs
    grouped by output-channel width (16 / 32 / 64 / 128)."""
    p = dict(params)
    p["out_w"] = params["out_w"] * params["eta"]      # per-channel scale commutes
    p["out_b"] = params["out_b"] * params["eta"]
    parts = {w: [] for w in _SLAB_WIDTHS}
    for name, rows, width in _ENTRIES:
        arr = p[name].astype(jnp.float32)
        assert arr.shape[0] == rows, name
        if arr.shape[1] < width:                      # out_w / out_b: 3 -> 16 lanes
            arr = jnp.pad(arr, ((0, 0), (0, width - arr.shape[1])))
        parts[width].append(arr)
    slabs = {}
    for w in _SLAB_WIDTHS:
        s = jnp.concatenate(parts[w], axis=0)
        slabs[w] = jnp.pad(s, ((0, _SLAB_ROWS[w] - s.shape[0]), (0, 0)))
    return slabs


def unet_forward(params, x_ncl):
    """x_ncl: (N, 3, L) float32 (PyTorch NCL). Returns (N, 3, L) float32."""
    n, cin0, length = x_ncl.shape
    assert cin0 == 3 and length % 8 == 0
    slabs = _pack_params(params)
    x_nlc = jnp.transpose(x_ncl, (0, 2, 1))           # channels on lanes
    vmem = pltpu.MemorySpace.VMEM
    out_nlc = pl.pallas_call(
        _unet_kernel,
        out_shape=jax.ShapeDtypeStruct((n, length, 3), jnp.float32),
        in_specs=[
            pl.BlockSpec(memory_space=vmem),      # x
            pl.BlockSpec(memory_space=vmem),      # 16-wide weight slab
            pl.BlockSpec(memory_space=vmem),      # 32-wide weight slab
            pl.BlockSpec(memory_space=pl.ANY),    # 64-wide slab (manual DMA)
            pl.BlockSpec(memory_space=pl.ANY),    # 128-wide slab (manual DMA)
        ],
        out_specs=pl.BlockSpec(memory_space=vmem),
        scratch_shapes=[
            pltpu.VMEM((n, length + 6, 128), jnp.float32),     # padded activation
            pltpu.VMEM((_SLAB_ROWS[64], 64), jnp.float32),     # 64-wide slab dst
            pltpu.VMEM((_SLAB_ROWS[128], 128), jnp.float32),   # 128-wide slab dst
            pltpu.SemaphoreType.DMA((2,)),
        ],
        compiler_params=pltpu.CompilerParams(vmem_limit_bytes=32 * 1024 * 1024),
    )(x_nlc, slabs[16], slabs[32], slabs[64], slabs[128])
    return jnp.transpose(out_nlc, (0, 2, 1))          # back to NCL


# --------------------------------------------------------------------------
# Parameters (deterministic synthetic init, already in the kernel's layout).
# --------------------------------------------------------------------------
def init_params(key):
    keys = iter(jax.random.split(key, 64))

    def w7(cin, cout):  # k=7 conv weight -> (7*Cin, Cout), tap-major rows
        fan_in = cin * 7
        w = jax.random.normal(next(keys), (7, cin, cout), jnp.float32)
        return (w / jnp.sqrt(jnp.float32(fan_in))).reshape(7 * cin, cout)

    def w1(cin, cout):  # k=1 conv weight -> (Cin, Cout)
        return (jax.random.normal(next(keys), (cin, cout), jnp.float32)
                / jnp.sqrt(jnp.float32(cin)))

    def bias(cout):
        return jax.random.normal(next(keys), (1, cout), jnp.float32) * 0.05

    p = {}
    for name, cin, cout in _CH:
        p[name + "_w1"] = w7(cin, cout)
        p[name + "_w2"] = w7(cout, cout)
    for name, ch in (("u1", 128), ("u2", 64), ("u3", 32)):
        p[name + "_w"] = w1(ch, ch // 2)
        p[name + "_b"] = bias(ch // 2)
    p["out_w"] = w7(16, 3)
    p["out_b"] = bias(3)
    p["eta"] = jnp.full((1, 3), 0.01, jnp.float32)
    # TODO(synk): nn.Linear(400, 400) is unused in UNetWithAll.forward() and is
    # intentionally not implemented.
    return p


# --------------------------------------------------------------------------
if __name__ == "__main__":
    key = jax.random.PRNGKey(0)
    kx, kp = jax.random.split(key)
    params = init_params(kp)
    x1 = jax.random.normal(kx, (2, 3, 16), jnp.float32)

    out = jax.jit(unet_forward)(params, x1)
    jax.block_until_ready(out)

    assert out.shape == (2, 3, 16), out.shape
    assert out.dtype == jnp.float32
    assert bool(jnp.all(jnp.isfinite(out)))
    print("KERNEL_OK")
</pallas_src>

<mosaic_0001>
module attributes {stable_mosaic.version = 11 : i64} {
  func.func @_unet_kernel(%arg0: memref<2x16x3xf32, #tpu.memory_space<vmem>>, %arg1: memref<616x16xf32, #tpu.memory_space<vmem>>, %arg2: memref<1080x32xf32, #tpu.memory_space<vmem>>, %arg3: memref<2152x64xf32, #tpu.memory_space<any>>, %arg4: memref<1344x128xf32, #tpu.memory_space<any>>, %arg5: memref<2x16x3xf32, #tpu.memory_space<vmem>>, %arg6: memref<2x22x128xf32, #tpu.memory_space<vmem>>, %arg7: memref<2152x64xf32, #tpu.memory_space<vmem>>, %arg8: memref<1344x128xf32, #tpu.memory_space<vmem>>, %arg9: memref<2x!tpu.dma_semaphore, #tpu.memory_space<semaphore_mem>>) attributes {dimension_semantics = [], scalar_prefetch = 0 : i64, scratch_operands = 4 : i64, tpu.core_type = #tpu.core_type<tc>} {
    %c0_i32 = arith.constant 0 : i32
    %0 = tpu.memref_slice %arg9[%c0_i32] : memref<2x!tpu.dma_semaphore, #tpu.memory_space<semaphore_mem>> -> memref<1x!tpu.dma_semaphore, #tpu.memory_space<semaphore_mem>>
    %1 = tpu.memref_squeeze %0 : memref<1x!tpu.dma_semaphore, #tpu.memory_space<semaphore_mem>> -> memref<!tpu.dma_semaphore, #tpu.memory_space<semaphore_mem>>
    tpu.enqueue_dma source(%arg3 : memref<2152x64xf32, #tpu.memory_space<any>>) target(%arg7 : memref<2152x64xf32, #tpu.memory_space<vmem>>) target_semaphore(%1 : memref<!tpu.dma_semaphore, #tpu.memory_space<semaphore_mem>>)
    %c1_i32 = arith.constant 1 : i32
    %2 = tpu.memref_slice %arg9[%c1_i32] : memref<2x!tpu.dma_semaphore, #tpu.memory_space<semaphore_mem>> -> memref<1x!tpu.dma_semaphore, #tpu.memory_space<semaphore_mem>>
    %3 = tpu.memref_squeeze %2 : memref<1x!tpu.dma_semaphore, #tpu.memory_space<semaphore_mem>> -> memref<!tpu.dma_semaphore, #tpu.memory_space<semaphore_mem>>
    tpu.enqueue_dma source(%arg4 : memref<1344x128xf32, #tpu.memory_space<any>>) target(%arg8 : memref<1344x128xf32, #tpu.memory_space<vmem>>) target_semaphore(%3 : memref<!tpu.dma_semaphore, #tpu.memory_space<semaphore_mem>>)
    %c0 = arith.constant 0 : index
    %c0_0 = arith.constant 0 : index
    %c0_1 = arith.constant 0 : index
    %4 = vector.load %arg0[%c0, %c0_0, %c0_1] : memref<2x16x3xf32, #tpu.memory_space<vmem>>, vector<2x16x3xf32>
    %5 = vector.shape_cast %4 : vector<2x16x3xf32> to vector<32x3xf32>
    %c0_2 = arith.constant 0 : index
    %c0_3 = arith.constant 0 : index
    %6 = vector.load %arg1[%c0_2, %c0_3] : memref<616x16xf32, #tpu.memory_space<vmem>>, vector<21x16xf32>
    %c21 = arith.constant 21 : index
    %c0_4 = arith.constant 0 : index
    %7 = vector.load %arg1[%c21, %c0_4] : memref<616x16xf32, #tpu.memory_space<vmem>>, vector<112x16xf32>
    %cst = arith.constant 0.000000e+00 : f32
    %8 = vector.broadcast %cst : f32 to vector<2x3x3xf32>
    %c0_5 = arith.constant 0 : index
    %c0_6 = arith.constant 0 : index
    %c0_7 = arith.constant 0 : index
    %9 = vector.load %arg6[%c0_5, %c0_6, %c0_7] : memref<2x22x128xf32, #tpu.memory_space<vmem>>, vector<2x3x3xf32>
    tpu.vector_store %arg6[%c0_5, %c0_6, %c0_7], %8 {strides = array<i32>} : memref<2x22x128xf32, #tpu.memory_space<vmem>>, vector<2x3x3xf32>,
    %cst_8 = arith.constant 0.000000e+00 : f32
    %10 = vector.broadcast %cst_8 : f32 to vector<2x3x3xf32>
    %c0_9 = arith.constant 0 : index
    %c19 = arith.constant 19 : index
    %c0_10 = arith.constant 0 : index
    %11 = vector.load %arg6[%c0_9, %c19, %c0_10] : memref<2x22x128xf32, #tpu.memory_space<vmem>>, vector<2x3x3xf32>
    tpu.vector_store %arg6[%c0_9, %c19, %c0_10], %10 {strides = array<i32>} : memref<2x22x128xf32, #tpu.memory_space<vmem>>, vector<2x3x3xf32>,
    %12 = vector.shape_cast %5 : vector<32x3xf32> to vector<2x16x3xf32>
    %c0_11 = arith.constant 0 : index
    %c3 = arith.constant 3 : index
    %c0_12 = arith.constant 0 : index
    %13 = vector.load %arg6[%c0_11, %c3, %c0_12] : memref<2x22x128xf32, #tpu.memory_space<vmem>>, vector<2x16x3xf32>
    tpu.vector_store %arg6[%c0_11, %c3, %c0_12], %12 {strides = array<i32>} : memref<2x22x128xf32, #tpu.memory_space<vmem>>, vector<2x16x3xf32>,
    %c0_13 = arith.constant 0 : index
    %c0_14 = arith.constant 0 : index
    %c0_15 = arith.constant 0 : index
    %14 = vector.load %arg6[%c0_13, %c0_14, %c0_15] : memref<2x22x128xf32, #tpu.memory_space<vmem>>, vector<2x16x3xf32>
    %c0_16 = arith.constant 0 : index
    %c1 = arith.constant 1 : index
    %c0_17 = arith.constant 0 : index
    %15 = vector.load %arg6[%c0_16, %c1, %c0_17] : memref<2x22x128xf32, #tpu.memory_space<vmem>>, vector<2x16x3xf32>
    %c0_18 = arith.constant 0 : index
    %c2 = arith.constant 2 : index
    %c0_19 = arith.constant 0 : index
    %16 = vector.load %arg6[%c0_18, %c2, %c0_19] : memref<2x22x128xf32, #tpu.memory_space<vmem>>, vector<2x16x3xf32>
    %c0_20 = arith.constant 0 : index
    %c3_21 = arith.constant 3 : index
    %c0_22 = arith.constant 0 : index
    %17 = vector.load %arg6[%c0_20, %c3_21, %c0_22] : memref<2x22x128xf32, #tpu.memory_space<vmem>>, vector<2x16x3xf32>
    %c0_23 = arith.constant 0 : index
    %c4 = arith.constant 4 : index
    %c0_24 = arith.constant 0 : index
    %18 = vector.load %arg6[%c0_23, %c4, %c0_24] : memref<2x22x128xf32, #tpu.memory_space<vmem>>, vector<2x16x3xf32>
    %c0_25 = arith.constant 0 : index
    %c5 = arith.constant 5 : index
    %c0_26 = arith.constant 0 : index
    %19 = vector.load %arg6[%c0_25, %c5, %c0_26] : memref<2x22x128xf32, #tpu.memory_space<vmem>>, vector<2x16x3xf32>
    %c0_27 = arith.constant 0 : index
    %c6 = arith.constant 6 : index
    %c0_28 = arith.constant 0 : index
    %20 = vector.load %arg6[%c0_27, %c6, %c0_28] : memref<2x22x128xf32, #tpu.memory_space<vmem>>, vector<2x16x3xf32>
    %21 = tpu.concatenate %14, %15, %16, %17, %18, %19, %20 in 2 : vector<2x16x3xf32>, vector<2x16x3xf32>, vector<2x16x3xf32>, vector<2x16x3xf32>, vector<2x16x3xf32>, vector<2x16x3xf32>, vector<2x16x3xf32> -> vector<2x16x21xf32>
    %22 = vector.shape_cast %21 : vector<2x16x21xf32> to vector<32x21xf32>
    %cst_29 = arith.constant dense<0.000000e+00> : vector<32x16xf32>
    %23 = tpu.matmul %22, %6, %cst_29 {dimension_numbers = #tpu.dot_dimension_numbers<[1], [0], [0], [1], [0, 0, 1, 1], [], []>} : vector<32x21xf32>, vector<21x16xf32>, vector<32x16xf32> -> vector<32x16xf32>
    %cst_30 = arith.constant 0.000000e+00 : f32
    %24 = vector.broadcast %cst_30 : f32 to vector<32x16xf32>
    %25 = arith.maximumf %23, %24 : vector<32x16xf32>
    %cst_31 = arith.constant dense<0.000000e+00> : vector<16xf32>
    %26 = vector.multi_reduction <add>, %25, %cst_31 [0] : vector<32x16xf32> to vector<16xf32>
    %27 = vector.shape_cast %26 : vector<16xf32> to vector<1x16xf32>
    %cst_32 = arith.constant 3.125000e-02 : f32
    %28 = vector.broadcast %cst_32 : f32 to vector<1x16xf32>
    %29 = arith.mulf %27, %28 : vector<1x16xf32>
    %30 = arith.mulf %25, %25 : vector<32x16xf32>
    %cst_33 = arith.constant dense<0.000000e+00> : vector<16xf32>
    %31 = vector.multi_reduction <add>, %30, %cst_33 [0] : vector<32x16xf32> to vector<16xf32>
    %32 = vector.shape_cast %31 : vector<16xf32> to vector<1x16xf32>
    %cst_34 = arith.constant 3.125000e-02 : f32
    %33 = vector.broadcast %cst_34 : f32 to vector<1x16xf32>
    %34 = arith.mulf %32, %33 : vector<1x16xf32>
    %35 = arith.mulf %29, %29 : vector<1x16xf32>
    %36 = arith.subf %34, %35 : vector<1x16xf32>
    %37 = vector.broadcast %29 : vector<1x16xf32> to vector<32x16xf32>
    %38 = arith.subf %25, %37 : vector<32x16xf32>
    %cst_35 = arith.constant 9.99999974E-6 : f32
    %39 = vector.broadcast %cst_35 : f32 to vector<1x16xf32>
    %40 = arith.addf %36, %39 : vector<1x16xf32>
    %41 = math.rsqrt %40 : vector<1x16xf32>
    %42 = vector.broadcast %41 : vector<1x16xf32> to vector<32x16xf32>
    %43 = arith.mulf %38, %42 : vector<32x16xf32>
    %cst_36 = arith.constant 0.000000e+00 : f32
    %44 = vector.broadcast %cst_36 : f32 to vector<2x3x16xf32>
    %c0_37 = arith.constant 0 : index
    %c0_38 = arith.constant 0 : index
    %c0_39 = arith.constant 0 : index
    %45 = vector.load %arg6[%c0_37, %c0_38, %c0_39] : memref<2x22x128xf32, #tpu.memory_space<vmem>>, vector<2x3x16xf32>
    tpu.vector_store %arg6[%c0_37, %c0_38, %c0_39], %44 {strides = array<i32>} : memref<2x22x128xf32, #tpu.memory_space<vmem>>, vector<2x3x16xf32>,
    %cst_40 = arith.constant 0.000000e+00 : f32
    %46 = vector.broadcast %cst_40 : f32 to vector<2x3x16xf32>
    %c0_41 = arith.constant 0 : index
    %c19_42 = arith.constant 19 : index
    %c0_43 = arith.constant 0 : index
    %47 = vector.load %arg6[%c0_41, %c19_42, %c0_43] : memref<2x22x128xf32, #tpu.memory_space<vmem>>, vector<2x3x16xf32>
    tpu.vector_store %arg6[%c0_41, %c19_42, %c0_43], %46 {strides = array<i32>} : memref<2x22x128xf32, #tpu.memory_space<vmem>>, vector<2x3x16xf32>,
    %48 = vector.shape_cast %43 : vector<32x16xf32> to vector<2x16x16xf32>
    %c0_44 = arith.constant 0 : index
    %c3_45 = arith.constant 3 : index
    %c0_46 = arith.constant 0 : index
    %49 = vector.load %arg6[%c0_44, %c3_45, %c0_46] : memref<2x22x128xf32, #tpu.memory_space<vmem>>, vector<2x16x16xf32>
    tpu.vector_store %arg6[%c0_44, %c3_45, %c0_46], %48 {strides = array<i32>} : memref<2x22x128xf32, #tpu.memory_space<vmem>>, vector<2x16x16xf32>,
    %c0_47 = arith.constant 0 : index
    %c0_48 = arith.constant 0 : index
    %c0_49 = arith.constant 0 : index
    %50 = vector.load %arg6[%c0_47, %c0_48, %c0_49] : memref<2x22x128xf32, #tpu.memory_space<vmem>>, vector<2x16x16xf32>
    %c0_50 = arith.constant 0 : index
    %c1_51 = arith.constant 1 : index
    %c0_52 = arith.constant 0 : index
    %51 = vector.load %arg6[%c0_50, %c1_51, %c0_52] : memref<2x22x128xf32, #tpu.memory_space<vmem>>, vector<2x16x16xf32>
    %c0_53 = arith.constant 0 : index
    %c2_54 = arith.constant 2 : index
    %c0_55 = arith.constant 0 : index
    %52 = vector.load %arg6[%c0_53, %c2_54, %c0_55] : memref<2x22x128xf32, #tpu.memory_space<vmem>>, vector<2x16x16xf32>
    %c0_56 = arith.constant 0 : index
    %c3_57 = arith.constant 3 : index
    %c0_58 = arith.constant 0 : index
    %53 = vector.load %arg6[%c0_56, %c3_57, %c0_58] : memref<2x22x128xf32, #tpu.memory_space<vmem>>, vector<2x16x16xf32>
    %c0_59 = arith.constant 0 : index
    %c4_60 = arith.constant 4 : index
    %c0_61 = arith.constant 0 : index
    %54 = vector.load %arg6[%c0_59, %c4_60, %c0_61] : memref<2x22x128xf32, #tpu.memory_space<vmem>>, vector<2x16x16xf32>
    %c0_62 = arith.constant 0 : index
    %c5_63 = arith.constant 5 : index
    %c0_64 = arith.constant 0 : index
    %55 = vector.load %arg6[%c0_62, %c5_63, %c0_64] : memref<2x22x128xf32, #tpu.memory_space<vmem>>, vector<2x16x16xf32>
    %c0_65 = arith.constant 0 : index
    %c6_66 = arith.constant 6 : index
    %c0_67 = arith.constant 0 : index
    %56 = vector.load %arg6[%c0_65, %c6_66, %c0_67] : memref<2x22x128xf32, #tpu.memory_space<vmem>>, vector<2x16x16xf32>
    %57 = tpu.concatenate %50, %51, %52, %53, %54, %55, %56 in 2 : vector<2x16x16xf32>, vector<2x16x16xf32>, vector<2x16x16xf32>, vector<2x16x16xf32>, vector<2x16x16xf32>, vector<2x16x16xf32>, vector<2x16x16xf32> -> vector<2x16x112xf32>
    %58 = vector.shape_cast %57 : vector<2x16x112xf32> to vector<32x112xf32>
    %cst_68 = arith.constant dense<0.000000e+00> : vector<32x16xf32>
    %59 = tpu.matmul %58, %7, %cst_68 {dimension_numbers = #tpu.dot_dimension_numbers<[1], [0], [0], [1], [0, 0, 1, 1], [], []>} : vector<32x112xf32>, vector<112x16xf32>, vector<32x16xf32> -> vector<32x16xf32>
    %cst_69 = arith.constant 0.000000e+00 : f32
    %60 = vector.broadcast %cst_69 : f32 to vector<32x16xf32>
    %61 = arith.maximumf %59, %60 : vector<32x16xf32>
    %cst_70 = arith.constant dense<0.000000e+00> : vector<16xf32>
    %62 = vector.multi_reduction <add>, %61, %cst_70 [0] : vector<32x16xf32> to vector<16xf32>
    %63 = vector.shape_cast %62 : vector<16xf32> to vector<1x16xf32>
    %cst_71 = arith.constant 3.125000e-02 : f32
    %64 = vector.broadcast %cst_71 : f32 to vector<1x16xf32>
    %65 = arith.mulf %63, %64 : vector<1x16xf32>
    %66 = arith.mulf %61, %61 : vector<32x16xf32>
    %cst_72 = arith.constant dense<0.000000e+00> : vector<16xf32>
    %67 = vector.multi_reduction <add>, %66, %cst_72 [0] : vector<32x16xf32> to vector<16xf32>
    %68 = vector.shape_cast %67 : vector<16xf32> to vector<1x16xf32>
    %cst_73 = arith.constant 3.125000e-02 : f32
    %69 = vector.broadcast %cst_73 : f32 to vector<1x16xf32>
    %70 = arith.mulf %68, %69 : vector<1x16xf32>
    %71 = arith.mulf %65, %65 : vector<1x16xf32>
    %72 = arith.subf %70, %71 : vector<1x16xf32>
    %73 = vector.broadcast %65 : vector<1x16xf32> to vector<32x16xf32>
    %74 = arith.subf %61, %73 : vector<32x16xf32>
    %cst_74 = arith.constant 9.99999974E-6 : f32
    %75 = vector.broadcast %cst_74 : f32 to vector<1x16xf32>
    %76 = arith.addf %72, %75 : vector<1x16xf32>
    %77 = math.rsqrt %76 : vector<1x16xf32>
    %78 = vector.broadcast %77 : vector<1x16xf32> to vector<32x16xf32>
    %79 = arith.mulf %74, %78 : vector<32x16xf32>
    %80 = vector.shape_cast %79 : vector<32x16xf32> to vector<16x2x16xf32>
    %81 = vector.extract_strided_slice %80 {offsets = [0, 0, 0], sizes = [16, 1, 16], strides = [1, 1, 1]} : vector<16x2x16xf32> to vector<16x1x16xf32>
    %82 = vector.shape_cast %81 : vector<16x1x16xf32> to vector<16x16xf32>
    %83 = vector.extract_strided_slice %80 {offsets = [0, 1, 0], sizes = [16, 1, 16], strides = [1, 1, 1]} : vector<16x2x16xf32> to vector<16x1x16xf32>
    %84 = vector.shape_cast %83 : vector<16x1x16xf32> to vector<16x16xf32>
    %85 = arith.maximumf %82, %84 : vector<16x16xf32>
    %c0_75 = arith.constant 0 : index
    %c0_76 = arith.constant 0 : index
    %86 = vector.load %arg2[%c0_75, %c0_76] : memref<1080x32xf32, #tpu.memory_space<vmem>>, vector<112x32xf32>
    %c112 = arith.constant 112 : index
    %c0_77 = arith.constant 0 : index
    %87 = vector.load %arg2[%c112, %c0_77] : memref<1080x32xf32, #tpu.memory_space<vmem>>, vector<224x32xf32>
    %cst_78 = arith.constant 0.000000e+00 : f32
    %88 = vector.broadcast %cst_78 : f32 to vector<2x3x16xf32>
    %c0_79 = arith.constant 0 : index
    %c0_80 = arith.constant 0 : index
    %c0_81 = arith.constant 0 : index
    %89 = vector.load %arg6[%c0_79, %c0_80, %c0_81] : memref<2x22x128xf32, #tpu.memory_space<vmem>>, vector<2x3x16xf32>
    tpu.vector_store %arg6[%c0_79, %c0_80, %c0_81], %88 {strides = array<i32>} : memref<2x22x128xf32, #tpu.memory_space<vmem>>, vector<2x3x16xf32>,
    %cst_82 = arith.constant 0.000000e+00 : f32
    %90 = vector.broadcast %cst_82 : f32 to vector<2x3x16xf32>
    %c0_83 = arith.constant 0 : index
    %c11 = arith.constant 11 : index
    %c0_84 = arith.constant 0 : index
    %91 = vector.load %arg6[%c0_83, %c11, %c0_84] : memref<2x22x128xf32, #tpu.memory_space<vmem>>, vector<2x3x16xf32>
    tpu.vector_store %arg6[%c0_83, %c11, %c0_84], %90 {strides = array<i32>} : memref<2x22x128xf32, #tpu.memory_space<vmem>>, vector<2x3x16xf32>,
    %92 = vector.shape_cast %85 : vector<16x16xf32> to vector<2x8x16xf32>
    %c0_85 = arith.constant 0 : index
    %c3_86 = arith.constant 3 : index
    %c0_87 = arith.constant 0 : index
    %93 = vector.load %arg6[%c0_85, %c3_86, %c0_87] : memref<2x22x128xf32, #tpu.memory_space<vmem>>, vector<2x8x16xf32>
    tpu.vector_store %arg6[%c0_85, %c3_86, %c0_87], %92 {strides = array<i32>} : memref<2x22x128xf32, #tpu.memory_space<vmem>>, vector<2x8x16xf32>,
    %c0_88 = arith.constant 0 : index
    %c0_89 = arith.constant 0 : index
    %c0_90 = arith.constant 0 : index
    %94 = vector.load %arg6[%c0_88, %c0_89, %c0_90] : memref<2x22x128xf32, #tpu.memory_space<vmem>>, vector<2x8x16xf32>
    %c0_91 = arith.constant 0 : index
    %c1_92 = arith.constant 1 : index
    %c0_93 = arith.constant 0 : index
    %95 = vector.load %arg6[%c0_91, %c1_92, %c0_93] : memref<2x22x128xf32, #tpu.memory_space<vmem>>, vector<2x8x16xf32>
    %c0_94 = arith.constant 0 : index
    %c2_95 = arith.constant 2 : index
    %c0_96 = arith.constant 0 : index
    %96 = vector.load %arg6[%c0_94, %c2_95, %c0_96] : memref<2x22x128xf32, #tpu.memory_space<vmem>>, vector<2x8x16xf32>
    %c0_97 = arith.constant 0 : index
    %c3_98 = arith.constant 3 : index
    %c0_99 = arith.constant 0 : index
    %97 = vector.load %arg6[%c0_97, %c3_98, %c0_99] : memref<2x22x128xf32, #tpu.memory_space<vmem>>, vector<2x8x16xf32>
    %c0_100 = arith.constant 0 : index
    %c4_101 = arith.constant 4 : index
    %c0_102 = arith.constant 0 : index
    %98 = vector.load %arg6[%c0_100, %c4_101, %c0_102] : memref<2x22x128xf32, #tpu.memory_space<vmem>>, vector<2x8x16xf32>
    %c0_103 = arith.constant 0 : index
    %c5_104 = arith.constant 5 : index
    %c0_105 = arith.constant 0 : index
    %99 = vector.load %arg6[%c0_103, %c5_104, %c0_105] : memref<2x22x128xf32, #tpu.memory_space<vmem>>, vector<2x8x16xf32>
    %c0_106 = arith.constant 0 : index
    %c6_107 = arith.constant 6 : index
    %c0_108 = arith.constant 0 : index
    %100 = vector.load %arg6[%c0_106, %c6_107, %c0_108] : memref<2x22x128xf32, #tpu.memory_space<vmem>>, vector<2x8x16xf32>
    %101 = tpu.concatenate %94, %95, %96, %97, %98, %99, %100 in 2 : vector<2x8x16xf32>, vector<2x8x16xf32>, vector<2x8x16xf32>, vector<2x8x16xf32>, vector<2x8x16xf32>, vector<2x8x16xf32>, vector<2x8x16xf32> -> vector<2x8x112xf32>
    %102 = vector.shape_cast %101 : vector<2x8x112xf32> to vector<16x112xf32>
    %cst_109 = arith.constant dense<0.000000e+00> : vector<16x32xf32>
    %103 = tpu.matmul %102, %86, %cst_109 {dimension_numbers = #tpu.dot_dimension_numbers<[1], [0], [0], [1], [0, 0, 1, 1], [], []>} : vector<16x112xf32>, vector<112x32xf32>, vector<16x32xf32> -> vector<16x32xf32>
    %cst_110 = arith.constant 0.000000e+00 : f32
    %104 = vector.broadcast %cst_110 : f32 to vector<16x32xf32>
    %105 = arith.maximumf %103, %104 : vector<16x32xf32>
    %cst_111 = arith.constant dense<0.000000e+00> : vector<32xf32>
    %106 = vector.multi_reduction <add>, %105, %cst_111 [0] : vector<16x32xf32> to vector<32xf32>
    %107 = vector.shape_cast %106 : vector<32xf32> to vector<1x32xf32>
    %cst_112 = arith.constant 6.250000e-02 : f32
    %108 = vector.broadcast %cst_112 : f32 to vector<1x32xf32>
    %109 = arith.mulf %107, %108 : vector<1x32xf32>
    %110 = arith.mulf %105, %105 : vector<16x32xf32>
    %cst_113 = arith.constant dense<0.000000e+00> : vector<32xf32>
    %111 = vector.multi_reduction <add>, %110, %cst_113 [0] : vector<16x32xf32> to vector<32xf32>
    %112 = vector.shape_cast %111 : vector<32xf32> to vector<1x32xf32>
    %cst_114 = arith.constant 6.250000e-02 : f32
    %113 = vector.broadcast %cst_114 : f32 to vector<1x32xf32>
    %114 = arith.mulf %112, %113 : vector<1x32xf32>
    %115 = arith.mulf %109, %109 : vector<1x32xf32>
    %116 = arith.subf %114, %115 : vector<1x32xf32>
    %117 = vector.broadcast %109 : vector<1x32xf32> to vector<16x32xf32>
    %118 = arith.subf %105, %117 : vector<16x32xf32>
    %cst_115 = arith.constant 9.99999974E-6 : f32
    %119 = vector.broadcast %cst_115 : f32 to vector<1x32xf32>
    %120 = arith.addf %116, %119 : vector<1x32xf32>
    %121 = math.rsqrt %120 : vector<1x32xf32>
    %122 = vector.broadcast %121 : vector<1x32xf32> to vector<16x32xf32>
    %123 = arith.mulf %118, %122 : vector<16x32xf32>
    %cst_116 = arith.constant 0.000000e+00 : f32
    %124 = vector.broadcast %cst_116 : f32 to vector<2x3x32xf32>
    %c0_117 = arith.constant 0 : index
    %c0_118 = arith.constant 0 : index
    %c0_119 = arith.constant 0 : index
    %125 = vector.load %arg6[%c0_117, %c0_118, %c0_119] : memref<2x22x128xf32, #tpu.memory_space<vmem>>, vector<2x3x32xf32>
    tpu.vector_store %arg6[%c0_117, %c0_118, %c0_119], %124 {strides = array<i32>} : memref<2x22x128xf32, #tpu.memory_space<vmem>>, vector<2x3x32xf32>,
    %cst_120 = arith.constant 0.000000e+00 : f32
    %126 = vector.broadcast %cst_120 : f32 to vector<2x3x32xf32>
    %c0_121 = arith.constant 0 : index
    %c11_122 = arith.constant 11 : index
    %c0_123 = arith.constant 0 : index
    %127 = vector.load %arg6[%c0_121, %c11_122, %c0_123] : memref<2x22x128xf32, #tpu.memory_space<vmem>>, vector<2x3x32xf32>
    tpu.vector_store %arg6[%c0_121, %c11_122, %c0_123], %126 {strides = array<i32>} : memref<2x22x128xf32, #tpu.memory_space<vmem>>, vector<2x3x32xf32>,
    %128 = vector.shape_cast %123 : vector<16x32xf32> to vector<2x8x32xf32>
    %c0_124 = arith.constant 0 : index
    %c3_125 = arith.constant 3 : index
    %c0_126 = arith.constant 0 : index
    %129 = vector.load %arg6[%c0_124, %c3_125, %c0_126] : memref<2x22x128xf32, #tpu.memory_space<vmem>>, vector<2x8x32xf32>
    tpu.vector_store %arg6[%c0_124, %c3_125, %c0_126], %128 {strides = array<i32>} : memref<2x22x128xf32, #tpu.memory_space<vmem>>, vector<2x8x32xf32>,
    %c0_127 = arith.constant 0 : index
    %c0_128 = arith.constant 0 : index
    %c0_129 = arith.constant 0 : index
    %130 = vector.load %arg6[%c0_127, %c0_128, %c0_129] : memref<2x22x128xf32, #tpu.memory_space<vmem>>, vector<2x8x32xf32>
    %c0_130 = arith.constant 0 : index
    %c1_131 = arith.constant 1 : index
    %c0_132 = arith.constant 0 : index
    %131 = vector.load %arg6[%c0_130, %c1_131, %c0_132] : memref<2x22x128xf32, #tpu.memory_space<vmem>>, vector<2x8x32xf32>
    %c0_133 = arith.constant 0 : index
    %c2_134 = arith.constant 2 : index
    %c0_135 = arith.constant 0 : index
    %132 = vector.load %arg6[%c0_133, %c2_134, %c0_135] : memref<2x22x128xf32, #tpu.memory_space<vmem>>, vector<2x8x32xf32>
    %c0_136 = arith.constant 0 : index
    %c3_137 = arith.constant 3 : index
    %c0_138 = arith.constant 0 : index
    %133 = vector.load %arg6[%c0_136, %c3_137, %c0_138] : memref<2x22x128xf32, #tpu.memory_space<vmem>>, vector<2x8x32xf32>
    %c0_139 = arith.constant 0 : index
    %c4_140 = arith.constant 4 : index
    %c0_141 = arith.constant 0 : index
    %134 = vector.load %arg6[%c0_139, %c4_140, %c0_141] : memref<2x22x128xf32, #tpu.memory_space<vmem>>, vector<2x8x32xf32>
    %c0_142 = arith.constant 0 : index
    %c5_143 = arith.constant 5 : index
    %c0_144 = arith.constant 0 : index
    %135 = vector.load %arg6[%c0_142, %c5_143, %c0_144] : memref<2x22x128xf32, #tpu.memory_space<vmem>>, vector<2x8x32xf32>
    %c0_145 = arith.constant 0 : index
    %c6_146 = arith.constant 6 : index
    %c0_147 = arith.constant 0 : index
    %136 = vector.load %arg6[%c0_145, %c6_146, %c0_147] : memref<2x22x128xf32, #tpu.memory_space<vmem>>, vector<2x8x32xf32>
    %137 = tpu.concatenate %130, %131, %132, %133, %134, %135, %136 in 2 : vector<2x8x32xf32>, vector<2x8x32xf32>, vector<2x8x32xf32>, vector<2x8x32xf32>, vector<2x8x32xf32>, vector<2x8x32xf32>, vector<2x8x32xf32> -> vector<2x8x224xf32>
    %138 = vector.shape_cast %137 : vector<2x8x224xf32> to vector<16x224xf32>
    %cst_148 = arith.constant dense<0.000000e+00> : vector<16x32xf32>
    %139 = tpu.matmul %138, %87, %cst_148 {dimension_numbers = #tpu.dot_dimension_numbers<[1], [0], [0], [1], [0, 0, 1, 1], [], []>} : vector<16x224xf32>, vector<224x32xf32>, vector<16x32xf32> -> vector<16x32xf32>
    %cst_149 = arith.constant 0.000000e+00 : f32
    %140 = vector.broadcast %cst_149 : f32 to vector<16x32xf32>
    %141 = arith.maximumf %139, %140 : vector<16x32xf32>
    %cst_150 = arith.constant dense<0.000000e+00> : vector<32xf32>
    %142 = vector.multi_reduction <add>, %141, %cst_150 [0] : vector<16x32xf32> to vector<32xf32>
    %143 = vector.shape_cast %142 : vector<32xf32> to vector<1x32xf32>
    %cst_151 = arith.constant 6.250000e-02 : f32
    %144 = vector.broadcast %cst_151 : f32 to vector<1x32xf32>
    %145 = arith.mulf %143, %144 : vector<1x32xf32>
    %146 = arith.mulf %141, %141 : vector<16x32xf32>
    %cst_152 = arith.constant dense<0.000000e+00> : vector<32xf32>
    %147 = vector.multi_reduction <add>, %146, %cst_152 [0] : vector<16x32xf32> to vector<32xf32>
    %148 = vector.shape_cast %147 : vector<32xf32> to vector<1x32xf32>
    %cst_153 = arith.constant 6.250000e-02 : f32
    %149 = vector.broadcast %cst_153 : f32 to vector<1x32xf32>
    %150 = arith.mulf %148, %149 : vector<1x32xf32>
    %151 = arith.mulf %145, %145 : vector<1x32xf32>
    %152 = arith.subf %150, %151 : vector<1x32xf32>
    %153 = vector.broadcast %145 : vector<1x32xf32> to vector<16x32xf32>
    %154 = arith.subf %141, %153 : vector<16x32xf32>
    %cst_154 = arith.constant 9.99999974E-6 : f32
    %155 = vector.broadcast %cst_154 : f32 to vector<1x32xf32>
    %156 = arith.addf %152, %155 : vector<1x32xf32>
    %157 = math.rsqrt %156 : vector<1x32xf32>
    %158 = vector.broadcast %157 : vector<1x32xf32> to vector<16x32xf32>
    %159 = arith.mulf %154, %158 : vector<16x32xf32>
    %c0_i32_155 = arith.constant 0 : i32
    %160 = tpu.memref_slice %arg9[%c0_i32_155] : memref<2x!tpu.dma_semaphore, #tpu.memory_space<semaphore_mem>> -> memref<1x!tpu.dma_semaphore, #tpu.memory_space<semaphore_mem>>
    %161 = tpu.memref_squeeze %160 : memref<1x!tpu.dma_semaphore, #tpu.memory_space<semaphore_mem>> -> memref<!tpu.dma_semaphore, #tpu.memory_space<semaphore_mem>>
    tpu.wait_dma2 semaphore(%161 : memref<!tpu.dma_semaphore, #tpu.memory_space<semaphore_mem>>) src(%arg3 : memref<2152x64xf32, #tpu.memory_space<any>>) dst(%arg7 : memref<2152x64xf32, #tpu.memory_space<vmem>>)
    %162 = vector.shape_cast %159 : vector<16x32xf32> to vector<8x2x32xf32>
    %163 = vector.extract_strided_slice %162 {offsets = [0, 0, 0], sizes = [8, 1, 32], strides = [1, 1, 1]} : vector<8x2x32xf32> to vector<8x1x32xf32>
    %164 = vector.shape_cast %163 : vector<8x1x32xf32> to vector<8x32xf32>
    %165 = vector.extract_strided_slice %162 {offsets = [0, 1, 0], sizes = [8, 1, 32], strides = [1, 1, 1]} : vector<8x2x32xf32> to vector<8x1x32xf32>
    %166 = vector.shape_cast %165 : vector<8x1x32xf32> to vector<8x32xf32>
    %167 = arith.maximumf %164, %166 : vector<8x32xf32>
    %c0_156 = arith.constant 0 : index
    %c0_157 = arith.constant 0 : index
    %168 = vector.load %arg7[%c0_156, %c0_157] : memref<2152x64xf32, #tpu.memory_space<vmem>>, vector<224x64xf32>
    %c224 = arith.constant 224 : index
    %c0_158 = arith.constant 0 : index
    %169 = vector.load %arg7[%c224, %c0_158] : memref<2152x64xf32, #tpu.memory_space<vmem>>, vector<448x64xf32>
    %cst_159 = arith.constant 0.000000e+00 : f32
    %170 = vector.broadcast %cst_159 : f32 to vector<2x3x32xf32>
    %c0_160 = arith.constant 0 : index
    %c0_161 = arith.constant 0 : index
    %c0_162 = arith.constant 0 : index
    %171 = vector.load %arg6[%c0_160, %c0_161, %c0_162] : memref<2x22x128xf32, #tpu.memory_space<vmem>>, vector<2x3x32xf32>
    tpu.vector_store %arg6[%c0_160, %c0_161, %c0_162], %170 {strides = array<i32>} : memref<2x22x128xf32, #tpu.memory_space<vmem>>, vector<2x3x32xf32>,
    %cst_163 = arith.constant 0.000000e+00 : f32
    %172 = vector.broadcast %cst_163 : f32 to vector<2x3x32xf32>
    %c0_164 = arith.constant 0 : index
    %c7 = arith.constant 7 : index
    %c0_165 = arith.constant 0 : index
    %173 = vector.load %arg6[%c0_164, %c7, %c0_165] : memref<2x22x128xf32, #tpu.memory_space<vmem>>, vector<2x3x32xf32>
    tpu.vector_store %arg6[%c0_164, %c7, %c0_165], %172 {strides = array<i32>} : memref<2x22x128xf32, #tpu.memory_space<vmem>>, vector<2x3x32xf32>,
    %174 = vector.shape_cast %167 : vector<8x32xf32> to vector<2x4x32xf32>
    %c0_166 = arith.constant 0 : index
    %c3_167 = arith.constant 3 : index
    %c0_168 = arith.constant 0 : index
    %175 = vector.load %arg6[%c0_166, %c3_167, %c0_168] : memref<2x22x128xf32, #tpu.memory_space<vmem>>, vector<2x4x32xf32>
    tpu.vector_store %arg6[%c0_166, %c3_167, %c0_168], %174 {strides = array<i32>} : memref<2x22x128xf32, #tpu.memory_space<vmem>>, vector<2x4x32xf32>,
    %c0_169 = arith.constant 0 : index
    %c0_170 = arith.constant 0 : index
    %c0_171 = arith.constant 0 : index
    %176 = vector.load %arg6[%c0_169, %c0_170, %c0_171] : memref<2x22x128xf32, #tpu.memory_space<vmem>>, vector<2x4x32xf32>
    %c0_172 = arith.constant 0 : index
    %c1_173 = arith.constant 1 : index
    %c0_174 = arith.constant 0 : index
    %177 = vector.load %arg6[%c0_172, %c1_173, %c0_174] : memref<2x22x128xf32, #tpu.memory_space<vmem>>, vector<2x4x32xf32>
    %c0_175 = arith.constant 0 : index
    %c2_176 = arith.constant 2 : index
    %c0_177 = arith.constant 0 : index
    %178 = vector.load %arg6[%c0_175, %c2_176, %c0_177] : memref<2x22x128xf32, #tpu.memory_space<vmem>>, vector<2x4x32xf32>
    %c0_178 = arith.constant 0 : index
    %c3_179 = arith.constant 3 : index
    %c0_180 = arith.constant 0 : index
    %179 = vector.load %arg6[%c0_178, %c3_179, %c0_180] : memref<2x22x128xf32, #tpu.memory_space<vmem>>, vector<2x4x32xf32>
    %c0_181 = arith.constant 0 : index
    %c4_182 = arith.constant 4 : index
    %c0_183 = arith.constant 0 : index
    %180 = vector.load %arg6[%c0_181, %c4_182, %c0_183] : memref<2x22x128xf32, #tpu.memory_space<vmem>>, vector<2x4x32xf32>
    %c0_184 = arith.constant 0 : index
    %c5_185 = arith.constant 5 : index
    %c0_186 = arith.constant 0 : index
    %181 = vector.load %arg6[%c0_184, %c5_185, %c0_186] : memref<2x22x128xf32, #tpu.memory_space<vmem>>, vector<2x4x32xf32>
    %c0_187 = arith.constant 0 : index
    %c6_188 = arith.constant 6 : index
    %c0_189 = arith.constant 0 : index
    %182 = vector.load %arg6[%c0_187, %c6_188, %c0_189] : memref<2x22x128xf32, #tpu.memory_space<vmem>>, vector<2x4x32xf32>
    %183 = tpu.concatenate %176, %177, %178, %179, %180, %181, %182 in 2 : vector<2x4x32xf32>, vector<2x4x32xf32>, vector<2x4x32xf32>, vector<2x4x32xf32>, vector<2x4x32xf32>, vector<2x4x32xf32>, vector<2x4x32xf32> -> vector<2x4x224xf32>
    %184 = vector.shape_cast %183 : vector<2x4x224xf32> to vector<8x224xf32>
    %cst_190 = arith.constant dense<0.000000e+00> : vector<8x64xf32>
    %185 = tpu.matmul %184, %168, %cst_190 {dimension_numbers = #tpu.dot_dimension_numbers<[1], [0], [0], [1], [0, 0, 1, 1], [], []>} : vector<8x224xf32>, vector<224x64xf32>, vector<8x64xf32> -> vector<8x64xf32>
    %cst_191 = arith.constant 0.000000e+00 : f32
    %186 = vector.broadcast %cst_191 : f32 to vector<8x64xf32>
    %187 = arith.maximumf %185, %186 : vector<8x64xf32>
    %cst_192 = arith.constant dense<0.000000e+00> : vector<64xf32>
    %188 = vector.multi_reduction <add>, %187, %cst_192 [0] : vector<8x64xf32> to vector<64xf32>
    %189 = vector.shape_cast %188 : vector<64xf32> to vector<1x64xf32>
    %cst_193 = arith.constant 1.250000e-01 : f32
    %190 = vector.broadcast %cst_193 : f32 to vector<1x64xf32>
    %191 = arith.mulf %189, %190 : vector<1x64xf32>
    %192 = arith.mulf %187, %187 : vector<8x64xf32>
    %cst_194 = arith.constant dense<0.000000e+00> : vector<64xf32>
    %193 = vector.multi_reduction <add>, %192, %cst_194 [0] : vector<8x64xf32> to vector<64xf32>
    %194 = vector.shape_cast %193 : vector<64xf32> to vector<1x64xf32>
    %cst_195 = arith.constant 1.250000e-01 : f32
    %195 = vector.broadcast %cst_195 : f32 to vector<1x64xf32>
    %196 = arith.mulf %194, %195 : vector<1x64xf32>
    %197 = arith.mulf %191, %191 : vector<1x64xf32>
    %198 = arith.subf %196, %197 : vector<1x64xf32>
    %199 = vector.broadcast %191 : vector<1x64xf32> to vector<8x64xf32>
    %200 = arith.subf %187, %199 : vector<8x64xf32>
    %cst_196 = arith.constant 9.99999974E-6 : f32
    %201 = vector.broadcast %cst_196 : f32 to vector<1x64xf32>
    %202 = arith.addf %198, %201 : vector<1x64xf32>
    %203 = math.rsqrt %202 : vector<1x64xf32>
    %204 = vector.broadcast %203 : vector<1x64xf32> to vector<8x64xf32>
    %205 = arith.mulf %200, %204 : vector<8x64xf32>
    %cst_197 = arith.constant 0.000000e+00 : f32
    %206 = vector.broadcast %cst_197 : f32 to vector<2x3x64xf32>
    %c0_198 = arith.constant 0 : index
    %c0_199 = arith.constant 0 : index
    %c0_200 = arith.constant 0 : index
    %207 = vector.load %arg6[%c0_198, %c0_199, %c0_200] : memref<2x22x128xf32, #tpu.memory_space<vmem>>, vector<2x3x64xf32>
    tpu.vector_store %arg6[%c0_198, %c0_199, %c0_200], %206 {strides = array<i32>} : memref<2x22x128xf32, #tpu.memory_space<vmem>>, vector<2x3x64xf32>,
    %cst_201 = arith.constant 0.000000e+00 : f32
    %208 = vector.broadcast %cst_201 : f32 to vector<2x3x64xf32>
    %c0_202 = arith.constant 0 : index
    %c7_203 = arith.constant 7 : index
    %c0_204 = arith.constant 0 : index
    %209 = vector.load %arg6[%c0_202, %c7_203, %c0_204] : memref<2x22x128xf32, #tpu.memory_space<vmem>>, vector<2x3x64xf32>
    tpu.vector_store %arg6[%c0_202, %c7_203, %c0_204], %208 {strides = array<i32>} : memref<2x22x128xf32, #tpu.memory_space<vmem>>, vector<2x3x64xf32>,
    %210 = vector.shape_cast %205 : vector<8x64xf32> to vector<2x4x64xf32>
    %c0_205 = arith.constant 0 : index
    %c3_206 = arith.constant 3 : index
    %c0_207 = arith.constant 0 : index
    %211 = vector.load %arg6[%c0_205, %c3_206, %c0_207] : memref<2x22x128xf32, #tpu.memory_space<vmem>>, vector<2x4x64xf32>
    tpu.vector_store %arg6[%c0_205, %c3_206, %c0_207], %210 {strides = array<i32>} : memref<2x22x128xf32, #tpu.memory_space<vmem>>, vector<2x4x64xf32>,
    %c0_208 = arith.constant 0 : index
    %c0_209 = arith.constant 0 : index
    %c0_210 = arith.constant 0 : index
    %212 = vector.load %arg6[%c0_208, %c0_209, %c0_210] : memref<2x22x128xf32, #tpu.memory_space<vmem>>, vector<2x4x64xf32>
    %c0_211 = arith.constant 0 : index
    %c1_212 = arith.constant 1 : index
    %c0_213 = arith.constant 0 : index
    %213 = vector.load %arg6[%c0_211, %c1_212, %c0_213] : memref<2x22x128xf32, #tpu.memory_space<vmem>>, vector<2x4x64xf32>
    %c0_214 = arith.constant 0 : index
    %c2_215 = arith.constant 2 : index
    %c0_216 = arith.constant 0 : index
    %214 = vector.load %arg6[%c0_214, %c2_215, %c0_216] : memref<2x22x128xf32, #tpu.memory_space<vmem>>, vector<2x4x64xf32>
    %c0_217 = arith.constant 0 : index
    %c3_218 = arith.constant 3 : index
    %c0_219 = arith.constant 0 : index
    %215 = vector.load %arg6[%c0_217, %c3_218, %c0_219] : memref<2x22x128xf32, #tpu.memory_space<vmem>>, vector<2x4x64xf32>
    %c0_220 = arith.constant 0 : index
    %c4_221 = arith.constant 4 : index
    %c0_222 = arith.constant 0 : index
    %216 = vector.load %arg6[%c0_220, %c4_221, %c0_222] : memref<2x22x128xf32, #tpu.memory_space<vmem>>, vector<2x4x64xf32>
    %c0_223 = arith.constant 0 : index
    %c5_224 = arith.constant 5 : index
    %c0_225 = arith.constant 0 : index
    %217 = vector.load %arg6[%c0_223, %c5_224, %c0_225] : memref<2x22x128xf32, #tpu.memory_space<vmem>>, vector<2x4x64xf32>
    %c0_226 = arith.constant 0 : index
    %c6_227 = arith.constant 6 : index
    %c0_228 = arith.constant 0 : index
    %218 = vector.load %arg6[%c0_226, %c6_227, %c0_228] : memref<2x22x128xf32, #tpu.memory_space<vmem>>, vector<2x4x64xf32>
    %219 = tpu.concatenate %212, %213, %214, %215, %216, %217, %218 in 2 : vector<2x4x64xf32>, vector<2x4x64xf32>, vector<2x4x64xf32>, vector<2x4x64xf32>, vector<2x4x64xf32>, vector<2x4x64xf32>, vector<2x4x64xf32> -> vector<2x4x448xf32>
    %220 = vector.shape_cast %219 : vector<2x4x448xf32> to vector<8x448xf32>
    %cst_229 = arith.constant dense<0.000000e+00> : vector<8x64xf32>
    %221 = tpu.matmul %220, %169, %cst_229 {dimension_numbers = #tpu.dot_dimension_numbers<[1], [0], [0], [1], [0, 0, 1, 1], [], []>} : vector<8x448xf32>, vector<448x64xf32>, vector<8x64xf32> -> vector<8x64xf32>
    %cst_230 = arith.constant 0.000000e+00 : f32
    %222 = vector.broadcast %cst_230 : f32 to vector<8x64xf32>
    %223 = arith.maximumf %221, %222 : vector<8x64xf32>
    %cst_231 = arith.constant dense<0.000000e+00> : vector<64xf32>
    %224 = vector.multi_reduction <add>, %223, %cst_231 [0] : vector<8x64xf32> to vector<64xf32>
    %225 = vector.shape_cast %224 : vector<64xf32> to vector<1x64xf32>
    %cst_232 = arith.constant 1.250000e-01 : f32
    %226 = vector.broadcast %cst_232 : f32 to vector<1x64xf32>
    %227 = arith.mulf %225, %226 : vector<1x64xf32>
    %228 = arith.mulf %223, %223 : vector<8x64xf32>
    %cst_233 = arith.constant dense<0.000000e+00> : vector<64xf32>
    %229 = vector.multi_reduction <add>, %228, %cst_233 [0] : vector<8x64xf32> to vector<64xf32>
    %230 = vector.shape_cast %229 : vector<64xf32> to vector<1x64xf32>
    %cst_234 = arith.constant 1.250000e-01 : f32
    %231 = vector.broadcast %cst_234 : f32 to vector<1x64xf32>
    %232 = arith.mulf %230, %231 : vector<1x64xf32>
    %233 = arith.mulf %227, %227 : vector<1x64xf32>
    %234 = arith.subf %232, %233 : vector<1x64xf32>
    %235 = vector.broadcast %227 : vector<1x64xf32> to vector<8x64xf32>
    %236 = arith.subf %223, %235 : vector<8x64xf32>
    %cst_235 = arith.constant 9.99999974E-6 : f32
    %237 = vector.broadcast %cst_235 : f32 to vector<1x64xf32>
    %238 = arith.addf %234, %237 : vector<1x64xf32>
    %239 = math.rsqrt %238 : vector<1x64xf32>
    %240 = vector.broadcast %239 : vector<1x64xf32> to vector<8x64xf32>
    %241 = arith.mulf %236, %240 : vector<8x64xf32>
    %c1_i32_236 = arith.constant 1 : i32
    %242 = tpu.memref_slice %arg9[%c1_i32_236] : memref<2x!tpu.dma_semaphore, #tpu.memory_space<semaphore_mem>> -> memref<1x!tpu.dma_semaphore, #tpu.memory_space<semaphore_mem>>
    %243 = tpu.memref_squeeze %242 : memref<1x!tpu.dma_semaphore, #tpu.memory_space<semaphore_mem>> -> memref<!tpu.dma_semaphore, #tpu.memory_space<semaphore_mem>>
    tpu.wait_dma2 semaphore(%243 : memref<!tpu.dma_semaphore, #tpu.memory_space<semaphore_mem>>) src(%arg4 : memref<1344x128xf32, #tpu.memory_space<any>>) dst(%arg8 : memref<1344x128xf32, #tpu.memory_space<vmem>>)
    %244 = vector.shape_cast %241 : vector<8x64xf32> to vector<4x2x64xf32>
    %245 = vector.extract_strided_slice %244 {offsets = [0, 0, 0], sizes = [4, 1, 64], strides = [1, 1, 1]} : vector<4x2x64xf32> to vector<4x1x64xf32>
    %246 = vector.shape_cast %245 : vector<4x1x64xf32> to vector<4x64xf32>
    %247 = vector.extract_strided_slice %244 {offsets = [0, 1, 0], sizes = [4, 1, 64], strides = [1, 1, 1]} : vector<4x2x64xf32> to vector<4x1x64xf32>
    %248 = vector.shape_cast %247 : vector<4x1x64xf32> to vector<4x64xf32>
    %249 = arith.maximumf %246, %248 : vector<4x64xf32>
    %c0_237 = arith.constant 0 : index
    %c0_238 = arith.constant 0 : index
    %250 = vector.load %arg8[%c0_237, %c0_238] : memref<1344x128xf32, #tpu.memory_space<vmem>>, vector<448x128xf32>
    %c448 = arith.constant 448 : index
    %c0_239 = arith.constant 0 : index
    %251 = vector.load %arg8[%c448, %c0_239] : memref<1344x128xf32, #tpu.memory_space<vmem>>, vector<896x128xf32>
    %cst_240 = arith.constant 0.000000e+00 : f32
    %252 = vector.broadcast %cst_240 : f32 to vector<2x3x64xf32>
    %c0_241 = arith.constant 0 : index
    %c0_242 = arith.constant 0 : index
    %c0_243 = arith.constant 0 : index
    %253 = vector.load %arg6[%c0_241, %c0_242, %c0_243] : memref<2x22x128xf32, #tpu.memory_space<vmem>>, vector<2x3x64xf32>
    tpu.vector_store %arg6[%c0_241, %c0_242, %c0_243], %252 {strides = array<i32>} : memref<2x22x128xf32, #tpu.memory_space<vmem>>, vector<2x3x64xf32>,
    %cst_244 = arith.constant 0.000000e+00 : f32
    %254 = vector.broadcast %cst_244 : f32 to vector<2x3x64xf32>
    %c0_245 = arith.constant 0 : index
    %c5_246 = arith.constant 5 : index
    %c0_247 = arith.constant 0 : index
    %255 = vector.load %arg6[%c0_245, %c5_246, %c0_247] : memref<2x22x128xf32, #tpu.memory_space<vmem>>, vector<2x3x64xf32>
    tpu.vector_store %arg6[%c0_245, %c5_246, %c0_247], %254 {strides = array<i32>} : memref<2x22x128xf32, #tpu.memory_space<vmem>>, vector<2x3x64xf32>,
    %256 = vector.shape_cast %249 : vector<4x64xf32> to vector<2x2x64xf32>
    %c0_248 = arith.constant 0 : index
    %c3_249 = arith.constant 3 : index
    %c0_250 = arith.constant 0 : index
    %257 = vector.load %arg6[%c0_248, %c3_249, %c0_250] : memref<2x22x128xf32, #tpu.memory_space<vmem>>, vector<2x2x64xf32>
    tpu.vector_store %arg6[%c0_248, %c3_249, %c0_250], %256 {strides = array<i32>} : memref<2x22x128xf32, #tpu.memory_space<vmem>>, vector<2x2x64xf32>,
    %c0_251 = arith.constant 0 : index
    %c0_252 = arith.constant 0 : index
    %c0_253 = arith.constant 0 : index
    %258 = vector.load %arg6[%c0_251, %c0_252, %c0_253] : memref<2x22x128xf32, #tpu.memory_space<vmem>>, vector<2x2x64xf32>
    %c0_254 = arith.constant 0 : index
    %c1_255 = arith.constant 1 : index
    %c0_256 = arith.constant 0 : index
    %259 = vector.load %arg6[%c0_254, %c1_255, %c0_256] : memref<2x22x128xf32, #tpu.memory_space<vmem>>, vector<2x2x64xf32>
    %c0_257 = arith.constant 0 : index
    %c2_258 = arith.constant 2 : index
    %c0_259 = arith.constant 0 : index
    %260 = vector.load %arg6[%c0_257, %c2_258, %c0_259] : memref<2x22x128xf32, #tpu.memory_space<vmem>>, vector<2x2x64xf32>
    %c0_260 = arith.constant 0 : index
    %c3_261 = arith.constant 3 : index
    %c0_262 = arith.constant 0 : index
    %261 = vector.load %arg6[%c0_260, %c3_261, %c0_262] : memref<2x22x128xf32, #tpu.memory_space<vmem>>, vector<2x2x64xf32>
    %c0_263 = arith.constant 0 : index
    %c4_264 = arith.constant 4 : index
    %c0_265 = arith.constant 0 : index
    %262 = vector.load %arg6[%c0_263, %c4_264, %c0_265] : memref<2x22x128xf32, #tpu.memory_space<vmem>>, vector<2x2x64xf32>
    %c0_266 = arith.constant 0 : index
    %c5_267 = arith.constant 5 : index
    %c0_268 = arith.constant 0 : index
    %263 = vector.load %arg6[%c0_266, %c5_267, %c0_268] : memref<2x22x128xf32, #tpu.memory_space<vmem>>, vector<2x2x64xf32>
    %c0_269 = arith.constant 0 : index
    %c6_270 = arith.constant 6 : index
    %c0_271 = arith.constant 0 : index
    %264 = vector.load %arg6[%c0_269, %c6_270, %c0_271] : memref<2x22x128xf32, #tpu.memory_space<vmem>>, vector<2x2x64xf32>
    %265 = tpu.concatenate %258, %259, %260, %261, %262, %263, %264 in 2 : vector<2x2x64xf32>, vector<2x2x64xf32>, vector<2x2x64xf32>, vector<2x2x64xf32>, vector<2x2x64xf32>, vector<2x2x64xf32>, vector<2x2x64xf32> -> vector<2x2x448xf32>
    %266 = vector.shape_cast %265 : vector<2x2x448xf32> to vector<4x448xf32>
    %cst_272 = arith.constant dense<0.000000e+00> : vector<4x128xf32>
    %267 = tpu.matmul %266, %250, %cst_272 {dimension_numbers = #tpu.dot_dimension_numbers<[1], [0], [0], [1], [0, 0, 1, 1], [], []>} : vector<4x448xf32>, vector<448x128xf32>, vector<4x128xf32> -> vector<4x128xf32>
    %cst_273 = arith.constant 0.000000e+00 : f32
    %268 = vector.broadcast %cst_273 : f32 to vector<4x128xf32>
    %269 = arith.maximumf %267, %268 : vector<4x128xf32>
    %cst_274 = arith.constant dense<0.000000e+00> : vector<128xf32>
    %270 = vector.multi_reduction <add>, %269, %cst_274 [0] : vector<4x128xf32> to vector<128xf32>
    %271 = vector.shape_cast %270 : vector<128xf32> to vector<1x128xf32>
    %cst_275 = arith.constant 2.500000e-01 : f32
    %272 = vector.broadcast %cst_275 : f32 to vector<1x128xf32>
    %273 = arith.mulf %271, %272 : vector<1x128xf32>
    %274 = arith.mulf %269, %269 : vector<4x128xf32>
    %cst_276 = arith.constant dense<0.000000e+00> : vector<128xf32>
    %275 = vector.multi_reduction <add>, %274, %cst_276 [0] : vector<4x128xf32> to vector<128xf32>
    %276 = vector.shape_cast %275 : vector<128xf32> to vector<1x128xf32>
    %cst_277 = arith.constant 2.500000e-01 : f32
    %277 = vector.broadcast %cst_277 : f32 to vector<1x128xf32>
    %278 = arith.mulf %276, %277 : vector<1x128xf32>
    %279 = arith.mulf %273, %273 : vector<1x128xf32>
    %280 = arith.subf %278, %279 : vector<1x128xf32>
    %281 = vector.broadcast %273 : vector<1x128xf32> to vector<4x128xf32>
    %282 = arith.subf %269, %281 : vector<4x128xf32>
    %cst_278 = arith.constant 9.99999974E-6 : f32
    %283 = vector.broadcast %cst_278 : f32 to vector<1x128xf32>
    %284 = arith.addf %280, %283 : vector<1x128xf32>
    %285 = math.rsqrt %284 : vector<1x128xf32>
    %286 = vector.broadcast %285 : vector<1x128xf32> to vector<4x128xf32>
    %287 = arith.mulf %282, %286 : vector<4x128xf32>
    %cst_279 = arith.constant 0.000000e+00 : f32
    %288 = vector.broadcast %cst_279 : f32 to vector<2x3x128xf32>
    %c0_280 = arith.constant 0 : index
    %c0_281 = arith.constant 0 : index
    %c0_282 = arith.constant 0 : index
    %289 = vector.load %arg6[%c0_280, %c0_281, %c0_282] : memref<2x22x128xf32, #tpu.memory_space<vmem>>, vector<2x3x128xf32>
    tpu.vector_store %arg6[%c0_280, %c0_281, %c0_282], %288 {strides = array<i32>} : memref<2x22x128xf32, #tpu.memory_space<vmem>>, vector<2x3x128xf32>,
    %cst_283 = arith.constant 0.000000e+00 : f32
    %290 = vector.broadcast %cst_283 : f32 to vector<2x3x128xf32>
    %c0_284 = arith.constant 0 : index
    %c5_285 = arith.constant 5 : index
    %c0_286 = arith.constant 0 : index
    %291 = vector.load %arg6[%c0_284, %c5_285, %c0_286] : memref<2x22x128xf32, #tpu.memory_space<vmem>>, vector<2x3x128xf32>
    tpu.vector_store %arg6[%c0_284, %c5_285, %c0_286], %290 {strides = array<i32>} : memref<2x22x128xf32, #tpu.memory_space<vmem>>, vector<2x3x128xf32>,
    %292 = vector.shape_cast %287 : vector<4x128xf32> to vector<2x2x128xf32>
    %c0_287 = arith.constant 0 : index
    %c3_288 = arith.constant 3 : index
    %c0_289 = arith.constant 0 : index
    %293 = vector.load %arg6[%c0_287, %c3_288, %c0_289] : memref<2x22x128xf32, #tpu.memory_space<vmem>>, vector<2x2x128xf32>
    tpu.vector_store %arg6[%c0_287, %c3_288, %c0_289], %292 {strides = array<i32>} : memref<2x22x128xf32, #tpu.memory_space<vmem>>, vector<2x2x128xf32>,
    %c0_290 = arith.constant 0 : index
    %c0_291 = arith.constant 0 : index
    %c0_292 = arith.constant 0 : index
    %294 = vector.load %arg6[%c0_290, %c0_291, %c0_292] : memref<2x22x128xf32, #tpu.memory_space<vmem>>, vector<2x2x128xf32>
    %c0_293 = arith.constant 0 : index
    %c1_294 = arith.constant 1 : index
    %c0_295 = arith.constant 0 : index
    %295 = vector.load %arg6[%c0_293, %c1_294, %c0_295] : memref<2x22x128xf32, #tpu.memory_space<vmem>>, vector<2x2x128xf32>
    %c0_296 = arith.constant 0 : index
    %c2_297 = arith.constant 2 : index
    %c0_298 = arith.constant 0 : index
    %296 = vector.load %arg6[%c0_296, %c2_297, %c0_298] : memref<2x22x128xf32, #tpu.memory_space<vmem>>, vector<2x2x128xf32>
    %c0_299 = arith.constant 0 : index
    %c3_300 = arith.constant 3 : index
    %c0_301 = arith.constant 0 : index
    %297 = vector.load %arg6[%c0_299, %c3_300, %c0_301] : memref<2x22x128xf32, #tpu.memory_space<vmem>>, vector<2x2x128xf32>
    %c0_302 = arith.constant 0 : index
    %c4_303 = arith.constant 4 : index
    %c0_304 = arith.constant 0 : index
    %298 = vector.load %arg6[%c0_302, %c4_303, %c0_304] : memref<2x22x128xf32, #tpu.memory_space<vmem>>, vector<2x2x128xf32>
    %c0_305 = arith.constant 0 : index
    %c5_306 = arith.constant 5 : index
    %c0_307 = arith.constant 0 : index
    %299 = vector.load %arg6[%c0_305, %c5_306, %c0_307] : memref<2x22x128xf32, #tpu.memory_space<vmem>>, vector<2x2x128xf32>
    %c0_308 = arith.constant 0 : index
    %c6_309 = arith.constant 6 : index
    %c0_310 = arith.constant 0 : index
    %300 = vector.load %arg6[%c0_308, %c6_309, %c0_310] : memref<2x22x128xf32, #tpu.memory_space<vmem>>, vector<2x2x128xf32>
    %301 = tpu.concatenate %294, %295, %296, %297, %298, %299, %300 in 2 : vector<2x2x128xf32>, vector<2x2x128xf32>, vector<2x2x128xf32>, vector<2x2x128xf32>, vector<2x2x128xf32>, vector<2x2x128xf32>, vector<2x2x128xf32> -> vector<2x2x896xf32>
    %302 = vector.shape_cast %301 : vector<2x2x896xf32> to vector<4x896xf32>
    %cst_311 = arith.constant dense<0.000000e+00> : vector<4x128xf32>
    %303 = tpu.matmul %302, %251, %cst_311 {dimension_numbers = #tpu.dot_dimension_numbers<[1], [0], [0], [1], [0, 0, 1, 1], [], []>} : vector<4x896xf32>, vector<896x128xf32>, vector<4x128xf32> -> vector<4x128xf32>
    %cst_312 = arith.constant 0.000000e+00 : f32
    %304 = vector.broadcast %cst_312 : f32 to vector<4x128xf32>
    %305 = arith.maximumf %303, %304 : vector<4x128xf32>
    %cst_313 = arith.constant dense<0.000000e+00> : vector<128xf32>
    %306 = vector.multi_reduction <add>, %305, %cst_313 [0] : vector<4x128xf32> to vector<128xf32>
    %307 = vector.shape_cast %306 : vector<128xf32> to vector<1x128xf32>
    %cst_314 = arith.constant 2.500000e-01 : f32
    %308 = vector.broadcast %cst_314 : f32 to vector<1x128xf32>
    %309 = arith.mulf %307, %308 : vector<1x128xf32>
    %310 = arith.mulf %305, %305 : vector<4x128xf32>
    %cst_315 = arith.constant dense<0.000000e+00> : vector<128xf32>
    %311 = vector.multi_reduction <add>, %310, %cst_315 [0] : vector<4x128xf32> to vector<128xf32>
    %312 = vector.shape_cast %311 : vector<128xf32> to vector<1x128xf32>
    %cst_316 = arith.constant 2.500000e-01 : f32
    %313 = vector.broadcast %cst_316 : f32 to vector<1x128xf32>
    %314 = arith.mulf %312, %313 : vector<1x128xf32>
    %315 = arith.mulf %309, %309 : vector<1x128xf32>
    %316 = arith.subf %314, %315 : vector<1x128xf32>
    %317 = vector.broadcast %309 : vector<1x128xf32> to vector<4x128xf32>
    %318 = arith.subf %305, %317 : vector<4x128xf32>
    %cst_317 = arith.constant 9.99999974E-6 : f32
    %319 = vector.broadcast %cst_317 : f32 to vector<1x128xf32>
    %320 = arith.addf %316, %319 : vector<1x128xf32>
    %321 = math.rsqrt %320 : vector<1x128xf32>
    %322 = vector.broadcast %321 : vector<1x128xf32> to vector<4x128xf32>
    %323 = arith.mulf %318, %322 : vector<4x128xf32>
    %c2016 = arith.constant 2016 : index
    %c0_318 = arith.constant 0 : index
    %324 = vector.load %arg7[%c2016, %c0_318] : memref<2152x64xf32, #tpu.memory_space<vmem>>, vector<128x64xf32>
    %c2144 = arith.constant 2144 : index
    %c0_319 = arith.constant 0 : index
    %325 = vector.load %arg7[%c2144, %c0_319] : memref<2152x64xf32, #tpu.memory_space<vmem>>, vector<1x64xf32>
    %cst_320 = arith.constant dense<0.000000e+00> : vector<4x64xf32>
    %326 = tpu.matmul %323, %324, %cst_320 {dimension_numbers = #tpu.dot_dimension_numbers<[1], [0], [0], [1], [0, 0, 1, 1], [], []>} : vector<4x128xf32>, vector<128x64xf32>, vector<4x64xf32> -> vector<4x64xf32>
    %327 = vector.broadcast %325 : vector<1x64xf32> to vector<4x64xf32>
    %328 = arith.addf %326, %327 : vector<4x64xf32>
    %329 = vector.shape_cast %328 : vector<4x64xf32> to vector<4x1x64xf32>
    %330 = vector.shape_cast %329 : vector<4x1x64xf32> to vector<4x1x64xf32>
    %331 = vector.broadcast %330 : vector<4x1x64xf32> to vector<4x2x64xf32>
    %332 = vector.shape_cast %331 : vector<4x2x64xf32> to vector<8x64xf32>
    %333 = tpu.concatenate %332, %241 in 1 : vector<8x64xf32>, vector<8x64xf32> -> vector<8x128xf32>
    %c672 = arith.constant 672 : index
    %c0_321 = arith.constant 0 : index
    %334 = vector.load %arg7[%c672, %c0_321] : memref<2152x64xf32, #tpu.memory_space<vmem>>, vector<896x64xf32>
    %c1568 = arith.constant 1568 : index
    %c0_322 = arith.constant 0 : index
    %335 = vector.load %arg7[%c1568, %c0_322] : memref<2152x64xf32, #tpu.memory_space<vmem>>, vector<448x64xf32>
    %cst_323 = arith.constant 0.000000e+00 : f32
    %336 = vector.broadcast %cst_323 : f32 to vector<2x3x128xf32>
    %c0_324 = arith.constant 0 : index
    %c0_325 = arith.constant 0 : index
    %c0_326 = arith.constant 0 : index
    %337 = vector.load %arg6[%c0_324, %c0_325, %c0_326] : memref<2x22x128xf32, #tpu.memory_space<vmem>>, vector<2x3x128xf32>
    tpu.vector_store %arg6[%c0_324, %c0_325, %c0_326], %336 {strides = array<i32>} : memref<2x22x128xf32, #tpu.memory_space<vmem>>, vector<2x3x128xf32>,
    %cst_327 = arith.constant 0.000000e+00 : f32
    %338 = vector.broadcast %cst_327 : f32 to vector<2x3x128xf32>
    %c0_328 = arith.constant 0 : index
    %c7_329 = arith.constant 7 : index
    %c0_330 = arith.constant 0 : index
    %339 = vector.load %arg6[%c0_328, %c7_329, %c0_330] : memref<2x22x128xf32, #tpu.memory_space<vmem>>, vector<2x3x128xf32>
    tpu.vector_store %arg6[%c0_328, %c7_329, %c0_330], %338 {strides = array<i32>} : memref<2x22x128xf32, #tpu.memory_space<vmem>>, vector<2x3x128xf32>,
    %340 = vector.shape_cast %333 : vector<8x128xf32> to vector<2x4x128xf32>
    %c0_331 = arith.constant 0 : index
    %c3_332 = arith.constant 3 : index
    %c0_333 = arith.constant 0 : index
    %341 = vector.load %arg6[%c0_331, %c3_332, %c0_333] : memref<2x22x128xf32, #tpu.memory_space<vmem>>, vector<2x4x128xf32>
    tpu.vector_store %arg6[%c0_331, %c3_332, %c0_333], %340 {strides = array<i32>} : memref<2x22x128xf32, #tpu.memory_space<vmem>>, vector<2x4x128xf32>,
    %c0_334 = arith.constant 0 : index
    %c0_335 = arith.constant 0 : index
    %c0_336 = arith.constant 0 : index
    %342 = vector.load %arg6[%c0_334, %c0_335, %c0_336] : memref<2x22x128xf32, #tpu.memory_space<vmem>>, vector<2x4x128xf32>
    %c0_337 = arith.constant 0 : index
    %c1_338 = arith.constant 1 : index
    %c0_339 = arith.constant 0 : index
    %343 = vector.load %arg6[%c0_337, %c1_338, %c0_339] : memref<2x22x128xf32, #tpu.memory_space<vmem>>, vector<2x4x128xf32>
    %c0_340 = arith.constant 0 : index
    %c2_341 = arith.constant 2 : index
    %c0_342 = arith.constant 0 : index
    %344 = vector.load %arg6[%c0_340, %c2_341, %c0_342] : memref<2x22x128xf32, #tpu.memory_space<vmem>>, vector<2x4x128xf32>
    %c0_343 = arith.constant 0 : index
    %c3_344 = arith.constant 3 : index
    %c0_345 = arith.constant 0 : index
    %345 = vector.load %arg6[%c0_343, %c3_344, %c0_345] : memref<2x22x128xf32, #tpu.memory_space<vmem>>, vector<2x4x128xf32>
    %c0_346 = arith.constant 0 : index
    %c4_347 = arith.constant 4 : index
    %c0_348 = arith.constant 0 : index
    %346 = vector.load %arg6[%c0_346, %c4_347, %c0_348] : memref<2x22x128xf32, #tpu.memory_space<vmem>>, vector<2x4x128xf32>
    %c0_349 = arith.constant 0 : index
    %c5_350 = arith.constant 5 : index
    %c0_351 = arith.constant 0 : index
    %347 = vector.load %arg6[%c0_349, %c5_350, %c0_351] : memref<2x22x128xf32, #tpu.memory_space<vmem>>, vector<2x4x128xf32>
    %c0_352 = arith.constant 0 : index
    %c6_353 = arith.constant 6 : index
    %c0_354 = arith.constant 0 : index
    %348 = vector.load %arg6[%c0_352, %c6_353, %c0_354] : memref<2x22x128xf32, #tpu.memory_space<vmem>>, vector<2x4x128xf32>
    %349 = tpu.concatenate %342, %343, %344, %345, %346, %347, %348 in 2 : vector<2x4x128xf32>, vector<2x4x128xf32>, vector<2x4x128xf32>, vector<2x4x128xf32>, vector<2x4x128xf32>, vector<2x4x128xf32>, vector<2x4x128xf32> -> vector<2x4x896xf32>
    %350 = vector.shape_cast %349 : vector<2x4x896xf32> to vector<8x896xf32>
    %cst_355 = arith.constant dense<0.000000e+00> : vector<8x64xf32>
    %351 = tpu.matmul %350, %334, %cst_355 {dimension_numbers = #tpu.dot_dimension_numbers<[1], [0], [0], [1], [0, 0, 1, 1], [], []>} : vector<8x896xf32>, vector<896x64xf32>, vector<8x64xf32> -> vector<8x64xf32>
    %cst_356 = arith.constant 0.000000e+00 : f32
    %352 = vector.broadcast %cst_356 : f32 to vector<8x64xf32>
    %353 = arith.maximumf %351, %352 : vector<8x64xf32>
    %cst_357 = arith.constant dense<0.000000e+00> : vector<64xf32>
    %354 = vector.multi_reduction <add>, %353, %cst_357 [0] : vector<8x64xf32> to vector<64xf32>
    %355 = vector.shape_cast %354 : vector<64xf32> to vector<1x64xf32>
    %cst_358 = arith.constant 1.250000e-01 : f32
    %356 = vector.broadcast %cst_358 : f32 to vector<1x64xf32>
    %357 = arith.mulf %355, %356 : vector<1x64xf32>
    %358 = arith.mulf %353, %353 : vector<8x64xf32>
    %cst_359 = arith.constant dense<0.000000e+00> : vector<64xf32>
    %359 = vector.multi_reduction <add>, %358, %cst_359 [0] : vector<8x64xf32> to vector<64xf32>
    %360 = vector.shape_cast %359 : vector<64xf32> to vector<1x64xf32>
    %cst_360 = arith.constant 1.250000e-01 : f32
    %361 = vector.broadcast %cst_360 : f32 to vector<1x64xf32>
    %362 = arith.mulf %360, %361 : vector<1x64xf32>
    %363 = arith.mulf %357, %357 : vector<1x64xf32>
    %364 = arith.subf %362, %363 : vector<1x64xf32>
    %365 = vector.broadcast %357 : vector<1x64xf32> to vector<8x64xf32>
    %366 = arith.subf %353, %365 : vector<8x64xf32>
    %cst_361 = arith.constant 9.99999974E-6 : f32
    %367 = vector.broadcast %cst_361 : f32 to vector<1x64xf32>
    %368 = arith.addf %364, %367 : vector<1x64xf32>
    %369 = math.rsqrt %368 : vector<1x64xf32>
    %370 = vector.broadcast %369 : vector<1x64xf32> to vector<8x64xf32>
    %371 = arith.mulf %366, %370 : vector<8x64xf32>
    %cst_362 = arith.constant 0.000000e+00 : f32
    %372 = vector.broadcast %cst_362 : f32 to vector<2x3x64xf32>
    %c0_363 = arith.constant 0 : index
    %c0_364 = arith.constant 0 : index
    %c0_365 = arith.constant 0 : index
    %373 = vector.load %arg6[%c0_363, %c0_364, %c0_365] : memref<2x22x128xf32, #tpu.memory_space<vmem>>, vector<2x3x64xf32>
    tpu.vector_store %arg6[%c0_363, %c0_364, %c0_365], %372 {strides = array<i32>} : memref<2x22x128xf32, #tpu.memory_space<vmem>>, vector<2x3x64xf32>,
    %cst_366 = arith.constant 0.000000e+00 : f32
    %374 = vector.broadcast %cst_366 : f32 to vector<2x3x64xf32>
    %c0_367 = arith.constant 0 : index
    %c7_368 = arith.constant 7 : index
    %c0_369 = arith.constant 0 : index
    %375 = vector.load %arg6[%c0_367, %c7_368, %c0_369] : memref<2x22x128xf32, #tpu.memory_space<vmem>>, vector<2x3x64xf32>
    tpu.vector_store %arg6[%c0_367, %c7_368, %c0_369], %374 {strides = array<i32>} : memref<2x22x128xf32, #tpu.memory_space<vmem>>, vector<2x3x64xf32>,
    %376 = vector.shape_cast %371 : vector<8x64xf32> to vector<2x4x64xf32>
    %c0_370 = arith.constant 0 : index
    %c3_371 = arith.constant 3 : index
    %c0_372 = arith.constant 0 : index
    %377 = vector.load %arg6[%c0_370, %c3_371, %c0_372] : memref<2x22x128xf32, #tpu.memory_space<vmem>>, vector<2x4x64xf32>
    tpu.vector_store %arg6[%c0_370, %c3_371, %c0_372], %376 {strides = array<i32>} : memref<2x22x128xf32, #tpu.memory_space<vmem>>, vector<2x4x64xf32>,
    %c0_373 = arith.constant 0 : index
    %c0_374 = arith.constant 0 : index
    %c0_375 = arith.constant 0 : index
    %378 = vector.load %arg6[%c0_373, %c0_374, %c0_375] : memref<2x22x128xf32, #tpu.memory_space<vmem>>, vector<2x4x64xf32>
    %c0_376 = arith.constant 0 : index
    %c1_377 = arith.constant 1 : index
    %c0_378 = arith.constant 0 : index
    %379 = vector.load %arg6[%c0_376, %c1_377, %c0_378] : memref<2x22x128xf32, #tpu.memory_space<vmem>>, vector<2x4x64xf32>
    %c0_379 = arith.constant 0 : index
    %c2_380 = arith.constant 2 : index
    %c0_381 = arith.constant 0 : index
    %380 = vector.load %arg6[%c0_379, %c2_380, %c0_381] : memref<2x22x128xf32, #tpu.memory_space<vmem>>, vector<2x4x64xf32>
    %c0_382 = arith.constant 0 : index
    %c3_383 = arith.constant 3 : index
    %c0_384 = arith.constant 0 : index
    %381 = vector.load %arg6[%c0_382, %c3_383, %c0_384] : memref<2x22x128xf32, #tpu.memory_space<vmem>>, vector<2x4x64xf32>
    %c0_385 = arith.constant 0 : index
    %c4_386 = arith.constant 4 : index
    %c0_387 = arith.constant 0 : index
    %382 = vector.load %arg6[%c0_385, %c4_386, %c0_387] : memref<2x22x128xf32, #tpu.memory_space<vmem>>, vector<2x4x64xf32>
    %c0_388 = arith.constant 0 : index
    %c5_389 = arith.constant 5 : index
    %c0_390 = arith.constant 0 : index
    %383 = vector.load %arg6[%c0_388, %c5_389, %c0_390] : memref<2x22x128xf32, #tpu.memory_space<vmem>>, vector<2x4x64xf32>
    %c0_391 = arith.constant 0 : index
    %c6_392 = arith.constant 6 : index
    %c0_393 = arith.constant 0 : index
    %384 = vector.load %arg6[%c0_391, %c6_392, %c0_393] : memref<2x22x128xf32, #tpu.memory_space<vmem>>, vector<2x4x64xf32>
    %385 = tpu.concatenate %378, %379, %380, %381, %382, %383, %384 in 2 : vector<2x4x64xf32>, vector<2x4x64xf32>, vector<2x4x64xf32>, vector<2x4x64xf32>, vector<2x4x64xf32>, vector<2x4x64xf32>, vector<2x4x64xf32> -> vector<2x4x448xf32>
    %386 = vector.shape_cast %385 : vector<2x4x448xf32> to vector<8x448xf32>
    %cst_394 = arith.constant dense<0.000000e+00> : vector<8x64xf32>
    %387 = tpu.matmul %386, %335, %cst_394 {dimension_numbers = #tpu.dot_dimension_numbers<[1], [0], [0], [1], [0, 0, 1, 1], [], []>} : vector<8x448xf32>, vector<448x64xf32>, vector<8x64xf32> -> vector<8x64xf32>
    %cst_395 = arith.constant 0.000000e+00 : f32
    %388 = vector.broadcast %cst_395 : f32 to vector<8x64xf32>
    %389 = arith.maximumf %387, %388 : vector<8x64xf32>
    %cst_396 = arith.constant dense<0.000000e+00> : vector<64xf32>
    %390 = vector.multi_reduction <add>, %389, %cst_396 [0] : vector<8x64xf32> to vector<64xf32>
    %391 = vector.shape_cast %390 : vector<64xf32> to vector<1x64xf32>
    %cst_397 = arith.constant 1.250000e-01 : f32
    %392 = vector.broadcast %cst_397 : f32 to vector<1x64xf32>
    %393 = arith.mulf %391, %392 : vector<1x64xf32>
    %394 = arith.mulf %389, %389 : vector<8x64xf32>
    %cst_398 = arith.constant dense<0.000000e+00> : vector<64xf32>
    %395 = vector.multi_reduction <add>, %394, %cst_398 [0] : vector<8x64xf32> to vector<64xf32>
    %396 = vector.shape_cast %395 : vector<64xf32> to vector<1x64xf32>
    %cst_399 = arith.constant 1.250000e-01 : f32
    %397 = vector.broadcast %cst_399 : f32 to vector<1x64xf32>
    %398 = arith.mulf %396, %397 : vector<1x64xf32>
    %399 = arith.mulf %393, %393 : vector<1x64xf32>
    %400 = arith.subf %398, %399 : vector<1x64xf32>
    %401 = vector.broadcast %393 : vector<1x64xf32> to vector<8x64xf32>
    %402 = arith.subf %389, %401 : vector<8x64xf32>
    %cst_400 = arith.constant 9.99999974E-6 : f32
    %403 = vector.broadcast %cst_400 : f32 to vector<1x64xf32>
    %404 = arith.addf %400, %403 : vector<1x64xf32>
    %405 = math.rsqrt %404 : vector<1x64xf32>
    %406 = vector.broadcast %405 : vector<1x64xf32> to vector<8x64xf32>
    %407 = arith.mulf %402, %406 : vector<8x64xf32>
    %c1008 = arith.constant 1008 : index
    %c0_401 = arith.constant 0 : index
    %408 = vector.load %arg2[%c1008, %c0_401] : memref<1080x32xf32, #tpu.memory_space<vmem>>, vector<64x32xf32>
    %c1072 = arith.constant 1072 : index
    %c0_402 = arith.constant 0 : index
    %409 = vector.load %arg2[%c1072, %c0_402] : memref<1080x32xf32, #tpu.memory_space<vmem>>, vector<1x32xf32>
    %cst_403 = arith.constant dense<0.000000e+00> : vector<8x32xf32>
    %410 = tpu.matmul %407, %408, %cst_403 {dimension_numbers = #tpu.dot_dimension_numbers<[1], [0], [0], [1], [0, 0, 1, 1], [], []>} : vector<8x64xf32>, vector<64x32xf32>, vector<8x32xf32> -> vector<8x32xf32>
    %411 = vector.broadcast %409 : vector<1x32xf32> to vector<8x32xf32>
    %412 = arith.addf %410, %411 : vector<8x32xf32>
    %413 = vector.shape_cast %412 : vector<8x32xf32> to vector<8x1x32xf32>
    %414 = vector.shape_cast %413 : vector<8x1x32xf32> to vector<8x1x32xf32>
    %415 = vector.broadcast %414 : vector<8x1x32xf32> to vector<8x2x32xf32>
    %416 = vector.shape_cast %415 : vector<8x2x32xf32> to vector<16x32xf32>
    %417 = tpu.concatenate %416, %159 in 1 : vector<16x32xf32>, vector<16x32xf32> -> vector<16x64xf32>
    %c336 = arith.constant 336 : index
    %c0_404 = arith.constant 0 : index
    %418 = vector.load %arg2[%c336, %c0_404] : memref<1080x32xf32, #tpu.memory_space<vmem>>, vector<448x32xf32>
    %c784 = arith.constant 784 : index
    %c0_405 = arith.constant 0 : index
    %419 = vector.load %arg2[%c784, %c0_405] : memref<1080x32xf32, #tpu.memory_space<vmem>>, vector<224x32xf32>
    %cst_406 = arith.constant 0.000000e+00 : f32
    %420 = vector.broadcast %cst_406 : f32 to vector<2x3x64xf32>
    %c0_407 = arith.constant 0 : index
    %c0_408 = arith.constant 0 : index
    %c0_409 = arith.constant 0 : index
    %421 = vector.load %arg6[%c0_407, %c0_408, %c0_409] : memref<2x22x128xf32, #tpu.memory_space<vmem>>, vector<2x3x64xf32>
    tpu.vector_store %arg6[%c0_407, %c0_408, %c0_409], %420 {strides = array<i32>} : memref<2x22x128xf32, #tpu.memory_space<vmem>>, vector<2x3x64xf32>,
    %cst_410 = arith.constant 0.000000e+00 : f32
    %422 = vector.broadcast %cst_410 : f32 to vector<2x3x64xf32>
    %c0_411 = arith.constant 0 : index
    %c11_412 = arith.constant 11 : index
    %c0_413 = arith.constant 0 : index
    %423 = vector.load %arg6[%c0_411, %c11_412, %c0_413] : memref<2x22x128xf32, #tpu.memory_space<vmem>>, vector<2x3x64xf32>
    tpu.vector_store %arg6[%c0_411, %c11_412, %c0_413], %422 {strides = array<i32>} : memref<2x22x128xf32, #tpu.memory_space<vmem>>, vector<2x3x64xf32>,
    %424 = vector.shape_cast %417 : vector<16x64xf32> to vector<2x8x64xf32>
    %c0_414 = arith.constant 0 : index
    %c3_415 = arith.constant 3 : index
    %c0_416 = arith.constant 0 : index
    %425 = vector.load %arg6[%c0_414, %c3_415, %c0_416] : memref<2x22x128xf32, #tpu.memory_space<vmem>>, vector<2x8x64xf32>
    tpu.vector_store %arg6[%c0_414, %c3_415, %c0_416], %424 {strides = array<i32>} : memref<2x22x128xf32, #tpu.memory_space<vmem>>, vector<2x8x64xf32>,
    %c0_417 = arith.constant 0 : index
    %c0_418 = arith.constant 0 : index
    %c0_419 = arith.constant 0 : index
    %426 = vector.load %arg6[%c0_417, %c0_418, %c0_419] : memref<2x22x128xf32, #tpu.memory_space<vmem>>, vector<2x8x64xf32>
    %c0_420 = arith.constant 0 : index
    %c1_421 = arith.constant 1 : index
    %c0_422 = arith.constant 0 : index
    %427 = vector.load %arg6[%c0_420, %c1_421, %c0_422] : memref<2x22x128xf32, #tpu.memory_space<vmem>>, vector<2x8x64xf32>
    %c0_423 = arith.constant 0 : index
    %c2_424 = arith.constant 2 : index
    %c0_425 = arith.constant 0 : index
    %428 = vector.load %arg6[%c0_423, %c2_424, %c0_425] : memref<2x22x128xf32, #tpu.memory_space<vmem>>, vector<2x8x64xf32>
    %c0_426 = arith.constant 0 : index
    %c3_427 = arith.constant 3 : index
    %c0_428 = arith.constant 0 : index
    %429 = vector.load %arg6[%c0_426, %c3_427, %c0_428] : memref<2x22x128xf32, #tpu.memory_space<vmem>>, vector<2x8x64xf32>
    %c0_429 = arith.constant 0 : index
    %c4_430 = arith.constant 4 : index
    %c0_431 = arith.constant 0 : index
    %430 = vector.load %arg6[%c0_429, %c4_430, %c0_431] : memref<2x22x128xf32, #tpu.memory_space<vmem>>, vector<2x8x64xf32>
    %c0_432 = arith.constant 0 : index
    %c5_433 = arith.constant 5 : index
    %c0_434 = arith.constant 0 : index
    %431 = vector.load %arg6[%c0_432, %c5_433, %c0_434] : memref<2x22x128xf32, #tpu.memory_space<vmem>>, vector<2x8x64xf32>
    %c0_435 = arith.constant 0 : index
    %c6_436 = arith.constant 6 : index
    %c0_437 = arith.constant 0 : index
    %432 = vector.load %arg6[%c0_435, %c6_436, %c0_437] : memref<2x22x128xf32, #tpu.memory_space<vmem>>, vector<2x8x64xf32>
    %433 = tpu.concatenate %426, %427, %428, %429, %430, %431, %432 in 2 : vector<2x8x64xf32>, vector<2x8x64xf32>, vector<2x8x64xf32>, vector<2x8x64xf32>, vector<2x8x64xf32>, vector<2x8x64xf32>, vector<2x8x64xf32> -> vector<2x8x448xf32>
    %434 = vector.shape_cast %433 : vector<2x8x448xf32> to vector<16x448xf32>
    %cst_438 = arith.constant dense<0.000000e+00> : vector<16x32xf32>
    %435 = tpu.matmul %434, %418, %cst_438 {dimension_numbers = #tpu.dot_dimension_numbers<[1], [0], [0], [1], [0, 0, 1, 1], [], []>} : vector<16x448xf32>, vector<448x32xf32>, vector<16x32xf32> -> vector<16x32xf32>
    %cst_439 = arith.constant 0.000000e+00 : f32
    %436 = vector.broadcast %cst_439 : f32 to vector<16x32xf32>
    %437 = arith.maximumf %435, %436 : vector<16x32xf32>
    %cst_440 = arith.constant dense<0.000000e+00> : vector<32xf32>
    %438 = vector.multi_reduction <add>, %437, %cst_440 [0] : vector<16x32xf32> to vector<32xf32>
    %439 = vector.shape_cast %438 : vector<32xf32> to vector<1x32xf32>
    %cst_441 = arith.constant 6.250000e-02 : f32
    %440 = vector.broadcast %cst_441 : f32 to vector<1x32xf32>
    %441 = arith.mulf %439, %440 : vector<1x32xf32>
    %442 = arith.mulf %437, %437 : vector<16x32xf32>
    %cst_442 = arith.constant dense<0.000000e+00> : vector<32xf32>
    %443 = vector.multi_reduction <add>, %442, %cst_442 [0] : vector<16x32xf32> to vector<32xf32>
    %444 = vector.shape_cast %443 : vector<32xf32> to vector<1x32xf32>
    %cst_443 = arith.constant 6.250000e-02 : f32
    %445 = vector.broadcast %cst_443 : f32 to vector<1x32xf32>
    %446 = arith.mulf %444, %445 : vector<1x32xf32>
    %447 = arith.mulf %441, %441 : vector<1x32xf32>
    %448 = arith.subf %446, %447 : vector<1x32xf32>
    %449 = vector.broadcast %441 : vector<1x32xf32> to vector<16x32xf32>
    %450 = arith.subf %437, %449 : vector<16x32xf32>
    %cst_444 = arith.constant 9.99999974E-6 : f32
    %451 = vector.broadcast %cst_444 : f32 to vector<1x32xf32>
    %452 = arith.addf %448, %451 : vector<1x32xf32>
    %453 = math.rsqrt %452 : vector<1x32xf32>
    %454 = vector.broadcast %453 : vector<1x32xf32> to vector<16x32xf32>
    %455 = arith.mulf %450, %454 : vector<16x32xf32>
    %cst_445 = arith.constant 0.000000e+00 : f32
    %456 = vector.broadcast %cst_445 : f32 to vector<2x3x32xf32>
    %c0_446 = arith.constant 0 : index
    %c0_447 = arith.constant 0 : index
    %c0_448 = arith.constant 0 : index
    %457 = vector.load %arg6[%c0_446, %c0_447, %c0_448] : memref<2x22x128xf32, #tpu.memory_space<vmem>>, vector<2x3x32xf32>
    tpu.vector_store %arg6[%c0_446, %c0_447, %c0_448], %456 {strides = array<i32>} : memref<2x22x128xf32, #tpu.memory_space<vmem>>, vector<2x3x32xf32>,
    %cst_449 = arith.constant 0.000000e+00 : f32
    %458 = vector.broadcast %cst_449 : f32 to vector<2x3x32xf32>
    %c0_450 = arith.constant 0 : index
    %c11_451 = arith.constant 11 : index
    %c0_452 = arith.constant 0 : index
    %459 = vector.load %arg6[%c0_450, %c11_451, %c0_452] : memref<2x22x128xf32, #tpu.memory_space<vmem>>, vector<2x3x32xf32>
    tpu.vector_store %arg6[%c0_450, %c11_451, %c0_452], %458 {strides = array<i32>} : memref<2x22x128xf32, #tpu.memory_space<vmem>>, vector<2x3x32xf32>,
    %460 = vector.shape_cast %455 : vector<16x32xf32> to vector<2x8x32xf32>
    %c0_453 = arith.constant 0 : index
    %c3_454 = arith.constant 3 : index
    %c0_455 = arith.constant 0 : index
    %461 = vector.load %arg6[%c0_453, %c3_454, %c0_455] : memref<2x22x128xf32, #tpu.memory_space<vmem>>, vector<2x8x32xf32>
    tpu.vector_store %arg6[%c0_453, %c3_454, %c0_455], %460 {strides = array<i32>} : memref<2x22x128xf32, #tpu.memory_space<vmem>>, vector<2x8x32xf32>,
    %c0_456 = arith.constant 0 : index
    %c0_457 = arith.constant 0 : index
    %c0_458 = arith.constant 0 : index
    %462 = vector.load %arg6[%c0_456, %c0_457, %c0_458] : memref<2x22x128xf32, #tpu.memory_space<vmem>>, vector<2x8x32xf32>
    %c0_459 = arith.constant 0 : index
    %c1_460 = arith.constant 1 : index
    %c0_461 = arith.constant 0 : index
    %463 = vector.load %arg6[%c0_459, %c1_460, %c0_461] : memref<2x22x128xf32, #tpu.memory_space<vmem>>, vector<2x8x32xf32>
    %c0_462 = arith.constant 0 : index
    %c2_463 = arith.constant 2 : index
    %c0_464 = arith.constant 0 : index
    %464 = vector.load %arg6[%c0_462, %c2_463, %c0_464] : memref<2x22x128xf32, #tpu.memory_space<vmem>>, vector<2x8x32xf32>
    %c0_465 = arith.constant 0 : index
    %c3_466 = arith.constant 3 : index
    %c0_467 = arith.constant 0 : index
    %465 = vector.load %arg6[%c0_465, %c3_466, %c0_467] : memref<2x22x128xf32, #tpu.memory_space<vmem>>, vector<2x8x32xf32>
    %c0_468 = arith.constant 0 : index
    %c4_469 = arith.constant 4 : index
    %c0_470 = arith.constant 0 : index
    %466 = vector.load %arg6[%c0_468, %c4_469, %c0_470] : memref<2x22x128xf32, #tpu.memory_space<vmem>>, vector<2x8x32xf32>
    %c0_471 = arith.constant 0 : index
    %c5_472 = arith.constant 5 : index
    %c0_473 = arith.constant 0 : index
    %467 = vector.load %arg6[%c0_471, %c5_472, %c0_473] : memref<2x22x128xf32, #tpu.memory_space<vmem>>, vector<2x8x32xf32>
    %c0_474 = arith.constant 0 : index
    %c6_475 = arith.constant 6 : index
    %c0_476 = arith.constant 0 : index
    %468 = vector.load %arg6[%c0_474, %c6_475, %c0_476] : memref<2x22x128xf32, #tpu.memory_space<vmem>>, vector<2x8x32xf32>
    %469 = tpu.concatenate %462, %463, %464, %465, %466, %467, %468 in 2 : vector<2x8x32xf32>, vector<2x8x32xf32>, vector<2x8x32xf32>, vector<2x8x32xf32>, vector<2x8x32xf32>, vector<2x8x32xf32>, vector<2x8x32xf32> -> vector<2x8x224xf32>
    %470 = vector.shape_cast %469 : vector<2x8x224xf32> to vector<16x224xf32>
    %cst_477 = arith.constant dense<0.000000e+00> : vector<16x32xf32>
    %471 = tpu.matmul %470, %419, %cst_477 {dimension_numbers = #tpu.dot_dimension_numbers<[1], [0], [0], [1], [0, 0, 1, 1], [], []>} : vector<16x224xf32>, vector<224x32xf32>, vector<16x32xf32> -> vector<16x32xf32>
    %cst_478 = arith.constant 0.000000e+00 : f32
    %472 = vector.broadcast %cst_478 : f32 to vector<16x32xf32>
    %473 = arith.maximumf %471, %472 : vector<16x32xf32>
    %cst_479 = arith.constant dense<0.000000e+00> : vector<32xf32>
    %474 = vector.multi_reduction <add>, %473, %cst_479 [0] : vector<16x32xf32> to vector<32xf32>
    %475 = vector.shape_cast %474 : vector<32xf32> to vector<1x32xf32>
    %cst_480 = arith.constant 6.250000e-02 : f32
    %476 = vector.broadcast %cst_480 : f32 to vector<1x32xf32>
    %477 = arith.mulf %475, %476 : vector<1x32xf32>
    %478 = arith.mulf %473, %473 : vector<16x32xf32>
    %cst_481 = arith.constant dense<0.000000e+00> : vector<32xf32>
    %479 = vector.multi_reduction <add>, %478, %cst_481 [0] : vector<16x32xf32> to vector<32xf32>
    %480 = vector.shape_cast %479 : vector<32xf32> to vector<1x32xf32>
    %cst_482 = arith.constant 6.250000e-02 : f32
    %481 = vector.broadcast %cst_482 : f32 to vector<1x32xf32>
    %482 = arith.mulf %480, %481 : vector<1x32xf32>
    %483 = arith.mulf %477, %477 : vector<1x32xf32>
    %484 = arith.subf %482, %483 : vector<1x32xf32>
    %485 = vector.broadcast %477 : vector<1x32xf32> to vector<16x32xf32>
    %486 = arith.subf %473, %485 : vector<16x32xf32>
    %cst_483 = arith.constant 9.99999974E-6 : f32
    %487 = vector.broadcast %cst_483 : f32 to vector<1x32xf32>
    %488 = arith.addf %484, %487 : vector<1x32xf32>
    %489 = math.rsqrt %488 : vector<1x32xf32>
    %490 = vector.broadcast %489 : vector<1x32xf32> to vector<16x32xf32>
    %491 = arith.mulf %486, %490 : vector<16x32xf32>
    %c469 = arith.constant 469 : index
    %c0_484 = arith.constant 0 : index
    %492 = vector.load %arg1[%c469, %c0_484] : memref<616x16xf32, #tpu.memory_space<vmem>>, vector<32x16xf32>
    %c501 = arith.constant 501 : index
    %c0_485 = arith.constant 0 : index
    %493 = vector.load %arg1[%c501, %c0_485] : memref<616x16xf32, #tpu.memory_space<vmem>>, vector<1x16xf32>
    %cst_486 = arith.constant dense<0.000000e+00> : vector<16x16xf32>
    %494 = tpu.matmul %491, %492, %cst_486 {dimension_numbers = #tpu.dot_dimension_numbers<[1], [0], [0], [1], [0, 0, 1, 1], [], []>} : vector<16x32xf32>, vector<32x16xf32>, vector<16x16xf32> -> vector<16x16xf32>
    %495 = vector.broadcast %493 : vector<1x16xf32> to vector<16x16xf32>
    %496 = arith.addf %494, %495 : vector<16x16xf32>
    %497 = vector.shape_cast %496 : vector<16x16xf32> to vector<16x1x16xf32>
    %498 = vector.shape_cast %497 : vector<16x1x16xf32> to vector<16x1x16xf32>
    %499 = vector.broadcast %498 : vector<16x1x16xf32> to vector<16x2x16xf32>
    %500 = vector.shape_cast %499 : vector<16x2x16xf32> to vector<32x16xf32>
    %501 = tpu.concatenate %500, %79 in 1 : vector<32x16xf32>, vector<32x16xf32> -> vector<32x32xf32>
    %c133 = arith.constant 133 : index
    %c0_487 = arith.constant 0 : index
    %502 = vector.load %arg1[%c133, %c0_487] : memref<616x16xf32, #tpu.memory_space<vmem>>, vector<224x16xf32>
    %c357 = arith.constant 357 : index
    %c0_488 = arith.constant 0 : index
    %503 = vector.load %arg1[%c357, %c0_488] : memref<616x16xf32, #tpu.memory_space<vmem>>, vector<112x16xf32>
    %cst_489 = arith.constant 0.000000e+00 : f32
    %504 = vector.broadcast %cst_489 : f32 to vector<2x3x32xf32>
    %c0_490 = arith.constant 0 : index
    %c0_491 = arith.constant 0 : index
    %c0_492 = arith.constant 0 : index
    %505 = vector.load %arg6[%c0_490, %c0_491, %c0_492] : memref<2x22x128xf32, #tpu.memory_space<vmem>>, vector<2x3x32xf32>
    tpu.vector_store %arg6[%c0_490, %c0_491, %c0_492], %504 {strides = array<i32>} : memref<2x22x128xf32, #tpu.memory_space<vmem>>, vector<2x3x32xf32>,
    %cst_493 = arith.constant 0.000000e+00 : f32
    %506 = vector.broadcast %cst_493 : f32 to vector<2x3x32xf32>
    %c0_494 = arith.constant 0 : index
    %c19_495 = arith.constant 19 : index
    %c0_496 = arith.constant 0 : index
    %507 = vector.load %arg6[%c0_494, %c19_495, %c0_496] : memref<2x22x128xf32, #tpu.memory_space<vmem>>, vector<2x3x32xf32>
    tpu.vector_store %arg6[%c0_494, %c19_495, %c0_496], %506 {strides = array<i32>} : memref<2x22x128xf32, #tpu.memory_space<vmem>>, vector<2x3x32xf32>,
    %508 = vector.shape_cast %501 : vector<32x32xf32> to vector<2x16x32xf32>
    %c0_497 = arith.constant 0 : index
    %c3_498 = arith.constant 3 : index
    %c0_499 = arith.constant 0 : index
    %509 = vector.load %arg6[%c0_497, %c3_498, %c0_499] : memref<2x22x128xf32, #tpu.memory_space<vmem>>, vector<2x16x32xf32>
    tpu.vector_store %arg6[%c0_497, %c3_498, %c0_499], %508 {strides = array<i32>} : memref<2x22x128xf32, #tpu.memory_space<vmem>>, vector<2x16x32xf32>,
    %c0_500 = arith.constant 0 : index
    %c0_501 = arith.constant 0 : index
    %c0_502 = arith.constant 0 : index
    %510 = vector.load %arg6[%c0_500, %c0_501, %c0_502] : memref<2x22x128xf32, #tpu.memory_space<vmem>>, vector<2x16x32xf32>
    %c0_503 = arith.constant 0 : index
    %c1_504 = arith.constant 1 : index
    %c0_505 = arith.constant 0 : index
    %511 = vector.load %arg6[%c0_503, %c1_504, %c0_505] : memref<2x22x128xf32, #tpu.memory_space<vmem>>, vector<2x16x32xf32>
    %c0_506 = arith.constant 0 : index
    %c2_507 = arith.constant 2 : index
    %c0_508 = arith.constant 0 : index
    %512 = vector.load %arg6[%c0_506, %c2_507, %c0_508] : memref<2x22x128xf32, #tpu.memory_space<vmem>>, vector<2x16x32xf32>
    %c0_509 = arith.constant 0 : index
    %c3_510 = arith.constant 3 : index
    %c0_511 = arith.constant 0 : index
    %513 = vector.load %arg6[%c0_509, %c3_510, %c0_511] : memref<2x22x128xf32, #tpu.memory_space<vmem>>, vector<2x16x32xf32>
    %c0_512 = arith.constant 0 : index
    %c4_513 = arith.constant 4 : index
    %c0_514 = arith.constant 0 : index
    %514 = vector.load %arg6[%c0_512, %c4_513, %c0_514] : memref<2x22x128xf32, #tpu.memory_space<vmem>>, vector<2x16x32xf32>
    %c0_515 = arith.constant 0 : index
    %c5_516 = arith.constant 5 : index
    %c0_517 = arith.constant 0 : index
    %515 = vector.load %arg6[%c0_515, %c5_516, %c0_517] : memref<2x22x128xf32, #tpu.memory_space<vmem>>, vector<2x16x32xf32>
    %c0_518 = arith.constant 0 : index
    %c6_519 = arith.constant 6 : index
    %c0_520 = arith.constant 0 : index
    %516 = vector.load %arg6[%c0_518, %c6_519, %c0_520] : memref<2x22x128xf32, #tpu.memory_space<vmem>>, vector<2x16x32xf32>
    %517 = tpu.concatenate %510, %511, %512, %513, %514, %515, %516 in 2 : vector<2x16x32xf32>, vector<2x16x32xf32>, vector<2x16x32xf32>, vector<2x16x32xf32>, vector<2x16x32xf32>, vector<2x16x32xf32>, vector<2x16x32xf32> -> vector<2x16x224xf32>
    %518 = vector.shape_cast %517 : vector<2x16x224xf32> to vector<32x224xf32>
    %cst_521 = arith.constant dense<0.000000e+00> : vector<32x16xf32>
    %519 = tpu.matmul %518, %502, %cst_521 {dimension_numbers = #tpu.dot_dimension_numbers<[1], [0], [0], [1], [0, 0, 1, 1], [], []>} : vector<32x224xf32>, vector<224x16xf32>, vector<32x16xf32> -> vector<32x16xf32>
    %cst_522 = arith.constant 0.000000e+00 : f32
    %520 = vector.broadcast %cst_522 : f32 to vector<32x16xf32>
    %521 = arith.maximumf %519, %520 : vector<32x16xf32>
    %cst_523 = arith.constant dense<0.000000e+00> : vector<16xf32>
    %522 = vector.multi_reduction <add>, %521, %cst_523 [0] : vector<32x16xf32> to vector<16xf32>
    %523 = vector.shape_cast %522 : vector<16xf32> to vector<1x16xf32>
    %cst_524 = arith.constant 3.125000e-02 : f32
    %524 = vector.broadcast %cst_524 : f32 to vector<1x16xf32>
    %525 = arith.mulf %523, %524 : vector<1x16xf32>
    %526 = arith.mulf %521, %521 : vector<32x16xf32>
    %cst_525 = arith.constant dense<0.000000e+00> : vector<16xf32>
    %527 = vector.multi_reduction <add>, %526, %cst_525 [0] : vector<32x16xf32> to vector<16xf32>
    %528 = vector.shape_cast %527 : vector<16xf32> to vector<1x16xf32>
    %cst_526 = arith.constant 3.125000e-02 : f32
    %529 = vector.broadcast %cst_526 : f32 to vector<1x16xf32>
    %530 = arith.mulf %528, %529 : vector<1x16xf32>
    %531 = arith.mulf %525, %525 : vector<1x16xf32>
    %532 = arith.subf %530, %531 : vector<1x16xf32>
    %533 = vector.broadcast %525 : vector<1x16xf32> to vector<32x16xf32>
    %534 = arith.subf %521, %533 : vector<32x16xf32>
    %cst_527 = arith.constant 9.99999974E-6 : f32
    %535 = vector.broadcast %cst_527 : f32 to vector<1x16xf32>
    %536 = arith.addf %532, %535 : vector<1x16xf32>
    %537 = math.rsqrt %536 : vector<1x16xf32>
    %538 = vector.broadcast %537 : vector<1x16xf32> to vector<32x16xf32>
    %539 = arith.mulf %534, %538 : vector<32x16xf32>
    %cst_528 = arith.constant 0.000000e+00 : f32
    %540 = vector.broadcast %cst_528 : f32 to vector<2x3x16xf32>
    %c0_529 = arith.constant 0 : index
    %c0_530 = arith.constant 0 : index
    %c0_531 = arith.constant 0 : index
    %541 = vector.load %arg6[%c0_529, %c0_530, %c0_531] : memref<2x22x128xf32, #tpu.memory_space<vmem>>, vector<2x3x16xf32>
    tpu.vector_store %arg6[%c0_529, %c0_530, %c0_531], %540 {strides = array<i32>} : memref<2x22x128xf32, #tpu.memory_space<vmem>>, vector<2x3x16xf32>,
    %cst_532 = arith.constant 0.000000e+00 : f32
    %542 = vector.broadcast %cst_532 : f32 to vector<2x3x16xf32>
    %c0_533 = arith.constant 0 : index
    %c19_534 = arith.constant 19 : index
    %c0_535 = arith.constant 0 : index
    %543 = vector.load %arg6[%c0_533, %c19_534, %c0_535] : memref<2x22x128xf32, #tpu.memory_space<vmem>>, vector<2x3x16xf32>
    tpu.vector_store %arg6[%c0_533, %c19_534, %c0_535], %542 {strides = array<i32>} : memref<2x22x128xf32, #tpu.memory_space<vmem>>, vector<2x3x16xf32>,
    %544 = vector.shape_cast %539 : vector<32x16xf32> to vector<2x16x16xf32>
    %c0_536 = arith.constant 0 : index
    %c3_537 = arith.constant 3 : index
    %c0_538 = arith.constant 0 : index
    %545 = vector.load %arg6[%c0_536, %c3_537, %c0_538] : memref<2x22x128xf32, #tpu.memory_space<vmem>>, vector<2x16x16xf32>
    tpu.vector_store %arg6[%c0_536, %c3_537, %c0_538], %544 {strides = array<i32>} : memref<2x22x128xf32, #tpu.memory_space<vmem>>, vector<2x16x16xf32>,
    %c0_539 = arith.constant 0 : index
    %c0_540 = arith.constant 0 : index
    %c0_541 = arith.constant 0 : index
    %546 = vector.load %arg6[%c0_539, %c0_540, %c0_541] : memref<2x22x128xf32, #tpu.memory_space<vmem>>, vector<2x16x16xf32>
    %c0_542 = arith.constant 0 : index
    %c1_543 = arith.constant 1 : index
    %c0_544 = arith.constant 0 : index
    %547 = vector.load %arg6[%c0_542, %c1_543, %c0_544] : memref<2x22x128xf32, #tpu.memory_space<vmem>>, vector<2x16x16xf32>
    %c0_545 = arith.constant 0 : index
    %c2_546 = arith.constant 2 : index
    %c0_547 = arith.constant 0 : index
    %548 = vector.load %arg6[%c0_545, %c2_546, %c0_547] : memref<2x22x128xf32, #tpu.memory_space<vmem>>, vector<2x16x16xf32>
    %c0_548 = arith.constant 0 : index
    %c3_549 = arith.constant 3 : index
    %c0_550 = arith.constant 0 : index
    %549 = vector.load %arg6[%c0_548, %c3_549, %c0_550] : memref<2x22x128xf32, #tpu.memory_space<vmem>>, vector<2x16x16xf32>
    %c0_551 = arith.constant 0 : index
    %c4_552 = arith.constant 4 : index
    %c0_553 = arith.constant 0 : index
    %550 = vector.load %arg6[%c0_551, %c4_552, %c0_553] : memref<2x22x128xf32, #tpu.memory_space<vmem>>, vector<2x16x16xf32>
    %c0_554 = arith.constant 0 : index
    %c5_555 = arith.constant 5 : index
    %c0_556 = arith.constant 0 : index
    %551 = vector.load %arg6[%c0_554, %c5_555, %c0_556] : memref<2x22x128xf32, #tpu.memory_space<vmem>>, vector<2x16x16xf32>
    %c0_557 = arith.constant 0 : index
    %c6_558 = arith.constant 6 : index
    %c0_559 = arith.constant 0 : index
    %552 = vector.load %arg6[%c0_557, %c6_558, %c0_559] : memref<2x22x128xf32, #tpu.memory_space<vmem>>, vector<2x16x16xf32>
    %553 = tpu.concatenate %546, %547, %548, %549, %550, %551, %552 in 2 : vector<2x16x16xf32>, vector<2x16x16xf32>, vector<2x16x16xf32>, vector<2x16x16xf32>, vector<2x16x16xf32>, vector<2x16x16xf32>, vector<2x16x16xf32> -> vector<2x16x112xf32>
    %554 = vector.shape_cast %553 : vector<2x16x112xf32> to vector<32x112xf32>
    %cst_560 = arith.constant dense<0.000000e+00> : vector<32x16xf32>
    %555 = tpu.matmul %554, %503, %cst_560 {dimension_numbers = #tpu.dot_dimension_numbers<[1], [0], [0], [1], [0, 0, 1, 1], [], []>} : vector<32x112xf32>, vector<112x16xf32>, vector<32x16xf32> -> vector<32x16xf32>
    %cst_561 = arith.constant 0.000000e+00 : f32
    %556 = vector.broadcast %cst_561 : f32 to vector<32x16xf32>
    %557 = arith.maximumf %555, %556 : vector<32x16xf32>
    %cst_562 = arith.constant dense<0.000000e+00> : vector<16xf32>
    %558 = vector.multi_reduction <add>, %557, %cst_562 [0] : vector<32x16xf32> to vector<16xf32>
    %559 = vector.shape_cast %558 : vector<16xf32> to vector<1x16xf32>
    %cst_563 = arith.constant 3.125000e-02 : f32
    %560 = vector.broadcast %cst_563 : f32 to vector<1x16xf32>
    %561 = arith.mulf %559, %560 : vector<1x16xf32>
    %562 = arith.mulf %557, %557 : vector<32x16xf32>
    %cst_564 = arith.constant dense<0.000000e+00> : vector<16xf32>
    %563 = vector.multi_reduction <add>, %562, %cst_564 [0] : vector<32x16xf32> to vector<16xf32>
    %564 = vector.shape_cast %563 : vector<16xf32> to vector<1x16xf32>
    %cst_565 = arith.constant 3.125000e-02 : f32
    %565 = vector.broadcast %cst_565 : f32 to vector<1x16xf32>
    %566 = arith.mulf %564, %565 : vector<1x16xf32>
    %567 = arith.mulf %561, %561 : vector<1x16xf32>
    %568 = arith.subf %566, %567 : vector<1x16xf32>
    %569 = vector.broadcast %561 : vector<1x16xf32> to vector<32x16xf32>
    %570 = arith.subf %557, %569 : vector<32x16xf32>
    %cst_566 = arith.constant 9.99999974E-6 : f32
    %571 = vector.broadcast %cst_566 : f32 to vector<1x16xf32>
    %572 = arith.addf %568, %571 : vector<1x16xf32>
    %573 = math.rsqrt %572 : vector<1x16xf32>
    %574 = vector.broadcast %573 : vector<1x16xf32> to vector<32x16xf32>
    %575 = arith.mulf %570, %574 : vector<32x16xf32>
    %c502 = arith.constant 502 : index
    %c0_567 = arith.constant 0 : index
    %576 = vector.load %arg1[%c502, %c0_567] : memref<616x16xf32, #tpu.memory_space<vmem>>, vector<112x16xf32>
    %577 = vector.extract_strided_slice %576 {offsets = [0, 0], sizes = [112, 3], strides = [1, 1]} : vector<112x16xf32> to vector<112x3xf32>
    %c614 = arith.constant 614 : index
    %c0_568 = arith.constant 0 : index
    %578 = vector.load %arg1[%c614, %c0_568] : memref<616x16xf32, #tpu.memory_space<vmem>>, vector<1x16xf32>
    %579 = vector.extract_strided_slice %578 {offsets = [0, 0], sizes = [1, 3], strides = [1, 1]} : vector<1x16xf32> to vector<1x3xf32>
    %cst_569 = arith.constant 0.000000e+00 : f32
    %580 = vector.broadcast %cst_569 : f32 to vector<2x3x16xf32>
    %c0_570 = arith.constant 0 : index
    %c0_571 = arith.constant 0 : index
    %c0_572 = arith.constant 0 : index
    %581 = vector.load %arg6[%c0_570, %c0_571, %c0_572] : memref<2x22x128xf32, #tpu.memory_space<vmem>>, vector<2x3x16xf32>
    tpu.vector_store %arg6[%c0_570, %c0_571, %c0_572], %580 {strides = array<i32>} : memref<2x22x128xf32, #tpu.memory_space<vmem>>, vector<2x3x16xf32>,
    %cst_573 = arith.constant 0.000000e+00 : f32
    %582 = vector.broadcast %cst_573 : f32 to vector<2x3x16xf32>
    %c0_574 = arith.constant 0 : index
    %c19_575 = arith.constant 19 : index
    %c0_576 = arith.constant 0 : index
    %583 = vector.load %arg6[%c0_574, %c19_575, %c0_576] : memref<2x22x128xf32, #tpu.memory_space<vmem>>, vector<2x3x16xf32>
    tpu.vector_store %arg6[%c0_574, %c19_575, %c0_576], %582 {strides = array<i32>} : memref<2x22x128xf32, #tpu.memory_space<vmem>>, vector<2x3x16xf32>,
    %584 = vector.shape_cast %575 : vector<32x16xf32> to vector<2x16x16xf32>
    %c0_577 = arith.constant 0 : index
    %c3_578 = arith.constant 3 : index
    %c0_579 = arith.constant 0 : index
    %585 = vector.load %arg6[%c0_577, %c3_578, %c0_579] : memref<2x22x128xf32, #tpu.memory_space<vmem>>, vector<2x16x16xf32>
    tpu.vector_store %arg6[%c0_577, %c3_578, %c0_579], %584 {strides = array<i32>} : memref<2x22x128xf32, #tpu.memory_space<vmem>>, vector<2x16x16xf32>,
    %c0_580 = arith.constant 0 : index
    %c0_581 = arith.constant 0 : index
    %c0_582 = arith.constant 0 : index
    %586 = vector.load %arg6[%c0_580, %c0_581, %c0_582] : memref<2x22x128xf32, #tpu.memory_space<vmem>>, vector<2x16x16xf32>
    %c0_583 = arith.constant 0 : index
    %c1_584 = arith.constant 1 : index
    %c0_585 = arith.constant 0 : index
    %587 = vector.load %arg6[%c0_583, %c1_584, %c0_585] : memref<2x22x128xf32, #tpu.memory_space<vmem>>, vector<2x16x16xf32>
    %c0_586 = arith.constant 0 : index
    %c2_587 = arith.constant 2 : index
    %c0_588 = arith.constant 0 : index
    %588 = vector.load %arg6[%c0_586, %c2_587, %c0_588] : memref<2x22x128xf32, #tpu.memory_space<vmem>>, vector<2x16x16xf32>
    %c0_589 = arith.constant 0 : index
    %c3_590 = arith.constant 3 : index
    %c0_591 = arith.constant 0 : index
    %589 = vector.load %arg6[%c0_589, %c3_590, %c0_591] : memref<2x22x128xf32, #tpu.memory_space<vmem>>, vector<2x16x16xf32>
    %c0_592 = arith.constant 0 : index
    %c4_593 = arith.constant 4 : index
    %c0_594 = arith.constant 0 : index
    %590 = vector.load %arg6[%c0_592, %c4_593, %c0_594] : memref<2x22x128xf32, #tpu.memory_space<vmem>>, vector<2x16x16xf32>
    %c0_595 = arith.constant 0 : index
    %c5_596 = arith.constant 5 : index
    %c0_597 = arith.constant 0 : index
    %591 = vector.load %arg6[%c0_595, %c5_596, %c0_597] : memref<2x22x128xf32, #tpu.memory_space<vmem>>, vector<2x16x16xf32>
    %c0_598 = arith.constant 0 : index
    %c6_599 = arith.constant 6 : index
    %c0_600 = arith.constant 0 : index
    %592 = vector.load %arg6[%c0_598, %c6_599, %c0_600] : memref<2x22x128xf32, #tpu.memory_space<vmem>>, vector<2x16x16xf32>
    %593 = tpu.concatenate %586, %587, %588, %589, %590, %591, %592 in 2 : vector<2x16x16xf32>, vector<2x16x16xf32>, vector<2x16x16xf32>, vector<2x16x16xf32>, vector<2x16x16xf32>, vector<2x16x16xf32>, vector<2x16x16xf32> -> vector<2x16x112xf32>
    %594 = vector.shape_cast %593 : vector<2x16x112xf32> to vector<32x112xf32>
    %cst_601 = arith.constant dense<0.000000e+00> : vector<32x3xf32>
    %595 = tpu.matmul %594, %577, %cst_601 {dimension_numbers = #tpu.dot_dimension_numbers<[1], [0], [0], [1], [0, 0, 1, 1], [], []>} : vector<32x112xf32>, vector<112x3xf32>, vector<32x3xf32> -> vector<32x3xf32>
    %596 = vector.broadcast %579 : vector<1x3xf32> to vector<32x3xf32>
    %597 = arith.addf %595, %596 : vector<32x3xf32>
    %598 = vector.shape_cast %597 : vector<32x3xf32> to vector<2x16x3xf32>
    %c0_602 = arith.constant 0 : index
    %c0_603 = arith.constant 0 : index
    %c0_604 = arith.constant 0 : index
    %599 = vector.load %arg5[%c0_602, %c0_603, %c0_604] : memref<2x16x3xf32, #tpu.memory_space<vmem>>, vector<2x16x3xf32>
    tpu.vector_store %arg5[%c0_602, %c0_603, %c0_604], %598 {strides = array<i32>} : memref<2x16x3xf32, #tpu.memory_space<vmem>>, vector<2x16x3xf32>,
    return
  }
}

</mosaic_0001>

<bundles_post_ra>
// kernel: mul.9
= control target key start
LH: loop header
LB: loop body
LE: loop exit
PB: predicated region body
PF: predicated region fallthrough
CT: control target
= control target key end

     0   :  { %s34_s0 = inlined_call_operand.vmem [shape: f32[1,3], index: 0, kind: input, shape index: {}]   ;;  %s35_s1 = inlined_call_operand.vmem [shape: f32[1,3], index: 1, kind: input, shape index: {}]   ;;  %s36_s2 = inlined_call_operand.vmem [shape: f32[1,3], index: 2, kind: output, shape index: {}]  }
   0x1   :  { %v3_v0 = vld [vmem:[%s34_s0] sm:$0x1] }
   0x2   :  { %v4_v1 = vld [vmem:[%s35_s1] sm:$0x1] }
   0x3   :  { %v7_v2 = vmul.f32 %v4_v1, %v3_v0 }
   0x5   :  { %9 = vst [vmem:[%s36_s2] sm:$0x1] %v7_v2 }

// kernel: unet_forward.1
= control target key start
LH: loop header
LB: loop body
LE: loop exit
PB: predicated region body
PF: predicated region fallthrough
CT: control target
= control target key end

     0   :  { %s11473_s0 = inlined_call_operand.vmem [shape: f32[2,16,3], index: 0, kind: input, shape index: {}]   ;;  %s11474_s1 = inlined_call_operand.vmem [shape: f32[616,16], index: 1, kind: input, shape index: {}]   ;;  %s11475_s2 = inlined_call_operand.vmem [shape: f32[1080,32], index: 2, kind: input, shape index: {}]   ;;  %s11476_s3 = inlined_call_operand.vmem [shape: f32[2152,64], index: 3, kind: input, shape index: {}]   ;;  %s11477_s4 = inlined_call_operand.vmem [shape: f32[1344,128], index: 4, kind: input, shape index: {}]   ;;  %s11478_s5 = inlined_call_operand.vmem [shape: f32[2,16,3], index: 5, kind: output, shape index: {}]  }
   0x1   :  { %v49_v0 = vld [vmem:[%s11476_s3] sm:$0xff]  ;;  %v51_v1 = vld [vmem:[%s11476_s3 + $0x8] sm:$0xff]  ;;  %v53_v2 = vld [vmem:[%s11476_s3 + $0x10] sm:$0xff] }
   0x2   :  { %50 = vst [vmem:[#allocation3] sm:$0xff] %v49_v0  ;;  %52 = vst [vmem:[#allocation3 + $0x8] sm:$0xff] %v51_v1  ;;  %v55_v3 = vld [vmem:[%s11476_s3 + $0x18] sm:$0xff]  ;;  %v57_v4 = vld [vmem:[%s11476_s3 + $0x20] sm:$0xff] }
   0x3   :  { %54 = vst [vmem:[#allocation3 + $0x10] sm:$0xff] %v53_v2  ;;  %v59_v5 = vld [vmem:[%s11476_s3 + $0x28] sm:$0xff]  ;;  %56 = vst [vmem:[#allocation3 + $0x18] sm:$0xff] %v55_v3  ;;  %v61_v6 = vld [vmem:[%s11476_s3 + $0x30] sm:$0xff] }
   0x4   :  { %58 = vst [vmem:[#allocation3 + $0x20] sm:$0xff] %v57_v4  ;;  %60 = vst [vmem:[#allocation3 + $0x28] sm:$0xff] %v59_v5  ;;  %v63_v7 = vld [vmem:[%s11476_s3 + $0x38] sm:$0xff]  ;;  %v65_v8 = vld [vmem:[%s11476_s3 + $0x40] sm:$0xff] }
   0x5   :  { %62 = vst [vmem:[#allocation3 + $0x30] sm:$0xff] %v61_v6  ;;  %64 = vst [vmem:[#allocation3 + $0x38] sm:$0xff] %v63_v7  ;;  %v67_v9 = vld [vmem:[%s11476_s3 + $0x48] sm:$0xff]  ;;  %v69_v10 = vld [vmem:[%s11476_s3 + $0x50] sm:$0xff] }
   0x6   :  { %66 = vst [vmem:[#allocation3 + $0x40] sm:$0xff] %v65_v8  ;;  %v71_v11 = vld [vmem:[%s11476_s3 + $0x58] sm:$0xff]  ;;  %68 = vst [vmem:[#allocation3 + $0x48] sm:$0xff] %v67_v9  ;;  %v73_v12 = vld [vmem:[%s11476_s3 + $0x60] sm:$0xff] }
   0x7   :  { %70 = vst [vmem:[#allocation3 + $0x50] sm:$0xff] %v69_v10  ;;  %72 = vst [vmem:[#allocation3 + $0x58] sm:$0xff] %v71_v11  ;;  %v75_v13 = vld [vmem:[%s11476_s3 + $0x68] sm:$0xff]  ;;  %v77_v14 = vld [vmem:[%s11476_s3 + $0x70] sm:$0xff] }
   0x8   :  { %74 = vst [vmem:[#allocation3 + $0x60] sm:$0xff] %v73_v12  ;;  %76 = vst [vmem:[#allocation3 + $0x68] sm:$0xff] %v75_v13  ;;  %v79_v15 = vld [vmem:[%s11476_s3 + $0x78] sm:$0xff]  ;;  %v81_v16 = vld [vmem:[%s11476_s3 + $0x80] sm:$0xff] }
   0x9   :  { %78 = vst [vmem:[#allocation3 + $0x70] sm:$0xff] %v77_v14  ;;  %v83_v17 = vld [vmem:[%s11476_s3 + $0x88] sm:$0xff]  ;;  %80 = vst [vmem:[#allocation3 + $0x78] sm:$0xff] %v79_v15  ;;  %v85_v18 = vld [vmem:[%s11476_s3 + $0x90] sm:$0xff] }
   0xa   :  { %82 = vst [vmem:[#allocation3 + $0x80] sm:$0xff] %v81_v16  ;;  %84 = vst [vmem:[#allocation3 + $0x88] sm:$0xff] %v83_v17  ;;  %v87_v19 = vld [vmem:[%s11476_s3 + $0x98] sm:$0xff]  ;;  %v89_v20 = vld [vmem:[%s11476_s3 + $0xa0] sm:$0xff] }
   0xb   :  { %86 = vst [vmem:[#allocation3 + $0x90] sm:$0xff] %v85_v18  ;;  %88 = vst [vmem:[#allocation3 + $0x98] sm:$0xff] %v87_v19  ;;  %v91_v21 = vld [vmem:[%s11476_s3 + $0xa8] sm:$0xff]  ;;  %v93_v22 = vld [vmem:[%s11476_s3 + $0xb0] sm:$0xff] }
   0xc   :  { %90 = vst [vmem:[#allocation3 + $0xa0] sm:$0xff] %v89_v20  ;;  %v95_v23 = vld [vmem:[%s11476_s3 + $0xb8] sm:$0xff]  ;;  %92 = vst [vmem:[#allocation3 + $0xa8] sm:$0xff] %v91_v21  ;;  %v97_v24 = vld [vmem:[%s11476_s3 + $0xc0] sm:$0xff] }
   0xd   :  { %94 = vst [vmem:[#allocation3 + $0xb0] sm:$0xff] %v93_v22  ;;  %96 = vst [vmem:[#allocation3 + $0xb8] sm:$0xff] %v95_v23  ;;  %v99_v25 = vld [vmem:[%s11476_s3 + $0xc8] sm:$0xff]  ;;  %v101_v26 = vld [vmem:[%s11476_s3 + $0xd0] sm:$0xff] }
   0xe   :  { %98 = vst [vmem:[#allocation3 + $0xc0] sm:$0xff] %v97_v24  ;;  %100 = vst [vmem:[#allocation3 + $0xc8] sm:$0xff] %v99_v25  ;;  %v103_v27 = vld [vmem:[%s11476_s3 + $0xd8] sm:$0xff]  ;;  %v105_v28 = vld [vmem:[%s11476_s3 + $0xe0] sm:$0xff] }
   0xf   :  { %102 = vst [vmem:[#allocation3 + $0xd0] sm:$0xff] %v101_v26  ;;  %v107_v29 = vld [vmem:[%s11476_s3 + $0xe8] sm:$0xff]  ;;  %104 = vst [vmem:[#allocation3 + $0xd8] sm:$0xff] %v103_v27  ;;  %v109_v30 = vld [vmem:[%s11476_s3 + $0xf0] sm:$0xff] }
  0x10   :  { %106 = vst [vmem:[#allocation3 + $0xe0] sm:$0xff] %v105_v28  ;;  %108 = vst [vmem:[#allocation3 + $0xe8] sm:$0xff] %v107_v29  ;;  %v111_v31 = vld [vmem:[%s11476_s3 + $0xf8] sm:$0xff]  ;;  %v113_v32 = vld [vmem:[%s11476_s3 + $0x100] sm:$0xff] }
  0x11   :  { %110 = vst [vmem:[#allocation3 + $0xf0] sm:$0xff] %v109_v30  ;;  %112 = vst [vmem:[#allocation3 + $0xf8] sm:$0xff] %v111_v31  ;;  %v115_v33 = vld [vmem:[%s11476_s3 + $0x108] sm:$0xff]  ;;  %v117_v34 = vld [vmem:[%s11476_s3 + $0x110] sm:$0xff] }
  0x12   :  { %114 = vst [vmem:[#allocation3 + $0x100] sm:$0xff] %v113_v32  ;;  %v119_v35 = vld [vmem:[%s11476_s3 + $0x118] sm:$0xff]  ;;  %116 = vst [vmem:[#allocation3 + $0x108] sm:$0xff] %v115_v33  ;;  %v121_v36 = vld [vmem:[%s11476_s3 + $0x120] sm:$0xff] }
  0x13   :  { %118 = vst [vmem:[#allocation3 + $0x110] sm:$0xff] %v117_v34  ;;  %120 = vst [vmem:[#allocation3 + $0x118] sm:$0xff] %v119_v35  ;;  %v123_v37 = vld [vmem:[%s11476_s3 + $0x128] sm:$0xff]  ;;  %v125_v38 = vld [vmem:[%s11476_s3 + $0x130] sm:$0xff] }
  0x14   :  { %122 = vst [vmem:[#allocation3 + $0x120] sm:$0xff] %v121_v36  ;;  %124 = vst [vmem:[#allocation3 + $0x128] sm:$0xff] %v123_v37  ;;  %v127_v39 = vld [vmem:[%s11476_s3 + $0x138] sm:$0xff]  ;;  %v129_v40 = vld [vmem:[%s11476_s3 + $0x140] sm:$0xff] }
  0x15   :  { %126 = vst [vmem:[#allocation3 + $0x130] sm:$0xff] %v125_v38  ;;  %v131_v41 = vld [vmem:[%s11476_s3 + $0x148] sm:$0xff]  ;;  %128 = vst [vmem:[#allocation3 + $0x138] sm:$0xff] %v127_v39  ;;  %v133_v42 = vld [vmem:[%s11476_s3 + $0x150] sm:$0xff] }
  0x16   :  { %130 = vst [vmem:[#allocation3 + $0x140] sm:$0xff] %v129_v40  ;;  %132 = vst [vmem:[#allocation3 + $0x148] sm:$0xff] %v131_v41  ;;  %v135_v43 = vld [vmem:[%s11476_s3 + $0x158] sm:$0xff]  ;;  %v137_v44 = vld [vmem:[%s11476_s3 + $0x160] sm:$0xff] }
  0x17   :  { %134 = vst [vmem:[#allocation3 + $0x150] sm:$0xff] %v133_v42  ;;  %136 = vst [vmem:[#allocation3 + $0x158] sm:$0xff] %v135_v43  ;;  %v139_v45 = vld [vmem:[%s11476_s3 + $0x168] sm:$0xff]  ;;  %v141_v46 = vld [vmem:[%s11476_s3 + $0x170] sm:$0xff] }
  0x18   :  { %138 = vst [vmem:[#allocation3 + $0x160] sm:$0xff] %v137_v44  ;;  %v143_v47 = vld [vmem:[%s11476_s3 + $0x178] sm:$0xff]  ;;  %140 = vst [vmem:[#allocation3 + $0x168] sm:$0xff] %v139_v45  ;;  %v145_v48 = vld [vmem:[%s11476_s3 + $0x180] sm:$0xff] }
  0x19   :  { %142 = vst [vmem:[#allocation3 + $0x170] sm:$0xff] %v141_v46  ;;  %144 = vst [vmem:[#allocation3 + $0x178] sm:$0xff] %v143_v47  ;;  %v147_v49 = vld [vmem:[%s11476_s3 + $0x188] sm:$0xff]  ;;  %v149_v50 = vld [vmem:[%s11476_s3 + $0x190] sm:$0xff] }
  0x1a   :  { %146 = vst [vmem:[#allocation3 + $0x180] sm:$0xff] %v145_v48  ;;  %148 = vst [vmem:[#allocation3 + $0x188] sm:$0xff] %v147_v49  ;;  %v151_v51 = vld [vmem:[%s11476_s3 + $0x198] sm:$0xff]  ;;  %v153_v52 = vld [vmem:[%s11476_s3 + $0x1a0] sm:$0xff] }
  0x1b   :  { %150 = vst [vmem:[#allocation3 + $0x190] sm:$0xff] %v149_v50  ;;  %v155_v53 = vld [vmem:[%s11476_s3 + $0x1a8] sm:$0xff]  ;;  %152 = vst [vmem:[#allocation3 + $0x198] sm:$0xff] %v151_v51  ;;  %v157_v54 = vld [vmem:[%s11476_s3 + $0x1b0] sm:$0xff] }
  0x1c   :  { %154 = vst [vmem:[#allocation3 + $0x1a0] sm:$0xff] %v153_v52  ;;  %156 = vst [vmem:[#allocation3 + $0x1a8] sm:$0xff] %v155_v53  ;;  %v159_v55 = vld [vmem:[%s11476_s3 + $0x1b8] sm:$0xff]  ;;  %v161_v56 = vld [vmem:[%s11476_s3 + $0x1c0] sm:$0xff] }
  0x1d   :  { %158 = vst [vmem:[#allocation3 + $0x1b0] sm:$0xff] %v157_v54  ;;  %160 = vst [vmem:[#allocation3 + $0x1b8] sm:$0xff] %v159_v55  ;;  %v163_v57 = vld [vmem:[%s11476_s3 + $0x1c8] sm:$0xff]  ;;  %v165_v58 = vld [vmem:[%s11476_s3 + $0x1d0] sm:$0xff] }
  0x1e   :  { %162 = vst [vmem:[#allocation3 + $0x1c0] sm:$0xff] %v161_v56  ;;  %v167_v59 = vld [vmem:[%s11476_s3 + $0x1d8] sm:$0xff]  ;;  %164 = vst [vmem:[#allocation3 + $0x1c8] sm:$0xff] %v163_v57  ;;  %v169_v60 = vld [vmem:[%s11476_s3 + $0x1e0] sm:$0xff] }
  0x1f   :  { %166 = vst [vmem:[#allocation3 + $0x1d0] sm:$0xff] %v165_v58  ;;  %168 = vst [vmem:[#allocation3 + $0x1d8] sm:$0xff] %v167_v59  ;;  %v171_v61 = vld [vmem:[%s11476_s3 + $0x1e8] sm:$0xff]  ;;  %v173_v62 = vld [vmem:[%s11476_s3 + $0x1f0] sm:$0xff] }
  0x20   :  { %170 = vst [vmem:[#allocation3 + $0x1e0] sm:$0xff] %v169_v60  ;;  %172 = vst [vmem:[#allocation3 + $0x1e8] sm:$0xff] %v171_v61  ;;  %v175_v63 = vld [vmem:[%s11476_s3 + $0x1f8] sm:$0xff]  ;;  %v177_v0 = vld [vmem:[%s11476_s3 + $0x200] sm:$0xff] }
  0x21   :  { %174 = vst [vmem:[#allocation3 + $0x1f0] sm:$0xff] %v173_v62  ;;  %v179_v1 = vld [vmem:[%s11476_s3 + $0x208] sm:$0xff]  ;;  %176 = vst [vmem:[#allocation3 + $0x1f8] sm:$0xff] %v175_v63  ;;  %v181_v2 = vld [vmem:[%s11476_s3 + $0x210] sm:$0xff] }
  0x22   :  { %178 = vst [vmem:[#allocation3 + $0x200] sm:$0xff] %v177_v0  ;;  %180 = vst [vmem:[#allocation3 + $0x208] sm:$0xff] %v179_v1  ;;  %v183_v3 = vld [vmem:[%s11476_s3 + $0x218] sm:$0xff]  ;;  %v185_v4 = vld [vmem:[%s11476_s3 + $0x220] sm:$0xff] }
  0x23   :  { %182 = vst [vmem:[#allocation3 + $0x210] sm:$0xff] %v181_v2  ;;  %184 = vst [vmem:[#allocation3 + $0x218] sm:$0xff] %v183_v3  ;;  %v187_v5 = vld [vmem:[%s11476_s3 + $0x228] sm:$0xff]  ;;  %v189_v6 = vld [vmem:[%s11476_s3 + $0x230] sm:$0xff] }
  0x24   :  { %186 = vst [vmem:[#allocation3 + $0x220] sm:$0xff] %v185_v4  ;;  %v191_v7 = vld [vmem:[%s11476_s3 + $0x238] sm:$0xff]  ;;  %188 = vst [vmem:[#allocation3 + $0x228] sm:$0xff] %v187_v5  ;;  %v193_v8 = vld [vmem:[%s11476_s3 + $0x240] sm:$0xff] }
  0x25   :  { %190 = vst [vmem:[#allocation3 + $0x230] sm:$0xff] %v189_v6  ;;  %192 = vst [vmem:[#allocation3 + $0x238] sm:$0xff] %v191_v7  ;;  %v195_v9 = vld [vmem:[%s11476_s3 + $0x248] sm:$0xff]  ;;  %v197_v10 = vld [vmem:[%s11476_s3 + $0x250] sm:$0xff] }
  0x26   :  { %194 = vst [vmem:[#allocation3 + $0x240] sm:$0xff] %v193_v8  ;;  %196 = vst [vmem:[#allocation3 + $0x248] sm:$0xff] %v195_v9  ;;  %v199_v11 = vld [vmem:[%s11476_s3 + $0x258] sm:$0xff]  ;;  %v201_v12 = vld [vmem:[%s11476_s3 + $0x260] sm:$0xff] }
  0x27   :  { %198 = vst [vmem:[#allocation3 + $0x250] sm:$0xff] %v197_v10  ;;  %v203_v13 = vld [vmem:[%s11476_s3 + $0x268] sm:$0xff]  ;;  %200 = vst [vmem:[#allocation3 + $0x258] sm:$0xff] %v199_v11  ;;  %v205_v14 = vld [vmem:[%s11476_s3 + $0x270] sm:$0xff] }
  0x28   :  { %202 = vst [vmem:[#allocation3 + $0x260] sm:$0xff] %v201_v12  ;;  %204 = vst [vmem:[#allocation3 + $0x268] sm:$0xff] %v203_v13  ;;  %v207_v15 = vld [vmem:[%s11476_s3 + $0x278] sm:$0xff]  ;;  %v209_v16 = vld [vmem:[%s11476_s3 + $0x280] sm:$0xff] }
  0x29   :  { %206 = vst [vmem:[#allocation3 + $0x270] sm:$0xff] %v205_v14  ;;  %208 = vst [vmem:[#allocation3 + $0x278] sm:$0xff] %v207_v15  ;;  %v211_v17 = vld [vmem:[%s11476_s3 + $0x288] sm:$0xff]  ;;  %v213_v18 = vld [vmem:[%s11476_s3 + $0x290] sm:$0xff] }
  0x2a   :  { %210 = vst [vmem:[#allocation3 + $0x280] sm:$0xff] %v209_v16  ;;  %v215_v19 = vld [vmem:[%s11476_s3 + $0x298] sm:$0xff]  ;;  %212 = vst [vmem:[#allocation3 + $0x288] sm:$0xff] %v211_v17  ;;  %v217_v20 = vld [vmem:[%s11476_s3 + $0x2a0] sm:$0xff] }
  0x2b   :  { %214 = vst [vmem:[#allocation3 + $0x290] sm:$0xff] %v213_v18  ;;  %216 = vst [vmem:[#allocation3 + $0x298] sm:$0xff] %v215_v19  ;;  %v219_v21 = vld [vmem:[%s11476_s3 + $0x2a8] sm:$0xff]  ;;  %v221_v22 = vld [vmem:[%s11476_s3 + $0x2b0] sm:$0xff] }
  0x2c   :  { %218 = vst [vmem:[#allocation3 + $0x2a0] sm:$0xff] %v217_v20  ;;  %220 = vst [vmem:[#allocation3 + $0x2a8] sm:$0xff] %v219_v21  ;;  %v223_v23 = vld [vmem:[%s11476_s3 + $0x2b8] sm:$0xff]  ;;  %v225_v24 = vld [vmem:[%s11476_s3 + $0x2c0] sm:$0xff] }
  0x2d   :  { %222 = vst [vmem:[#allocation3 + $0x2b0] sm:$0xff] %v221_v22  ;;  %v227_v25 = vld [vmem:[%s11476_s3 + $0x2c8] sm:$0xff]  ;;  %224 = vst [vmem:[#allocation3 + $0x2b8] sm:$0xff] %v223_v23  ;;  %v229_v26 = vld [vmem:[%s11476_s3 + $0x2d0] sm:$0xff] }
  0x2e   :  { %226 = vst [vmem:[#allocation3 + $0x2c0] sm:$0xff] %v225_v24  ;;  %228 = vst [vmem:[#allocation3 + $0x2c8] sm:$0xff] %v227_v25  ;;  %v231_v27 = vld [vmem:[%s11476_s3 + $0x2d8] sm:$0xff]  ;;  %v233_v28 = vld [vmem:[%s11476_s3 + $0x2e0] sm:$0xff] }
  0x2f   :  { %230 = vst [vmem:[#allocation3 + $0x2d0] sm:$0xff] %v229_v26  ;;  %232 = vst [vmem:[#allocation3 + $0x2d8] sm:$0xff] %v231_v27  ;;  %v235_v29 = vld [vmem:[%s11476_s3 + $0x2e8] sm:$0xff]  ;;  %v237_v30 = vld [vmem:[%s11476_s3 + $0x2f0] sm:$0xff] }
  0x30   :  { %234 = vst [vmem:[#allocation3 + $0x2e0] sm:$0xff] %v233_v28  ;;  %v239_v31 = vld [vmem:[%s11476_s3 + $0x2f8] sm:$0xff]  ;;  %236 = vst [vmem:[#allocation3 + $0x2e8] sm:$0xff] %v235_v29  ;;  %v241_v32 = vld [vmem:[%s11476_s3 + $0x300] sm:$0xff] }
  0x31   :  { %238 = vst [vmem:[#allocation3 + $0x2f0] sm:$0xff] %v237_v30  ;;  %240 = vst [vmem:[#allocation3 + $0x2f8] sm:$0xff] %v239_v31  ;;  %v243_v33 = vld [vmem:[%s11476_s3 + $0x308] sm:$0xff]  ;;  %v245_v34 = vld [vmem:[%s11476_s3 + $0x310] sm:$0xff] }
  0x32   :  { %242 = vst [vmem:[#allocation3 + $0x300] sm:$0xff] %v241_v32  ;;  %244 = vst [vmem:[#allocation3 + $0x308] sm:$0xff] %v243_v33  ;;  %v247_v35 = vld [vmem:[%s11476_s3 + $0x318] sm:$0xff]  ;;  %v249_v36 = vld [vmem:[%s11476_s3 + $0x320] sm:$0xff] }
  0x33   :  { %246 = vst [vmem:[#allocation3 + $0x310] sm:$0xff] %v245_v34  ;;  %v251_v37 = vld [vmem:[%s11476_s3 + $0x328] sm:$0xff]  ;;  %248 = vst [vmem:[#allocation3 + $0x318] sm:$0xff] %v247_v35  ;;  %v253_v38 = vld [vmem:[%s11476_s3 + $0x330] sm:$0xff] }
  0x34   :  { %250 = vst [vmem:[#allocation3 + $0x320] sm:$0xff] %v249_v36  ;;  %252 = vst [vmem:[#allocation3 + $0x328] sm:$0xff] %v251_v37  ;;  %v255_v39 = vld [vmem:[%s11476_s3 + $0x338] sm:$0xff]  ;;  %v257_v40 = vld [vmem:[%s11476_s3 + $0x340] sm:$0xff] }
  0x35   :  { %254 = vst [vmem:[#allocation3 + $0x330] sm:$0xff] %v253_v38  ;;  %256 = vst [vmem:[#allocation3 + $0x338] sm:$0xff] %v255_v39  ;;  %v259_v41 = vld [vmem:[%s11476_s3 + $0x348] sm:$0xff]  ;;  %v261_v42 = vld [vmem:[%s11476_s3 + $0x350] sm:$0xff] }
  0x36   :  { %258 = vst [vmem:[#allocation3 + $0x340] sm:$0xff] %v257_v40  ;;  %v263_v43 = vld [vmem:[%s11476_s3 + $0x358] sm:$0xff]  ;;  %260 = vst [vmem:[#allocation3 + $0x348] sm:$0xff] %v259_v41  ;;  %v265_v44 = vld [vmem:[%s11476_s3 + $0x360] sm:$0xff] }
  0x37   :  { %262 = vst [vmem:[#allocation3 + $0x350] sm:$0xff] %v261_v42  ;;  %264 = vst [vmem:[#allocation3 + $0x358] sm:$0xff] %v263_v43  ;;  %v267_v45 = vld [vmem:[%s11476_s3 + $0x368] sm:$0xff]  ;;  %v269_v46 = vld [vmem:[%s11476_s3 + $0x370] sm:$0xff] }
  0x38   :  { %266 = vst [vmem:[#allocation3 + $0x360] sm:$0xff] %v265_v44  ;;  %268 = vst [vmem:[#allocation3 + $0x368] sm:$0xff] %v267_v45  ;;  %v271_v47 = vld [vmem:[%s11476_s3 + $0x378] sm:$0xff]  ;;  %v273_v48 = vld [vmem:[%s11476_s3 + $0x380] sm:$0xff] }
  0x39   :  { %270 = vst [vmem:[#allocation3 + $0x370] sm:$0xff] %v269_v46  ;;  %v275_v49 = vld [vmem:[%s11476_s3 + $0x388] sm:$0xff]  ;;  %272 = vst [vmem:[#allocation3 + $0x378] sm:$0xff] %v271_v47  ;;  %v277_v50 = vld [vmem:[%s11476_s3 + $0x390] sm:$0xff] }
  0x3a   :  { %274 = vst [vmem:[#allocation3 + $0x380] sm:$0xff] %v273_v48  ;;  %276 = vst [vmem:[#allocation3 + $0x388] sm:$0xff] %v275_v49  ;;  %v279_v51 = vld [vmem:[%s11476_s3 + $0x398] sm:$0xff]  ;;  %v281_v52 = vld [vmem:[%s11476_s3 + $0x3a0] sm:$0xff] }
  0x3b   :  { %278 = vst [vmem:[#allocation3 + $0x390] sm:$0xff] %v277_v50  ;;  %280 = vst [vmem:[#allocation3 + $0x398] sm:$0xff] %v279_v51  ;;  %v283_v53 = vld [vmem:[%s11476_s3 + $0x3a8] sm:$0xff]  ;;  %v285_v54 = vld [vmem:[%s11476_s3 + $0x3b0] sm:$0xff] }
  0x3c   :  { %282 = vst [vmem:[#allocation3 + $0x3a0] sm:$0xff] %v281_v52  ;;  %v287_v55 = vld [vmem:[%s11476_s3 + $0x3b8] sm:$0xff]  ;;  %284 = vst [vmem:[#allocation3 + $0x3a8] sm:$0xff] %v283_v53  ;;  %v289_v56 = vld [vmem:[%s11476_s3 + $0x3c0] sm:$0xff] }
  0x3d   :  { %286 = vst [vmem:[#allocation3 + $0x3b0] sm:$0xff] %v285_v54  ;;  %288 = vst [vmem:[#allocation3 + $0x3b8] sm:$0xff] %v287_v55  ;;  %v291_v57 = vld [vmem:[%s11476_s3 + $0x3c8] sm:$0xff]  ;;  %v293_v58 = vld [vmem:[%s11476_s3 + $0x3d0] sm:$0xff] }
  0x3e   :  { %290 = vst [vmem:[#allocation3 + $0x3c0] sm:$0xff] %v289_v56  ;;  %292 = vst [vmem:[#allocation3 + $0x3c8] sm:$0xff] %v291_v57  ;;  %v295_v59 = vld [vmem:[%s11476_s3 + $0x3d8] sm:$0xff]  ;;  %v297_v60 = vld [vmem:[%s11476_s3 + $0x3e0] sm:$0xff] }
  0x3f   :  { %294 = vst [vmem:[#allocation3 + $0x3d0] sm:$0xff] %v293_v58  ;;  %v299_v61 = vld [vmem:[%s11476_s3 + $0x3e8] sm:$0xff]  ;;  %296 = vst [vmem:[#allocation3 + $0x3d8] sm:$0xff] %v295_v59  ;;  %v301_v62 = vld [vmem:[%s11476_s3 + $0x3f0] sm:$0xff] }
  0x40   :  { %298 = vst [vmem:[#allocation3 + $0x3e0] sm:$0xff] %v297_v60  ;;  %300 = vst [vmem:[#allocation3 + $0x3e8] sm:$0xff] %v299_v61  ;;  %v303_v63 = vld [vmem:[%s11476_s3 + $0x3f8] sm:$0xff]  ;;  %v305_v0 = vld [vmem:[%s11476_s3 + $0x400] sm:$0xff] }
  0x41   :  { %302 = vst [vmem:[#allocation3 + $0x3f0] sm:$0xff] %v301_v62  ;;  %304 = vst [vmem:[#allocation3 + $0x3f8] sm:$0xff] %v303_v63  ;;  %v307_v1 = vld [vmem:[%s11476_s3 + $0x408] sm:$0xff]  ;;  %v309_v2 = vld [vmem:[%s11476_s3 + $0x410] sm:$0xff] }
  0x42   :  { %306 = vst [vmem:[#allocation3 + $0x400] sm:$0xff] %v305_v0  ;;  %v311_v3 = vld [vmem:[%s11476_s3 + $0x418] sm:$0xff]  ;;  %308 = vst [vmem:[#allocation3 + $0x408] sm:$0xff] %v307_v1  ;;  %v313_v4 = vld [vmem:[%s11476_s3 + $0x420] sm:$0xff] }
  0x43   :  { %310 = vst [vmem:[#allocation3 + $0x410] sm:$0xff] %v309_v2  ;;  %312 = vst [vmem:[#allocation3 + $0x418] sm:$0xff] %v311_v3  ;;  %v315_v5 = vld [vmem:[%s11476_s3 + $0x428] sm:$0xff]  ;;  %v317_v6 = vld [vmem:[%s11476_s3 + $0x430] sm:$0xff] }
  0x44   :  { %314 = vst [vmem:[#allocation3 + $0x420] sm:$0xff] %v313_v4  ;;  %316 = vst [vmem:[#allocation3 + $0x428] sm:$0xff] %v315_v5  ;;  %v319_v7 = vld [vmem:[%s11476_s3 + $0x438] sm:$0xff]  ;;  %v321_v8 = vld [vmem:[%s11476_s3 + $0x440] sm:$0xff] }
  0x45   :  { %318 = vst [vmem:[#allocation3 + $0x430] sm:$0xff] %v317_v6  ;;  %v323_v9 = vld [vmem:[%s11476_s3 + $0x448] sm:$0xff]  ;;  %320 = vst [vmem:[#allocation3 + $0x438] sm:$0xff] %v319_v7  ;;  %v325_v10 = vld [vmem:[%s11476_s3 + $0x450] sm:$0xff] }
  0x46   :  { %322 = vst [vmem:[#allocation3 + $0x440] sm:$0xff] %v321_v8  ;;  %324 = vst [vmem:[#allocation3 + $0x448] sm:$0xff] %v323_v9  ;;  %v327_v11 = vld [vmem:[%s11476_s3 + $0x458] sm:$0xff]  ;;  %v329_v12 = vld [vmem:[%s11476_s3 + $0x460] sm:$0xff] }
  0x47   :  { %326 = vst [vmem:[#allocation3 + $0x450] sm:$0xff] %v325_v10  ;;  %328 = vst [vmem:[#allocation3 + $0x458] sm:$0xff] %v327_v11  ;;  %v331_v13 = vld [vmem:[%s11476_s3 + $0x468] sm:$0xff]  ;;  %v333_v14 = vld [vmem:[%s11476_s3 + $0x470] sm:$0xff] }
  0x48   :  { %330 = vst [vmem:[#allocation3 + $0x460] sm:$0xff] %v329_v12  ;;  %v335_v15 = vld [vmem:[%s11476_s3 + $0x478] sm:$0xff]  ;;  %332 = vst [vmem:[#allocation3 + $0x468] sm:$0xff] %v331_v13  ;;  %v337_v16 = vld [vmem:[%s11476_s3 + $0x480] sm:$0xff] }
  0x49   :  { %334 = vst [vmem:[#allocation3 + $0x470] sm:$0xff] %v333_v14  ;;  %336 = vst [vmem:[#allocation3 + $0x478] sm:$0xff] %v335_v15  ;;  %v339_v17 = vld [vmem:[%s11476_s3 + $0x488] sm:$0xff]  ;;  %v341_v18 = vld [vmem:[%s11476_s3 + $0x490] sm:$0xff] }
  0x4a   :  { %338 = vst [vmem:[#allocation3 + $0x480] sm:$0xff] %v337_v16  ;;  %340 = vst [vmem:[#allocation3 + $0x488] sm:$0xff] %v339_v17  ;;  %v343_v19 = vld [vmem:[%s11476_s3 + $0x498] sm:$0xff]  ;;  %v345_v20 = vld [vmem:[%s11476_s3 + $0x4a0] sm:$0xff] }
  0x4b   :  { %342 = vst [vmem:[#allocation3 + $0x490] sm:$0xff] %v341_v18  ;;  %v347_v21 = vld [vmem:[%s11476_s3 + $0x4a8] sm:$0xff]  ;;  %344 = vst [vmem:[#allocation3 + $0x498] sm:$0xff] %v343_v19  ;;  %v349_v22 = vld [vmem:[%s11476_s3 + $0x4b0] sm:$0xff] }
  0x4c   :  { %346 = vst [vmem:[#allocation3 + $0x4a0] sm:$0xff] %v345_v20  ;;  %348 = vst [vmem:[#allocation3 + $0x4a8] sm:$0xff] %v347_v21  ;;  %v351_v23 = vld [vmem:[%s11476_s3 + $0x4b8] sm:$0xff]  ;;  %v353_v24 = vld [vmem:[%s11476_s3 + $0x4c0] sm:$0xff] }
  0x4d   :  { %350 = vst [vmem:[#allocation3 + $0x4b0] sm:$0xff] %v349_v22  ;;  %352 = vst [vmem:[#allocation3 + $0x4b8] sm:$0xff] %v351_v23  ;;  %v355_v25 = vld [vmem:[%s11476_s3 + $0x4c8] sm:$0xff]  ;;  %v357_v26 = vld [vmem:[%s11476_s3 + $0x4d0] sm:$0xff] }
  0x4e   :  { %354 = vst [vmem:[#allocation3 + $0x4c0] sm:$0xff] %v353_v24  ;;  %v359_v27 = vld [vmem:[%s11476_s3 + $0x4d8] sm:$0xff]  ;;  %356 = vst [vmem:[#allocation3 + $0x4c8] sm:$0xff] %v355_v25  ;;  %v361_v28 = vld [vmem:[%s11476_s3 + $0x4e0] sm:$0xff] }
  0x4f   :  { %358 = vst [vmem:[#allocation3 + $0x4d0] sm:$0xff] %v357_v26  ;;  %360 = vst [vmem:[#allocation3 + $0x4d8] sm:$0xff] %v359_v27  ;;  %v363_v29 = vld [vmem:[%s11476_s3 + $0x4e8] sm:$0xff]  ;;  %v365_v30 = vld [vmem:[%s11476_s3 + $0x4f0] sm:$0xff] }
  0x50   :  { %362 = vst [vmem:[#allocation3 + $0x4e0] sm:$0xff] %v361_v28  ;;  %364 = vst [vmem:[#allocation3 + $0x4e8] sm:$0xff] %v363_v29  ;;  %v367_v31 = vld [vmem:[%s11476_s3 + $0x4f8] sm:$0xff]  ;;  %v369_v32 = vld [vmem:[%s11476_s3 + $0x500] sm:$0xff] }
  0x51   :  { %366 = vst [vmem:[#allocation3 + $0x4f0] sm:$0xff] %v365_v30  ;;  %v371_v33 = vld [vmem:[%s11476_s3 + $0x508] sm:$0xff]  ;;  %368 = vst [vmem:[#allocation3 + $0x4f8] sm:$0xff] %v367_v31  ;;  %v373_v34 = vld [vmem:[%s11476_s3 + $0x510] sm:$0xff] }
  0x52   :  { %370 = vst [vmem:[#allocation3 + $0x500] sm:$0xff] %v369_v32  ;;  %372 = vst [vmem:[#allocation3 + $0x508] sm:$0xff] %v371_v33  ;;  %v375_v35 = vld [vmem:[%s11476_s3 + $0x518] sm:$0xff]  ;;  %v377_v36 = vld [vmem:[%s11476_s3 + $0x520] sm:$0xff] }
  0x53   :  { %374 = vst [vmem:[#allocation3 + $0x510] sm:$0xff] %v373_v34  ;;  %376 = vst [vmem:[#allocation3 + $0x518] sm:$0xff] %v375_v35  ;;  %v379_v37 = vld [vmem:[%s11476_s3 + $0x528] sm:$0xff]  ;;  %v381_v38 = vld [vmem:[%s11476_s3 + $0x530] sm:$0xff] }
  0x54   :  { %378 = vst [vmem:[#allocation3 + $0x520] sm:$0xff] %v377_v36  ;;  %v383_v39 = vld [vmem:[%s11476_s3 + $0x538] sm:$0xff]  ;;  %380 = vst [vmem:[#allocation3 + $0x528] sm:$0xff] %v379_v37  ;;  %v385_v40 = vld [vmem:[%s11476_s3 + $0x540] sm:$0xff] }
  0x55   :  { %382 = vst [vmem:[#allocation3 + $0x530] sm:$0xff] %v381_v38  ;;  %384 = vst [vmem:[#allocation3 + $0x538] sm:$0xff] %v383_v39  ;;  %v387_v41 = vld [vmem:[%s11476_s3 + $0x548] sm:$0xff]  ;;  %v389_v42 = vld [vmem:[%s11476_s3 + $0x550] sm:$0xff] }
  0x56   :  { %386 = vst [vmem:[#allocation3 + $0x540] sm:$0xff] %v385_v40  ;;  %388 = vst [vmem:[#allocation3 + $0x548] sm:$0xff] %v387_v41  ;;  %v391_v43 = vld [vmem:[%s11476_s3 + $0x558] sm:$0xff]  ;;  %v393_v44 = vld [vmem:[%s11476_s3 + $0x560] sm:$0xff] }
  0x57   :  { %390 = vst [vmem:[#allocation3 + $0x550] sm:$0xff] %v389_v42  ;;  %v395_v45 = vld [vmem:[%s11476_s3 + $0x568] sm:$0xff]  ;;  %392 = vst [vmem:[#allocation3 + $0x558] sm:$0xff] %v391_v43  ;;  %v397_v46 = vld [vmem:[%s11476_s3 + $0x570] sm:$0xff] }
  0x58   :  { %394 = vst [vmem:[#allocation3 + $0x560] sm:$0xff] %v393_v44  ;;  %396 = vst [vmem:[#allocation3 + $0x568] sm:$0xff] %v395_v45  ;;  %v399_v47 = vld [vmem:[%s11476_s3 + $0x578] sm:$0xff]  ;;  %v401_v48 = vld [vmem:[%s11476_s3 + $0x580] sm:$0xff] }
  0x59   :  { %398 = vst [vmem:[#allocation3 + $0x570] sm:$0xff] %v397_v46  ;;  %400 = vst [vmem:[#allocation3 + $0x578] sm:$0xff] %v399_v47  ;;  %v403_v49 = vld [vmem:[%s11476_s3 + $0x588] sm:$0xff]  ;;  %v405_v50 = vld [vmem:[%s11476_s3 + $0x590] sm:$0xff] }
  0x5a   :  { %402 = vst [vmem:[#allocation3 + $0x580] sm:$0xff] %v401_v48  ;;  %v407_v51 = vld [vmem:[%s11476_s3 + $0x598] sm:$0xff]  ;;  %404 = vst [vmem:[#allocation3 + $0x588] sm:$0xff] %v403_v49  ;;  %v409_v52 = vld [vmem:[%s11476_s3 + $0x5a0] sm:$0xff] }
  0x5b   :  { %406 = vst [vmem:[#allocation3 + $0x590] sm:$0xff] %v405_v50  ;;  %408 = vst [vmem:[#allocation3 + $0x598] sm:$0xff] %v407_v51  ;;  %v411_v53 = vld [vmem:[%s11476_s3 + $0x5a8] sm:$0xff]  ;;  %v413_v54 = vld [vmem:[%s11476_s3 + $0x5b0] sm:$0xff] }
  0x5c   :  { %410 = vst [vmem:[#allocation3 + $0x5a0] sm:$0xff] %v409_v52  ;;  %412 = vst [vmem:[#allocation3 + $0x5a8] sm:$0xff] %v411_v53  ;;  %v415_v55 = vld [vmem:[%s11476_s3 + $0x5b8] sm:$0xff]  ;;  %v417_v56 = vld [vmem:[%s11476_s3 + $0x5c0] sm:$0xff] }
  0x5d   :  { %414 = vst [vmem:[#allocation3 + $0x5b0] sm:$0xff] %v413_v54  ;;  %v419_v57 = vld [vmem:[%s11476_s3 + $0x5c8] sm:$0xff]  ;;  %416 = vst [vmem:[#allocation3 + $0x5b8] sm:$0xff] %v415_v55  ;;  %v421_v58 = vld [vmem:[%s11476_s3 + $0x5d0] sm:$0xff] }
  0x5e   :  { %418 = vst [vmem:[#allocation3 + $0x5c0] sm:$0xff] %v417_v56  ;;  %420 = vst [vmem:[#allocation3 + $0x5c8] sm:$0xff] %v419_v57  ;;  %v423_v59 = vld [vmem:[%s11476_s3 + $0x5d8] sm:$0xff]  ;;  %v425_v60 = vld [vmem:[%s11476_s3 + $0x5e0] sm:$0xff] }
  0x5f   :  { %422 = vst [vmem:[#allocation3 + $0x5d0] sm:$0xff] %v421_v58  ;;  %424 = vst [vmem:[#allocation3 + $0x5d8] sm:$0xff] %v423_v59  ;;  %v427_v61 = vld [vmem:[%s11476_s3 + $0x5e8] sm:$0xff]  ;;  %v429_v62 = vld [vmem:[%s11476_s3 + $0x5f0] sm:$0xff] }
  0x60   :  { %426 = vst [vmem:[#allocation3 + $0x5e0] sm:$0xff] %v425_v60  ;;  %v431_v63 = vld [vmem:[%s11476_s3 + $0x5f8] sm:$0xff]  ;;  %428 = vst [vmem:[#allocation3 + $0x5e8] sm:$0xff] %v427_v61  ;;  %v433_v0 = vld [vmem:[%s11476_s3 + $0x600] sm:$0xff] }
  0x61   :  { %430 = vst [vmem:[#allocation3 + $0x5f0] sm:$0xff] %v429_v62  ;;  %432 = vst [vmem:[#allocation3 + $0x5f8] sm:$0xff] %v431_v63  ;;  %v435_v1 = vld [vmem:[%s11476_s3 + $0x608] sm:$0xff]  ;;  %v437_v2 = vld [vmem:[%s11476_s3 + $0x610] sm:$0xff] }
  0x62   :  { %434 = vst [vmem:[#allocation3 + $0x600] sm:$0xff] %v433_v0  ;;  %436 = vst [vmem:[#allocation3 + $0x608] sm:$0xff] %v435_v1  ;;  %v439_v3 = vld [vmem:[%s11476_s3 + $0x618] sm:$0xff]  ;;  %v441_v4 = vld [vmem:[%s11476_s3 + $0x620] sm:$0xff] }
  0x63   :  { %438 = vst [vmem:[#allocation3 + $0x610] sm:$0xff] %v437_v2  ;;  %v443_v5 = vld [vmem:[%s11476_s3 + $0x628] sm:$0xff]  ;;  %440 = vst [vmem:[#allocation3 + $0x618] sm:$0xff] %v439_v3  ;;  %v445_v6 = vld [vmem:[%s11476_s3 + $0x630] sm:$0xff] }
  0x64   :  { %442 = vst [vmem:[#allocation3 + $0x620] sm:$0xff] %v441_v4  ;;  %444 = vst [vmem:[#allocation3 + $0x628] sm:$0xff] %v443_v5  ;;  %v447_v7 = vld [vmem:[%s11476_s3 + $0x638] sm:$0xff]  ;;  %v449_v8 = vld [vmem:[%s11476_s3 + $0x640] sm:$0xff] }
  0x65   :  { %446 = vst [vmem:[#allocation3 + $0x630] sm:$0xff] %v445_v6  ;;  %448 = vst [vmem:[#allocation3 + $0x638] sm:$0xff] %v447_v7  ;;  %v451_v9 = vld [vmem:[%s11476_s3 + $0x648] sm:$0xff]  ;;  %v453_v10 = vld [vmem:[%s11476_s3 + $0x650] sm:$0xff] }
  0x66   :  { %450 = vst [vmem:[#allocation3 + $0x640] sm:$0xff] %v449_v8  ;;  %v455_v11 = vld [vmem:[%s11476_s3 + $0x658] sm:$0xff]  ;;  %452 = vst [vmem:[#allocation3 + $0x648] sm:$0xff] %v451_v9  ;;  %v457_v12 = vld [vmem:[%s11476_s3 + $0x660] sm:$0xff] }
  0x67   :  { %454 = vst [vmem:[#allocation3 + $0x650] sm:$0xff] %v453_v10  ;;  %456 = vst [vmem:[#allocation3 + $0x658] sm:$0xff] %v455_v11  ;;  %v459_v13 = vld [vmem:[%s11476_s3 + $0x668] sm:$0xff]  ;;  %v461_v14 = vld [vmem:[%s11476_s3 + $0x670] sm:$0xff] }
  0x68   :  { %458 = vst [vmem:[#allocation3 + $0x660] sm:$0xff] %v457_v12  ;;  %460 = vst [vmem:[#allocation3 + $0x668] sm:$0xff] %v459_v13  ;;  %v463_v15 = vld [vmem:[%s11476_s3 + $0x678] sm:$0xff]  ;;  %v465_v16 = vld [vmem:[%s11476_s3 + $0x680] sm:$0xff] }
  0x69   :  { %462 = vst [vmem:[#allocation3 + $0x670] sm:$0xff] %v461_v14  ;;  %v467_v17 = vld [vmem:[%s11476_s3 + $0x688] sm:$0xff]  ;;  %464 = vst [vmem:[#allocation3 + $0x678] sm:$0xff] %v463_v15  ;;  %v469_v18 = vld [vmem:[%s11476_s3 + $0x690] sm:$0xff] }
  0x6a   :  { %466 = vst [vmem:[#allocation3 + $0x680] sm:$0xff] %v465_v16  ;;  %468 = vst [vmem:[#allocation3 + $0x688] sm:$0xff] %v467_v17  ;;  %v471_v19 = vld [vmem:[%s11476_s3 + $0x698] sm:$0xff]  ;;  %v473_v20 = vld [vmem:[%s11476_s3 + $0x6a0] sm:$0xff] }
  0x6b   :  { %470 = vst [vmem:[#allocation3 + $0x690] sm:$0xff] %v469_v18  ;;  %472 = vst [vmem:[#allocation3 + $0x698] sm:$0xff] %v471_v19  ;;  %v475_v21 = vld [vmem:[%s11476_s3 + $0x6a8] sm:$0xff]  ;;  %v477_v22 = vld [vmem:[%s11476_s3 + $0x6b0] sm:$0xff] }
  0x6c   :  { %474 = vst [vmem:[#allocation3 + $0x6a0] sm:$0xff] %v473_v20  ;;  %v479_v23 = vld [vmem:[%s11476_s3 + $0x6b8] sm:$0xff]  ;;  %476 = vst [vmem:[#allocation3 + $0x6a8] sm:$0xff] %v475_v21  ;;  %v481_v24 = vld [vmem:[%s11476_s3 + $0x6c0] sm:$0xff] }
  0x6d   :  { %478 = vst [vmem:[#allocation3 + $0x6b0] sm:$0xff] %v477_v22  ;;  %480 = vst [vmem:[#allocation3 + $0x6b8] sm:$0xff] %v479_v23  ;;  %v483_v25 = vld [vmem:[%s11476_s3 + $0x6c8] sm:$0xff]  ;;  %v485_v26 = vld [vmem:[%s11476_s3 + $0x6d0] sm:$0xff] }
  0x6e   :  { %482 = vst [vmem:[#allocation3 + $0x6c0] sm:$0xff] %v481_v24  ;;  %484 = vst [vmem:[#allocation3 + $0x6c8] sm:$0xff] %v483_v25  ;;  %v487_v27 = vld [vmem:[%s11476_s3 + $0x6d8] sm:$0xff]  ;;  %v489_v28 = vld [vmem:[%s11476_s3 + $0x6e0] sm:$0xff] }
  0x6f   :  { %486 = vst [vmem:[#allocation3 + $0x6d0] sm:$0xff] %v485_v26  ;;  %v491_v29 = vld [vmem:[%s11476_s3 + $0x6e8] sm:$0xff]  ;;  %488 = vst [vmem:[#allocation3 + $0x6d8] sm:$0xff] %v487_v27  ;;  %v493_v30 = vld [vmem:[%s11476_s3 + $0x6f0] sm:$0xff] }
  0x70   :  { %490 = vst [vmem:[#allocation3 + $0x6e0] sm:$0xff] %v489_v28  ;;  %492 = vst [vmem:[#allocation3 + $0x6e8] sm:$0xff] %v491_v29  ;;  %v495_v31 = vld [vmem:[%s11476_s3 + $0x6f8] sm:$0xff]  ;;  %v497_v32 = vld [vmem:[%s11476_s3 + $0x700] sm:$0xff] }
  0x71   :  { %494 = vst [vmem:[#allocation3 + $0x6f0] sm:$0xff] %v493_v30  ;;  %496 = vst [vmem:[#allocation3 + $0x6f8] sm:$0xff] %v495_v31  ;;  %v499_v33 = vld [vmem:[%s11476_s3 + $0x708] sm:$0xff]  ;;  %v501_v34 = vld [vmem:[%s11476_s3 + $0x710] sm:$0xff] }
  0x72   :  { %498 = vst [vmem:[#allocation3 + $0x700] sm:$0xff] %v497_v32  ;;  %v503_v35 = vld [vmem:[%s11476_s3 + $0x718] sm:$0xff]  ;;  %500 = vst [vmem:[#allocation3 + $0x708] sm:$0xff] %v499_v33  ;;  %v505_v36 = vld [vmem:[%s11476_s3 + $0x720] sm:$0xff] }
  0x73   :  { %502 = vst [vmem:[#allocation3 + $0x710] sm:$0xff] %v501_v34  ;;  %504 = vst [vmem:[#allocation3 + $0x718] sm:$0xff] %v503_v35  ;;  %v507_v37 = vld [vmem:[%s11476_s3 + $0x728] sm:$0xff]  ;;  %v509_v38 = vld [vmem:[%s11476_s3 + $0x730] sm:$0xff] }
  0x74   :  { %506 = vst [vmem:[#allocation3 + $0x720] sm:$0xff] %v505_v36  ;;  %508 = vst [vmem:[#allocation3 + $0x728] sm:$0xff] %v507_v37  ;;  %v511_v39 = vld [vmem:[%s11476_s3 + $0x738] sm:$0xff]  ;;  %v513_v40 = vld [vmem:[%s11476_s3 + $0x740] sm:$0xff] }
  0x75   :  { %510 = vst [vmem:[#allocation3 + $0x730] sm:$0xff] %v509_v38  ;;  %v515_v41 = vld [vmem:[%s11476_s3 + $0x748] sm:$0xff]  ;;  %512 = vst [vmem:[#allocation3 + $0x738] sm:$0xff] %v511_v39  ;;  %v517_v42 = vld [vmem:[%s11476_s3 + $0x750] sm:$0xff] }
  0x76   :  { %514 = vst [vmem:[#allocation3 + $0x740] sm:$0xff] %v513_v40  ;;  %516 = vst [vmem:[#allocation3 + $0x748] sm:$0xff] %v515_v41  ;;  %v519_v43 = vld [vmem:[%s11476_s3 + $0x758] sm:$0xff]  ;;  %v521_v44 = vld [vmem:[%s11476_s3 + $0x760] sm:$0xff] }
  0x77   :  { %518 = vst [vmem:[#allocation3 + $0x750] sm:$0xff] %v517_v42  ;;  %520 = vst [vmem:[#allocation3 + $0x758] sm:$0xff] %v519_v43  ;;  %v523_v45 = vld [vmem:[%s11476_s3 + $0x768] sm:$0xff]  ;;  %v525_v46 = vld [vmem:[%s11476_s3 + $0x770] sm:$0xff] }
  0x78   :  { %522 = vst [vmem:[#allocation3 + $0x760] sm:$0xff] %v521_v44  ;;  %v527_v47 = vld [vmem:[%s11476_s3 + $0x778] sm:$0xff]  ;;  %524 = vst [vmem:[#allocation3 + $0x768] sm:$0xff] %v523_v45  ;;  %v529_v48 = vld [vmem:[%s11476_s3 + $0x780] sm:$0xff] }
  0x79   :  { %526 = vst [vmem:[#allocation3 + $0x770] sm:$0xff] %v525_v46  ;;  %528 = vst [vmem:[#allocation3 + $0x778] sm:$0xff] %v527_v47  ;;  %v531_v49 = vld [vmem:[%s11476_s3 + $0x788] sm:$0xff]  ;;  %v533_v50 = vld [vmem:[%s11476_s3 + $0x790] sm:$0xff] }
  0x7a   :  { %530 = vst [vmem:[#allocation3 + $0x780] sm:$0xff] %v529_v48  ;;  %532 = vst [vmem:[#allocation3 + $0x788] sm:$0xff] %v531_v49  ;;  %v535_v51 = vld [vmem:[%s11476_s3 + $0x798] sm:$0xff]  ;;  %v537_v52 = vld [vmem:[%s11476_s3 + $0x7a0] sm:$0xff] }
  0x7b   :  { %534 = vst [vmem:[#allocation3 + $0x790] sm:$0xff] %v533_v50  ;;  %v539_v53 = vld [vmem:[%s11476_s3 + $0x7a8] sm:$0xff]  ;;  %536 = vst [vmem:[#allocation3 + $0x798] sm:$0xff] %v535_v51  ;;  %v541_v54 = vld [vmem:[%s11476_s3 + $0x7b0] sm:$0xff] }
  0x7c   :  { %538 = vst [vmem:[#allocation3 + $0x7a0] sm:$0xff] %v537_v52  ;;  %540 = vst [vmem:[#allocation3 + $0x7a8] sm:$0xff] %v539_v53  ;;  %v543_v55 = vld [vmem:[%s11476_s3 + $0x7b8] sm:$0xff]  ;;  %v545_v56 = vld [vmem:[%s11476_s3 + $0x7c0] sm:$0xff] }
  0x7d   :  { %542 = vst [vmem:[#allocation3 + $0x7b0] sm:$0xff] %v541_v54  ;;  %544 = vst [vmem:[#allocation3 + $0x7b8] sm:$0xff] %v543_v55  ;;  %v547_v57 = vld [vmem:[%s11476_s3 + $0x7c8] sm:$0xff]  ;;  %v549_v58 = vld [vmem:[%s11476_s3 + $0x7d0] sm:$0xff] }
  0x7e   :  { %546 = vst [vmem:[#allocation3 + $0x7c0] sm:$0xff] %v545_v56  ;;  %v551_v59 = vld [vmem:[%s11476_s3 + $0x7d8] sm:$0xff]  ;;  %548 = vst [vmem:[#allocation3 + $0x7c8] sm:$0xff] %v547_v57  ;;  %v553_v60 = vld [vmem:[%s11476_s3 + $0x7e0] sm:$0xff] }
  0x7f   :  { %550 = vst [vmem:[#allocation3 + $0x7d0] sm:$0xff] %v549_v58  ;;  %552 = vst [vmem:[#allocation3 + $0x7d8] sm:$0xff] %v551_v59  ;;  %v555_v61 = vld [vmem:[%s11476_s3 + $0x7e8] sm:$0xff]  ;;  %v557_v62 = vld [vmem:[%s11476_s3 + $0x7f0] sm:$0xff] }
  0x80   :  { %554 = vst [vmem:[#allocation3 + $0x7e0] sm:$0xff] %v553_v60  ;;  %556 = vst [vmem:[#allocation3 + $0x7e8] sm:$0xff] %v555_v61  ;;  %v559_v63 = vld [vmem:[%s11476_s3 + $0x7f8] sm:$0xff]  ;;  %v561_v0 = vld [vmem:[%s11476_s3 + $0x800] sm:$0xff] }
  0x81   :  { %558 = vst [vmem:[#allocation3 + $0x7f0] sm:$0xff] %v557_v62  ;;  %v563_v1 = vld [vmem:[%s11476_s3 + $0x808] sm:$0xff]  ;;  %560 = vst [vmem:[#allocation3 + $0x7f8] sm:$0xff] %v559_v63  ;;  %v565_v2 = vld [vmem:[%s11476_s3 + $0x810] sm:$0xff] }
  0x82   :  { %562 = vst [vmem:[#allocation3 + $0x800] sm:$0xff] %v561_v0  ;;  %564 = vst [vmem:[#allocation3 + $0x808] sm:$0xff] %v563_v1  ;;  %v567_v3 = vld [vmem:[%s11476_s3 + $0x818] sm:$0xff]  ;;  %v569_v4 = vld [vmem:[%s11476_s3 + $0x820] sm:$0xff] }
  0x83   :  { %566 = vst [vmem:[#allocation3 + $0x810] sm:$0xff] %v565_v2  ;;  %568 = vst [vmem:[#allocation3 + $0x818] sm:$0xff] %v567_v3  ;;  %v571_v5 = vld [vmem:[%s11476_s3 + $0x828] sm:$0xff]  ;;  %v573_v6 = vld [vmem:[%s11476_s3 + $0x830] sm:$0xff] }
  0x84   :  { %570 = vst [vmem:[#allocation3 + $0x820] sm:$0xff] %v569_v4  ;;  %v575_v7 = vld [vmem:[%s11476_s3 + $0x838] sm:$0xff]  ;;  %572 = vst [vmem:[#allocation3 + $0x828] sm:$0xff] %v571_v5  ;;  %v577_v8 = vld [vmem:[%s11476_s3 + $0x840] sm:$0xff] }
  0x85   :  { %574 = vst [vmem:[#allocation3 + $0x830] sm:$0xff] %v573_v6  ;;  %576 = vst [vmem:[#allocation3 + $0x838] sm:$0xff] %v575_v7  ;;  %v579_v9 = vld [vmem:[%s11476_s3 + $0x848] sm:$0xff]  ;;  %v581_v10 = vld [vmem:[%s11476_s3 + $0x850] sm:$0xff] }
  0x86   :  { %578 = vst [vmem:[#allocation3 + $0x840] sm:$0xff] %v577_v8  ;;  %580 = vst [vmem:[#allocation3 + $0x848] sm:$0xff] %v579_v9  ;;  %v583_v11 = vld [vmem:[%s11476_s3 + $0x858] sm:$0xff]  ;;  %v585_v12 = vld [vmem:[%s11476_s3 + $0x860] sm:$0xff] }
  0x87   :  { %582 = vst [vmem:[#allocation3 + $0x850] sm:$0xff] %v581_v10  ;;  %584 = vst [vmem:[#allocation3 + $0x858] sm:$0xff] %v583_v11 }
  0x88   :  { %586 = vst [vmem:[#allocation3 + $0x860] sm:$0xff] %v585_v12 }
  0x89   :  { %594 = vsyncadd [#allocation5], 34432  ;;  %v8640_v13 = vld [vmem:[%s11477_s4] sm:$0xff]  ;;  %v8645_v14 = vld [vmem:[%s11477_s4 + $0x8] sm:$0xff]  ;;  %vm994_vm0 = vcmask 18432   ;;  %vm999_vm1 = vcmask 23552  }
  0x8a   :  { %11486 = vst [vmem:[#allocation10_spill] sm:$0xff] %v8640_v13  ;;  %11487 = vst [vmem:[#allocation11_spill] sm:$0xff] %v8645_v14  ;;  %v8650_v15 = vld [vmem:[%s11477_s4 + $0x10] sm:$0xff]  ;;  %v8655_v16 = vld [vmem:[%s11477_s4 + $0x18] sm:$0xff] }
  0x8b   :  { %11488 = vst [vmem:[#allocation12_spill] sm:$0xff] %v8650_v15  ;;  %11489 = vst [vmem:[#allocation13_spill] sm:$0xff] %v8655_v16  ;;  %v8660_v17 = vld [vmem:[%s11477_s4 + $0x20] sm:$0xff]  ;;  %v8665_v18 = vld [vmem:[%s11477_s4 + $0x28] sm:$0xff] }
  0x8c   :  { %11490 = vst [vmem:[#allocation14_spill] sm:$0xff] %v8660_v17  ;;  %11491 = vst [vmem:[#allocation15_spill] sm:$0xff] %v8665_v18  ;;  %v8670_v19 = vld [vmem:[%s11477_s4 + $0x30] sm:$0xff]  ;;  %v8675_v20 = vld [vmem:[%s11477_s4 + $0x38] sm:$0xff] }
  0x8d   :  { %11492 = vst [vmem:[#allocation16_spill] sm:$0xff] %v8670_v19  ;;  %11493 = vst [vmem:[#allocation17_spill] sm:$0xff] %v8675_v20  ;;  %v8680_v21 = vld [vmem:[%s11477_s4 + $0x40] sm:$0xff]  ;;  %v8685_v22 = vld [vmem:[%s11477_s4 + $0x48] sm:$0xff] }
  0x8e   :  { %11494 = vst [vmem:[#allocation18_spill] sm:$0xff] %v8680_v21  ;;  %11495 = vst [vmem:[#allocation19_spill] sm:$0xff] %v8685_v22  ;;  %v8690_v23 = vld [vmem:[%s11477_s4 + $0x50] sm:$0xff]  ;;  %v8695_v24 = vld [vmem:[%s11477_s4 + $0x58] sm:$0xff] }
  0x8f   :  { %11496 = vst [vmem:[#allocation20_spill] sm:$0xff] %v8690_v23  ;;  %v8700_v25 = vld [vmem:[%s11477_s4 + $0x60] sm:$0xff]  ;;  %v8705_v26 = vld [vmem:[%s11477_s4 + $0x68] sm:$0xff]  ;;  %v8710_v27 = vld [vmem:[%s11477_s4 + $0x70] sm:$0xff] }
  0x90   :  { %v8715_v28 = vld [vmem:[%s11477_s4 + $0x78] sm:$0xff]  ;;  %v8720_v29 = vld [vmem:[%s11477_s4 + $0x80] sm:$0xff]  ;;  %v8725_v30 = vld [vmem:[%s11477_s4 + $0x88] sm:$0xff] }
  0x91   :  { %11497 = vst [vmem:[#allocation21_spill] sm:$0xff] %v8720_v29  ;;  %11498 = vst [vmem:[#allocation22_spill] sm:$0xff] %v8725_v30  ;;  %v8730_v31 = vld [vmem:[%s11477_s4 + $0x90] sm:$0xff]  ;;  %v8735_v32 = vld [vmem:[%s11477_s4 + $0x98] sm:$0xff] }
  0x92   :  { %11499 = vst [vmem:[#allocation23_spill] sm:$0xff] %v8730_v31  ;;  %11500 = vst [vmem:[#allocation24_spill] sm:$0xff] %v8735_v32  ;;  %v8740_v33 = vld [vmem:[%s11477_s4 + $0xa0] sm:$0xff]  ;;  %v8745_v34 = vld [vmem:[%s11477_s4 + $0xa8] sm:$0xff] }
  0x93   :  { %11501 = vst [vmem:[#allocation25_spill] sm:$0xff] %v8740_v33  ;;  %11502 = vst [vmem:[#allocation26_spill] sm:$0xff] %v8745_v34  ;;  %v8750_v35 = vld [vmem:[%s11477_s4 + $0xb0] sm:$0xff]  ;;  %v8755_v36 = vld [vmem:[%s11477_s4 + $0xb8] sm:$0xff] }
  0x94   :  { %11503 = vst [vmem:[#allocation27_spill] sm:$0xff] %v8750_v35  ;;  %11504 = vst [vmem:[#allocation28_spill] sm:$0xff] %v8755_v36  ;;  %v8760_v37 = vld [vmem:[%s11477_s4 + $0xc0] sm:$0xff]  ;;  %v8765_v38 = vld [vmem:[%s11477_s4 + $0xc8] sm:$0xff] }
  0x95   :  { %11505 = vst [vmem:[#allocation29_spill] sm:$0xff] %v8760_v37  ;;  %11506 = vst [vmem:[#allocation30_spill] sm:$0xff] %v8765_v38  ;;  %v8770_v39 = vld [vmem:[%s11477_s4 + $0xd0] sm:$0xff]  ;;  %v8775_v40 = vld [vmem:[%s11477_s4 + $0xd8] sm:$0xff] }
  0x96   :  { %v8780_v41 = vld [vmem:[%s11477_s4 + $0xe0] sm:$0xff]  ;;  %v8785_v42 = vld [vmem:[%s11477_s4 + $0xe8] sm:$0xff]  ;;  %v8790_v43 = vld [vmem:[%s11477_s4 + $0xf0] sm:$0xff] }
  0x97   :  { %v8795_v44 = vld [vmem:[%s11477_s4 + $0xf8] sm:$0xff]  ;;  %v8800_v45 = vld [vmem:[%s11477_s4 + $0x100] sm:$0xff]  ;;  %v8805_v46 = vld [vmem:[%s11477_s4 + $0x108] sm:$0xff] }
  0x98   :  { %11507 = vst [vmem:[#allocation31_spill] sm:$0xff] %v8800_v45  ;;  %11508 = vst [vmem:[#allocation32_spill] sm:$0xff] %v8805_v46  ;;  %v8810_v47 = vld [vmem:[%s11477_s4 + $0x110] sm:$0xff]  ;;  %v8815_v48 = vld [vmem:[%s11477_s4 + $0x118] sm:$0xff] }
  0x99   :  { %11509 = vst [vmem:[#allocation33_spill] sm:$0xff] %v8810_v47  ;;  %11510 = vst [vmem:[#allocation34_spill] sm:$0xff] %v8815_v48  ;;  %v8820_v49 = vld [vmem:[%s11477_s4 + $0x120] sm:$0xff]  ;;  %v8825_v50 = vld [vmem:[%s11477_s4 + $0x128] sm:$0xff] }
  0x9a   :  { %11511 = vst [vmem:[#allocation35_spill] sm:$0xff] %v8820_v49  ;;  %11512 = vst [vmem:[#allocation36_spill] sm:$0xff] %v8825_v50  ;;  %v8830_v51 = vld [vmem:[%s11477_s4 + $0x130] sm:$0xff]  ;;  %v8835_v52 = vld [vmem:[%s11477_s4 + $0x138] sm:$0xff] }
  0x9b   :  { %11513 = vst [vmem:[#allocation37_spill] sm:$0xff] %v8830_v51  ;;  %11514 = vst [vmem:[#allocation38_spill] sm:$0xff] %v8835_v52  ;;  %v8840_v53 = vld [vmem:[%s11477_s4 + $0x140] sm:$0xff]  ;;  %v8845_v54 = vld [vmem:[%s11477_s4 + $0x148] sm:$0xff] }
  0x9c   :  { %11515 = vst [vmem:[#allocation39_spill] sm:$0xff] %v8840_v53  ;;  %11516 = vst [vmem:[#allocation40_spill] sm:$0xff] %v8845_v54  ;;  %v8850_v55 = vld [vmem:[%s11477_s4 + $0x150] sm:$0xff]  ;;  %v8855_v56 = vld [vmem:[%s11477_s4 + $0x158] sm:$0xff] }
  0x9d   :  { %v8860_v57 = vld [vmem:[%s11477_s4 + $0x160] sm:$0xff]  ;;  %v8865_v58 = vld [vmem:[%s11477_s4 + $0x168] sm:$0xff]  ;;  %v8870_v59 = vld [vmem:[%s11477_s4 + $0x170] sm:$0xff] }
  0x9e   :  { %v8875_v60 = vld [vmem:[%s11477_s4 + $0x178] sm:$0xff]  ;;  %v8880_v61 = vld [vmem:[%s11477_s4 + $0x180] sm:$0xff]  ;;  %v8885_v62 = vld [vmem:[%s11477_s4 + $0x188] sm:$0xff] }
  0x9f   :  { %11517 = vst [vmem:[#allocation41_spill] sm:$0xff] %v8880_v61  ;;  %11518 = vst [vmem:[#allocation42_spill] sm:$0xff] %v8885_v62  ;;  %v8890_v63 = vld [vmem:[%s11477_s4 + $0x190] sm:$0xff]  ;;  %v8895_v0 = vld [vmem:[%s11477_s4 + $0x198] sm:$0xff] }
  0xa0   :  { %11519 = vst [vmem:[#allocation43_spill] sm:$0xff] %v8890_v63  ;;  %11520 = vst [vmem:[#allocation44_spill] sm:$0xff] %v8895_v0  ;;  %v8900_v1 = vld [vmem:[%s11477_s4 + $0x1a0] sm:$0xff]  ;;  %v8905_v2 = vld [vmem:[%s11477_s4 + $0x1a8] sm:$0xff] }
  0xa1   :  { %11521 = vst [vmem:[#allocation45_spill] sm:$0xff] %v8900_v1  ;;  %11522 = vst [vmem:[#allocation46_spill] sm:$0xff] %v8905_v2  ;;  %v8910_v3 = vld [vmem:[%s11477_s4 + $0x1b0] sm:$0xff]  ;;  %v8915_v4 = vld [vmem:[%s11477_s4 + $0x1b8] sm:$0xff] }
  0xa2   :  { %11523 = vst [vmem:[#allocation47_spill] sm:$0xff] %v8910_v3  ;;  %11524 = vst [vmem:[#allocation48_spill] sm:$0xff] %v8915_v4  ;;  %v8920_v5 = vld [vmem:[%s11477_s4 + $0x1c0] sm:$0xff]  ;;  %v8925_v6 = vld [vmem:[%s11477_s4 + $0x1c8] sm:$0xff] }
  0xa3   :  { %11525 = vst [vmem:[#allocation49_spill] sm:$0xff] %v8920_v5  ;;  %11526 = vst [vmem:[#allocation50_spill] sm:$0xff] %v8925_v6  ;;  %v8930_v7 = vld [vmem:[%s11477_s4 + $0x1d0] sm:$0xff]  ;;  %v8935_v8 = vld [vmem:[%s11477_s4 + $0x1d8] sm:$0xff] }
  0xa4   :  { %11527 = vst [vmem:[#allocation51_spill] sm:$0xff] %v8930_v7  ;;  %11528 = vst [vmem:[#allocation52_spill] sm:$0xff] %v8935_v8  ;;  %v8940_v9 = vld [vmem:[%s11477_s4 + $0x1e0] sm:$0xff]  ;;  %v8945_v10 = vld [vmem:[%s11477_s4 + $0x1e8] sm:$0xff] }
  0xa5   :  { %11529 = vst [vmem:[#allocation53_spill] sm:$0xff] %v8940_v9  ;;  %11530 = vst [vmem:[#allocation54_spill] sm:$0xff] %v8945_v10  ;;  %v8950_v11 = vld [vmem:[%s11477_s4 + $0x1f0] sm:$0xff]  ;;  %v8955_v12 = vld [vmem:[%s11477_s4 + $0x1f8] sm:$0xff] }
  0xa6   :  { %11531 = vst [vmem:[#allocation55_spill] sm:$0xff] %v8950_v11  ;;  %11532 = vst [vmem:[#allocation56_spill] sm:$0xff] %v8955_v12  ;;  %v8960_v5 = vld [vmem:[%s11477_s4 + $0x200] sm:$0xff]  ;;  %v8965_v6 = vld [vmem:[%s11477_s4 + $0x208] sm:$0xff] }
  0xa7   :  { %11533 = vst [vmem:[#allocation57_spill] sm:$0xff] %v8960_v5  ;;  %11534 = vst [vmem:[#allocation58_spill] sm:$0xff] %v8965_v6  ;;  %v8970_v7 = vld [vmem:[%s11477_s4 + $0x210] sm:$0xff]  ;;  %v8975_v8 = vld [vmem:[%s11477_s4 + $0x218] sm:$0xff] }
  0xa8   :  { %11535 = vst [vmem:[#allocation59_spill] sm:$0xff] %v8970_v7  ;;  %11536 = vst [vmem:[#allocation60_spill] sm:$0xff] %v8975_v8  ;;  %v8980_v9 = vld [vmem:[%s11477_s4 + $0x220] sm:$0xff]  ;;  %v8985_v10 = vld [vmem:[%s11477_s4 + $0x228] sm:$0xff] }
  0xa9   :  { %11537 = vst [vmem:[#allocation61_spill] sm:$0xff] %v8980_v9  ;;  %11538 = vst [vmem:[#allocation62_spill] sm:$0xff] %v8985_v10  ;;  %v8990_v11 = vld [vmem:[%s11477_s4 + $0x230] sm:$0xff]  ;;  %v8995_v12 = vld [vmem:[%s11477_s4 + $0x238] sm:$0xff] }
  0xaa   :  { %11539 = vst [vmem:[#allocation63_spill] sm:$0xff] %v8990_v11  ;;  %11540 = vst [vmem:[#allocation64_spill] sm:$0xff] %v8995_v12  ;;  %v9000_v5 = vld [vmem:[%s11477_s4 + $0x240] sm:$0xff]  ;;  %v9005_v6 = vld [vmem:[%s11477_s4 + $0x248] sm:$0xff] }
  0xab   :  { %11541 = vst [vmem:[#allocation65_spill] sm:$0xff] %v9000_v5  ;;  %11542 = vst [vmem:[#allocation66_spill] sm:$0xff] %v9005_v6  ;;  %v9010_v7 = vld [vmem:[%s11477_s4 + $0x250] sm:$0xff]  ;;  %v9015_v8 = vld [vmem:[%s11477_s4 + $0x258] sm:$0xff] }
  0xac   :  { %11543 = vst [vmem:[#allocation67_spill] sm:$0xff] %v9010_v7  ;;  %11544 = vst [vmem:[#allocation68_spill] sm:$0xff] %v9015_v8  ;;  %v9020_v9 = vld [vmem:[%s11477_s4 + $0x260] sm:$0xff]  ;;  %v9025_v5 = vld [vmem:[%s11477_s4 + $0x268] sm:$0xff] }
  0xad   :  { %11545 = vst [vmem:[#allocation69_spill] sm:$0xff] %v9020_v9  ;;  %11546 = vst [vmem:[#allocation70_spill] sm:$0xff] %v9025_v5  ;;  %v9030_v6 = vld [vmem:[%s11477_s4 + $0x270] sm:$0xff]  ;;  %v9035_v7 = vld [vmem:[%s11477_s4 + $0x278] sm:$0xff] }
  0xae   :  { %11547 = vst [vmem:[#allocation71_spill] sm:$0xff] %v9030_v6  ;;  %11548 = vst [vmem:[#allocation72_spill] sm:$0xff] %v9035_v7  ;;  %v9040_v8 = vld [vmem:[%s11477_s4 + $0x280] sm:$0xff]  ;;  %v9045_v9 = vld [vmem:[%s11477_s4 + $0x288] sm:$0xff] }
  0xaf   :  { %11549 = vst [vmem:[#allocation73_spill] sm:$0xff] %v9040_v8  ;;  %11550 = vst [vmem:[#allocation74_spill] sm:$0xff] %v9045_v9  ;;  %v9050_v5 = vld [vmem:[%s11477_s4 + $0x290] sm:$0xff]  ;;  %v9055_v6 = vld [vmem:[%s11477_s4 + $0x298] sm:$0xff] }
  0xb0   :  { %11551 = vst [vmem:[#allocation75_spill] sm:$0xff] %v9050_v5  ;;  %11552 = vst [vmem:[#allocation76_spill] sm:$0xff] %v9055_v6  ;;  %v9060_v7 = vld [vmem:[%s11477_s4 + $0x2a0] sm:$0xff]  ;;  %v9065_v8 = vld [vmem:[%s11477_s4 + $0x2a8] sm:$0xff] }
  0xb1   :  { %11553 = vst [vmem:[#allocation77_spill] sm:$0xff] %v9060_v7  ;;  %11554 = vst [vmem:[#allocation78_spill] sm:$0xff] %v9065_v8  ;;  %v9070_v9 = vld [vmem:[%s11477_s4 + $0x2b0] sm:$0xff]  ;;  %v9075_v5 = vld [vmem:[%s11477_s4 + $0x2b8] sm:$0xff] }
  0xb2   :  { %11555 = vst [vmem:[#allocation79_spill] sm:$0xff] %v9070_v9  ;;  %11556 = vst [vmem:[#allocation80_spill] sm:$0xff] %v9075_v5  ;;  %v9080_v6 = vld [vmem:[%s11477_s4 + $0x2c0] sm:$0xff]  ;;  %v9085_v7 = vld [vmem:[%s11477_s4 + $0x2c8] sm:$0xff] }
  0xb3   :  { %11557 = vst [vmem:[#allocation81_spill] sm:$0xff] %v9080_v6  ;;  %11558 = vst [vmem:[#allocation82_spill] sm:$0xff] %v9085_v7  ;;  %v9090_v10 = vld [vmem:[%s11477_s4 + $0x2d0] sm:$0xff]  ;;  %v9095_v8 = vld [vmem:[%s11477_s4 + $0x2d8] sm:$0xff] }
  0xb4   :  { %11559 = vst [vmem:[#allocation83_spill] sm:$0xff] %v9090_v10  ;;  %11560 = vst [vmem:[#allocation84_spill] sm:$0xff] %v9095_v8  ;;  %v9100_v11 = vld [vmem:[%s11477_s4 + $0x2e0] sm:$0xff]  ;;  %v9105_v6 = vld [vmem:[%s11477_s4 + $0x2e8] sm:$0xff] }
  0xb5   :  { %11561 = vst [vmem:[#allocation85_spill] sm:$0xff] %v9100_v11  ;;  %11562 = vst [vmem:[#allocation86_spill] sm:$0xff] %v9105_v6  ;;  %v9110_v7 = vld [vmem:[%s11477_s4 + $0x2f0] sm:$0xff]  ;;  %v9115_v10 = vld [vmem:[%s11477_s4 + $0x2f8] sm:$0xff] }
  0xb6   :  { %11563 = vst [vmem:[#allocation87_spill] sm:$0xff] %v9110_v7  ;;  %11564 = vst [vmem:[#allocation88_spill] sm:$0xff] %v9115_v10  ;;  %v9120_v8 = vld [vmem:[%s11477_s4 + $0x300] sm:$0xff]  ;;  %v9125_v11 = vld [vmem:[%s11477_s4 + $0x308] sm:$0xff] }
  0xb7   :  { %11565 = vst [vmem:[#allocation89_spill] sm:$0xff] %v9120_v8  ;;  %11566 = vst [vmem:[#allocation90_spill] sm:$0xff] %v9125_v11  ;;  %v9130_v6 = vld [vmem:[%s11477_s4 + $0x310] sm:$0xff]  ;;  %v9135_v7 = vld [vmem:[%s11477_s4 + $0x318] sm:$0xff] }
  0xb8   :  { %11567 = vst [vmem:[#allocation91_spill] sm:$0xff] %v9130_v6  ;;  %11568 = vst [vmem:[#allocation92_spill] sm:$0xff] %v9135_v7  ;;  %v9140_v10 = vld [vmem:[%s11477_s4 + $0x320] sm:$0xff]  ;;  %v9145_v8 = vld [vmem:[%s11477_s4 + $0x328] sm:$0xff] }
  0xb9   :  { %11569 = vst [vmem:[#allocation93_spill] sm:$0xff] %v9140_v10  ;;  %11570 = vst [vmem:[#allocation94_spill] sm:$0xff] %v9145_v8  ;;  %v9150_v11 = vld [vmem:[%s11477_s4 + $0x330] sm:$0xff]  ;;  %v9155_v6 = vld [vmem:[%s11477_s4 + $0x338] sm:$0xff] }
  0xba   :  { %11571 = vst [vmem:[#allocation95_spill] sm:$0xff] %v9150_v11  ;;  %11572 = vst [vmem:[#allocation96_spill] sm:$0xff] %v9155_v6  ;;  %v9160_v7 = vld [vmem:[%s11477_s4 + $0x340] sm:$0xff]  ;;  %v9165_v10 = vld [vmem:[%s11477_s4 + $0x348] sm:$0xff] }
  0xbb   :  { %11573 = vst [vmem:[#allocation97_spill] sm:$0xff] %v9160_v7  ;;  %11574 = vst [vmem:[#allocation98_spill] sm:$0xff] %v9165_v10  ;;  %v9170_v8 = vld [vmem:[%s11477_s4 + $0x350] sm:$0xff]  ;;  %v9175_v11 = vld [vmem:[%s11477_s4 + $0x358] sm:$0xff] }
  0xbc   :  { %11575 = vst [vmem:[#allocation99_spill] sm:$0xff] %v9170_v8  ;;  %11576 = vst [vmem:[#allocation100_spill] sm:$0xff] %v9175_v11  ;;  %v9180_v6 = vld [vmem:[%s11477_s4 + $0x360] sm:$0xff]  ;;  %v9185_v7 = vld [vmem:[%s11477_s4 + $0x368] sm:$0xff] }
  0xbd   :  { %11577 = vst [vmem:[#allocation101_spill] sm:$0xff] %v9180_v6  ;;  %11578 = vst [vmem:[#allocation102_spill] sm:$0xff] %v9185_v7  ;;  %v9190_v10 = vld [vmem:[%s11477_s4 + $0x370] sm:$0xff]  ;;  %v9195_v8 = vld [vmem:[%s11477_s4 + $0x378] sm:$0xff] }
  0xbe   :  { %11579 = vst [vmem:[#allocation103_spill] sm:$0xff] %v9190_v10  ;;  %11580 = vst [vmem:[#allocation104_spill] sm:$0xff] %v9195_v8  ;;  %v9200_v11 = vld [vmem:[%s11477_s4 + $0x380] sm:$0xff]  ;;  %v9205_v6 = vld [vmem:[%s11477_s4 + $0x388] sm:$0xff] }
  0xbf   :  { %11581 = vst [vmem:[#allocation105_spill] sm:$0xff] %v9200_v11  ;;  %11582 = vst [vmem:[#allocation106_spill] sm:$0xff] %v9205_v6  ;;  %v9210_v7 = vld [vmem:[%s11477_s4 + $0x390] sm:$0xff]  ;;  %v9215_v10 = vld [vmem:[%s11477_s4 + $0x398] sm:$0xff] }
  0xc0   :  { %11583 = vst [vmem:[#allocation107_spill] sm:$0xff] %v9210_v7  ;;  %11584 = vst [vmem:[#allocation108_spill] sm:$0xff] %v9215_v10  ;;  %v9220_v8 = vld [vmem:[%s11477_s4 + $0x3a0] sm:$0xff]  ;;  %v9225_v11 = vld [vmem:[%s11477_s4 + $0x3a8] sm:$0xff] }
  0xc1   :  { %11585 = vst [vmem:[#allocation109_spill] sm:$0xff] %v9220_v8  ;;  %11586 = vst [vmem:[#allocation110_spill] sm:$0xff] %v9225_v11  ;;  %v9230_v6 = vld [vmem:[%s11477_s4 + $0x3b0] sm:$0xff]  ;;  %v9235_v7 = vld [vmem:[%s11477_s4 + $0x3b8] sm:$0xff] }
  0xc2   :  { %11587 = vst [vmem:[#allocation111_spill] sm:$0xff] %v9230_v6  ;;  %11588 = vst [vmem:[#allocation112_spill] sm:$0xff] %v9235_v7  ;;  %v9240_v10 = vld [vmem:[%s11477_s4 + $0x3c0] sm:$0xff]  ;;  %v9245_v8 = vld [vmem:[%s11477_s4 + $0x3c8] sm:$0xff] }
  0xc3   :  { %11589 = vst [vmem:[#allocation113_spill] sm:$0xff] %v9240_v10  ;;  %11590 = vst [vmem:[#allocation114_spill] sm:$0xff] %v9245_v8  ;;  %v9250_v11 = vld [vmem:[%s11477_s4 + $0x3d0] sm:$0xff]  ;;  %v9255_v6 = vld [vmem:[%s11477_s4 + $0x3d8] sm:$0xff] }
  0xc4   :  { %11591 = vst [vmem:[#allocation115_spill] sm:$0xff] %v9250_v11  ;;  %11592 = vst [vmem:[#allocation116_spill] sm:$0xff] %v9255_v6  ;;  %v9260_v7 = vld [vmem:[%s11477_s4 + $0x3e0] sm:$0xff]  ;;  %v9265_v10 = vld [vmem:[%s11477_s4 + $0x3e8] sm:$0xff] }
  0xc5   :  { %11593 = vst [vmem:[#allocation117_spill] sm:$0xff] %v9260_v7  ;;  %11594 = vst [vmem:[#allocation118_spill] sm:$0xff] %v9265_v10  ;;  %v9270_v8 = vld [vmem:[%s11477_s4 + $0x3f0] sm:$0xff]  ;;  %v9275_v11 = vld [vmem:[%s11477_s4 + $0x3f8] sm:$0xff] }
  0xc6   :  { %11595 = vst [vmem:[#allocation119_spill] sm:$0xff] %v9270_v8  ;;  %11596 = vst [vmem:[#allocation120_spill] sm:$0xff] %v9275_v11  ;;  %v9280_v6 = vld [vmem:[%s11477_s4 + $0x400] sm:$0xff]  ;;  %v9285_v7 = vld [vmem:[%s11477_s4 + $0x408] sm:$0xff] }
  0xc7   :  { %11597 = vst [vmem:[#allocation121_spill] sm:$0xff] %v9280_v6  ;;  %11598 = vst [vmem:[#allocation122_spill] sm:$0xff] %v9285_v7  ;;  %v9290_v10 = vld [vmem:[%s11477_s4 + $0x410] sm:$0xff]  ;;  %v9295_v8 = vld [vmem:[%s11477_s4 + $0x418] sm:$0xff] }
  0xc8   :  { %11599 = vst [vmem:[#allocation123_spill] sm:$0xff] %v9290_v10  ;;  %11600 = vst [vmem:[#allocation124_spill] sm:$0xff] %v9295_v8  ;;  %v9300_v11 = vld [vmem:[%s11477_s4 + $0x420] sm:$0xff]  ;;  %v9305_v6 = vld [vmem:[%s11477_s4 + $0x428] sm:$0xff] }
  0xc9   :  { %11601 = vst [vmem:[#allocation125_spill] sm:$0xff] %v9300_v11  ;;  %11602 = vst [vmem:[#allocation126_spill] sm:$0xff] %v9305_v6  ;;  %v9310_v7 = vld [vmem:[%s11477_s4 + $0x430] sm:$0xff]  ;;  %v9315_v10 = vld [vmem:[%s11477_s4 + $0x438] sm:$0xff] }
  0xca   :  { %11603 = vst [vmem:[#allocation127_spill] sm:$0xff] %v9310_v7  ;;  %11604 = vst [vmem:[#allocation128_spill] sm:$0xff] %v9315_v10  ;;  %v9320_v8 = vld [vmem:[%s11477_s4 + $0x440] sm:$0xff]  ;;  %v9325_v11 = vld [vmem:[%s11477_s4 + $0x448] sm:$0xff] }
  0xcb   :  { %11605 = vst [vmem:[#allocation129_spill] sm:$0xff] %v9320_v8  ;;  %11606 = vst [vmem:[#allocation130_spill] sm:$0xff] %v9325_v11  ;;  %v9330_v6 = vld [vmem:[%s11477_s4 + $0x450] sm:$0xff]  ;;  %v9335_v7 = vld [vmem:[%s11477_s4 + $0x458] sm:$0xff] }
  0xcc   :  { %11607 = vst [vmem:[#allocation131_spill] sm:$0xff] %v9330_v6  ;;  %11608 = vst [vmem:[#allocation132_spill] sm:$0xff] %v9335_v7  ;;  %v9340_v10 = vld [vmem:[%s11477_s4 + $0x460] sm:$0xff]  ;;  %v9345_v8 = vld [vmem:[%s11477_s4 + $0x468] sm:$0xff] }
  0xcd   :  { %11609 = vst [vmem:[#allocation133_spill] sm:$0xff] %v9340_v10  ;;  %11610 = vst [vmem:[#allocation134_spill] sm:$0xff] %v9345_v8  ;;  %v9350_v11 = vld [vmem:[%s11477_s4 + $0x470] sm:$0xff]  ;;  %v9355_v6 = vld [vmem:[%s11477_s4 + $0x478] sm:$0xff] }
  0xce   :  { %11611 = vst [vmem:[#allocation135_spill] sm:$0xff] %v9350_v11  ;;  %11612 = vst [vmem:[#allocation136_spill] sm:$0xff] %v9355_v6  ;;  %v9360_v7 = vld [vmem:[%s11477_s4 + $0x480] sm:$0xff]  ;;  %v9365_v10 = vld [vmem:[%s11477_s4 + $0x488] sm:$0xff] }
  0xcf   :  { %11613 = vst [vmem:[#allocation137_spill] sm:$0xff] %v9360_v7  ;;  %11614 = vst [vmem:[#allocation138_spill] sm:$0xff] %v9365_v10  ;;  %v9370_v8 = vld [vmem:[%s11477_s4 + $0x490] sm:$0xff]  ;;  %v9375_v11 = vld [vmem:[%s11477_s4 + $0x498] sm:$0xff] }
  0xd0   :  { %11615 = vst [vmem:[#allocation139_spill] sm:$0xff] %v9370_v8  ;;  %11616 = vst [vmem:[#allocation140_spill] sm:$0xff] %v9375_v11  ;;  %v9380_v6 = vld [vmem:[%s11477_s4 + $0x4a0] sm:$0xff]  ;;  %v9385_v7 = vld [vmem:[%s11477_s4 + $0x4a8] sm:$0xff] }
  0xd1   :  { %11617 = vst [vmem:[#allocation141_spill] sm:$0xff] %v9380_v6  ;;  %11618 = vst [vmem:[#allocation142_spill] sm:$0xff] %v9385_v7  ;;  %v9390_v10 = vld [vmem:[%s11477_s4 + $0x4b0] sm:$0xff]  ;;  %v9395_v8 = vld [vmem:[%s11477_s4 + $0x4b8] sm:$0xff] }
  0xd2   :  { %11619 = vst [vmem:[#allocation143_spill] sm:$0xff] %v9390_v10  ;;  %11620 = vst [vmem:[#allocation144_spill] sm:$0xff] %v9395_v8  ;;  %v9400_v11 = vld [vmem:[%s11477_s4 + $0x4c0] sm:$0xff]  ;;  %v9405_v6 = vld [vmem:[%s11477_s4 + $0x4c8] sm:$0xff] }
  0xd3   :  { %11621 = vst [vmem:[#allocation145_spill] sm:$0xff] %v9400_v11  ;;  %11622 = vst [vmem:[#allocation146_spill] sm:$0xff] %v9405_v6  ;;  %v9410_v7 = vld [vmem:[%s11477_s4 + $0x4d0] sm:$0xff]  ;;  %v9415_v10 = vld [vmem:[%s11477_s4 + $0x4d8] sm:$0xff] }
  0xd4   :  { %11623 = vst [vmem:[#allocation147_spill] sm:$0xff] %v9410_v7  ;;  %11624 = vst [vmem:[#allocation148_spill] sm:$0xff] %v9415_v10  ;;  %v9420_v9 = vld [vmem:[%s11477_s4 + $0x4e0] sm:$0xff]  ;;  %v9425_v11 = vld [vmem:[%s11477_s4 + $0x4e8] sm:$0xff] }
  0xd5   :  { %11625 = vst [vmem:[#allocation149_spill] sm:$0xff] %v9420_v9  ;;  %11626 = vst [vmem:[#allocation150_spill] sm:$0xff] %v9425_v11  ;;  %v9430_v6 = vld [vmem:[%s11477_s4 + $0x4f0] sm:$0xff]  ;;  %v9435_v7 = vld [vmem:[%s11477_s4 + $0x4f8] sm:$0xff] }
  0xd6   :  { %11627 = vst [vmem:[#allocation151_spill] sm:$0xff] %v9430_v6  ;;  %11628 = vst [vmem:[#allocation152_spill] sm:$0xff] %v9435_v7  ;;  %v9440_v10 = vld [vmem:[%s11477_s4 + $0x500] sm:$0xff]  ;;  %v9445_v9 = vld [vmem:[%s11477_s4 + $0x508] sm:$0xff] }
  0xd7   :  { %11629 = vst [vmem:[#allocation153_spill] sm:$0xff] %v9440_v10  ;;  %11630 = vst [vmem:[#allocation154_spill] sm:$0xff] %v9445_v9  ;;  %v9450_v11 = vld [vmem:[%s11477_s4 + $0x510] sm:$0xff]  ;;  %v9455_v6 = vld [vmem:[%s11477_s4 + $0x518] sm:$0xff] }
  0xd8   :  { %11631 = vst [vmem:[#allocation155_spill] sm:$0xff] %v9450_v11  ;;  %11632 = vst [vmem:[#allocation156_spill] sm:$0xff] %v9455_v6  ;;  %v9460_v7 = vld [vmem:[%s11477_s4 + $0x520] sm:$0xff]  ;;  %v9465_v10 = vld [vmem:[%s11477_s4 + $0x528] sm:$0xff] }
  0xd9   :  { %11633 = vst [vmem:[#allocation157_spill] sm:$0xff] %v9460_v7  ;;  %11634 = vst [vmem:[#allocation158_spill] sm:$0xff] %v9465_v10  ;;  %v9470_v9 = vld [vmem:[%s11477_s4 + $0x530] sm:$0xff]  ;;  %v9475_v11 = vld [vmem:[%s11477_s4 + $0x538] sm:$0xff]  ;;  %v11479_v7 = vmov 0.0  }
  0xda   :  { %11635 = vst [vmem:[#allocation159_spill] sm:$0xff] %v9470_v9  ;;  %11636 = vst [vmem:[#allocation160_spill] sm:$0xff] %v9475_v11  ;;  %v973_v6 = vld [vmem:[%s11473_s0] sm:$0xff]  ;;  %v974_v10 = vld [vmem:[%s11473_s0 + $0x8] sm:$0xff] }
  0xdb   :  { %995 = vst.msk [vmem:[#allocation2] sm:$0x7] %vm994_vm0, %v11479_v7  ;;  %996 = vst.msk [vmem:[#allocation2 + $0x18] sm:$0x7] %vm994_vm0, %v11479_v7  ;;  %v975_v9 = vld [vmem:[%s11473_s0 + $0x10] sm:$0xff]  ;;  %v976_v11 = vld [vmem:[%s11473_s0 + $0x18] sm:$0xff] }
  0xdc   :  { %1000 = vst.msk [vmem:[#allocation2 + $0x3] sm:$0xff] %vm999_vm1, %v973_v6  ;;  %1001 = vst.msk [vmem:[#allocation2 + $0xb] sm:$0xff] %vm999_vm1, %v974_v10 }
  0xdd   :  { %997 = vst.msk [vmem:[#allocation2 + $0x13] sm:$0x7] %vm994_vm0, %v11479_v7  ;;  %998 = vst.msk [vmem:[#allocation2 + $0x2b] sm:$0x7] %vm994_vm0, %v11479_v7 }
  0xde   :  { %1002 = vst.msk [vmem:[#allocation2 + $0x1b] sm:$0xff] %vm999_vm1, %v975_v9  ;;  %1003 = vst.msk [vmem:[#allocation2 + $0x23] sm:$0xff] %vm999_vm1, %v976_v11 }
  0xdf   :  { %972 = vsyncadd [#allocation5 + $0x1], 21504  ;;  %s7785_s11 = smov 6   ;;  %s7786_s12 = smov 3   ;;  %vm1308_vm2 = vcmask 124928   ;;  %v11637_v0 = vmov 0.0  }
  0xe0   :  { %s7787_s0 = smov 9   ;;  %s7788_s3 = smov 12   ;;  %v979_v2 = vld [vmem:[%s11474_s1 + $0x10] sm:$0x1f]  ;;  %vm1170_vm3 = vcmask 1044480   ;;  %vm1132_vm4 = vcmask 48128  }
  0xe1   :  { %7392 = vmatprep.subr.msk.mxu1 %vm1170_vm3, %v979_v2  ;;  %s7789_s17 = smov 15   ;;  %s7790_s20 = smov 18   ;;  %vm1137_vm5 = vcmask 72704   ;;  %vm1142_vm6 = vcmask 97280   ;;  %vm1147_vm7 = vcmask 121856   ;;  %vm1152_vm8 = vcmask 146432  }
  0xe2   :  { %7393 = vmatpush3.msk.msra.mxu1 %vm1170_vm3, %v979_v2  ;;  %vm1157_vm9 = vcmask 171008   ;;  %vm1263_vm10 = vcmask 130048   ;;  %s7791_s29 = smov 16   ;;  %s7792_s30 = smov 32   ;;  %vm1445_vm11 = vcmask 261120   ;;  %vm1450_vm12 = vcmask 392192  }
  0xe3   :  { %v1012_v6 = vld [vmem:[#allocation2 + $0x2] sm:$0xff]  ;;  %v1013_v12 = vld [vmem:[#allocation2 + $0xa] sm:$0xff]  ;;  %s7793_s6 = smov 48   ;;  %s7795_s13 = smov 80   ;;  %vm1455_vm13 = vcmask 523264   ;;  %vm1460_vm14 = vcmask 654336  }
  0xe4   :  { %v1008_v7 = vld [vmem:[#allocation2 + $0x1] sm:$0xff]  ;;  %1052 = vrot.lane.b32.xlu1 %v1012_v6, %s7785_s11  ;;  %v1009_v8 = vld [vmem:[#allocation2 + $0x9] sm:$0xff]  ;;  %vm1465_vm15 = vcmask 785408   ;;  %vm1470_vm0 = vcmask 916480   ;;  %vm1894_vm3 = vcmask 1041409  }
  0xe5   :  { %1036 = vrot.lane.b32.xlu0 %v1008_v7, %s7786_s12  ;;  %v1021_v10 = vld [vmem:[#allocation2 + $0xc] sm:$0xff]  ;;  %v1016_v62 = vld [vmem:[#allocation2 + $0x3] sm:$0xff]  ;;  %v1010_v63 = vld [vmem:[#allocation2 + $0x19] sm:$0xff] }
  0xe6   :  { %v1025_v9 = vld [vmem:[#allocation2 + $0xd] sm:$0xff]  ;;  %v1023_v6 = vld [vmem:[#allocation2 + $0x24] sm:$0xff]  ;;  %v1014_v7 = vld [vmem:[#allocation2 + $0x1a] sm:$0xff] }
  0xe7   :  { %v1029_v61 = vld [vmem:[#allocation2 + $0xe] sm:$0xff]  ;;  %v1027_v1 = vld [vmem:[#allocation2 + $0x25] sm:$0xff] }
  0xe8   :  { %1054 = vrot.lane.b32.xlu1 %v1013_v12, %s7785_s11  ;;  %v1017_v11 = vld [vmem:[#allocation2 + $0xb] sm:$0xff]  ;;  %1311 = vst.msk [vmem:[#allocation2 + $0x13] sm:$0x7] %vm1308_vm2, %v11637_v0  ;;  %v1004_v13 = vld [vmem:[#allocation2] sm:$0xff]  ;;  %v9505_v12 = vld [vmem:[#allocation2 + $0x18] sm:$0xff] }
  0xe9   :  { %1038 = vrot.lane.b32.xlu0 %v1009_v8, %s7786_s12  ;;  %v1031_v5 = vld [vmem:[#allocation2 + $0x26] sm:$0xff]  ;;  %1309 = vst.msk [vmem:[#allocation2] sm:$0x7] %vm1308_vm2, %v11637_v0  ;;  %1310 = vst.msk [vmem:[#allocation2 + $0x18] sm:$0x7] %vm1308_vm2, %v11637_v0 }
  0xea   :  { %1312 = vst.msk [vmem:[#allocation2 + $0x2b] sm:$0x7] %vm1308_vm2, %v11637_v0  ;;  %v1020_v8 = vld [vmem:[#allocation2 + $0x4] sm:$0xff] }
  0xeb   :  { %v1028_v2 = vld [vmem:[#allocation2 + $0x6] sm:$0xff] }
  0xec   :  { %1070 = vrot.lane.b32.xlu1 %v1017_v11, %s7787_s0  ;;  %v1024_v11 = vld [vmem:[#allocation2 + $0x5] sm:$0xff] }
  0xed   :  { %1068 = vrot.lane.b32.xlu0 %v1016_v62, %s7787_s0  ;;  %v978_v62 = vld [vmem:[%s11474_s1 + $0x8] sm:$0xff] }
  0xee   :  { %7394 = vmatprep.subr.mxu1 %v978_v62  ;;  %v1015_v29 = vld [vmem:[#allocation2 + $0x22] sm:$0xff] }
  0xef   :  { %7395 = vmatpush3.msra.mxu1 %v978_v62  ;;  %v1022_v62 = vld [vmem:[#allocation2 + $0x1c] sm:$0xff] }
  0xf0   :  { %1040 = vrot.lane.b32.xlu1 %v1010_v63, %s7786_s12  ;;  %v977_v63 = vld [vmem:[%s11474_s1] sm:$0xff] }
  0xf1   :  { %1084 = vrot.lane.b32.xlu0 %v1020_v8, %s7788_s3  ;;  %v1011_v8 = vld [vmem:[#allocation2 + $0x21] sm:$0xff]  ;;  %7396 = vmatprep.subr.mxu1 %v977_v63 }
  0xf2   :  { %7397 = vmatpush3.msra.mxu1 %v977_v63  ;;  %v1030_v63 = vld [vmem:[#allocation2 + $0x1e] sm:$0xff] }
  0xf4   :  { %1100 = vrot.lane.b32.xlu1 %v1024_v11, %s7789_s17  ;;  %v1018_v11 = vld [vmem:[#allocation2 + $0x1b] sm:$0xff] }
  0xf5   :  { %1086 = vrot.lane.b32.xlu0 %v1021_v10, %s7788_s3  ;;  %v1019_v10 = vld [vmem:[#allocation2 + $0x23] sm:$0xff] }
  0xf8   :  { %1056 = vrot.lane.b32.xlu1 %v1014_v7, %s7785_s11  ;;  %v1026_v7 = vld [vmem:[#allocation2 + $0x1d] sm:$0xff] }
  0xf9   :  { %1042 = vrot.lane.b32.xlu0 %v1011_v8, %s7786_s12  ;;  %s7794_s12 = smov 64  }
  0xfc   :  { %1116 = vrot.lane.b32.xlu1 %v1028_v2, %s7790_s20 }
  0xfd   :  { %1102 = vrot.lane.b32.xlu0 %v1025_v9, %s7789_s17 }
 0x100   :  { %1072 = vrot.lane.b32.xlu1 %v1018_v11, %s7787_s0 }
 0x101   :  { %1058 = vrot.lane.b32.xlu0 %v1015_v29, %s7785_s11 }
 0x104   :  { %1074 = vrot.lane.b32.xlu1 %v1019_v10, %s7787_s0 }
 0x105   :  { %1118 = vrot.lane.b32.xlu0 %v1029_v61, %s7790_s20 }
 0x108   :  { %1090 = vrot.lane.b32.xlu1 %v1023_v6, %s7788_s3 }
 0x109   :  { %1088 = vrot.lane.b32.xlu0 %v1022_v62, %s7788_s3 }
 0x10c   :  { %1106 = vrot.lane.b32.xlu1 %v1027_v1, %s7789_s17 }
 0x10d   :  { %1104 = vrot.lane.b32.xlu0 %v1026_v7, %s7789_s17 }
 0x110   :  { %1122 = vrot.lane.b32.xlu1 %v1031_v5, %s7790_s20 }
 0x111   :  { %1120 = vrot.lane.b32.xlu0 %v1030_v63, %s7790_s20  ;;  %v1005_v63 = vld [vmem:[#allocation2 + $0x8] sm:$0xff]  ;;  %s7796_s20 = smov 96  }
 0x156   :  { %v1053_v9 = vpop.permute.xlu1 %1052 }
 0x157   :  { %v1037_v8 = vpop.permute.xlu0 %1036 }
 0x158   :  { %v1128_v6 = vsel %vm999_vm1, %v1004_v13, %v1037_v8 }
 0x159   :  { %v1133_v5 = vsel %vm1132_vm4, %v1128_v6, %v1053_v9 }
 0x15a   :  { %v1055_v2 = vpop.permute.xlu1 %1054 }
 0x15b   :  { %v1039_v11 = vpop.permute.xlu0 %1038 }
 0x15c   :  { %v1129_v8 = vsel %vm999_vm1, %v1005_v63, %v1039_v11  ;;  %v1007_v11 = vld [vmem:[#allocation2 + $0x20] sm:$0xff] }
 0x15d   :  { %v1134_v6 = vsel %vm1132_vm4, %v1129_v8, %v1055_v2 }
 0x15e   :  { %v1071_v29 = vpop.permute.xlu1 %1070 }
 0x15f   :  { %v1069_v14 = vpop.permute.xlu0 %1068 }
 0x160   :  { %v1138_v7 = vsel %vm1137_vm5, %v1133_v5, %v1069_v14  ;;  %v1139_v14 = vsel %vm1137_vm5, %v1134_v6, %v1071_v29 }
 0x162   :  { %v1041_v3 = vpop.permute.xlu1 %1040 }
 0x163   :  { %v1085_v10 = vpop.permute.xlu0 %1084  ;;  %v1130_v63 = vsel %vm999_vm1, %v9505_v12, %v1041_v3 }
 0x164   :  { %v1143_v15 = vsel %vm1142_vm6, %v1138_v7, %v1085_v10 }
 0x166   :  { %v1101_v61 = vpop.permute.xlu1 %1100 }
 0x167   :  { %v1087_v30 = vpop.permute.xlu0 %1086  ;;  %v1148_v4 = vsel %vm1147_vm7, %v1143_v15, %v1101_v61 }
 0x168   :  { %v1144_v5 = vsel %vm1142_vm6, %v1139_v14, %v1087_v30 }
 0x16a   :  { %v1057_v1 = vpop.permute.xlu1 %1056 }
 0x16b   :  { %v1043_v62 = vpop.permute.xlu0 %1042  ;;  %v1135_v30 = vsel %vm1132_vm4, %v1130_v63, %v1057_v1 }
 0x16c   :  { %v1131_v2 = vsel %vm999_vm1, %v1007_v11, %v1043_v62 }
 0x16e   :  { %v1117_v31 = vpop.permute.xlu1 %1116 }
 0x16f   :  { %v1103_v16 = vpop.permute.xlu0 %1102  ;;  %v1153_v13 = vsel %vm1152_vm8, %v1148_v4, %v1117_v31 }
 0x170   :  { %7398 = vmatprep.mubr.msk.f32.mxu1 %vm1157_vm9, %v1153_v13  ;;  %v1149_v10 = vsel %vm1147_vm7, %v1144_v5, %v1103_v16 }
 0x172   :  { %v1073_v45 = vpop.permute.xlu1 %1072 }
 0x173   :  { %v1059_v9 = vpop.permute.xlu0 %1058  ;;  %v1140_v8 = vsel %vm1137_vm5, %v1135_v30, %v1073_v45 }
 0x174   :  { %v1136_v16 = vsel %vm1132_vm4, %v1131_v2, %v1059_v9  ;;  %vm1896_vm4 = vcmask 1042434  }
 0x176   :  { %v1075_v7 = vpop.permute.xlu1 %1074 }
 0x177   :  { %v1119_v15 = vpop.permute.xlu0 %1118  ;;  %v1141_v6 = vsel %vm1137_vm5, %v1136_v16, %v1075_v7  ;;  %vm1898_vm5 = vcmask 1043459  }
 0x178   :  { %v1154_v61 = vsel %vm1152_vm8, %v1149_v10, %v1119_v15 }
 0x179   :  { %7399 = vmatmul.mubr.msk.f32.vlgmr.msra.gmra.mxu1 %vm1157_vm9, %v1154_v61 }
 0x17a   :  { %v1091_v31 = vpop.permute.xlu1 %1090 }
 0x17b   :  { %v1089_v4 = vpop.permute.xlu0 %1088  ;;  %v1146_v14 = vsel %vm1142_vm6, %v1141_v6, %v1091_v31 }
 0x17c   :  { %v1145_v5 = vsel %vm1142_vm6, %v1140_v8, %v1089_v4  ;;  %vm1900_vm6 = vcmask 1044484  }
 0x17e   :  { %v1107_v13 = vpop.permute.xlu1 %1106 }
 0x17f   :  { %v1105_v29 = vpop.permute.xlu0 %1104  ;;  %v1151_v10 = vsel %vm1147_vm7, %v1146_v14, %v1107_v13 }
 0x180   :  { %v1150_v3 = vsel %vm1147_vm7, %v1145_v5, %v1105_v29  ;;  %vm1902_vm7 = vcmask 1045509  }
 0x182   :  { %v1123_v12 = vpop.permute.xlu1 %1122 }
 0x183   :  { %v1121_v62 = vpop.permute.xlu0 %1120  ;;  %v1156_v15 = vsel %vm1152_vm8, %v1151_v10, %v1123_v12 }
 0x184   :  { %v1155_v1 = vsel %vm1152_vm8, %v1150_v3, %v1121_v62  ;;  %vm1904_vm8 = vcmask 1046534  }
 0x185   :  { %7401 = vmatprep.mubr.msk.f32.mxu1 %vm1157_vm9, %v1155_v1 }
 0x186   :  { %7402 = vmatmul.mubr.msk.f32.gmra.mxu1 %vm1157_vm9, %v1156_v15  ;;  %vm1906_vm9 = vcmask 1047559  }
 0x239   :  { %v7400_v45 = vpop.f32.mrf.mxu1 }
 0x23a   :  { %v1260_v61 = vmax.f32 %v7400_v45, 0.0 }
 0x23b   :  { %v1240_v9 = vpop.f32.mrf.mxu1 }
 0x23c   :  { %v1259_v7 = vmax.f32 %v1240_v9, 0.0  ;;  %v1279_v11 = vmul.f32 %v1260_v61, %v1260_v61  ;;  %v1265_v29 = vsel %vm1263_vm10, %v1260_v61, 0.0 }
 0x23e   :  { %v1278_v31 = vmul.f32 %v1259_v7, %v1259_v7  ;;  %v1264_v63 = vsel %vm1263_vm10, %v1259_v7, 0.0  ;;  %v1283_v6 = vsel %vm1263_vm10, %v1279_v11, 0.0 }
 0x23f   :  { %v1266_v8 = vadd.f32 %v1265_v29, %v1264_v63 }
 0x240   :  { %v1282_v30 = vsel %vm1263_vm10, %v1278_v31, 0.0 }
 0x241   :  { %v1284_v3 = vadd.f32 %v1283_v6, %v1282_v30 }
 0x246   :  { %v7403_v4 = vpop.f32.mrf.mxu1 }
 0x247   :  { %v1262_v2 = vmax.f32 %v7403_v4, 0.0 }
 0x248   :  { %v1250_v13 = vpop.f32.mrf.mxu1 }
 0x249   :  { %v1261_v16 = vmax.f32 %v1250_v13, 0.0  ;;  %v1281_v14 = vmul.f32 %v1262_v2, %v1262_v2  ;;  %v1269_v62 = vsel %vm1263_vm10, %v1262_v2, 0.0 }
 0x24b   :  { %v1267_v5 = vsel %vm1263_vm10, %v1261_v16, 0.0  ;;  %v1280_v10 = vmul.f32 %v1261_v16, %v1261_v16  ;;  %v1287_v9 = vsel %vm1263_vm10, %v1281_v14, 0.0 }
 0x24c   :  { %v1268_v12 = vadd.f32 %v1267_v5, %v1266_v8 }
 0x24d   :  { %v1285_v15 = vsel %vm1263_vm10, %v1280_v10, 0.0 }
 0x24e   :  { %v1270_v1 = vadd.f32 %v1269_v62, %v1268_v12  ;;  %v1286_v45 = vadd.f32 %v1285_v15, %v1284_v3 }
 0x250   :  { %v1271_v4 = vrot.slane %v1270_v1, 4  ;;  %v1288_v31 = vadd.f32 %v1287_v9, %v1286_v45 }
 0x252   :  { %v1272_v13 = vadd.f32 %v1271_v4, %v1270_v1  ;;  %v1289_v63 = vrot.slane %v1288_v31, 4 }
 0x254   :  { %v1273_v29 = vrot.slane %v1272_v13, 2  ;;  %v1290_v11 = vadd.f32 %v1289_v63, %v1288_v31 }
 0x256   :  { %v1274_v32 = vadd.f32 %v1273_v29, %v1272_v13  ;;  %v1291_v17 = vrot.slane %v1290_v11, 2 }
 0x258   :  { %v1275_v46 = vrot.slane %v1274_v32, 1  ;;  %v1292_v33 = vadd.f32 %v1291_v17, %v1290_v11  ;;  %v993_v17 = vld [vmem:[%s11474_s1 + $0x7d] sm:$0xff] }
 0x259   :  { %7404 = vmatprep.subr.mxu1 %v993_v17 }
 0x25a   :  { %v1276_v30 = vadd.f32 %v1275_v46, %v1274_v32  ;;  %v1293_v8 = vrot.slane %v1292_v33, 1  ;;  %v992_v32 = vld [vmem:[%s11474_s1 + $0x75] sm:$0xff]  ;;  %7405 = vmatpush3.msra.mxu1 %v993_v17  ;;  %v990_v46 = vld [vmem:[%s11474_s1 + $0x65] sm:$0xff]  ;;  %v989_v17 = vld [vmem:[%s11474_s1 + $0x5d] sm:$0xff] }
 0x25b   :  { %7406 = vmatprep.subr.mxu1 %v992_v32 }
 0x25c   :  { %v1277_v6 = vmul.f32 0.03125, %v1276_v30  ;;  %v1294_v5 = vadd.f32 %v1293_v8, %v1292_v33  ;;  %7407 = vmatpush3.msra.mxu1 %v992_v32  ;;  %v991_v33 = vld [vmem:[%s11474_s1 + $0x6d] sm:$0xff]  ;;  %v988_v32 = vld [vmem:[%s11474_s1 + $0x55] sm:$0xff] }
 0x25d   :  { %7408 = vmatprep.subr.mxu1 %v991_v33 }
 0x25e   :  { %v1295_v47 = vmul.f32 0.03125, %v1294_v5  ;;  %v1296_v10 = vmul.f32 %v1277_v6, %v1277_v6  ;;  %v1298_v14 = vsub.f32 %v1259_v7, %v1277_v6  ;;  %v1299_v62 = vsub.f32 %v1260_v61, %v1277_v6  ;;  %7409 = vmatpush3.msra.mxu1 %v991_v33 }
 0x25f   :  { %v1300_v15 = vsub.f32 %v1261_v16, %v1277_v6  ;;  %v1301_v1 = vsub.f32 %v1262_v2, %v1277_v6  ;;  %7410 = vmatprep.subr.mxu1 %v990_v46 }
 0x260   :  { %v1297_v12 = vsub.f32 %v1295_v47, %v1296_v10  ;;  %7411 = vmatpush3.msra.mxu1 %v990_v46  ;;  %v987_v46 = vld [vmem:[%s11474_s1 + $0x4d] sm:$0xff] }
 0x261   :  { %7412 = vmatprep.subr.mxu1 %v989_v17 }
 0x262   :  { %v1302_v3 = vadd.f32 1e-05, %v1297_v12  ;;  %7413 = vmatpush3.msra.mxu1 %v989_v17 }
 0x263   :  { %7414 = vmatprep.subr.mxu1 %v988_v32 }
 0x264   :  { %7698 = vrsqrt.f32 %v1302_v3  ;;  %7415 = vmatpush3.msra.mxu1 %v988_v32 }
 0x265   :  { %7416 = vmatprep.subr.mxu1 %v987_v46 }
 0x266   :  { %7417 = vmatpush3.msra.mxu1 %v987_v46 }
 0x271   :  { %v7699_v45 = vpop.eup %7698 }
 0x272   :  { %v1304_v9 = vmul.f32 %v7699_v45, %v1298_v14  ;;  %v1305_v4 = vmul.f32 %v7699_v45, %v1299_v62  ;;  %v1306_v31 = vmul.f32 %v7699_v45, %v1300_v15  ;;  %v1307_v13 = vmul.f32 %v7699_v45, %v1301_v1 }
 0x274   :  { %1313 = vst.msk [vmem:[#allocation2 + $0x3] sm:$0xff] %vm1263_vm10, %v1304_v9  ;;  %1314 = vst.msk [vmem:[#allocation2 + $0xb] sm:$0xff] %vm1263_vm10, %v1305_v4 }
 0x275   :  { %1315 = vst.msk [vmem:[#allocation2 + $0x1b] sm:$0xff] %vm1263_vm10, %v1306_v31  ;;  %1316 = vst.msk [vmem:[#allocation2 + $0x23] sm:$0xff] %vm1263_vm10, %v1307_v13 }
 0x27b   :  { %v1322_v47 = vld [vmem:[#allocation2 + $0x9] sm:$0xff]  ;;  %v1321_v7 = vld [vmem:[#allocation2 + $0x1] sm:$0xff] }
 0x27c   :  { %1351 = vrot.lane.b32.xlu1 %v1322_v47, %s7791_s29  ;;  %1349 = vrot.lane.b32.xlu0 %v1321_v7, %s7791_s29  ;;  %v1326_v61 = vld [vmem:[#allocation2 + $0xa] sm:$0xff]  ;;  %v1325_v2 = vld [vmem:[#allocation2 + $0x2] sm:$0xff]  ;;  %v1323_v29 = vld [vmem:[#allocation2 + $0x19] sm:$0xff] }
 0x27d   :  { %v1330_v16 = vld [vmem:[#allocation2 + $0xb] sm:$0xff]  ;;  %v1329_v63 = vld [vmem:[#allocation2 + $0x3] sm:$0xff]  ;;  %v1327_v6 = vld [vmem:[#allocation2 + $0x1a] sm:$0xff] }
 0x27e   :  { %v1333_v11 = vld [vmem:[#allocation2 + $0x4] sm:$0xff]  ;;  %v1334_v8 = vld [vmem:[#allocation2 + $0xc] sm:$0xff]  ;;  %v9591_v15 = vld [vmem:[#allocation2 + $0x1c] sm:$0xff] }
 0x27f   :  { %v1337_v30 = vld [vmem:[#allocation2 + $0x5] sm:$0xff]  ;;  %v1338_v10 = vld [vmem:[#allocation2 + $0xd] sm:$0xff]  ;;  %v9595_v45 = vld [vmem:[#allocation2 + $0x1d] sm:$0xff] }
 0x280   :  { %1367 = vrot.lane.b32.xlu1 %v1326_v61, %s7792_s30  ;;  %1365 = vrot.lane.b32.xlu0 %v1325_v2, %s7792_s30  ;;  %v1341_v5 = vld [vmem:[#allocation2 + $0x6] sm:$0xff]  ;;  %v9597_v9 = vld [vmem:[#allocation2 + $0x1e] sm:$0xff]  ;;  %v984_v61 = vld [vmem:[%s11474_s1 + $0x35] sm:$0xff] }
 0x281   :  { %v1324_v12 = vld [vmem:[#allocation2 + $0x21] sm:$0xff]  ;;  %v9603_v13 = vld [vmem:[#allocation2 + $0x18] sm:$0xff]  ;;  %v983_v2 = vld [vmem:[%s11474_s1 + $0x2d] sm:$0xff] }
 0x282   :  { %v1328_v3 = vld [vmem:[#allocation2 + $0x22] sm:$0xff]  ;;  %1811 = vst.msk [vmem:[#allocation2 + $0x18] sm:$0x7] %vm1308_vm2, %v11637_v0 }
 0x283   :  { %v1332_v14 = vld [vmem:[#allocation2 + $0x23] sm:$0xff] }
 0x284   :  { %v9589_v62 = vld [vmem:[#allocation2 + $0x24] sm:$0xff]  ;;  %1383 = vrot.lane.b32.xlu1 %v1330_v16, %s7793_s6  ;;  %1381 = vrot.lane.b32.xlu0 %v1329_v63, %s7793_s6  ;;  %v1331_v63 = vld [vmem:[#allocation2 + $0x1b] sm:$0xff] }
 0x285   :  { %v9593_v1 = vld [vmem:[#allocation2 + $0x25] sm:$0xff]  ;;  %v985_v7 = vld [vmem:[%s11474_s1 + $0x3d] sm:$0xff] }
 0x286   :  { %v9599_v4 = vld [vmem:[#allocation2 + $0x8] sm:$0xff]  ;;  %v9601_v31 = vld [vmem:[#allocation2] sm:$0xff] }
 0x287   :  { %1812 = vst.msk [vmem:[#allocation2 + $0xb] sm:$0x7] %vm1308_vm2, %v11637_v0  ;;  %1810 = vst.msk [vmem:[#allocation2] sm:$0x7] %vm1308_vm2, %v11637_v0  ;;  %v9619_v33 = vld [vmem:[#allocation2 + $0x20] sm:$0xff] }
 0x288   :  { %1813 = vst.msk [vmem:[#allocation2 + $0x23] sm:$0x7] %vm1308_vm2, %v11637_v0  ;;  %1353 = vrot.lane.b32.xlu1 %v1323_v29, %s7791_s29  ;;  %1397 = vrot.lane.b32.xlu0 %v1333_v11, %s7794_s12  ;;  %v986_v47 = vld [vmem:[%s11474_s1 + $0x45] sm:$0xff]  ;;  %v981_v29 = vld [vmem:[%s11474_s1 + $0x1d] sm:$0xff] }
 0x289   :  { %7418 = vmatprep.subr.mxu1 %v986_v47  ;;  %v982_v16 = vld [vmem:[%s11474_s1 + $0x25] sm:$0xff]  ;;  %v980_v11 = vld [vmem:[%s11474_s1 + $0x15] sm:$0xff] }
 0x28a   :  { %7419 = vmatpush3.msra.mxu1 %v986_v47 }
 0x28b   :  { %7420 = vmatprep.subr.mxu1 %v985_v7 }
 0x28c   :  { %1413 = vrot.lane.b32.xlu1 %v1337_v30, %s7795_s13  ;;  %1399 = vrot.lane.b32.xlu0 %v1334_v8, %s7794_s12  ;;  %v1342_v30 = vld [vmem:[#allocation2 + $0xe] sm:$0xff]  ;;  %v1344_v8 = vld [vmem:[#allocation2 + $0x26] sm:$0xff] }
 0x28d   :  { %7421 = vmatpush3.msra.mxu1 %v985_v7 }
 0x28e   :  { %7422 = vmatprep.subr.mxu1 %v984_v61 }
 0x28f   :  { %7423 = vmatpush3.msra.mxu1 %v984_v61 }
 0x290   :  { %1369 = vrot.lane.b32.xlu1 %v1327_v6, %s7792_s30  ;;  %1355 = vrot.lane.b32.xlu0 %v1324_v12, %s7791_s29 }
 0x291   :  { %7424 = vmatprep.subr.mxu1 %v983_v2 }
 0x292   :  { %7425 = vmatpush3.msra.mxu1 %v983_v2 }
 0x293   :  { %7426 = vmatprep.subr.mxu1 %v982_v16 }
 0x294   :  { %1429 = vrot.lane.b32.xlu1 %v1341_v5, %s7796_s20  ;;  %1415 = vrot.lane.b32.xlu0 %v1338_v10, %s7795_s13 }
 0x295   :  { %7427 = vmatpush3.msra.mxu1 %v982_v16 }
 0x296   :  { %7428 = vmatprep.subr.mxu1 %v981_v29 }
 0x297   :  { %7429 = vmatpush3.msra.mxu1 %v981_v29 }
 0x298   :  { %1385 = vrot.lane.b32.xlu1 %v1331_v63, %s7793_s6  ;;  %1371 = vrot.lane.b32.xlu0 %v1328_v3, %s7792_s30 }
 0x299   :  { %7430 = vmatprep.subr.mxu1 %v980_v11 }
 0x29a   :  { %7431 = vmatpush3.msra.mxu1 %v980_v11 }
 0x29b   :  { %2183 = vmatprep.subr.mxu1 %v11637_v0 }
 0x29c   :  { %1387 = vrot.lane.b32.xlu1 %v1332_v14, %s7793_s6  ;;  %1431 = vrot.lane.b32.xlu0 %v1342_v30, %s7796_s20 }
 0x2a0   :  { %1403 = vrot.lane.b32.xlu1 %v9589_v62, %s7794_s12  ;;  %1401 = vrot.lane.b32.xlu0 %v9591_v15, %s7794_s12 }
 0x2a4   :  { %1419 = vrot.lane.b32.xlu1 %v9593_v1, %s7795_s13  ;;  %1417 = vrot.lane.b32.xlu0 %v9595_v45, %s7795_s13 }
 0x2a8   :  { %1435 = vrot.lane.b32.xlu1 %v1344_v8, %s7796_s20  ;;  %1433 = vrot.lane.b32.xlu0 %v9597_v9, %s7796_s20 }
 0x2ee   :  { %v1352_v6 = vpop.permute.xlu1 %1351  ;;  %v1350_v5 = vpop.permute.xlu0 %1349 }
 0x2ef   :  { %v1441_v1 = vsel %vm1263_vm10, %v9601_v31, %v1350_v5  ;;  %v1442_v31 = vsel %vm1263_vm10, %v9599_v4, %v1352_v6 }
 0x2f2   :  { %v1368_v10 = vpop.permute.xlu1 %1367  ;;  %v1366_v12 = vpop.permute.xlu0 %1365 }
 0x2f3   :  { %v1446_v9 = vsel %vm1445_vm11, %v1441_v1, %v1366_v12  ;;  %v1447_v30 = vsel %vm1445_vm11, %v1442_v31, %v1368_v10  ;;  %v1781_v31 = vld [vmem:[%s11475_s2 + $0x68] sm:$0xff] }
 0x2f4   :  { %7438 = vmatprep.subr.mxu0 %v1781_v31 }
 0x2f5   :  { %7439 = vmatpush3.msra.mxu0 %v1781_v31 }
 0x2f6   :  { %v1384_v3 = vpop.permute.xlu1 %1383  ;;  %v1382_v14 = vpop.permute.xlu0 %1381 }
 0x2f7   :  { %v1451_v47 = vsel %vm1450_vm12, %v1446_v9, %v1382_v14  ;;  %v1452_v8 = vsel %vm1450_vm12, %v1447_v30, %v1384_v3 }
 0x2fa   :  { %v1354_v62 = vpop.permute.xlu1 %1353  ;;  %v1398_v15 = vpop.permute.xlu0 %1397 }
 0x2fb   :  { %v1456_v7 = vsel %vm1455_vm13, %v1451_v47, %v1398_v15  ;;  %v1443_v4 = vsel %vm1263_vm10, %v9603_v13, %v1354_v62 }
 0x2fe   :  { %v1414_v17 = vpop.permute.xlu1 %1413  ;;  %v1400_v32 = vpop.permute.xlu0 %1399 }
 0x2ff   :  { %v1461_v61 = vsel %vm1460_vm14, %v1456_v7, %v1414_v17  ;;  %v1457_v5 = vsel %vm1455_vm13, %v1452_v8, %v1400_v32 }
 0x302   :  { %v1370_v45 = vpop.permute.xlu1 %1369  ;;  %v1356_v46 = vpop.permute.xlu0 %1355 }
 0x303   :  { %v1444_v6 = vsel %vm1263_vm10, %v9619_v33, %v1356_v46  ;;  %v1448_v32 = vsel %vm1445_vm11, %v1443_v4, %v1370_v45 }
 0x306   :  { %v1430_v2 = vpop.permute.xlu1 %1429  ;;  %v1416_v16 = vpop.permute.xlu0 %1415 }
 0x307   :  { %v1466_v63 = vsel %vm1465_vm15, %v1461_v61, %v1430_v2  ;;  %v1462_v12 = vsel %vm1460_vm14, %v1457_v5, %v1416_v16 }
 0x308   :  { %7432 = vmatprep.mubr.msk.f32.mxu1 %vm1470_vm0, %v1466_v63 }
 0x30a   :  { %v1386_v29 = vpop.permute.xlu1 %1385  ;;  %v1372_v11 = vpop.permute.xlu0 %1371 }
 0x30b   :  { %v1449_v47 = vsel %vm1445_vm11, %v1444_v6, %v1372_v11  ;;  %v1453_v7 = vsel %vm1450_vm12, %v1448_v32, %v1386_v29  ;;  %v1780_v29 = vld [vmem:[%s11475_s2 + $0x60] sm:$0xff]  ;;  %v1779_v11 = vld [vmem:[%s11475_s2 + $0x58] sm:$0xff] }
 0x30c   :  { %7440 = vmatprep.subr.mxu0 %v1780_v29 }
 0x30d   :  { %7441 = vmatpush3.msra.mxu0 %v1780_v29 }
 0x30e   :  { %v1388_v14 = vpop.permute.xlu1 %1387  ;;  %v1432_v15 = vpop.permute.xlu0 %1431  ;;  %7442 = vmatprep.subr.mxu0 %v1779_v11 }
 0x30f   :  { %v1467_v17 = vsel %vm1465_vm15, %v1462_v12, %v1432_v15  ;;  %v1454_v61 = vsel %vm1450_vm12, %v1449_v47, %v1388_v14  ;;  %7443 = vmatpush3.msra.mxu0 %v1779_v11 }
 0x310   :  { %7433 = vmatmul.mubr.msk.f32.vlgmr.msra.gmra.mxu1 %vm1470_vm0, %v1467_v17 }
 0x312   :  { %v1404_v1 = vpop.permute.xlu1 %1403  ;;  %v1402_v9 = vpop.permute.xlu0 %1401 }
 0x313   :  { %v1459_v2 = vsel %vm1455_vm13, %v1454_v61, %v1404_v1  ;;  %v1458_v16 = vsel %vm1455_vm13, %v1453_v7, %v1402_v9 }
 0x316   :  { %v1420_v10 = vpop.permute.xlu1 %1419  ;;  %v1418_v3 = vpop.permute.xlu0 %1417 }
 0x317   :  { %v1464_v63 = vsel %vm1460_vm14, %v1459_v2, %v1420_v10  ;;  %v1463_v13 = vsel %vm1460_vm14, %v1458_v16, %v1418_v3 }
 0x31a   :  { %v1436_v62 = vpop.permute.xlu1 %1435  ;;  %v1434_v33 = vpop.permute.xlu0 %1433 }
 0x31b   :  { %v1469_v46 = vsel %vm1465_vm15, %v1464_v63, %v1436_v62  ;;  %v1468_v45 = vsel %vm1465_vm15, %v1463_v13, %v1434_v33 }
 0x31c   :  { %7435 = vmatprep.mubr.msk.f32.mxu1 %vm1470_vm0, %v1468_v45 }
 0x31d   :  { %7436 = vmatmul.mubr.msk.f32.gmra.mxu1 %vm1470_vm0, %v1469_v46 }
 0x3d0   :  { %v7434_v30 = vpop.f32.mrf.mxu1 }
 0x3d1   :  { %v1569_v12 = vmax.f32 %v7434_v30, 0.0 }
 0x3d2   :  { %v1549_v8 = vpop.f32.mrf.mxu1 }
 0x3d3   :  { %v1568_v5 = vmax.f32 %v1549_v8, 0.0  ;;  %v1587_v17 = vmul.f32 %v1569_v12, %v1569_v12  ;;  %v1573_v6 = vsel %vm1263_vm10, %v1569_v12, 0.0 }
 0x3d5   :  { %v1586_v14 = vmul.f32 %v1568_v5, %v1568_v5  ;;  %v1572_v1 = vsel %vm1263_vm10, %v1568_v5, 0.0  ;;  %v1591_v47 = vsel %vm1263_vm10, %v1587_v17, 0.0 }
 0x3d6   :  { %v1574_v32 = vadd.f32 %v1573_v6, %v1572_v1 }
 0x3d7   :  { %v1590_v10 = vsel %vm1263_vm10, %v1586_v14, 0.0 }
 0x3d8   :  { %v1592_v16 = vadd.f32 %v1591_v47, %v1590_v10 }
 0x3dd   :  { %v7437_v15 = vpop.f32.mrf.mxu1 }
 0x3de   :  { %v1571_v9 = vmax.f32 %v7437_v15, 0.0 }
 0x3df   :  { %v1559_v4 = vpop.f32.mrf.mxu1 }
 0x3e0   :  { %v1570_v3 = vmax.f32 %v1559_v4, 0.0  ;;  %v1589_v7 = vmul.f32 %v1571_v9, %v1571_v9  ;;  %v1577_v13 = vsel %vm1263_vm10, %v1571_v9, 0.0 }
 0x3e2   :  { %v1575_v61 = vsel %vm1263_vm10, %v1570_v3, 0.0  ;;  %v1588_v2 = vmul.f32 %v1570_v3, %v1570_v3  ;;  %v1595_v45 = vsel %vm1263_vm10, %v1589_v7, 0.0  ;;  %v7797_v7 = vmov 1983009808  }
 0x3e3   :  { %v1576_v63 = vadd.f32 %v1575_v61, %v1574_v32 }
 0x3e4   :  { %v1593_v62 = vsel %vm1263_vm10, %v1588_v2, 0.0 }
 0x3e5   :  { %v1578_v33 = vadd.f32 %v1577_v13, %v1576_v63  ;;  %v1594_v46 = vadd.f32 %v1593_v62, %v1592_v16  ;;  %v1622_v13 = vunpack.c.l.s4 %v7797_v7  ;;  %v1624_v62 = vlaneseq }
 0x3e7   :  { %v1579_v31 = vrot.slane %v1578_v33, 4  ;;  %v1596_v29 = vadd.f32 %v1595_v45, %v1594_v46  ;;  %v9720_v46 = vshrl.u32 %v1624_v62, 7 }
 0x3e9   :  { %v1580_v11 = vadd.f32 %v1579_v31, %v1578_v33  ;;  %v1597_v30 = vrot.slane %v1596_v29, 4  ;;  %v1623_v33 = vunpack.c.0.s8 %v1622_v13  ;;  %11638 = vst [vmem:[#allocation161_spill] sm:$0xff] %v9720_v46 }
 0x3eb   :  { %v1581_v8 = vrot.slane %v1580_v11, 2  ;;  %v1598_v14 = vadd.f32 %v1597_v30, %v1596_v29  ;;  %v9723_v45 = vsub.s32 %v1623_v33, %v9720_v46 }
 0x3ed   :  { %v1582_v15 = vadd.f32 %v1581_v8, %v1580_v11  ;;  %v1599_v17 = vrot.slane %v1598_v14, 2 }
 0x3ef   :  { %v1583_v1 = vrot.slane %v1582_v15, 1  ;;  %v1600_v4 = vadd.f32 %v1599_v17, %v1598_v14 }
 0x3f1   :  { %v1584_v6 = vadd.f32 %v1583_v1, %v1582_v15  ;;  %v1601_v10 = vrot.slane %v1600_v4, 1 }
 0x3f3   :  { %v1585_v32 = vmul.f32 0.03125, %v1584_v6  ;;  %v1602_v47 = vadd.f32 %v1601_v10, %v1600_v4 }
 0x3f5   :  { %v1603_v61 = vmul.f32 0.03125, %v1602_v47  ;;  %v1604_v2 = vmul.f32 %v1585_v32, %v1585_v32  ;;  %v1606_v31 = vsub.f32 %v1568_v5, %v1585_v32  ;;  %v1607_v29 = vsub.f32 %v1569_v12, %v1585_v32 }
 0x3f6   :  { %v1608_v11 = vsub.f32 %v1570_v3, %v1585_v32  ;;  %v1609_v30 = vsub.f32 %v1571_v9, %v1585_v32 }
 0x3f7   :  { %v1605_v63 = vsub.f32 %v1603_v61, %v1604_v2 }
 0x3f9   :  { %v1610_v16 = vadd.f32 1e-05, %v1605_v63 }
 0x3fb   :  { %7700 = vrsqrt.f32 %v1610_v16 }
 0x408   :  { %v7701_v8 = vpop.eup %7700 }
 0x409   :  { %v9725_v14 = vmul.f32 %v7701_v8, %v1606_v31  ;;  %v9727_v15 = vmul.f32 %v7701_v8, %v1607_v29  ;;  %v9729_v17 = vmul.f32 %v7701_v8, %v1608_v11  ;;  %v9731_v1 = vmul.f32 %v7701_v8, %v1609_v30 }
 0x40a   :  { %v9754_v29 = vsub.s32 0, %v9720_v46 }
 0x40b   :  { %11639 = vst [vmem:[#allocation162_spill] sm:$0xff] %v9725_v14  ;;  %11640 = vst [vmem:[#allocation163_spill] sm:$0xff] %v9727_v15  ;;  %v1620_v4 = vcombine.high %v9725_v14, %v9725_v14  ;;  %v1627_v6 = vrot.slane %v9725_v14, %v9723_v45  ;;  %v1637_v5 = vcombine.high %v9727_v15, %v9727_v15 }
 0x40c   :  { %11641 = vst [vmem:[#allocation164_spill] sm:$0xff] %v9729_v17  ;;  %11642 = vst [vmem:[#allocation165_spill] sm:$0xff] %v9731_v1  ;;  %v1644_v12 = vrot.slane %v9727_v15, %v9723_v45  ;;  %v1654_v9 = vcombine.high %v9729_v17, %v9729_v17  ;;  %v1661_v3 = vrot.slane %v9729_v17, %v9723_v45 }
 0x40d   :  { %v1671_v10 = vcombine.high %v9731_v1, %v9731_v1  ;;  %v1634_v32 = vrot.slane %v1620_v4, %v9723_v45  ;;  %v1635_v47 = vcombine.high %v1627_v6, %v1627_v6  ;;  %v1678_v61 = vrot.slane %v9731_v1, %v9723_v45 }
 0x40e   :  { %v1668_v2 = vrot.slane %v1654_v9, %v9723_v45  ;;  %v1669_v63 = vcombine.high %v1661_v3, %v1661_v3  ;;  %v1651_v7 = vrot.slane %v1637_v5, %v9723_v45  ;;  %v1652_v62 = vcombine.high %v1644_v12, %v1644_v12 }
 0x40f   :  { %v1636_v16 = vcombine.high %v1634_v32, %v1634_v32  ;;  %v1685_v13 = vrot.slane %v1671_v10, %v9723_v45  ;;  %v6811_v31 = vrot.slane %v1635_v47, 9  ;;  %v1686_v11 = vcombine.high %v1678_v61, %v1678_v61 }
 0x410   :  { %v1670_v33 = vcombine.high %v1668_v2, %v1668_v2  ;;  %v6810_v30 = vrot.slane %v1627_v6, 9  ;;  %v6812_v8 = vrot.slane %v1634_v32, 9  ;;  %v6818_v17 = vrot.slane %v1661_v3, 9 }
 0x411   :  { %v6813_v4 = vrot.slane %v1636_v16, 9  ;;  %v6819_v1 = vrot.slane %v1669_v63, 9  ;;  %v6820_v9 = vrot.slane %v1668_v2, 9  ;;  %v1653_v15 = vcombine.high %v1651_v7, %v1651_v7 }
 0x412   :  { %v6821_v14 = vrot.slane %v1670_v33, 9  ;;  %v1687_v18 = vcombine.high %v1685_v13, %v1685_v13  ;;  %v6814_v5 = vrot.slane %v1644_v12, 9  ;;  %v6815_v10 = vrot.slane %v1652_v62, 9 }
 0x413   :  { %v6822_v34 = vrot.slane %v1678_v61, 9  ;;  %v1753_v48 = vmax.f32 %v1635_v47, %v6811_v31  ;;  %v6823_v46 = vrot.slane %v1686_v11, 9  ;;  %v1752_v19 = vmax.f32 %v1627_v6, %v6810_v30  ;;  %v1774_v30 = vld [vmem:[%s11475_s2 + $0x30] sm:$0xff] }
 0x414   :  { %v1754_v49 = vmax.f32 %v1634_v32, %v6812_v8  ;;  %v1755_v35 = vmax.f32 %v1636_v16, %v6813_v4  ;;  %v1760_v20 = vmax.f32 %v1661_v3, %v6818_v17  ;;  %v1761_v50 = vmax.f32 %v1669_v63, %v6819_v1  ;;  %v1773_v8 = vld [vmem:[%s11475_s2 + $0x28] sm:$0xff] }
 0x415   :  { %v1762_v36 = vmax.f32 %v1668_v2, %v6820_v9  ;;  %v1763_v51 = vmax.f32 %v1670_v33, %v6821_v14  ;;  %v6816_v21 = vrot.slane %v1651_v7, 9  ;;  %v6817_v52 = vrot.slane %v1653_v15, 9  ;;  %v1776_v33 = vld [vmem:[%s11475_s2 + $0x40] sm:$0xff] }
 0x416   :  { %v6824_v37 = vrot.slane %v1685_v13, 9  ;;  %v6825_v22 = vrot.slane %v1687_v18, 9  ;;  %v1756_v53 = vmax.f32 %v1644_v12, %v6814_v5  ;;  %v1757_v38 = vmax.f32 %v1652_v62, %v6815_v10 }
 0x417   :  { %v1764_v54 = vmax.f32 %v1678_v61, %v6822_v34  ;;  %v1837_v23 = vrot.slane %v1753_v48, %v9754_v29  ;;  %v1765_v47 = vmax.f32 %v1686_v11, %v6823_v46  ;;  %v1833_v31 = vrot.slane %v1752_v19, %v9754_v29  ;;  %v1775_v11 = vld [vmem:[%s11475_s2 + $0x38] sm:$0xff] }
 0x418   :  { %v1841_v6 = vrot.slane %v1754_v49, %v9754_v29  ;;  %v1845_v32 = vrot.slane %v1755_v35, %v9754_v29  ;;  %v1865_v17 = vrot.slane %v1760_v20, %v9754_v29  ;;  %v1869_v14 = vrot.slane %v1761_v50, %v9754_v29 }
 0x419   :  { %v1873_v1 = vrot.slane %v1762_v36, %v9754_v29  ;;  %v1877_v3 = vrot.slane %v1763_v51, %v9754_v29  ;;  %v1758_v12 = vmax.f32 %v1651_v7, %v6816_v21  ;;  %v1766_v2 = vmax.f32 %v1685_v13, %v6824_v37 }
 0x41a   :  { %v1759_v34 = vmax.f32 %v1653_v15, %v6817_v52  ;;  %v1767_v48 = vmax.f32 %v1687_v18, %v6825_v22  ;;  %v1895_v19 = vsel %vm1894_vm3, %v1837_v23, %v1833_v31  ;;  %v1908_v49 = vsel %vm1894_vm3, %v1869_v14, %v1865_v17  ;;  %v1778_v22 = vld [vmem:[%s11475_s2 + $0x50] sm:$0xff]  ;;  %v1777_v23 = vld [vmem:[%s11475_s2 + $0x48] sm:$0xff]  ;;  %v1771_v31 = vld [vmem:[%s11475_s2 + $0x18] sm:$0xff] }
 0x41b   :  { %v1849_v35 = vrot.slane %v1756_v53, %v9754_v29  ;;  %v1881_v20 = vrot.slane %v1764_v54, %v9754_v29  ;;  %v1897_v50 = vsel %vm1896_vm4, %v1841_v6, %v1895_v19  ;;  %v1909_v36 = vsel %vm1896_vm4, %v1873_v1, %v1908_v49  ;;  %7444 = vmatprep.subr.mxu0 %v1778_v22  ;;  %v1770_v17 = vld [vmem:[%s11475_s2 + $0x10] sm:$0xff]  ;;  %v1769_v14 = vld [vmem:[%s11475_s2 + $0x8] sm:$0xff] }
 0x41c   :  { %v1853_v51 = vrot.slane %v1757_v38, %v9754_v29  ;;  %v1885_v21 = vrot.slane %v1765_v47, %v9754_v29  ;;  %v1899_v37 = vsel %vm1898_vm5, %v1845_v32, %v1897_v50  ;;  %v1910_v18 = vsel %vm1898_vm5, %v1877_v3, %v1909_v36  ;;  %7445 = vmatpush3.msra.mxu0 %v1778_v22  ;;  %v1772_v47 = vld [vmem:[%s11475_s2 + $0x20] sm:$0xff] }
 0x41d   :  { %v1857_v52 = vrot.slane %v1758_v12, %v9754_v29  ;;  %v1889_v53 = vrot.slane %v1766_v2, %v9754_v29  ;;  %v1901_v38 = vsel %vm1900_vm6, %v1849_v35, %v1899_v37  ;;  %v1911_v54 = vsel %vm1900_vm6, %v1881_v20, %v1910_v18  ;;  %7446 = vmatprep.subr.mxu0 %v1777_v23  ;;  %v1768_v12 = vld [vmem:[%s11475_s2] sm:$0xff] }
 0x41e   :  { %v1861_v46 = vrot.slane %v1759_v34, %v9754_v29  ;;  %v1893_v15 = vrot.slane %v1767_v48, %v9754_v29  ;;  %v1903_v61 = vsel %vm1902_vm7, %v1853_v51, %v1901_v38  ;;  %v1912_v63 = vsel %vm1902_vm7, %v1885_v21, %v1911_v54  ;;  %7447 = vmatpush3.msra.mxu0 %v1777_v23 }
 0x41f   :  { %v1905_v16 = vsel %vm1904_vm8, %v1857_v52, %v1903_v61  ;;  %v1913_v7 = vsel %vm1904_vm8, %v1889_v53, %v1912_v63  ;;  %7448 = vmatprep.subr.mxu0 %v1776_v33  ;;  %vm2106_vm6 = vcmask 256000  }
 0x420   :  { %v1907_v13 = vsel %vm1906_vm9, %v1861_v46, %v1905_v16  ;;  %v1914_v62 = vsel %vm1906_vm9, %v1893_v15, %v1913_v7  ;;  %7449 = vmatpush3.msra.mxu0 %v1776_v33 }
 0x421   :  { %1917 = vst.msk [vmem:[#allocation2 + $0x3] sm:$0xff] %vm1263_vm10, %v1907_v13  ;;  %1918 = vst.msk [vmem:[#allocation2 + $0x1b] sm:$0xff] %vm1263_vm10, %v1914_v62  ;;  %7450 = vmatprep.subr.mxu0 %v1775_v11 }
 0x422   :  { %7451 = vmatpush3.msra.mxu0 %v1775_v11 }
 0x423   :  { %7452 = vmatprep.subr.mxu0 %v1774_v30 }
 0x424   :  { %7453 = vmatpush3.msra.mxu0 %v1774_v30 }
 0x425   :  { %7454 = vmatprep.subr.mxu0 %v1773_v8 }
 0x426   :  { %7455 = vmatpush3.msra.mxu0 %v1773_v8  ;;  %v1797_v8 = vld [vmem:[%s11475_s2 + $0xe8] sm:$0xff] }
 0x427   :  { %7456 = vmatprep.subr.mxu0 %v1772_v47  ;;  %2184 = vmatpush1.msra.mxu1 %v1797_v8 }
 0x428   :  { %v1922_v4 = vld [vmem:[#allocation2 + $0x19] sm:$0xff]  ;;  %v1921_v9 = vld [vmem:[#allocation2 + $0x1] sm:$0xff]  ;;  %7457 = vmatpush3.msra.mxu0 %v1772_v47  ;;  %2185 = vmatprep.subr.mxu1 %v11637_v0 }
 0x429   :  { %1937 = vrot.lane.b32.xlu1 %v1922_v4, %s7791_s29  ;;  %1935 = vrot.lane.b32.xlu0 %v1921_v9, %s7791_s29  ;;  %v1924_v5 = vld [vmem:[#allocation2 + $0x1a] sm:$0xff]  ;;  %v1923_v10 = vld [vmem:[#allocation2 + $0x2] sm:$0xff] }
 0x42a   :  { %v1926_v6 = vld [vmem:[#allocation2 + $0x1b] sm:$0xff]  ;;  %v1925_v32 = vld [vmem:[#allocation2 + $0x3] sm:$0xff]  ;;  %7458 = vmatprep.subr.mxu0 %v1771_v31 }
 0x42b   :  { %7459 = vmatpush3.msra.mxu0 %v1771_v31  ;;  %v1928_v1 = vld [vmem:[#allocation2 + $0x1c] sm:$0xff]  ;;  %v1927_v3 = vld [vmem:[#allocation2 + $0x4] sm:$0xff] }
 0x42c   :  { %7460 = vmatprep.subr.mxu0 %v1770_v17  ;;  %v1930_v2 = vld [vmem:[#allocation2 + $0x1d] sm:$0xff]  ;;  %v1929_v34 = vld [vmem:[#allocation2 + $0x5] sm:$0xff] }
 0x42d   :  { %1945 = vrot.lane.b32.xlu1 %v1924_v5, %s7792_s30  ;;  %1943 = vrot.lane.b32.xlu0 %v1923_v10, %s7792_s30  ;;  %v1932_v48 = vld [vmem:[#allocation2 + $0x1e] sm:$0xff]  ;;  %v1931_v19 = vld [vmem:[#allocation2 + $0x6] sm:$0xff]  ;;  %v1794_v5 = vld [vmem:[%s11475_s2 + $0xd0] sm:$0xff] }
 0x42e   :  { %7461 = vmatpush3.msra.mxu0 %v1770_v17  ;;  %v1920_v18 = vld [vmem:[#allocation2 + $0x18] sm:$0xff]  ;;  %v1919_v22 = vld [vmem:[#allocation2] sm:$0xff]  ;;  %2109 = vst.msk [vmem:[#allocation2 + $0xb] sm:$0x7] %vm2106_vm6, %v11637_v0  ;;  %2110 = vst.msk [vmem:[#allocation2 + $0x23] sm:$0x7] %vm2106_vm6, %v11637_v0 }
 0x42f   :  { %7462 = vmatprep.subr.mxu0 %v1769_v14  ;;  %2107 = vst.msk [vmem:[#allocation2] sm:$0x7] %vm2106_vm6, %v11637_v0  ;;  %2108 = vst.msk [vmem:[#allocation2 + $0x18] sm:$0x7] %vm2106_vm6, %v11637_v0  ;;  %v1796_v4 = vld [vmem:[%s11475_s2 + $0xe0] sm:$0xff]  ;;  %v1795_v9 = vld [vmem:[%s11475_s2 + $0xd8] sm:$0xff] }
 0x430   :  { %7463 = vmatpush3.msra.mxu0 %v1769_v14  ;;  %2186 = vmatpush1.msra.mxu1 %v1796_v4  ;;  %v1793_v10 = vld [vmem:[%s11475_s2 + $0xc8] sm:$0xff]  ;;  %v1792_v47 = vld [vmem:[%s11475_s2 + $0xc0] sm:$0xff]  ;;  %v1791_v31 = vld [vmem:[%s11475_s2 + $0xb8] sm:$0xff] }
 0x431   :  { %1953 = vrot.lane.b32.xlu1 %v1926_v6, %s7793_s6  ;;  %1951 = vrot.lane.b32.xlu0 %v1925_v32, %s7793_s6  ;;  %v1790_v6 = vld [vmem:[%s11475_s2 + $0xb0] sm:$0xff]  ;;  %v1789_v32 = vld [vmem:[%s11475_s2 + $0xa8] sm:$0xff] }
 0x432   :  { %7464 = vmatprep.subr.mxu0 %v1768_v12  ;;  %2187 = vmatprep.subr.mxu1 %v11637_v0  ;;  %v1788_v17 = vld [vmem:[%s11475_s2 + $0xa0] sm:$0xff]  ;;  %v1787_v14 = vld [vmem:[%s11475_s2 + $0x98] sm:$0xff] }
 0x433   :  { %7465 = vmatpush3.msra.mxu0 %v1768_v12  ;;  %2188 = vmatpush1.msra.mxu1 %v1795_v9  ;;  %v1784_v12 = vld [vmem:[%s11475_s2 + $0x80] sm:$0xff] }
 0x434   :  { %2189 = vmatprep.subr.mxu1 %v11637_v0 }
 0x435   :  { %1961 = vrot.lane.b32.xlu1 %v1928_v1, %s7794_s12  ;;  %1959 = vrot.lane.b32.xlu0 %v1927_v3, %s7794_s12  ;;  %v1786_v1 = vld [vmem:[%s11475_s2 + $0x90] sm:$0xff]  ;;  %v1785_v3 = vld [vmem:[%s11475_s2 + $0x88] sm:$0xff] }
 0x436   :  { %2190 = vmatpush1.msra.mxu1 %v1794_v5 }
 0x437   :  { %2191 = vmatprep.subr.mxu1 %v11637_v0 }
 0x438   :  { %2192 = vmatpush1.msra.mxu1 %v1793_v10 }
 0x439   :  { %1969 = vrot.lane.b32.xlu1 %v1930_v2, %s7795_s13  ;;  %1967 = vrot.lane.b32.xlu0 %v1929_v34, %s7795_s13  ;;  %v1783_v2 = vld [vmem:[%s11475_s2 + $0x78] sm:$0xff]  ;;  %v1782_v34 = vld [vmem:[%s11475_s2 + $0x70] sm:$0xff] }
 0x43a   :  { %2193 = vmatprep.subr.mxu1 %v11637_v0 }
 0x43b   :  { %2194 = vmatpush1.msra.mxu1 %v1792_v47 }
 0x43c   :  { %2195 = vmatprep.subr.mxu1 %v11637_v0 }
 0x43d   :  { %1977 = vrot.lane.b32.xlu1 %v1932_v48, %s7796_s20  ;;  %1975 = vrot.lane.b32.xlu0 %v1931_v19, %s7796_s20  ;;  %v1809_v48 = vld [vmem:[%s11475_s2 + $0x148] sm:$0xff]  ;;  %v1808_v19 = vld [vmem:[%s11475_s2 + $0x140] sm:$0xff] }
 0x43e   :  { %2196 = vmatpush1.msra.mxu1 %v1791_v31 }
 0x43f   :  { %2197 = vmatprep.subr.mxu1 %v11637_v0 }
 0x440   :  { %2198 = vmatpush1.msra.mxu1 %v1790_v6  ;;  %v1803_v6 = vld [vmem:[%s11475_s2 + $0x118] sm:$0xff] }
 0x441   :  { %2199 = vmatprep.subr.mxu1 %v11637_v0 }
 0x442   :  { %2200 = vmatpush1.msra.mxu1 %v1789_v32 }
 0x443   :  { %2201 = vmatprep.subr.mxu1 %v11637_v0 }
 0x444   :  { %2202 = vmatpush1.msra.mxu1 %v1788_v17 }
 0x445   :  { %2203 = vmatprep.subr.mxu1 %v11637_v0 }
 0x446   :  { %2204 = vmatpush1.msra.mxu1 %v1787_v14 }
 0x447   :  { %2205 = vmatprep.subr.mxu1 %v11637_v0 }
 0x448   :  { %2206 = vmatpush1.msra.mxu1 %v1786_v1  ;;  %v1802_v1 = vld [vmem:[%s11475_s2 + $0x110] sm:$0xff] }
 0x449   :  { %2207 = vmatprep.subr.mxu1 %v11637_v0 }
 0x44a   :  { %2208 = vmatpush1.msra.mxu1 %v1785_v3 }
 0x44b   :  { %2209 = vmatprep.subr.mxu1 %v11637_v0 }
 0x44c   :  { %2210 = vmatpush1.msra.mxu1 %v1784_v12 }
 0x44d   :  { %2211 = vmatprep.subr.mxu1 %v11637_v0 }
 0x44e   :  { %2212 = vmatpush1.msra.mxu1 %v1783_v2  ;;  %v1801_v2 = vld [vmem:[%s11475_s2 + $0x108] sm:$0xff] }
 0x44f   :  { %2213 = vmatprep.subr.mxu1 %v11637_v0 }
 0x450   :  { %2214 = vmatpush1.msra.mxu1 %v1782_v34  ;;  %v1800_v34 = vld [vmem:[%s11475_s2 + $0x100] sm:$0xff] }
 0x451   :  { %2223 = vmatprep.subr.mxu1 %v11637_v0 }
 0x452   :  { %2224 = vmatpush2.msra.mxu1 %v1809_v48  ;;  %v1799_v48 = vld [vmem:[%s11475_s2 + $0xf8] sm:$0xff] }
 0x453   :  { %2225 = vmatprep.subr.mxu1 %v11637_v0 }
 0x454   :  { %2226 = vmatpush2.msra.mxu1 %v1808_v19  ;;  %v1798_v19 = vld [vmem:[%s11475_s2 + $0xf0] sm:$0xff] }
 0x455   :  { %2227 = vmatprep.subr.mxu1 %v11637_v0 }
 0x49b   :  { %v1938_v49 = vpop.permute.xlu1 %1937  ;;  %v1936_v35 = vpop.permute.xlu0 %1935 }
 0x49c   :  { %v1982_v23 = vsel %vm1263_vm10, %v1920_v18, %v1938_v49  ;;  %v1981_v52 = vsel %vm1263_vm10, %v1919_v22, %v1936_v35  ;;  %v1807_v49 = vld [vmem:[%s11475_s2 + $0x138] sm:$0xff]  ;;  %v1806_v35 = vld [vmem:[%s11475_s2 + $0x130] sm:$0xff] }
 0x49d   :  { %2228 = vmatpush2.msra.mxu1 %v1807_v49 }
 0x49e   :  { %2229 = vmatprep.subr.mxu1 %v11637_v0 }
 0x49f   :  { %v1946_v20 = vpop.permute.xlu1 %1945  ;;  %v1944_v50 = vpop.permute.xlu0 %1943  ;;  %2230 = vmatpush2.msra.mxu1 %v1806_v35 }
 0x4a0   :  { %v1984_v54 = vsel %vm1445_vm11, %v1982_v23, %v1946_v20  ;;  %v1983_v46 = vsel %vm1445_vm11, %v1981_v52, %v1944_v50  ;;  %v1805_v20 = vld [vmem:[%s11475_s2 + $0x128] sm:$0xff]  ;;  %2231 = vmatprep.subr.mxu1 %v11637_v0  ;;  %v1804_v50 = vld [vmem:[%s11475_s2 + $0x120] sm:$0xff] }
 0x4a1   :  { %2232 = vmatpush2.msra.mxu1 %v1805_v20 }
 0x4a2   :  { %2233 = vmatprep.subr.mxu1 %v11637_v0 }
 0x4a3   :  { %v1954_v36 = vpop.permute.xlu1 %1953  ;;  %v1952_v51 = vpop.permute.xlu0 %1951  ;;  %2234 = vmatpush2.msra.mxu1 %v1804_v50 }
 0x4a4   :  { %v1986_v15 = vsel %vm1450_vm12, %v1984_v54, %v1954_v36  ;;  %v1985_v61 = vsel %vm1450_vm12, %v1983_v46, %v1952_v51  ;;  %2235 = vmatprep.subr.mxu1 %v11637_v0 }
 0x4a5   :  { %2236 = vmatpush2.msra.mxu1 %v1803_v6 }
 0x4a6   :  { %2237 = vmatprep.subr.mxu1 %v11637_v0 }
 0x4a7   :  { %v1962_v21 = vpop.permute.xlu1 %1961  ;;  %v1960_v37 = vpop.permute.xlu0 %1959  ;;  %2238 = vmatpush2.msra.mxu1 %v1802_v1 }
 0x4a8   :  { %v1988_v63 = vsel %vm1455_vm13, %v1986_v15, %v1962_v21  ;;  %v1987_v16 = vsel %vm1455_vm13, %v1985_v61, %v1960_v37  ;;  %2239 = vmatprep.subr.mxu1 %v11637_v0 }
 0x4a9   :  { %2240 = vmatpush2.msra.mxu1 %v1801_v2 }
 0x4aa   :  { %2241 = vmatprep.subr.mxu1 %v11637_v0 }
 0x4ab   :  { %v1970_v53 = vpop.permute.xlu1 %1969  ;;  %v1968_v38 = vpop.permute.xlu0 %1967  ;;  %2242 = vmatpush2.msra.mxu1 %v1800_v34 }
 0x4ac   :  { %v1990_v7 = vsel %vm1460_vm14, %v1988_v63, %v1970_v53  ;;  %v1989_v13 = vsel %vm1460_vm14, %v1987_v16, %v1968_v38  ;;  %2243 = vmatprep.subr.mxu1 %v11637_v0 }
 0x4ad   :  { %2244 = vmatpush2.msra.mxu1 %v1799_v48 }
 0x4ae   :  { %2245 = vmatprep.subr.mxu1 %v11637_v0 }
 0x4af   :  { %v1978_v62 = vpop.permute.xlu1 %1977  ;;  %v1976_v33 = vpop.permute.xlu0 %1975  ;;  %2246 = vmatpush2.msra.mxu1 %v1798_v19 }
 0x4b0   :  { %v1992_v11 = vsel %vm1465_vm15, %v1990_v7, %v1978_v62  ;;  %v1991_v30 = vsel %vm1465_vm15, %v1989_v13, %v1976_v33 }
 0x4b1   :  { %7466 = vmatprep.mubr.msk.f32.mxu0 %vm1470_vm0, %v1991_v30 }
 0x4b2   :  { %7467 = vmatmul.mubr.msk.f32.vlgmr.msra.gmra.mxu0 %vm1470_vm0, %v1992_v11 }
 0x572   :  { %v7468_v36 = vpop.f32.mrf.mxu0 }
 0x573   :  { %v2075_v51 = vmax.f32 %v7468_v36, 0.0 }
 0x574   :  { %v2065_v21 = vpop.f32.mrf.mxu0 }
 0x575   :  { %v2087_v37 = vmul.f32 %v2075_v51, %v2075_v51  ;;  %v2074_v18 = vmax.f32 %v2065_v21, 0.0  ;;  %v2077_v22 = vsel %vm1445_vm11, %v2075_v51, 0.0 }
 0x577   :  { %v2076_v23 = vsel %vm1445_vm11, %v2074_v18, 0.0  ;;  %v2086_v52 = vmul.f32 %v2074_v18, %v2074_v18  ;;  %v2089_v38 = vsel %vm1445_vm11, %v2087_v37, 0.0 }
 0x578   :  { %v2078_v53 = vadd.f32 %v2077_v22, %v2076_v23 }
 0x579   :  { %v2088_v54 = vsel %vm1445_vm11, %v2086_v52, 0.0 }
 0x57a   :  { %v2079_v46 = vrot.slane %v2078_v53, 4  ;;  %v2090_v15 = vadd.f32 %v2089_v38, %v2088_v54 }
 0x57c   :  { %v2080_v61 = vadd.f32 %v2079_v46, %v2078_v53  ;;  %v2091_v63 = vrot.slane %v2090_v15, 4 }
 0x57e   :  { %v2081_v16 = vrot.slane %v2080_v61, 2  ;;  %v2092_v7 = vadd.f32 %v2091_v63, %v2090_v15 }
 0x580   :  { %v2082_v13 = vadd.f32 %v2081_v16, %v2080_v61  ;;  %v2093_v62 = vrot.slane %v2092_v7, 2 }
 0x582   :  { %v2083_v33 = vrot.slane %v2082_v13, 1  ;;  %v2094_v11 = vadd.f32 %v2093_v62, %v2092_v7 }
 0x584   :  { %v2084_v30 = vadd.f32 %v2083_v33, %v2082_v13  ;;  %v2095_v8 = vrot.slane %v2094_v11, 1 }
 0x586   :  { %v2085_v4 = vmul.f32 0.0625, %v2084_v30  ;;  %v2096_v9 = vadd.f32 %v2095_v8, %v2094_v11 }
 0x588   :  { %v2097_v5 = vmul.f32 0.0625, %v2096_v9  ;;  %v2098_v10 = vmul.f32 %v2085_v4, %v2085_v4  ;;  %v2100_v32 = vsub.f32 %v2074_v18, %v2085_v4  ;;  %v2101_v17 = vsub.f32 %v2075_v51, %v2085_v4 }
 0x58a   :  { %v2099_v47 = vsub.f32 %v2097_v5, %v2098_v10 }
 0x58c   :  { %v2102_v31 = vadd.f32 1e-05, %v2099_v47 }
 0x58e   :  { %7702 = vrsqrt.f32 %v2102_v31 }
 0x59b   :  { %v7703_v14 = vpop.eup %7702 }
 0x59c   :  { %v2104_v3 = vmul.f32 %v7703_v14, %v2100_v32  ;;  %v2105_v12 = vmul.f32 %v7703_v14, %v2101_v17 }
 0x59e   :  { %2111 = vst.msk [vmem:[#allocation2 + $0x3] sm:$0xff] %vm1445_vm11, %v2104_v3  ;;  %2112 = vst.msk [vmem:[#allocation2 + $0x1b] sm:$0xff] %vm1445_vm11, %v2105_v12 }
 0x5a5   :  { %v2123_v49 = vld [vmem:[#allocation2 + $0x5] sm:$0xff]  ;;  %v2116_v20 = vld [vmem:[#allocation2 + $0x19] sm:$0xff] }
 0x5a6   :  { %v2115_v35 = vld [vmem:[#allocation2 + $0x1] sm:$0xff]  ;;  %2153 = vrot.lane.b32.xlu1 %v2123_v49, %s7792_s30  ;;  %v2114_v47 = vld [vmem:[#allocation2 + $0x18] sm:$0xff] }
 0x5a7   :  { %v7688_v50 = vpack.i.bf16 %v2116_v20, %v2115_v35  ;;  %v2117_v36 = vld [vmem:[#allocation2 + $0x2] sm:$0xff]  ;;  %v2118_v51 = vld [vmem:[#allocation2 + $0x1a] sm:$0xff] }
 0x5a8   :  { %v2125_v21 = vld [vmem:[#allocation2 + $0x6] sm:$0xff]  ;;  %v7693_v37 = vpack.i.bf16 %v2118_v51, %v2117_v36  ;;  %v2124_v18 = vld [vmem:[#allocation2 + $0x1d] sm:$0xff] }
 0x5a9   :  { %7689 = vrot.lane.b32.xlu0 %v7688_v50, %s7792_s30  ;;  %v2119_v22 = vld [vmem:[#allocation2 + $0x3] sm:$0xff]  ;;  %v2120_v23 = vld [vmem:[#allocation2 + $0x1b] sm:$0xff] }
 0x5aa   :  { %2161 = vrot.lane.b32.xlu1 %v2125_v21, %s7794_s12  ;;  %v2126_v52 = vld [vmem:[#allocation2 + $0x1e] sm:$0xff] }
 0x5ab   :  { %v2121_v54 = vld [vmem:[#allocation2 + $0x4] sm:$0xff]  ;;  %v2122_v5 = vld [vmem:[#allocation2 + $0x1c] sm:$0xff] }
 0x5ac   :  { %v2113_v13 = vld [vmem:[#allocation2] sm:$0xff] }
 0x5ad   :  { %7694 = vrot.lane.b32.xlu0 %v7693_v37, %s7794_s12 }
 0x5ae   :  { %2155 = vrot.lane.b32.xlu1 %v2124_v18, %s7792_s30 }
 0x5b1   :  { %2145 = vrot.lane.b32.xlu0 %v2119_v22, %s7796_s20 }
 0x5b2   :  { %2147 = vrot.lane.b32.xlu1 %v2120_v23, %s7796_s20 }
 0x5b5   :  { %2163 = vrot.lane.b32.xlu0 %v2126_v52, %s7794_s12 }
 0x618   :  { %v2154_v53 = vpop.permute.xlu1 %2153 }
 0x619   :  { %v2173_v46 = vsel %vm1445_vm11, %v2121_v54, %v2154_v53 }
 0x61b   :  { %v7690_v38 = vpop.permute.xlu0 %7689 }
 0x61c   :  { %v7691_v15 = vunpack.i.l.bf16 %v7690_v38  ;;  %v2162_v61 = vpop.permute.xlu1 %2161  ;;  %v7692_v30 = vunpack.i.h.bf16 %v7690_v38 }
 0x61d   :  { %v2175_v63 = vsel %vm1455_vm13, %v2173_v46, %v2162_v61 }
 0x61e   :  { %6828 = vmatprep.mubr.msk.f32.mxu1 %vm1465_vm15, %v2175_v63  ;;  %v2167_v33 = vsel %vm1445_vm11, %v2113_v13, %v7691_v15  ;;  %v2168_v32 = vsel %vm1445_vm11, %v2114_v47, %v7692_v30 }
 0x61f   :  { %v7695_v16 = vpop.permute.xlu0 %7694 }
 0x620   :  { %v7696_v7 = vunpack.i.l.bf16 %v7695_v16  ;;  %v2156_v62 = vpop.permute.xlu1 %2155  ;;  %v7697_v4 = vunpack.i.h.bf16 %v7695_v16 }
 0x621   :  { %v2174_v31 = vsel %vm1445_vm11, %v2122_v5, %v2156_v62 }
 0x622   :  { %v2169_v11 = vsel %vm1455_vm13, %v2167_v33, %v7696_v7  ;;  %v2170_v14 = vsel %vm1455_vm13, %v2168_v32, %v7697_v4 }
 0x623   :  { %v2146_v8 = vpop.permute.xlu0 %2145 }
 0x624   :  { %v2171_v9 = vsel %vm1465_vm15, %v2169_v11, %v2146_v8  ;;  %v2148_v10 = vpop.permute.xlu1 %2147 }
 0x625   :  { %2248 = vmatmul.mubr.f32.vlgmr.msra.gmra.mxu1 %v2171_v9  ;;  %v2172_v1 = vsel %vm1465_vm15, %v2170_v14, %v2148_v10 }
 0x627   :  { %v2164_v6 = vpop.permute.xlu0 %2163 }
 0x628   :  { %v2176_v17 = vsel %vm1455_vm13, %v2174_v31, %v2164_v6 }
 0x629   :  { %6829 = vmatprep.mubr.msk.f32.mxu1 %vm1465_vm15, %v2176_v17 }
 0x62a   :  { %2253 = vmatmul.mubr.f32.gmra.mxu1 %v2172_v1 }
 0x6e5   :  { %v2249_v3 = vpop.f32.mrf.mxu1 }
 0x6e6   :  { %v2258_v12 = vmax.f32 %v2249_v3, 0.0 }
 0x6e7   :  { %v2251_v2 = vpop.f32.mrf.mxu1 }
 0x6e8   :  { %v2270_v48 = vmul.f32 %v2258_v12, %v2258_v12  ;;  %v2260_v35 = vsel %vm1445_vm11, %v2258_v12, 0.0 }
 0x6ea   :  { %v2254_v34 = vpop.f32.mrf.mxu1  ;;  %v2272_v51 = vsel %vm1445_vm11, %v2270_v48, 0.0 }
 0x6eb   :  { %v2259_v19 = vmax.f32 %v2254_v34, 0.0 }
 0x6ec   :  { %v2256_v49 = vpop.f32.mrf.mxu1 }
 0x6ed   :  { %v2261_v20 = vsel %vm1445_vm11, %v2259_v19, 0.0  ;;  %v2271_v50 = vmul.f32 %v2259_v19, %v2259_v19 }
 0x6ee   :  { %v2262_v36 = vadd.f32 %v2261_v20, %v2260_v35 }
 0x6ef   :  { %v2273_v21 = vsel %vm1445_vm11, %v2271_v50, 0.0 }
 0x6f0   :  { %v2263_v37 = vrot.slane %v2262_v36, 4  ;;  %v2274_v18 = vadd.f32 %v2273_v21, %v2272_v51 }
 0x6f2   :  { %v2264_v22 = vadd.f32 %v2263_v37, %v2262_v36  ;;  %v2275_v23 = vrot.slane %v2274_v18, 4 }
 0x6f4   :  { %v2265_v52 = vrot.slane %v2264_v22, 2  ;;  %v2276_v53 = vadd.f32 %v2275_v23, %v2274_v18 }
 0x6f6   :  { %v2266_v38 = vadd.f32 %v2265_v52, %v2264_v22  ;;  %v2277_v54 = vrot.slane %v2276_v53, 2 }
 0x6f8   :  { %v2267_v46 = vrot.slane %v2266_v38, 1  ;;  %v2278_v15 = vadd.f32 %v2277_v54, %v2276_v53 }
 0x6fa   :  { %v2268_v61 = vadd.f32 %v2267_v46, %v2266_v38  ;;  %v2279_v63 = vrot.slane %v2278_v15, 1 }
 0x6fc   :  { %v2269_v16 = vmul.f32 0.0625, %v2268_v61  ;;  %v2280_v7 = vadd.f32 %v2279_v63, %v2278_v15 }
 0x6fe   :  { %v2281_v13 = vmul.f32 0.0625, %v2280_v7  ;;  %v2282_v62 = vmul.f32 %v2269_v16, %v2269_v16  ;;  %v2284_v30 = vsub.f32 %v2258_v12, %v2269_v16  ;;  %v2285_v8 = vsub.f32 %v2259_v19, %v2269_v16 }
 0x700   :  { %v2283_v33 = vsub.f32 %v2281_v13, %v2282_v62 }
 0x702   :  { %v2286_v11 = vadd.f32 1e-05, %v2283_v33 }
 0x704   :  { %7704 = vrsqrt.f32 %v2286_v11 }
 0x711   :  { %v7705_v4 = vpop.eup %7704 }
 0x712   :  { %v9996_v9 = vmul.f32 %v7705_v4, %v2284_v30  ;;  %v9998_v5 = vmul.f32 %v7705_v4, %v2285_v8 }
 0x713   :  { %7780 = dma.done.wait [#allocation5], 34432 }
 0x714   :  { %7781 = vsyncadd [#allocation5], 4294932864  ;;  %v2295_v10 = vcombine.high %v9996_v9, %v9996_v9  ;;  %v2302_v47 = vrot.slane %v9996_v9, %v9723_v45  ;;  %v2312_v31 = vcombine.high %v9998_v5, %v9998_v5  ;;  %2583 = vmatprep.subr.mxu0 %v11637_v0  ;;  %2453 = vst.msk [vmem:[#allocation2] sm:$0x7] %vm2106_vm6, %v11637_v0  ;;  %v2384_v53 = vld [vmem:[#allocation3 + $0x78] sm:$0xff]  ;;  %v2383_v38 = vld [vmem:[#allocation3 + $0x70] sm:$0xff] }
 0x715   :  { %2454 = vst.msk [vmem:[#allocation2 + $0x18] sm:$0x7] %vm2106_vm6, %v11637_v0  ;;  %2455 = vst.msk [vmem:[#allocation2 + $0x7] sm:$0x7] %vm2106_vm6, %v11637_v0  ;;  %v2319_v6 = vrot.slane %v9998_v5, %v9723_v45  ;;  %2584 = vmatpush1.msra.mxu0 %v2384_v53  ;;  %v2382_v7 = vld [vmem:[#allocation3 + $0x68] sm:$0xff]  ;;  %vm2505_vm7 = vcmask 257024  }
 0x716   :  { %2456 = vst.msk [vmem:[#allocation2 + $0x1f] sm:$0x7] %vm2106_vm6, %v11637_v0  ;;  %v2309_v32 = vrot.slane %v2295_v10, %v9723_v45  ;;  %v2310_v17 = vcombine.high %v2302_v47, %v2302_v47  ;;  %v6830_v14 = vrot.slane %v2302_v47, 9  ;;  %v2326_v1 = vrot.slane %v2312_v31, %v9723_v45  ;;  %2585 = vmatprep.subr.mxu0 %v11637_v0  ;;  %v2381_v8 = vld [vmem:[#allocation3 + $0x60] sm:$0xff]  ;;  %v2380_v31 = vld [vmem:[#allocation3 + $0x58] sm:$0xff]  ;;  %v2370_v53 = vld [vmem:[#allocation3 + $0x8] sm:$0xff] }
 0x717   :  { %v2327_v3 = vcombine.high %v2319_v6, %v2319_v6  ;;  %v6834_v12 = vrot.slane %v2319_v6, 9  ;;  %2586 = vmatpush1.msra.mxu0 %v2383_v38  ;;  %v2369_v38 = vld [vmem:[#allocation3] sm:$0xff] }
 0x718   :  { %v2311_v2 = vcombine.high %v2309_v32, %v2309_v32  ;;  %v6831_v34 = vrot.slane %v2310_v17, 9  ;;  %v6832_v48 = vrot.slane %v2309_v32, 9  ;;  %v2361_v19 = vmax.f32 %v2302_v47, %v6830_v14  ;;  %2587 = vmatprep.subr.mxu0 %v11637_v0 }
 0x719   :  { %v2328_v49 = vcombine.high %v2326_v1, %v2326_v1  ;;  %v6835_v35 = vrot.slane %v2327_v3, 9  ;;  %v6836_v20 = vrot.slane %v2326_v1, 9  ;;  %v2365_v50 = vmax.f32 %v2319_v6, %v6834_v12  ;;  %2588 = vmatpush1.msra.mxu0 %v2382_v7  ;;  %v2379_v6 = vld [vmem:[#allocation3 + $0x50] sm:$0xff]  ;;  %v2376_v12 = vld [vmem:[#allocation3 + $0x38] sm:$0xff]  ;;  %v2390_v7 = vld [vmem:[#allocation3 + $0xa8] sm:$0xff] }
 0x71a   :  { %v6833_v36 = vrot.slane %v2311_v2, 9  ;;  %v2362_v51 = vmax.f32 %v2310_v17, %v6831_v34  ;;  %v2363_v21 = vmax.f32 %v2309_v32, %v6832_v48  ;;  %v2468_v37 = vrot.slane %v2361_v19, %v9754_v29  ;;  %2589 = vmatprep.subr.mxu0 %v11637_v0  ;;  %v2378_v32 = vld [vmem:[#allocation3 + $0x48] sm:$0xff] }
 0x71b   :  { %v6837_v18 = vrot.slane %v2328_v49, 9  ;;  %v2366_v22 = vmax.f32 %v2327_v3, %v6835_v35  ;;  %v2367_v23 = vmax.f32 %v2326_v1, %v6836_v20  ;;  %v2484_v52 = vrot.slane %v2365_v50, %v9754_v29  ;;  %2590 = vmatpush1.msra.mxu0 %v2381_v8  ;;  %v2377_v1 = vld [vmem:[#allocation3 + $0x40] sm:$0xff] }
 0x71c   :  { %v2364_v54 = vmax.f32 %v2311_v2, %v6833_v36  ;;  %v2472_v46 = vrot.slane %v2362_v51, %v9754_v29  ;;  %v2476_v15 = vrot.slane %v2363_v21, %v9754_v29  ;;  %2591 = vmatprep.subr.mxu0 %v11637_v0  ;;  %v2375_v51 = vld [vmem:[#allocation3 + $0x30] sm:$0xff]  ;;  %v2374_v21 = vld [vmem:[#allocation3 + $0x28] sm:$0xff] }
 0x71d   :  { %v2368_v61 = vmax.f32 %v2328_v49, %v6837_v18  ;;  %v2488_v63 = vrot.slane %v2366_v22, %v9754_v29  ;;  %v2492_v16 = vrot.slane %v2367_v23, %v9754_v29  ;;  %2592 = vmatpush1.msra.mxu0 %v2380_v31  ;;  %v2372_v18 = vld [vmem:[#allocation3 + $0x18] sm:$0xff] }
 0x71e   :  { %v2480_v13 = vrot.slane %v2364_v54, %v9754_v29  ;;  %v2497_v62 = vsel %vm1894_vm3, %v2472_v46, %v2468_v37  ;;  %2593 = vmatprep.subr.mxu0 %v11637_v0  ;;  %v2373_v37 = vld [vmem:[#allocation3 + $0x20] sm:$0xff]  ;;  %v2396_v54 = vld [vmem:[#allocation3 + $0xd8] sm:$0xff]  ;;  %v2395_v46 = vld [vmem:[#allocation3 + $0xd0] sm:$0xff] }
 0x71f   :  { %v2498_v33 = vsel %vm1896_vm4, %v2476_v15, %v2497_v62  ;;  %v2496_v11 = vrot.slane %v2368_v61, %v9754_v29  ;;  %v2500_v30 = vsel %vm1894_vm3, %v2488_v63, %v2484_v52  ;;  %2594 = vmatpush1.msra.mxu0 %v2379_v6  ;;  %v2371_v52 = vld [vmem:[#allocation3 + $0x10] sm:$0xff]  ;;  %v2394_v15 = vld [vmem:[#allocation3 + $0xc8] sm:$0xff]  ;;  %v2393_v61 = vld [vmem:[#allocation3 + $0xc0] sm:$0xff] }
 0x720   :  { %v2499_v4 = vsel %vm1898_vm5, %v2480_v13, %v2498_v33  ;;  %v2501_v10 = vsel %vm1896_vm4, %v2492_v16, %v2500_v30  ;;  %2595 = vmatprep.subr.mxu0 %v11637_v0  ;;  %vm2677_vm4 = vcmask 518144   ;;  %v2392_v63 = vld [vmem:[#allocation3 + $0xb8] sm:$0xff]  ;;  %v2391_v16 = vld [vmem:[#allocation3 + $0xb0] sm:$0xff]  ;;  %v2389_v13 = vld [vmem:[#allocation3 + $0xa0] sm:$0xff] }
 0x721   :  { %2506 = vst.msk [vmem:[#allocation2 + $0x3] sm:$0xf] %vm2505_vm7, %v2499_v4  ;;  %v2502_v47 = vsel %vm1898_vm5, %v2496_v11, %v2501_v10  ;;  %2596 = vmatpush1.msra.mxu0 %v2378_v32  ;;  %v2388_v62 = vld [vmem:[#allocation3 + $0x98] sm:$0xff]  ;;  %v2387_v33 = vld [vmem:[#allocation3 + $0x90] sm:$0xff]  ;;  %v2386_v11 = vld [vmem:[#allocation3 + $0x88] sm:$0xff]  ;;  %vm2685_vm5 = vcmask 519168  }
 0x722   :  { %2507 = vst.msk [vmem:[#allocation2 + $0x1b] sm:$0xf] %vm2505_vm7, %v2502_v47  ;;  %2597 = vmatprep.subr.mxu0 %v11637_v0  ;;  %v2385_v30 = vld [vmem:[#allocation3 + $0x80] sm:$0xff] }
 0x723   :  { %2598 = vmatpush1.msra.mxu0 %v2377_v1 }
 0x724   :  { %2599 = vmatprep.subr.mxu0 %v11637_v0 }
 0x725   :  { %2600 = vmatpush1.msra.mxu0 %v2376_v12 }
 0x726   :  { %2601 = vmatprep.subr.mxu0 %v11637_v0 }
 0x727   :  { %2602 = vmatpush1.msra.mxu0 %v2375_v51 }
 0x728   :  { %v2518_v17 = vld [vmem:[#allocation2 + $0x5] sm:$0xf]  ;;  %v2510_v14 = vld [vmem:[#allocation2 + $0x1] sm:$0xf]  ;;  %2603 = vmatprep.subr.mxu0 %v11637_v0 }
 0x729   :  { %2548 = vrot.lane.b32.xlu1 %v2518_v17, %s7792_s30  ;;  %2524 = vrot.lane.b32.xlu0 %v2510_v14, %s7792_s30  ;;  %v2512_v3 = vld [vmem:[#allocation2 + $0x2] sm:$0xf]  ;;  %v2519_v2 = vld [vmem:[#allocation2 + $0x1d] sm:$0xf]  ;;  %v2511_v34 = vld [vmem:[#allocation2 + $0x19] sm:$0xf] }
 0x72a   :  { %v2513_v48 = vld [vmem:[#allocation2 + $0x1a] sm:$0xf]  ;;  %v2520_v19 = vld [vmem:[#allocation2 + $0x6] sm:$0xf]  ;;  %v10044_v35 = vld [vmem:[#allocation2] sm:$0xf]  ;;  %2604 = vmatpush1.msra.mxu0 %v2374_v21 }
 0x72b   :  { %v10042_v49 = vld [vmem:[#allocation2 + $0x4] sm:$0xf]  ;;  %v2521_v20 = vld [vmem:[#allocation2 + $0x1e] sm:$0xf]  ;;  %2678 = vst.msk [vmem:[#allocation2] sm:$0x7] %vm2677_vm4, %v11637_v0  ;;  %2605 = vmatprep.subr.mxu0 %v11637_v0 }
 0x72c   :  { %2680 = vst.msk [vmem:[#allocation2 + $0x7] sm:$0x7] %vm2677_vm4, %v11637_v0  ;;  %v10051_v50 = vld [vmem:[#allocation2 + $0x1c] sm:$0xf]  ;;  %v10053_v36 = vld [vmem:[#allocation2 + $0x18] sm:$0xf]  ;;  %2606 = vmatpush1.msra.mxu0 %v2373_v37 }
 0x72d   :  { %2550 = vrot.lane.b32.xlu1 %v2519_v2, %s7792_s30  ;;  %2526 = vrot.lane.b32.xlu0 %v2511_v34, %s7792_s30  ;;  %2681 = vst.msk [vmem:[#allocation2 + $0x1f] sm:$0x7] %vm2677_vm4, %v11637_v0  ;;  %2679 = vst.msk [vmem:[#allocation2 + $0x18] sm:$0x7] %vm2677_vm4, %v11637_v0  ;;  %v2515_v22 = vld [vmem:[#allocation2 + $0x1b] sm:$0xf] }
 0x72e   :  { %v2514_v23 = vld [vmem:[#allocation2 + $0x3] sm:$0xf]  ;;  %2607 = vmatprep.subr.mxu0 %v11637_v0 }
 0x72f   :  { %2608 = vmatpush1.msra.mxu0 %v2372_v18  ;;  %v2444_v18 = vld [vmem:[#allocation3 + $0x258] sm:$0xff] }
 0x730   :  { %2609 = vmatprep.subr.mxu0 %v11637_v0 }
 0x731   :  { %2534 = vrot.lane.b32.xlu1 %v2513_v48, %s7794_s12  ;;  %2532 = vrot.lane.b32.xlu0 %v2512_v3, %s7794_s12 }
 0x732   :  { %2610 = vmatpush1.msra.mxu0 %v2371_v52  ;;  %v2427_v52 = vld [vmem:[#allocation3 + $0x1d0] sm:$0xff] }
 0x733   :  { %2611 = vmatprep.subr.mxu0 %v11637_v0 }
 0x734   :  { %2612 = vmatpush1.msra.mxu0 %v2370_v53  ;;  %v2411_v53 = vld [vmem:[#allocation3 + $0x150] sm:$0xff] }
 0x735   :  { %2558 = vrot.lane.b32.xlu1 %v2521_v20, %s7794_s12  ;;  %2556 = vrot.lane.b32.xlu0 %v2520_v19, %s7794_s12 }
 0x736   :  { %2613 = vmatprep.subr.mxu0 %v11637_v0 }
 0x737   :  { %2614 = vmatpush1.msra.mxu0 %v2369_v38  ;;  %v2441_v38 = vld [vmem:[#allocation3 + $0x240] sm:$0xff] }
 0x738   :  { %2623 = vmatprep.subr.mxu0 %v11637_v0 }
 0x739   :  { %2542 = vrot.lane.b32.xlu1 %v2515_v22, %s7796_s20  ;;  %2540 = vrot.lane.b32.xlu0 %v2514_v23, %s7796_s20  ;;  %v2443_v22 = vld [vmem:[#allocation3 + $0x250] sm:$0xff]  ;;  %v2412_v23 = vld [vmem:[#allocation3 + $0x158] sm:$0xff] }
 0x73a   :  { %2624 = vmatpush2.msra.mxu0 %v2396_v54  ;;  %v2426_v54 = vld [vmem:[#allocation3 + $0x1c8] sm:$0xff] }
 0x73b   :  { %2625 = vmatprep.subr.mxu0 %v11637_v0 }
 0x73c   :  { %2626 = vmatpush2.msra.mxu0 %v2395_v46  ;;  %v2410_v46 = vld [vmem:[#allocation3 + $0x148] sm:$0xff] }
 0x73d   :  { %2627 = vmatprep.subr.mxu0 %v11637_v0 }
 0x73e   :  { %2628 = vmatpush2.msra.mxu0 %v2394_v15  ;;  %v2440_v15 = vld [vmem:[#allocation3 + $0x238] sm:$0xff] }
 0x73f   :  { %2629 = vmatprep.subr.mxu0 %v11637_v0 }
 0x740   :  { %2630 = vmatpush2.msra.mxu0 %v2393_v61  ;;  %v2425_v61 = vld [vmem:[#allocation3 + $0x1c0] sm:$0xff] }
 0x741   :  { %2631 = vmatprep.subr.mxu0 %v11637_v0 }
 0x742   :  { %2632 = vmatpush2.msra.mxu0 %v2392_v63  ;;  %v2409_v63 = vld [vmem:[#allocation3 + $0x140] sm:$0xff] }
 0x743   :  { %2633 = vmatprep.subr.mxu0 %v11637_v0 }
 0x744   :  { %2634 = vmatpush2.msra.mxu0 %v2391_v16  ;;  %v2439_v16 = vld [vmem:[#allocation3 + $0x230] sm:$0xff] }
 0x745   :  { %2635 = vmatprep.subr.mxu0 %v11637_v0 }
 0x746   :  { %2636 = vmatpush2.msra.mxu0 %v2390_v7  ;;  %v2424_v7 = vld [vmem:[#allocation3 + $0x1b8] sm:$0xff] }
 0x747   :  { %2637 = vmatprep.subr.mxu0 %v11637_v0 }
 0x748   :  { %2638 = vmatpush2.msra.mxu0 %v2389_v13  ;;  %v2408_v13 = vld [vmem:[#allocation3 + $0x138] sm:$0xff] }
 0x749   :  { %2639 = vmatprep.subr.mxu0 %v11637_v0 }
 0x74a   :  { %2640 = vmatpush2.msra.mxu0 %v2388_v62  ;;  %v2438_v62 = vld [vmem:[#allocation3 + $0x228] sm:$0xff] }
 0x74b   :  { %2641 = vmatprep.subr.mxu0 %v11637_v0 }
 0x74c   :  { %2642 = vmatpush2.msra.mxu0 %v2387_v33  ;;  %v2423_v33 = vld [vmem:[#allocation3 + $0x1b0] sm:$0xff] }
 0x74d   :  { %2643 = vmatprep.subr.mxu0 %v11637_v0 }
 0x74e   :  { %2644 = vmatpush2.msra.mxu0 %v2386_v11  ;;  %v2407_v11 = vld [vmem:[#allocation3 + $0x130] sm:$0xff] }
 0x74f   :  { %2645 = vmatprep.subr.mxu0 %v11637_v0 }
 0x750   :  { %2646 = vmatpush2.msra.mxu0 %v2385_v30  ;;  %v2437_v30 = vld [vmem:[#allocation3 + $0x220] sm:$0xff] }
 0x751   :  { %2823 = vmatprep.subr.mxu0 %v11637_v0 }
 0x79b   :  { %v2549_v8 = vpop.permute.xlu1 %2548  ;;  %v2525_v4 = vpop.permute.xlu0 %2524 }
 0x79c   :  { %v2568_v32 = vsel %vm1445_vm11, %v10042_v49, %v2549_v8  ;;  %v2562_v34 = vsel %vm1445_vm11, %v10044_v35, %v2525_v4  ;;  %v2442_v35 = vld [vmem:[#allocation3 + $0x248] sm:$0xff] }
 0x79d   :  { %v2422_v8 = vld [vmem:[#allocation3 + $0x1a8] sm:$0xff] }
 0x79e   :  { %v2406_v4 = vld [vmem:[#allocation3 + $0x128] sm:$0xff] }
 0x79f   :  { %v2551_v10 = vpop.permute.xlu1 %2550  ;;  %v2527_v47 = vpop.permute.xlu0 %2526 }
 0x7a0   :  { %v2569_v17 = vsel %vm1445_vm11, %v10051_v50, %v2551_v10  ;;  %v2563_v48 = vsel %vm1445_vm11, %v10053_v36, %v2527_v47  ;;  %v2428_v36 = vld [vmem:[#allocation3 + $0x1d8] sm:$0xff]  ;;  %v2421_v47 = vld [vmem:[#allocation3 + $0x1a0] sm:$0xff] }
 0x7a1   :  { %6937 = vmatprep.subr.mxu1 %v2428_v36  ;;  %v2436_v10 = vld [vmem:[#allocation3 + $0x218] sm:$0xff] }
 0x7a2   :  { %6938 = vmatpush3.msra.mxu1 %v2412_v23 }
 0x7a3   :  { %v2535_v31 = vpop.permute.xlu1 %2534  ;;  %v2533_v6 = vpop.permute.xlu0 %2532  ;;  %6939 = vmatprep.subr.mxu1 %v2427_v52 }
 0x7a4   :  { %v2565_v19 = vsel %vm1455_vm13, %v2563_v48, %v2535_v31  ;;  %v2564_v49 = vsel %vm1455_vm13, %v2562_v34, %v2533_v6  ;;  %6940 = vmatpush3.msra.mxu1 %v2411_v53  ;;  %v2405_v31 = vld [vmem:[#allocation3 + $0x120] sm:$0xff]  ;;  %v2435_v6 = vld [vmem:[#allocation3 + $0x210] sm:$0xff]  ;;  %v2402_v34 = vld [vmem:[#allocation3 + $0x108] sm:$0xff] }
 0x7a5   :  { %6941 = vmatprep.subr.mxu1 %v2426_v54  ;;  %v2432_v48 = vld [vmem:[#allocation3 + $0x1f8] sm:$0xff] }
 0x7a6   :  { %6942 = vmatpush3.msra.mxu1 %v2410_v46 }
 0x7a7   :  { %v2559_v14 = vpop.permute.xlu1 %2558  ;;  %v2557_v1 = vpop.permute.xlu0 %2556  ;;  %6943 = vmatprep.subr.mxu1 %v2425_v61 }
 0x7a8   :  { %v2571_v3 = vsel %vm1455_vm13, %v2569_v17, %v2559_v14  ;;  %v2570_v12 = vsel %vm1455_vm13, %v2568_v32, %v2557_v1  ;;  %6944 = vmatpush3.msra.mxu1 %v2409_v63  ;;  %v2420_v32 = vld [vmem:[#allocation3 + $0x198] sm:$0xff]  ;;  %v2434_v14 = vld [vmem:[#allocation3 + $0x208] sm:$0xff]  ;;  %v2419_v1 = vld [vmem:[#allocation3 + $0x190] sm:$0xff] }
 0x7a9   :  { %v6839_v2 = vcombine.low %v2570_v12, %v2571_v3  ;;  %6945 = vmatprep.subr.mxu1 %v2424_v7  ;;  %v2404_v17 = vld [vmem:[#allocation3 + $0x118] sm:$0xff]  ;;  %v2403_v3 = vld [vmem:[#allocation3 + $0x110] sm:$0xff]  ;;  %v2433_v12 = vld [vmem:[#allocation3 + $0x200] sm:$0xff] }
 0x7aa   :  { %6946 = vmatpush3.msra.mxu1 %v2408_v13 }
 0x7ab   :  { %v2543_v20 = vpop.permute.xlu1 %2542  ;;  %6840 = vmatprep.mubr.msk.f32.mxu0 %vm1465_vm15, %v6839_v2  ;;  %v2541_v50 = vpop.permute.xlu0 %2540  ;;  %6947 = vmatprep.subr.mxu1 %v2423_v33  ;;  %v2418_v2 = vld [vmem:[#allocation3 + $0x188] sm:$0xff] }
 0x7ac   :  { %v2567_v51 = vsel %vm1465_vm15, %v2565_v19, %v2543_v20  ;;  %v2566_v21 = vsel %vm1465_vm15, %v2564_v49, %v2541_v50  ;;  %6948 = vmatpush3.msra.mxu1 %v2407_v11  ;;  %v2417_v19 = vld [vmem:[#allocation3 + $0x180] sm:$0xff]  ;;  %v2431_v49 = vld [vmem:[#allocation3 + $0x1f0] sm:$0xff]  ;;  %v2430_v20 = vld [vmem:[#allocation3 + $0x1e8] sm:$0xff] }
 0x7ad   :  { %v6838_v37 = vcombine.low %v2566_v21, %v2567_v51  ;;  %6949 = vmatprep.subr.mxu1 %v2422_v8  ;;  %v2429_v50 = vld [vmem:[#allocation3 + $0x1e0] sm:$0xff]  ;;  %v2452_v51 = vld [vmem:[#allocation3 + $0x298] sm:$0xff] }
 0x7ae   :  { %6950 = vmatpush3.msra.mxu1 %v2406_v4  ;;  %v2401_v4 = vld [vmem:[#allocation3 + $0x100] sm:$0xff] }
 0x7af   :  { %2648 = vmatmul.mubr.f32.vlgmr.msra.gmra.mxu0 %v6838_v37  ;;  %6951 = vmatprep.subr.mxu1 %v2421_v47  ;;  %v2416_v47 = vld [vmem:[#allocation3 + $0x178] sm:$0xff] }
 0x7b0   :  { %2824 = vmatpush1.msra.mxu0 %v2444_v18  ;;  %6952 = vmatpush3.msra.mxu1 %v2405_v31 }
 0x7b1   :  { %2825 = vmatprep.subr.mxu0 %v11637_v0  ;;  %6953 = vmatprep.subr.mxu1 %v2420_v32  ;;  %v2400_v32 = vld [vmem:[#allocation3 + $0xf8] sm:$0xff] }
 0x7b2   :  { %2826 = vmatpush1.msra.mxu0 %v2443_v22  ;;  %6954 = vmatpush3.msra.mxu1 %v2404_v17  ;;  %v2450_v17 = vld [vmem:[#allocation3 + $0x288] sm:$0xff] }
 0x7b3   :  { %2827 = vmatprep.subr.mxu0 %v11637_v0  ;;  %6955 = vmatprep.subr.mxu1 %v2419_v1 }
 0x7b4   :  { %2828 = vmatpush1.msra.mxu0 %v2442_v35  ;;  %6956 = vmatpush3.msra.mxu1 %v2403_v3  ;;  %v2399_v3 = vld [vmem:[#allocation3 + $0xf0] sm:$0xff] }
 0x7b5   :  { %2829 = vmatprep.subr.mxu0 %v11637_v0  ;;  %6957 = vmatprep.subr.mxu1 %v2418_v2  ;;  %v2414_v2 = vld [vmem:[#allocation3 + $0x168] sm:$0xff] }
 0x7b6   :  { %2830 = vmatpush1.msra.mxu0 %v2441_v38  ;;  %6958 = vmatpush3.msra.mxu1 %v2402_v34 }
 0x7b7   :  { %2831 = vmatprep.subr.mxu0 %v11637_v0  ;;  %6959 = vmatprep.subr.mxu1 %v2417_v19  ;;  %v2448_v19 = vld [vmem:[#allocation3 + $0x278] sm:$0xff] }
 0x7b8   :  { %2832 = vmatpush1.msra.mxu0 %v2440_v15  ;;  %6960 = vmatpush3.msra.mxu1 %v2401_v4 }
 0x7b9   :  { %2833 = vmatprep.subr.mxu0 %v11637_v0  ;;  %6961 = vmatprep.subr.mxu1 %v2416_v47 }
 0x7ba   :  { %2834 = vmatpush1.msra.mxu0 %v2439_v16  ;;  %6962 = vmatpush3.msra.mxu1 %v2400_v32 }
 0x7bb   :  { %2835 = vmatprep.subr.mxu0 %v11637_v0 }
 0x7bc   :  { %2836 = vmatpush1.msra.mxu0 %v2438_v62 }
 0x7bd   :  { %2837 = vmatprep.subr.mxu0 %v11637_v0 }
 0x7be   :  { %2838 = vmatpush1.msra.mxu0 %v2437_v30 }
 0x7bf   :  { %2839 = vmatprep.subr.mxu0 %v11637_v0 }
 0x7c0   :  { %2840 = vmatpush1.msra.mxu0 %v2436_v10  ;;  %v2451_v10 = vld [vmem:[#allocation3 + $0x290] sm:$0xff] }
 0x7c1   :  { %2841 = vmatprep.subr.mxu0 %v11637_v0 }
 0x7c2   :  { %2842 = vmatpush1.msra.mxu0 %v2435_v6 }
 0x7c3   :  { %2843 = vmatprep.subr.mxu0 %v11637_v0 }
 0x7c4   :  { %2844 = vmatpush1.msra.mxu0 %v2434_v14  ;;  %v2415_v14 = vld [vmem:[#allocation3 + $0x170] sm:$0xff] }
 0x7c5   :  { %2845 = vmatprep.subr.mxu0 %v11637_v0  ;;  %6963 = vmatprep.subr.mxu1 %v2415_v14 }
 0x7c6   :  { %2846 = vmatpush1.msra.mxu0 %v2433_v12  ;;  %v2449_v12 = vld [vmem:[#allocation3 + $0x280] sm:$0xff]  ;;  %6964 = vmatpush3.msra.mxu1 %v2399_v3 }
 0x7c7   :  { %2847 = vmatprep.subr.mxu0 %v11637_v0  ;;  %6965 = vmatprep.subr.mxu1 %v2414_v2 }
 0x7c8   :  { %2848 = vmatpush1.msra.mxu0 %v2432_v48  ;;  %v2398_v48 = vld [vmem:[#allocation3 + $0xe8] sm:$0xff] }
 0x7c9   :  { %2849 = vmatprep.subr.mxu0 %v11637_v0  ;;  %6966 = vmatpush3.msra.mxu1 %v2398_v48 }
 0x7ca   :  { %2850 = vmatpush1.msra.mxu0 %v2431_v49  ;;  %v2413_v49 = vld [vmem:[#allocation3 + $0x160] sm:$0xff] }
 0x7cb   :  { %2851 = vmatprep.subr.mxu0 %v11637_v0  ;;  %6967 = vmatprep.subr.mxu1 %v2413_v49 }
 0x7cc   :  { %2852 = vmatpush1.msra.mxu0 %v2430_v20  ;;  %v2397_v20 = vld [vmem:[#allocation3 + $0xe0] sm:$0xff] }
 0x7cd   :  { %2853 = vmatprep.subr.mxu0 %v11637_v0  ;;  %6968 = vmatpush3.msra.mxu1 %v2397_v20 }
 0x7ce   :  { %2854 = vmatpush1.msra.mxu0 %v2429_v50  ;;  %v2447_v50 = vld [vmem:[#allocation3 + $0x270] sm:$0xff] }
 0x7cf   :  { %2871 = vmatprep.subr.mxu0 %v11637_v0 }
 0x7d0   :  { %2872 = vmatpush2.msra.mxu0 %v2452_v51  ;;  %v2446_v51 = vld [vmem:[#allocation3 + $0x268] sm:$0xff] }
 0x7d1   :  { %2873 = vmatprep.subr.mxu0 %v11637_v0 }
 0x7d2   :  { %2874 = vmatpush2.msra.mxu0 %v2451_v10 }
 0x7d3   :  { %2875 = vmatprep.subr.mxu0 %v11637_v0 }
 0x7d4   :  { %2876 = vmatpush2.msra.mxu0 %v2450_v17 }
 0x7d5   :  { %2877 = vmatprep.subr.mxu0 %v11637_v0 }
 0x7d6   :  { %2878 = vmatpush2.msra.mxu0 %v2449_v12 }
 0x7d7   :  { %2879 = vmatprep.subr.mxu0 %v11637_v0 }
 0x7d8   :  { %2880 = vmatpush2.msra.mxu0 %v2448_v19 }
 0x7d9   :  { %2881 = vmatprep.subr.mxu0 %v11637_v0 }
 0x7da   :  { %2882 = vmatpush2.msra.mxu0 %v2447_v50 }
 0x7db   :  { %2883 = vmatprep.subr.mxu0 %v11637_v0 }
 0x7dc   :  { %2884 = vmatpush2.msra.mxu0 %v2446_v51 }
 0x7dd   :  { %2885 = vmatprep.subr.mxu0 %v11637_v0 }
 0x86f   :  { %v2649_v21 = vpop.f32.mrf.mxu0 }
 0x870   :  { %v2653_v37 = vmax.f32 %v2649_v21, 0.0  ;;  %v2445_v21 = vld [vmem:[#allocation3 + $0x260] sm:$0xff] }
 0x871   :  { %v2651_v18 = vpop.f32.mrf.mxu0  ;;  %2886 = vmatpush2.msra.mxu0 %v2445_v21 }
 0x872   :  { %v2654_v22 = vsel %vm1455_vm13, %v2653_v37, 0.0  ;;  %v2662_v35 = vmul.f32 %v2653_v37, %v2653_v37 }
 0x873   :  { %v2655_v36 = vrot.slane %v2654_v22, 4 }
 0x874   :  { %v2663_v23 = vsel %vm1455_vm13, %v2662_v35, 0.0 }
 0x875   :  { %v2656_v52 = vadd.f32 %v2655_v36, %v2654_v22  ;;  %v2664_v53 = vrot.slane %v2663_v23, 4 }
 0x877   :  { %v2657_v38 = vrot.slane %v2656_v52, 2  ;;  %v2665_v54 = vadd.f32 %v2664_v53, %v2663_v23 }
 0x879   :  { %v2658_v46 = vadd.f32 %v2657_v38, %v2656_v52  ;;  %v2666_v15 = vrot.slane %v2665_v54, 2 }
 0x87b   :  { %v2659_v61 = vrot.slane %v2658_v46, 1  ;;  %v2667_v63 = vadd.f32 %v2666_v15, %v2665_v54 }
 0x87d   :  { %v2660_v16 = vadd.f32 %v2659_v61, %v2658_v46  ;;  %v2668_v7 = vrot.slane %v2667_v63, 1 }
 0x87f   :  { %v2661_v13 = vmul.f32 0.125, %v2660_v16  ;;  %v2669_v62 = vadd.f32 %v2668_v7, %v2667_v63 }
 0x881   :  { %v2670_v33 = vmul.f32 0.125, %v2669_v62  ;;  %v2671_v11 = vmul.f32 %v2661_v13, %v2661_v13  ;;  %v2673_v31 = vsub.f32 %v2653_v37, %v2661_v13 }
 0x883   :  { %v2672_v30 = vsub.f32 %v2670_v33, %v2671_v11 }
 0x885   :  { %v2674_v8 = vadd.f32 1e-05, %v2672_v30 }
 0x887   :  { %7707 = vrsqrt.f32 %v2674_v8 }
 0x894   :  { %v7708_v6 = vpop.eup %7707 }
 0x895   :  { %v2676_v1 = vmul.f32 %v7708_v6, %v2673_v31 }
 0x897   :  { %v2683_v34 = vcombine.high %v2676_v1, %v2676_v1  ;;  %2686 = vst.msk [vmem:[#allocation2 + $0x3] sm:$0xf] %vm2685_vm5, %v2676_v1 }
 0x899   :  { %2687 = vst.msk [vmem:[#allocation2 + $0x1b] sm:$0xf] %vm2685_vm5, %v2683_v34 }
 0x89e   :  { %v2694_v37 = vld [vmem:[#allocation2 + $0x3] sm:$0xf] }
 0x89f   :  { %2712 = vrot.lane.b32.xlu0 %v2694_v37, %s7794_s12  ;;  %v2690_v35 = vld [vmem:[#allocation2 + $0x1] sm:$0xf]  ;;  %v2698_v23 = vld [vmem:[#allocation2 + $0x5] sm:$0xf] }
 0x8a0   :  { %v2695_v18 = vld [vmem:[#allocation2 + $0x1b] sm:$0xf]  ;;  %v2692_v38 = vld [vmem:[#allocation2 + $0x2] sm:$0xf] }
 0x8a1   :  { %v7706_v22 = vld [vmem:[#allocation2 + $0x6] ss:$24 sps:$4 sm:$0xff]   ;;  %2714 = vrot.lane.b32.xlu1 %v2695_v18, %s7794_s12  ;;  %v2691_v36 = vld [vmem:[#allocation2 + $0x19] sm:$0xf] }
 0x8a2   :  { %6845 = vmatprep.mubr.msk.f32.mxu0 %vm1455_vm13, %v7706_v22  ;;  %v2699_v52 = vld [vmem:[#allocation2 + $0x1d] sm:$0xf]  ;;  %v2689_v62 = vld [vmem:[#allocation2 + $0x18] sm:$0xf]  ;;  %v2696_v4 = vld [vmem:[#allocation2 + $0x4] sm:$0xf] }
 0x8a3   :  { %2704 = vrot.lane.b32.xlu0 %v2690_v35, %s7794_s12  ;;  %v2693_v46 = vld [vmem:[#allocation2 + $0x1a] sm:$0xf]  ;;  %v2688_v7 = vld [vmem:[#allocation2] sm:$0xf] }
 0x8a4   :  { %v2697_v10 = vld [vmem:[#allocation2 + $0x1c] sm:$0xf] }
 0x8a5   :  { %2706 = vrot.lane.b32.xlu1 %v2691_v36, %s7794_s12 }
 0x8a7   :  { %2720 = vrot.lane.b32.xlu0 %v2698_v23, %s7794_s12 }
 0x8a9   :  { %2722 = vrot.lane.b32.xlu1 %v2699_v52, %s7794_s12 }
 0x911   :  { %v2713_v53 = vpop.permute.xlu0 %2712 }
 0x912   :  { %v2728_v15 = vsel %vm1455_vm13, %v2692_v38, %v2713_v53 }
 0x913   :  { %v2715_v54 = vpop.permute.xlu1 %2714 }
 0x914   :  { %v2729_v61 = vsel %vm1455_vm13, %v2693_v46, %v2715_v54 }
 0x915   :  { %v2705_v63 = vpop.permute.xlu0 %2704  ;;  %v6842_v16 = vcombine.low %v2728_v15, %v2729_v61 }
 0x916   :  { %v2726_v33 = vsel %vm1455_vm13, %v2688_v7, %v2705_v63 }
 0x917   :  { %2817 = vmatprep.mubr.f32.mxu1 %v6842_v16  ;;  %v2707_v13 = vpop.permute.xlu1 %2706 }
 0x918   :  { %v2727_v11 = vsel %vm1455_vm13, %v2689_v62, %v2707_v13 }
 0x919   :  { %v6841_v30 = vcombine.low %v2726_v33, %v2727_v11  ;;  %v2721_v8 = vpop.permute.xlu0 %2720 }
 0x91a   :  { %v2730_v31 = vsel %vm1455_vm13, %v2696_v4, %v2721_v8 }
 0x91b   :  { %v2723_v47 = vpop.permute.xlu1 %2722  ;;  %2818 = vmatmul.mubr.f32.vlgmr.msra.gmra.mxu1 %v6841_v30 }
 0x91c   :  { %v2731_v6 = vsel %vm1455_vm13, %v2697_v10, %v2723_v47 }
 0x91d   :  { %v6843_v32 = vcombine.low %v2730_v31, %v2731_v6 }
 0x91f   :  { %2888 = vmatmul.mubr.f32.vlgmr.msra.gmra.mxu0 %v6843_v32 }
 0x9db   :  { %v6969_v17 = vpop.f32.mrf.mxu1 }
 0x9dd   :  { %v6970_v14 = vpop.f32.mrf.mxu1 }
 0x9de   :  { %v6971_v1 = vadd.f32 %v6970_v14, %v6969_v17 }
 0x9df   :  { %v2889_v3 = vpop.f32.mrf.mxu0 }
 0x9e0   :  { %v2890_v12 = vadd.f32 %v6971_v1, %v2889_v3 }
 0x9e1   :  { %v2891_v2 = vpop.f32.mrf.mxu0 }
 0x9e2   :  { %v2893_v34 = vmax.f32 %v2890_v12, 0.0 }
 0x9e4   :  { %v2894_v48 = vsel %vm1455_vm13, %v2893_v34, 0.0  ;;  %v2902_v19 = vmul.f32 %v2893_v34, %v2893_v34 }
 0x9e5   :  { %v2895_v49 = vrot.slane %v2894_v48, 4 }
 0x9e6   :  { %v2903_v20 = vsel %vm1455_vm13, %v2902_v19, 0.0 }
 0x9e7   :  { %v2896_v50 = vadd.f32 %v2895_v49, %v2894_v48  ;;  %v2904_v51 = vrot.slane %v2903_v20, 4 }
 0x9e9   :  { %v2897_v21 = vrot.slane %v2896_v50, 2  ;;  %v2905_v37 = vadd.f32 %v2904_v51, %v2903_v20 }
 0x9eb   :  { %v2898_v18 = vadd.f32 %v2897_v21, %v2896_v50  ;;  %v2906_v22 = vrot.slane %v2905_v37, 2 }
 0x9ed   :  { %v2899_v35 = vrot.slane %v2898_v18, 1  ;;  %v2907_v36 = vadd.f32 %v2906_v22, %v2905_v37 }
 0x9ef   :  { %v2900_v23 = vadd.f32 %v2899_v35, %v2898_v18  ;;  %v2908_v52 = vrot.slane %v2907_v36, 1 }
 0x9f1   :  { %v2901_v53 = vmul.f32 0.125, %v2900_v23  ;;  %v2909_v38 = vadd.f32 %v2908_v52, %v2907_v36 }
 0x9f3   :  { %v2910_v54 = vmul.f32 0.125, %v2909_v38  ;;  %v2911_v46 = vmul.f32 %v2901_v53, %v2901_v53  ;;  %v2913_v63 = vsub.f32 %v2893_v34, %v2901_v53 }
 0x9f5   :  { %v2912_v15 = vsub.f32 %v2910_v54, %v2911_v46 }
 0x9f7   :  { %v2914_v61 = vadd.f32 1e-05, %v2912_v15 }
 0x9f9   :  { %7709 = vrsqrt.f32 %v2914_v61 }
 0xa06   :  { %v7710_v16 = vpop.eup %7709 }
 0xa07   :  { %v10144_v7 = vmul.f32 %v7710_v16, %v2913_v63 }
 0xa08   :  { %7782 = dma.done.wait [#allocation5 + $0x1], 21504 }
 0xa09   :  { %7783 = vsyncadd [#allocation5 + $0x1], 4294945792  ;;  %v2928_v13 = vrot.slane %v10144_v7, %v9723_v45  ;;  %v2921_v62 = vcombine.high %v10144_v7, %v10144_v7  ;;  %3336 = vmatprep.subr.mxu0 %v11637_v0  ;;  %6972 = vmatprep.subr.mxu1 %v8795_v44  ;;  %3126 = vst.msk [vmem:[#allocation2] sm:$0x7] %vm2677_vm4, %v11637_v0  ;;  %vm3154_vm8 = vcmask 517120   ;;  %v11648_v6 = vld [vmem:[#allocation29_spill] sm:$0xff] }
 0xa0a   :  { %3127 = vst.msk [vmem:[#allocation2 + $0x18] sm:$0x7] %vm2677_vm4, %v11637_v0  ;;  %3128 = vst.msk [vmem:[#allocation2 + $0x5] sm:$0x7] %vm2677_vm4, %v11637_v0  ;;  %3337 = vmatpush1.msra.mxu0 %v8875_v60  ;;  %6973 = vmatpush3.msra.mxu1 %v8715_v28  ;;  %v11649_v32 = vld [vmem:[#allocation38_spill] sm:$0xff]  ;;  %v11651_v48 = vld [vmem:[#allocation37_spill] sm:$0xff] }
 0xa0b   :  { %3129 = vst.msk [vmem:[#allocation2 + $0x1d] sm:$0x7] %vm2677_vm4, %v11637_v0  ;;  %5107 = vst.msk [vmem:[#allocation2 + $0xb] sm:$0x7] %vm2677_vm4, %v11637_v0  ;;  %v2936_v44 = vcombine.high %v2928_v13, %v2928_v13  ;;  %v6846_v33 = vrot.slane %v2928_v13, 9  ;;  %v2935_v11 = vrot.slane %v2921_v62, %v9723_v45  ;;  %3338 = vmatprep.subr.mxu0 %v11637_v0  ;;  %6974 = vmatprep.subr.mxu1 %v8790_v43  ;;  %v11650_v3 = vld [vmem:[#allocation18_spill] sm:$0xff] }
 0xa0c   :  { %5108 = vst.msk [vmem:[#allocation2 + $0x23] sm:$0x7] %vm2677_vm4, %v11637_v0  ;;  %3339 = vmatpush1.msra.mxu0 %v8870_v59  ;;  %6975 = vmatpush3.msra.mxu1 %v8710_v27  ;;  %v11644_v59 = vld [vmem:[#allocation40_spill] sm:$0xff]  ;;  %v11654_v18 = vld [vmem:[#allocation17_spill] sm:$0xff]  ;;  %v11655_v22 = vld [vmem:[#allocation27_spill] sm:$0xff]  ;;  %vm7798_vm9 = vmmov 0  }
 0xa0d   :  { %5912 = vst.msk [vmem:[#allocation2 + $0x13] sm:$0x7] %vm2106_vm6, %v11637_v0  ;;  %5913 = vst.msk [vmem:[#allocation2 + $0x2b] sm:$0x7] %vm2106_vm6, %v11637_v0  ;;  %v6847_v30 = vrot.slane %v2936_v44, 9  ;;  %v2954_v8 = vmax.f32 %v2928_v13, %v6846_v33  ;;  %v2937_v4 = vcombine.high %v2935_v11, %v2935_v11  ;;  %v6848_v10 = vrot.slane %v2935_v11, 9  ;;  %3340 = vmatprep.subr.mxu0 %v11637_v0 }
 0xa0e   :  { %6976 = vmatprep.subr.mxu1 %v8785_v42  ;;  %3341 = vmatpush1.msra.mxu0 %v8865_v58  ;;  %v11652_v50 = vld [vmem:[#allocation28_spill] sm:$0xff]  ;;  %v11656_v35 = vld [vmem:[#allocation35_spill] sm:$0xff]  ;;  %v11658_v23 = vld [vmem:[#allocation34_spill] sm:$0xff] }
 0xa0f   :  { %6977 = vmatpush3.msra.mxu1 %v8705_v26  ;;  %v2955_v28 = vmax.f32 %v2936_v44, %v6847_v30  ;;  %v3137_v60 = vrot.slane %v2954_v8, %v9754_v29  ;;  %v6849_v43 = vrot.slane %v2937_v4, 9  ;;  %v2956_v47 = vmax.f32 %v2935_v11, %v6848_v10  ;;  %3342 = vmatprep.subr.mxu0 %v11637_v0  ;;  %v11653_v37 = vld [vmem:[#allocation36_spill] sm:$0xff]  ;;  %v11659_v52 = vld [vmem:[#allocation26_spill] sm:$0xff]  ;;  %v11660_v53 = vld [vmem:[#allocation15_spill] sm:$0xff] }
 0xa10   :  { %6978 = vmatprep.subr.mxu1 %v8780_v41  ;;  %3343 = vmatpush1.msra.mxu0 %v8860_v57  ;;  %v3159_v42 = vld [vmem:[#allocation2 + $0x1] sm:$0x3]  ;;  %v11657_v36 = vld [vmem:[#allocation16_spill] sm:$0xff]  ;;  %v11661_v38 = vld [vmem:[#allocation33_spill] sm:$0xff] }
 0xa11   :  { %6979 = vmatpush3.msra.mxu1 %v8700_v25  ;;  %v3141_v27 = vrot.slane %v2955_v28, %v9754_v29  ;;  %v2957_v58 = vmax.f32 %v2937_v4, %v6849_v43  ;;  %v3145_v26 = vrot.slane %v2956_v47, %v9754_v29  ;;  %3344 = vmatprep.subr.mxu0 %v11637_v0  ;;  %v3160_v25 = vld [vmem:[#allocation2 + $0x19] sm:$0x3]  ;;  %v3167_v31 = vld [vmem:[#allocation2 + $0x5] sm:$0x3]  ;;  %v10211_v17 = vld [vmem:[#allocation2] sm:$0x3] }
 0xa12   :  { %6980 = vmatprep.subr.mxu1 %v8775_v40  ;;  %3173 = vrot.lane.b32.xlu0 %v3159_v42, %s7794_s12  ;;  %v10213_v14 = vld [vmem:[#allocation2 + $0x6] sm:$0x3]  ;;  %v3168_v34 = vld [vmem:[#allocation2 + $0x1d] sm:$0x3]  ;;  %v10224_v19 = vld [vmem:[#allocation2 + $0x18] sm:$0x3] }
 0xa13   :  { %3345 = vmatpush1.msra.mxu0 %v8855_v56  ;;  %v3150_v41 = vsel %vm1894_vm3, %v3141_v27, %v3137_v60  ;;  %v3149_v57 = vrot.slane %v2957_v58, %v9754_v29  ;;  %6981 = vmatpush3.msra.mxu1 %v8695_v24  ;;  %v11643_v56 = vld [vmem:[#allocation20_spill] sm:$0xff]  ;;  %v11645_v24 = vld [vmem:[#allocation30_spill] sm:$0xff]  ;;  %v11662_v54 = vld [vmem:[#allocation25_spill] sm:$0xff] }
 0xa14   :  { %3346 = vmatprep.subr.mxu0 %v11637_v0  ;;  %3155 = vst.msk [vmem:[#allocation2 + $0x3] sm:$0x3] %vm3154_vm8, %v3150_v41  ;;  %6982 = vmatprep.subr.mxu1 %v8770_v39  ;;  %v11647_v39 = vld [vmem:[#allocation19_spill] sm:$0xff]  ;;  %v10226_v49 = vld [vmem:[#allocation2 + $0x1e] sm:$0x3]  ;;  %v11663_v46 = vld [vmem:[#allocation32_spill] sm:$0xff] }
 0xa15   :  { %3347 = vmatpush1.msra.mxu0 %v8850_v55  ;;  %v3151_v40 = vsel %vm1894_vm3, %v3149_v57, %v3145_v26  ;;  %6983 = vmatpush3.msra.mxu1 %v11643_v56  ;;  %v11646_v55 = vld [vmem:[#allocation39_spill] sm:$0xff]  ;;  %v11664_v15 = vld [vmem:[#allocation14_spill] sm:$0xff]  ;;  %v11665_v61 = vld [vmem:[#allocation24_spill] sm:$0xff]  ;;  %vm3407_vm3 = vcmask 1043456  }
 0xa16   :  { %3348 = vmatprep.subr.mxu0 %v11637_v0  ;;  %3156 = vst.msk [vmem:[#allocation2 + $0x1b] sm:$0x3] %vm3154_vm8, %v3151_v40  ;;  %3175 = vrot.lane.b32.xlu0 %v3160_v25, %s7794_s12  ;;  %v11666_v63 = vld [vmem:[#allocation31_spill] sm:$0xff]  ;;  %v11667_v16 = vld [vmem:[#allocation13_spill] sm:$0xff]  ;;  %v11669_v62 = vld [vmem:[#allocation48_spill] sm:$0xff] }
 0xa17   :  { %3349 = vmatpush1.msra.mxu0 %v11644_v59  ;;  %6984 = vmatprep.subr.mxu1 %v11645_v24  ;;  %v11668_v13 = vld [vmem:[#allocation23_spill] sm:$0xff]  ;;  %v11670_v44 = vld [vmem:[#allocation12_spill] sm:$0xff]  ;;  %v11671_v33 = vld [vmem:[#allocation22_spill] sm:$0xff] }
 0xa18   :  { %3350 = vmatprep.subr.mxu0 %v11637_v0  ;;  %6985 = vmatpush3.msra.mxu1 %v11647_v39  ;;  %v11672_v11 = vld [vmem:[#allocation47_spill] sm:$0xff]  ;;  %v11674_v8 = vld [vmem:[#allocation21_spill] sm:$0xff]  ;;  %v11675_v4 = vld [vmem:[#allocation46_spill] sm:$0xff] }
 0xa19   :  { %3351 = vmatpush1.msra.mxu0 %v11646_v55  ;;  %6986 = vmatprep.subr.mxu1 %v11648_v6  ;;  %v11673_v30 = vld [vmem:[#allocation11_spill] sm:$0xff]  ;;  %v11676_v10 = vld [vmem:[#allocation10_spill] sm:$0xff]  ;;  %v11677_v28 = vld [vmem:[#allocation80_spill] sm:$0xff] }
 0xa1a   :  { %3352 = vmatprep.subr.mxu0 %v11637_v0  ;;  %3189 = vrot.lane.b32.xlu0 %v3167_v31, %s7794_s12  ;;  %v11678_v60 = vld [vmem:[#allocation45_spill] sm:$0xff]  ;;  %v11679_v43 = vld [vmem:[#allocation44_spill] sm:$0xff]  ;;  %v11680_v47 = vld [vmem:[#allocation43_spill] sm:$0xff] }
 0xa1b   :  { %3353 = vmatpush1.msra.mxu0 %v11649_v32  ;;  %v3163_v1 = vld [vmem:[#allocation2 + $0x3] sm:$0x3]  ;;  %6987 = vmatpush3.msra.mxu1 %v11650_v3  ;;  %v11681_v27 = vld [vmem:[#allocation42_spill] sm:$0xff]  ;;  %v11682_v42 = vld [vmem:[#allocation41_spill] sm:$0xff] }
 0xa1c   :  { %3354 = vmatprep.subr.mxu0 %v11637_v0  ;;  %v10217_v12 = vld [vmem:[#allocation2 + $0x2] sm:$0x3]  ;;  %v10219_v2 = vld [vmem:[#allocation2 + $0x4] sm:$0x3]  ;;  %3181 = vrot.lane.b32.xlu1 %v3163_v1, %s7794_s12  ;;  %v11683_v58 = vld [vmem:[#allocation144_spill] sm:$0xff] }
 0xa1d   :  { %3355 = vmatpush1.msra.mxu0 %v11651_v48  ;;  %3431 = vst [vmem:[#allocation2] sm:$0x7] %v11637_v0  ;;  %3433 = vst [vmem:[#allocation2 + $0x5] sm:$0x7] %v11637_v0  ;;  %v3164_v20 = vld [vmem:[#allocation2 + $0x1b] sm:$0x3]  ;;  %6988 = vmatprep.subr.mxu1 %v11652_v50 }
 0xa1e   :  { %3356 = vmatprep.subr.mxu0 %v11637_v0  ;;  %v3162_v51 = vld [vmem:[#allocation2 + $0x1a] sm:$0x3]  ;;  %v10231_v21 = vld [vmem:[#allocation2 + $0x1c] sm:$0x3]  ;;  %6989 = vmatpush3.msra.mxu1 %v11654_v18  ;;  %v11685_v18 = vld [vmem:[#allocation79_spill] sm:$0xff] }
 0xa1f   :  { %3357 = vmatpush1.msra.mxu0 %v11653_v37  ;;  %3432 = vst [vmem:[#allocation2 + $0x18] sm:$0x7] %v11637_v0  ;;  %3434 = vst [vmem:[#allocation2 + $0x1d] sm:$0x7] %v11637_v0  ;;  %6990 = vmatprep.subr.mxu1 %v11655_v22  ;;  %v11684_v37 = vld [vmem:[#allocation64_spill] sm:$0xff]  ;;  %v11688_v22 = vld [vmem:[#allocation62_spill] sm:$0xff] }
 0xa20   :  { %3358 = vmatprep.subr.mxu0 %v11637_v0  ;;  %3183 = vrot.lane.b32.xlu1 %v3164_v20, %s7794_s12 }
 0xa21   :  { %3359 = vmatpush1.msra.mxu0 %v11656_v35  ;;  %6991 = vmatpush3.msra.mxu1 %v11657_v36  ;;  %v11689_v35 = vld [vmem:[#allocation128_spill] sm:$0xff]  ;;  %v11690_v36 = vld [vmem:[#allocation77_spill] sm:$0xff] }
 0xa22   :  { %3360 = vmatprep.subr.mxu0 %v11637_v0  ;;  %6992 = vmatprep.subr.mxu1 %v11659_v52  ;;  %v11692_v52 = vld [vmem:[#allocation61_spill] sm:$0xff] }
 0xa23   :  { %3361 = vmatpush1.msra.mxu0 %v11658_v23  ;;  %6993 = vmatpush3.msra.mxu1 %v11660_v53  ;;  %v11691_v23 = vld [vmem:[#allocation143_spill] sm:$0xff] }
 0xa24   :  { %3362 = vmatprep.subr.mxu0 %v11637_v0  ;;  %3191 = vrot.lane.b32.xlu1 %v3168_v34, %s7794_s12  ;;  %v11693_v53 = vld [vmem:[#allocation127_spill] sm:$0xff] }
 0xa25   :  { %3363 = vmatpush1.msra.mxu0 %v11661_v38  ;;  %6994 = vmatprep.subr.mxu1 %v11662_v54  ;;  %v11694_v38 = vld [vmem:[#allocation76_spill] sm:$0xff]  ;;  %v11695_v54 = vld [vmem:[#allocation142_spill] sm:$0xff] }
 0xa26   :  { %3364 = vmatprep.subr.mxu0 %v11637_v0  ;;  %6995 = vmatpush3.msra.mxu1 %v11664_v15  ;;  %v11697_v15 = vld [vmem:[#allocation126_spill] sm:$0xff] }
 0xa27   :  { %3365 = vmatpush1.msra.mxu0 %v11663_v46  ;;  %6996 = vmatprep.subr.mxu1 %v11665_v61  ;;  %v11696_v46 = vld [vmem:[#allocation60_spill] sm:$0xff]  ;;  %v11698_v61 = vld [vmem:[#allocation75_spill] sm:$0xff] }
 0xa28   :  { %3366 = vmatprep.subr.mxu0 %v11637_v0  ;;  %6997 = vmatpush3.msra.mxu1 %v11667_v16  ;;  %v11700_v16 = vld [vmem:[#allocation59_spill] sm:$0xff] }
 0xa29   :  { %3367 = vmatpush1.msra.mxu0 %v11666_v63  ;;  %6998 = vmatprep.subr.mxu1 %v11668_v13  ;;  %v11699_v63 = vld [vmem:[#allocation141_spill] sm:$0xff] }
 0xa2a   :  { %3384 = vmatprep.subr.mxu0 %v11637_v0  ;;  %6999 = vmatpush3.msra.mxu1 %v11670_v44  ;;  %v11701_v13 = vld [vmem:[#allocation125_spill] sm:$0xff]  ;;  %v11703_v44 = vld [vmem:[#allocation140_spill] sm:$0xff] }
 0xa2b   :  { %3385 = vmatpush2.msra.mxu0 %v11669_v62  ;;  %7000 = vmatprep.subr.mxu1 %v11671_v33  ;;  %v11702_v62 = vld [vmem:[#allocation74_spill] sm:$0xff] }
 0xa2c   :  { %3386 = vmatprep.subr.mxu0 %v11637_v0  ;;  %7001 = vmatpush3.msra.mxu1 %v11673_v30  ;;  %v11704_v33 = vld [vmem:[#allocation58_spill] sm:$0xff]  ;;  %v11706_v30 = vld [vmem:[#allocation73_spill] sm:$0xff] }
 0xa2d   :  { %3387 = vmatpush2.msra.mxu0 %v11672_v11  ;;  %7002 = vmatprep.subr.mxu1 %v11674_v8  ;;  %v11705_v11 = vld [vmem:[#allocation124_spill] sm:$0xff]  ;;  %v11707_v8 = vld [vmem:[#allocation139_spill] sm:$0xff] }
 0xa2e   :  { %3388 = vmatprep.subr.mxu0 %v11637_v0  ;;  %7003 = vmatpush3.msra.mxu1 %v11676_v10  ;;  %v11709_v10 = vld [vmem:[#allocation123_spill] sm:$0xff] }
 0xa2f   :  { %3389 = vmatpush2.msra.mxu0 %v11675_v4  ;;  %7007 = vmatprep.subr.mxu1 %v11677_v28  ;;  %v11708_v4 = vld [vmem:[#allocation57_spill] sm:$0xff]  ;;  %v11710_v28 = vld [vmem:[#allocation72_spill] sm:$0xff] }
 0xa30   :  { %3390 = vmatprep.subr.mxu0 %v11637_v0  ;;  %4038 = vrot.lane.b32.xlu0 %v10144_v7, %s7794_s12 }
 0xa31   :  { %3391 = vmatpush2.msra.mxu0 %v11678_v60  ;;  %v11711_v60 = vld [vmem:[#allocation138_spill] sm:$0xff] }
 0xa32   :  { %3392 = vmatprep.subr.mxu0 %v11637_v0 }
 0xa33   :  { %3393 = vmatpush2.msra.mxu0 %v11679_v43  ;;  %v11712_v43 = vld [vmem:[#allocation56_spill] sm:$0xff] }
 0xa34   :  { %3394 = vmatprep.subr.mxu0 %v11637_v0 }
 0xa35   :  { %3395 = vmatpush2.msra.mxu0 %v11680_v47  ;;  %v11713_v47 = vld [vmem:[#allocation122_spill] sm:$0xff] }
 0xa36   :  { %3396 = vmatprep.subr.mxu0 %v11637_v0 }
 0xa37   :  { %3397 = vmatpush2.msra.mxu0 %v11681_v27  ;;  %v11714_v27 = vld [vmem:[#allocation71_spill] sm:$0xff] }
 0xa38   :  { %3398 = vmatprep.subr.mxu0 %v11637_v0 }
 0xa39   :  { %3399 = vmatpush2.msra.mxu0 %v11682_v42  ;;  %v11715_v42 = vld [vmem:[#allocation137_spill] sm:$0xff] }
 0xa3a   :  { %7077 = vmatprep.subr.mxu0 %v11683_v58  ;;  %v11716_v58 = vld [vmem:[#allocation55_spill] sm:$0xff] }
 0xa84   :  { %v3174_v26 = vpop.permute.xlu0 %3173 }
 0xa85   :  { %v3195_v40 = vsel %vm1455_vm13, %v10211_v17, %v3174_v26  ;;  %v11717_v26 = vld [vmem:[#allocation121_spill] sm:$0xff] }
 0xa88   :  { %v3176_v7 = vpop.permute.xlu0 %3175 }
 0xa89   :  { %v3196_v56 = vsel %vm1455_vm13, %v10224_v19, %v3176_v7  ;;  %v11718_v7 = vld [vmem:[#allocation70_spill] sm:$0xff] }
 0xa8c   :  { %v3190_v57 = vpop.permute.xlu0 %3189 }
 0xa8d   :  { %v3199_v59 = vsel %vm1455_vm13, %v10219_v2, %v3190_v57  ;;  %v11720_v57 = vld [vmem:[#allocation54_spill] sm:$0xff] }
 0xa8e   :  { %v3182_v41 = vpop.permute.xlu1 %3181  ;;  %v3210_v6 = vcombine.low %v3199_v59, %v10213_v14  ;;  %v11724_v59 = vld [vmem:[#allocation53_spill] sm:$0xff] }
 0xa8f   :  { %v3197_v25 = vsel %vm1455_vm13, %v10217_v12, %v3182_v41  ;;  %v11719_v41 = vld [vmem:[#allocation136_spill] sm:$0xff] }
 0xa90   :  { %v3209_v31 = vcombine.low %v3195_v40, %v3197_v25  ;;  %v3224_v34 = vrot.slane %v3210_v6, %v9723_v45  ;;  %v11721_v25 = vld [vmem:[#allocation120_spill] sm:$0xff]  ;;  %v11722_v40 = vld [vmem:[#allocation69_spill] sm:$0xff]  ;;  %v11729_v6 = vld [vmem:[#allocation118_spill] sm:$0xff] }
 0xa92   :  { %v3184_v24 = vpop.permute.xlu1 %3183  ;;  %v3217_v32 = vrot.slane %v3209_v31, %v9723_v45  ;;  %v11725_v31 = vld [vmem:[#allocation119_spill] sm:$0xff] }
 0xa93   :  { %v3198_v55 = vsel %vm1455_vm13, %v3162_v51, %v3184_v24  ;;  %v11726_v24 = vld [vmem:[#allocation68_spill] sm:$0xff] }
 0xa94   :  { %v3226_v39 = vcombine.low %v3196_v56, %v3198_v55  ;;  %v11723_v56 = vld [vmem:[#allocation135_spill] sm:$0xff]  ;;  %v11727_v55 = vld [vmem:[#allocation134_spill] sm:$0xff] }
 0xa96   :  { %v3234_v1 = vrot.slane %v3226_v39, %v9723_v45  ;;  %v3192_v3 = vpop.permute.xlu1 %3191  ;;  %v11728_v39 = vld [vmem:[#allocation52_spill] sm:$0xff] }
 0xa97   :  { %v3200_v17 = vsel %vm1455_vm13, %v10231_v21, %v3192_v3  ;;  %v11687_v21 = vld [vmem:[#allocation78_spill] sm:$0xff]  ;;  %v11732_v3 = vld [vmem:[#allocation51_spill] sm:$0xff] }
 0xa98   :  { %v3227_v12 = vcombine.low %v3200_v17, %v10226_v49  ;;  %v6850_v2 = vcombine.low %v3217_v32, %v3234_v1  ;;  %v11686_v49 = vld [vmem:[#allocation63_spill] sm:$0xff]  ;;  %v11731_v1 = vld [vmem:[#allocation133_spill] sm:$0xff] }
 0xa99   :  { %v11730_v32 = vld [vmem:[#allocation67_spill] sm:$0xff]  ;;  %v11733_v17 = vld [vmem:[#allocation117_spill] sm:$0xff] }
 0xa9a   :  { %v3241_v48 = vrot.slane %v3227_v12, %v9723_v45  ;;  %v3251_v19 = vrot.slane %v6850_v2, %v9723_v45  ;;  %v11734_v12 = vld [vmem:[#allocation66_spill] sm:$0xff] }
 0xa9b   :  { %v11736_v2 = vld [vmem:[#allocation50_spill] sm:$0xff] }
 0xa9c   :  { %v3259_v20 = vcombine.high %v3251_v19, %v3251_v19  ;;  %v6851_v50 = vcombine.low %v3224_v34, %v3241_v48  ;;  %v11735_v34 = vld [vmem:[#allocation132_spill] sm:$0xff] }
 0xa9d   :  { %v11737_v48 = vld [vmem:[#allocation116_spill] sm:$0xff] }
 0xa9e   :  { %3330 = vmatprep.mubr.f32.mxu1 %v3259_v20  ;;  %v3258_v14 = vrot.slane %v6851_v50, %v9723_v45  ;;  %v11739_v20 = vld [vmem:[#allocation131_spill] sm:$0xff]  ;;  %v11740_v50 = vld [vmem:[#allocation49_spill] sm:$0xff] }
 0xa9f   :  { %3331 = vmatmul.mubr.f32.vlgmr.msra.gmra.mxu1 %v3251_v19  ;;  %v11738_v19 = vld [vmem:[#allocation65_spill] sm:$0xff] }
 0xaa0   :  { %v3260_v51 = vcombine.high %v3258_v14, %v3258_v14  ;;  %7008 = vmatpush3.msra.mxu1 %v11684_v37  ;;  %v11743_v37 = vld [vmem:[#allocation130_spill] sm:$0xff] }
 0xaa1   :  { %7009 = vmatprep.subr.mxu1 %v11685_v18  ;;  %v11744_v18 = vld [vmem:[#allocation114_spill] sm:$0xff] }
 0xaa2   :  { %6852 = vmatprep.mubr.msk.f32.mxu0 %vm1455_vm13, %v3260_v51  ;;  %7010 = vmatpush3.msra.mxu1 %v11686_v49  ;;  %v11742_v51 = vld [vmem:[#allocation112_spill] sm:$0xff]  ;;  %v11745_v49 = vld [vmem:[#allocation129_spill] sm:$0xff] }
 0xaa3   :  { %3401 = vmatmul.mubr.f32.vlgmr.msra.gmra.mxu0 %v3258_v14  ;;  %7011 = vmatprep.subr.mxu1 %v11687_v21  ;;  %v11741_v14 = vld [vmem:[#allocation115_spill] sm:$0xff]  ;;  %v11746_v21 = vld [vmem:[#allocation113_spill] sm:$0xff] }
 0xaa4   :  { %7012 = vmatpush3.msra.mxu1 %v11688_v22  ;;  %7078 = vmatpush3.msra.mxu0 %v11689_v35  ;;  %v3448_v22 = vld [vmem:[#allocation2] sm:$0x3]  ;;  %v3449_v35 = vld [vmem:[#allocation2 + $0x18] sm:$0x3] }
 0xaa5   :  { %7013 = vmatprep.subr.mxu1 %v11690_v36  ;;  %7079 = vmatprep.subr.mxu0 %v11691_v23  ;;  %v3450_v36 = vld [vmem:[#allocation2 + $0x1] sm:$0x3]  ;;  %v3451_v23 = vld [vmem:[#allocation2 + $0x19] sm:$0x3] }
 0xaa6   :  { %7014 = vmatpush3.msra.mxu1 %v11692_v52  ;;  %7080 = vmatpush3.msra.mxu0 %v11693_v53  ;;  %v3476_v52 = vcombine.low %v3448_v22, %v3450_v36  ;;  %v3509_v53 = vcombine.low %v3449_v35, %v3451_v23 }
 0xaa7   :  { %7015 = vmatprep.subr.mxu1 %v11694_v38  ;;  %7081 = vmatprep.subr.mxu0 %v11695_v54 }
 0xaa8   :  { %7016 = vmatpush3.msra.mxu1 %v11696_v46  ;;  %7082 = vmatpush3.msra.mxu0 %v11697_v15  ;;  %v3484_v38 = vrot.slane %v3476_v52, %v9723_v45  ;;  %v3517_v54 = vrot.slane %v3509_v53, %v9723_v45 }
 0xaa9   :  { %7017 = vmatprep.subr.mxu1 %v11698_v61  ;;  %7083 = vmatprep.subr.mxu0 %v11699_v63  ;;  %v11747_v63 = vld [vmem:[#allocation96_spill] sm:$0xff] }
 0xaaa   :  { %7018 = vmatpush3.msra.mxu1 %v11700_v16  ;;  %7084 = vmatpush3.msra.mxu0 %v11701_v13  ;;  %v6856_v46 = vcombine.low %v3484_v38, %v3517_v54  ;;  %v11748_v16 = vld [vmem:[#allocation111_spill] sm:$0xff] }
 0xaab   :  { %7019 = vmatprep.subr.mxu1 %v11702_v62  ;;  %7085 = vmatprep.subr.mxu0 %v11703_v44  ;;  %v11749_v13 = vld [vmem:[#allocation95_spill] sm:$0xff]  ;;  %v11750_v62 = vld [vmem:[#allocation110_spill] sm:$0xff] }
 0xaac   :  { %7020 = vmatpush3.msra.mxu1 %v11704_v33  ;;  %7086 = vmatpush3.msra.mxu0 %v11705_v11  ;;  %v3550_v15 = vrot.slane %v6856_v46, %v9723_v45  ;;  %v11751_v44 = vld [vmem:[#allocation94_spill] sm:$0xff]  ;;  %v11752_v33 = vld [vmem:[#allocation109_spill] sm:$0xff] }
 0xaad   :  { %7021 = vmatprep.subr.mxu1 %v11706_v30  ;;  %7087 = vmatprep.subr.mxu0 %v11707_v8  ;;  %v11753_v11 = vld [vmem:[#allocation93_spill] sm:$0xff]  ;;  %v11754_v30 = vld [vmem:[#allocation108_spill] sm:$0xff] }
 0xaae   :  { %7022 = vmatpush3.msra.mxu1 %v11708_v4  ;;  %7088 = vmatpush3.msra.mxu0 %v11709_v10  ;;  %v3558_v61 = vcombine.high %v3550_v15, %v3550_v15  ;;  %v11755_v8 = vld [vmem:[#allocation92_spill] sm:$0xff]  ;;  %v11756_v4 = vld [vmem:[#allocation107_spill] sm:$0xff] }
 0xaaf   :  { %7023 = vmatprep.subr.mxu1 %v11710_v28  ;;  %7089 = vmatprep.subr.mxu0 %v11711_v60  ;;  %v11757_v10 = vld [vmem:[#allocation91_spill] sm:$0xff]  ;;  %v11758_v28 = vld [vmem:[#allocation106_spill] sm:$0xff] }
 0xab0   :  { %7024 = vmatpush3.msra.mxu1 %v11712_v43  ;;  %7090 = vmatpush3.msra.mxu0 %v11713_v47  ;;  %v11759_v60 = vld [vmem:[#allocation90_spill] sm:$0xff]  ;;  %v11760_v43 = vld [vmem:[#allocation105_spill] sm:$0xff] }
 0xab1   :  { %7025 = vmatprep.subr.mxu1 %v11714_v27  ;;  %7091 = vmatprep.subr.mxu0 %v11715_v42  ;;  %v11761_v47 = vld [vmem:[#allocation89_spill] sm:$0xff]  ;;  %v11762_v27 = vld [vmem:[#allocation104_spill] sm:$0xff] }
 0xab2   :  { %7026 = vmatpush3.msra.mxu1 %v11716_v58  ;;  %7092 = vmatpush3.msra.mxu0 %v11717_v26  ;;  %v11763_v42 = vld [vmem:[#allocation88_spill] sm:$0xff]  ;;  %v11764_v58 = vld [vmem:[#allocation103_spill] sm:$0xff] }
 0xab3   :  { %7027 = vmatprep.subr.mxu1 %v11718_v7  ;;  %7093 = vmatprep.subr.mxu0 %v11719_v41  ;;  %v11765_v26 = vld [vmem:[#allocation87_spill] sm:$0xff]  ;;  %v11766_v7 = vld [vmem:[#allocation102_spill] sm:$0xff] }
 0xab4   :  { %7028 = vmatpush3.msra.mxu1 %v11720_v57  ;;  %7094 = vmatpush3.msra.mxu0 %v11721_v25  ;;  %v11767_v41 = vld [vmem:[#allocation86_spill] sm:$0xff]  ;;  %v11768_v57 = vld [vmem:[#allocation101_spill] sm:$0xff] }
 0xab5   :  { %7029 = vmatprep.subr.mxu1 %v11722_v40  ;;  %7095 = vmatprep.subr.mxu0 %v11723_v56  ;;  %v11769_v25 = vld [vmem:[#allocation85_spill] sm:$0xff]  ;;  %v11770_v40 = vld [vmem:[#allocation100_spill] sm:$0xff] }
 0xab6   :  { %7030 = vmatpush3.msra.mxu1 %v11724_v59  ;;  %7096 = vmatpush3.msra.mxu0 %v11725_v31  ;;  %v11771_v56 = vld [vmem:[#allocation84_spill] sm:$0xff]  ;;  %v11772_v59 = vld [vmem:[#allocation99_spill] sm:$0xff] }
 0xab7   :  { %7031 = vmatprep.subr.mxu1 %v11726_v24  ;;  %7097 = vmatprep.subr.mxu0 %v11727_v55  ;;  %v11773_v31 = vld [vmem:[#allocation83_spill] sm:$0xff]  ;;  %v11774_v24 = vld [vmem:[#allocation98_spill] sm:$0xff] }
 0xab8   :  { %7032 = vmatpush3.msra.mxu1 %v11728_v39  ;;  %7098 = vmatpush3.msra.mxu0 %v11729_v6  ;;  %v11775_v55 = vld [vmem:[#allocation82_spill] sm:$0xff]  ;;  %v11776_v39 = vld [vmem:[#allocation97_spill] sm:$0xff] }
 0xab9   :  { %7033 = vmatprep.subr.mxu1 %v11730_v32  ;;  %7099 = vmatprep.subr.mxu0 %v11731_v1  ;;  %v11777_v6 = vld [vmem:[#allocation81_spill] sm:$0xff]  ;;  %v10402_v32 = vld.sshfl [vmem:[#allocation2 + $0x6] sm:$0x3 pattern:$0x76325410] }
 0xaba   :  { %7034 = vmatpush3.msra.mxu1 %v11732_v3  ;;  %7100 = vmatpush3.msra.mxu0 %v11733_v17  ;;  %v10404_v1 = vld.sshfl [vmem:[#allocation2 + $0x1e] sm:$0x3 pattern:$0x76325410]  ;;  %4212 = vst [vmem:[#allocation2 + $0x7] sm:$0x7] %v11637_v0 }
 0xabb   :  { %7035 = vmatprep.subr.mxu1 %v11734_v12  ;;  %7101 = vmatprep.subr.mxu0 %v11735_v34  ;;  %4213 = vst [vmem:[#allocation2 + $0x1f] sm:$0x7] %v11637_v0 }
 0xabc   :  { %7036 = vmatpush3.msra.mxu1 %v11736_v2  ;;  %7102 = vmatpush3.msra.mxu0 %v11737_v48 }
 0xabd   :  { %7037 = vmatprep.subr.mxu1 %v11738_v19  ;;  %7103 = vmatprep.subr.mxu0 %v11739_v20 }
 0xabe   :  { %7038 = vmatpush3.msra.mxu1 %v11740_v50  ;;  %7104 = vmatpush3.msra.mxu0 %v11741_v14 }
 0xabf   :  { %7042 = vmatprep.subr.mxu1 %v11742_v51  ;;  %7105 = vmatprep.subr.mxu0 %v11743_v37 }
 0xac0   :  { %7106 = vmatpush3.msra.mxu0 %v11744_v18  ;;  %3648 = vmatprep.mubr.f32.mxu1 %v3558_v61 }
 0xac1   :  { %7107 = vmatprep.subr.mxu0 %v11745_v49  ;;  %3649 = vmatmul.mubr.f32.vlgmr.msra.gmra.mxu1 %v3550_v15 }
 0xac2   :  { %7108 = vmatpush3.msra.mxu0 %v11746_v21  ;;  %7043 = vmatpush3.msra.mxu1 %v11747_v63 }
 0xac3   :  { %7504 = vmatprep.subr.mxu0 %v11637_v0  ;;  %7044 = vmatprep.subr.mxu1 %v11748_v16 }
 0xac4   :  { %7045 = vmatpush3.msra.mxu1 %v11749_v13 }
 0xac5   :  { %7046 = vmatprep.subr.mxu1 %v11750_v62 }
 0xac6   :  { %7047 = vmatpush3.msra.mxu1 %v11751_v44 }
 0xac7   :  { %7048 = vmatprep.subr.mxu1 %v11752_v33 }
 0xac8   :  { %7049 = vmatpush3.msra.mxu1 %v11753_v11  ;;  %v3458_v11 = vld [vmem:[#allocation2 + $0x5] sm:$0x3] }
 0xac9   :  { %7050 = vmatprep.subr.mxu1 %v11754_v30 }
 0xaca   :  { %7051 = vmatpush3.msra.mxu1 %v11755_v8 }
 0xacb   :  { %7052 = vmatprep.subr.mxu1 %v11756_v4 }
 0xacc   :  { %7053 = vmatpush3.msra.mxu1 %v11757_v10  ;;  %v3459_v10 = vld [vmem:[#allocation2 + $0x1d] sm:$0x3] }
 0xacd   :  { %7054 = vmatprep.subr.mxu1 %v11758_v28 }
 0xace   :  { %7055 = vmatpush3.msra.mxu1 %v11759_v60 }
 0xacf   :  { %7056 = vmatprep.subr.mxu1 %v11760_v43 }
 0xad0   :  { %7057 = vmatpush3.msra.mxu1 %v11761_v47 }
 0xad1   :  { %7058 = vmatprep.subr.mxu1 %v11762_v27 }
 0xad2   :  { %7059 = vmatpush3.msra.mxu1 %v11763_v42 }
 0xad3   :  { %7060 = vmatprep.subr.mxu1 %v11764_v58 }
 0xad4   :  { %7061 = vmatpush3.msra.mxu1 %v11765_v26 }
 0xad5   :  { %7062 = vmatprep.subr.mxu1 %v11766_v7 }
 0xad6   :  { %7063 = vmatpush3.msra.mxu1 %v11767_v41 }
 0xad7   :  { %7064 = vmatprep.subr.mxu1 %v11768_v57 }
 0xad8   :  { %7065 = vmatpush3.msra.mxu1 %v11769_v25 }
 0xad9   :  { %7066 = vmatprep.subr.mxu1 %v11770_v40 }
 0xada   :  { %7067 = vmatpush3.msra.mxu1 %v11771_v56 }
 0xadb   :  { %7068 = vmatprep.subr.mxu1 %v11772_v59 }
 0xadc   :  { %7069 = vmatpush3.msra.mxu1 %v11773_v31 }
 0xadd   :  { %7070 = vmatprep.subr.mxu1 %v11774_v24 }
 0xade   :  { %7071 = vmatpush3.msra.mxu1 %v11775_v55  ;;  %v11778_v55 = vld [vmem:[#allocation160_spill] sm:$0xff] }
 0xadf   :  { %7072 = vmatprep.subr.mxu1 %v11776_v39  ;;  %v11779_v39 = vld [vmem:[#allocation159_spill] sm:$0xff] }
 0xae0   :  { %7073 = vmatpush3.msra.mxu1 %v11777_v6  ;;  %v11780_v6 = vld [vmem:[#allocation158_spill] sm:$0xff] }
 0xae1   :  { %7469 = vmatprep.subr.mxu1 %v11637_v0 }
 0xb5f   :  { %v7004_v3 = vpop.f32.mrf.mxu1 }
 0xb61   :  { %v7005_v17 = vpop.f32.mrf.mxu1 }
 0xb62   :  { %v7006_v12 = vadd.f32 %v7005_v17, %v7004_v3  ;;  %v11781_v3 = vld [vmem:[#allocation157_spill] sm:$0xff]  ;;  %v11782_v17 = vld [vmem:[#allocation156_spill] sm:$0xff] }
 0xb63   :  { %v3402_v34 = vpop.f32.mrf.mxu0 }
 0xb64   :  { %v3403_v2 = vadd.f32 %v7006_v12, %v3402_v34  ;;  %v11783_v12 = vld [vmem:[#allocation155_spill] sm:$0xff]  ;;  %v11784_v34 = vld [vmem:[#allocation154_spill] sm:$0xff] }
 0xb65   :  { %v3404_v48 = vpop.f32.mrf.mxu0 }
 0xb66   :  { %v3406_v19 = vmax.f32 %v3403_v2, 0.0  ;;  %v11785_v2 = vld [vmem:[#allocation153_spill] sm:$0xff]  ;;  %v11786_v48 = vld [vmem:[#allocation152_spill] sm:$0xff] }
 0xb68   :  { %v3408_v20 = vsel %vm3407_vm3, %v3406_v19, 0.0  ;;  %v3416_v50 = vmul.f32 %v3406_v19, %v3406_v19 }
 0xb69   :  { %v3409_v14 = vrot.slane %v3408_v20, 4 }
 0xb6a   :  { %v3417_v51 = vsel %vm3407_vm3, %v3416_v50, 0.0  ;;  %v11789_v50 = vld [vmem:[#allocation149_spill] sm:$0xff] }
 0xb6b   :  { %v3410_v37 = vadd.f32 %v3409_v14, %v3408_v20  ;;  %v3418_v18 = vrot.slane %v3417_v51, 4  ;;  %v11788_v20 = vld [vmem:[#allocation150_spill] sm:$0xff]  ;;  %v6859_v14 = vcombine.low %v10402_v32, %v10404_v1  ;;  %v3902_v32 = vld [vmem:[#allocation3 + $0x850] sm:$0xff] }
 0xb6c   :  { %v3901_v1 = vld [vmem:[#allocation3 + $0x848] sm:$0xff] }
 0xb6d   :  { %v3411_v49 = vrot.slane %v3410_v37, 2  ;;  %v3419_v21 = vadd.f32 %v3418_v18, %v3417_v51  ;;  %v11790_v51 = vld [vmem:[#allocation148_spill] sm:$0xff]  ;;  %v3575_v18 = vrot.slane %v6859_v14, %v9723_v45 }
 0xb6f   :  { %v3412_v22 = vadd.f32 %v3411_v49, %v3410_v37  ;;  %v3420_v35 = vrot.slane %v3419_v21, 2  ;;  %v11791_v37 = vld [vmem:[#allocation147_spill] sm:$0xff]  ;;  %v11792_v49 = vld [vmem:[#allocation146_spill] sm:$0xff] }
 0xb71   :  { %v3413_v36 = vrot.slane %v3412_v22, 1  ;;  %v3421_v23 = vadd.f32 %v3420_v35, %v3419_v21  ;;  %v11793_v21 = vld [vmem:[#allocation145_spill] sm:$0xff] }
 0xb72   :  { %v3900_v35 = vld [vmem:[#allocation3 + $0x840] sm:$0xff] }
 0xb73   :  { %v3414_v52 = vadd.f32 %v3413_v36, %v3412_v22  ;;  %v3422_v53 = vrot.slane %v3421_v23, 1  ;;  %v3903_v22 = vld [vmem:[#allocation3 + $0x858] sm:$0xff] }
 0xb74   :  { %v3899_v36 = vld [vmem:[#allocation3 + $0x838] sm:$0xff] }
 0xb75   :  { %v3415_v38 = vmul.f32 0.25, %v3414_v52  ;;  %v3423_v54 = vadd.f32 %v3422_v53, %v3421_v23  ;;  %v3898_v23 = vld [vmem:[#allocation3 + $0x830] sm:$0xff]  ;;  %v3897_v52 = vld [vmem:[#allocation3 + $0x828] sm:$0xff]  ;;  %v3896_v53 = vld [vmem:[#allocation3 + $0x820] sm:$0xff] }
 0xb77   :  { %v3424_v46 = vmul.f32 0.25, %v3423_v54  ;;  %v3425_v15 = vmul.f32 %v3415_v38, %v3415_v38  ;;  %v3427_v16 = vsub.f32 %v3406_v19, %v3415_v38  ;;  %v11787_v19 = vld [vmem:[#allocation151_spill] sm:$0xff]  ;;  %v3895_v38 = vld [vmem:[#allocation3 + $0x818] sm:$0xff] }
 0xb78   :  { %v3894_v54 = vld [vmem:[#allocation3 + $0x810] sm:$0xff] }
 0xb79   :  { %v3426_v61 = vsub.f32 %v3424_v46, %v3425_v15  ;;  %v3893_v46 = vld [vmem:[#allocation3 + $0x808] sm:$0xff]  ;;  %v3892_v15 = vld [vmem:[#allocation3 + $0x800] sm:$0xff] }
 0xb7b   :  { %v3428_v63 = vadd.f32 1e-05, %v3426_v61  ;;  %v3891_v61 = vld [vmem:[#allocation3 + $0x7f8] sm:$0xff] }
 0xb7d   :  { %7764 = vrsqrt.f32 %v3428_v63  ;;  %v3890_v63 = vld [vmem:[#allocation3 + $0x7f0] sm:$0xff] }
 0xb8a   :  { %v7765_v13 = vpop.eup %7764 }
 0xb8b   :  { %v3430_v62 = vmul.f32 %v7765_v13, %v3427_v16  ;;  %v3889_v16 = vld [vmem:[#allocation3 + $0x7e8] sm:$0xff]  ;;  %v3888_v13 = vld [vmem:[#allocation3 + $0x7e0] sm:$0xff] }
 0xb8d   :  { %v3442_v44 = vrot.slane %v3430_v62, %v9723_v45  ;;  %6853 = vst.sshfl [vmem:[#allocation2 + $0x3] sm:$0x3 pattern:$0x76325410] %v3430_v62  ;;  %v7039_v62 = vpop.f32.mrf.mxu1 }
 0xb8f   :  { %v3443_v33 = vcombine.high %v3442_v44, %v3442_v44  ;;  %v7040_v44 = vpop.f32.mrf.mxu1 }
 0xb91   :  { %3447 = vst [vmem:[#allocation2 + $0x1b] sm:$0x3] %v3443_v33 }
 0xb94   :  { %v3452_v30 = vld [vmem:[#allocation2 + $0x2] sm:$0x3]  ;;  %v3456_v4 = vld [vmem:[#allocation2 + $0x4] sm:$0x3] }
 0xb95   :  { %v3454_v8 = vld [vmem:[#allocation2 + $0x3] sm:$0x3]  ;;  %4210 = vst [vmem:[#allocation2] sm:$0x7] %v11637_v0  ;;  %v3493_v60 = vcombine.low %v3456_v4, %v3458_v11  ;;  %v7041_v4 = vadd.f32 %v7040_v44, %v7039_v62 }
 0xb96   :  { %v3477_v28 = vcombine.low %v3452_v30, %v3454_v8  ;;  %v4100_v62 = vld [vmem:[#allocation3 + $0x470] sm:$0xff] }
 0xb97   :  { %v3500_v41 = vrot.slane %v3493_v60, %v9723_v45  ;;  %v4052_v44 = vld [vmem:[#allocation3 + $0x2f0] sm:$0xff] }
 0xb98   :  { %v3453_v43 = vld [vmem:[#allocation2 + $0x1a] sm:$0x3]  ;;  %v3457_v27 = vld [vmem:[#allocation2 + $0x1c] sm:$0x3]  ;;  %v3491_v26 = vrot.slane %v3477_v28, %v9723_v45 }
 0xb99   :  { %v3455_v47 = vld [vmem:[#allocation2 + $0x1b] sm:$0x3]  ;;  %4211 = vst [vmem:[#allocation2 + $0x18] sm:$0x7] %v11637_v0  ;;  %v3526_v58 = vcombine.low %v3457_v27, %v3459_v10 }
 0xb9a   :  { %v3510_v42 = vcombine.low %v3453_v43, %v3455_v47 }
 0xb9b   :  { %v3533_v57 = vrot.slane %v3526_v58, %v9723_v45 }
 0xb9c   :  { %v3524_v7 = vrot.slane %v3510_v42, %v9723_v45 }
 0xb9d   :  { %v6858_v40 = vcombine.low %v3500_v41, %v3533_v57 }
 0xb9e   :  { %v6857_v25 = vcombine.low %v3491_v26, %v3524_v7 }
 0xb9f   :  { %v3568_v59 = vrot.slane %v6858_v40, %v9723_v45 }
 0xba0   :  { %v3557_v56 = vrot.slane %v6857_v25, %v9723_v45 }
 0xba1   :  { %v3576_v24 = vcombine.high %v3568_v59, %v3568_v59 }
 0xba2   :  { %v3559_v31 = vcombine.high %v3557_v56, %v3557_v56 }
 0xba3   :  { %3788 = vmatprep.mubr.f32.mxu0 %v3576_v24 }
 0xba4   :  { %3718 = vmatprep.mubr.f32.mxu1 %v3559_v31  ;;  %3789 = vmatmul.mubr.f32.vlgmr.msra.gmra.mxu0 %v3568_v59 }
 0xba5   :  { %3719 = vmatmul.mubr.f32.vlgmr.msra.gmra.mxu1 %v3557_v56  ;;  %7536 = vmatprep.mubr.msk.f32.mxu0 %vm7798_vm9, %v11637_v0 }
 0xba6   :  { %7470 = vmatpush3.msra.mxu1 %v11778_v55  ;;  %7501 = vmatprep.mubr.msk.f32.mxu1 %vm7798_vm9, %v11637_v0 }
 0xba7   :  { %7471 = vmatprep.subr.mxu1 %v11637_v0  ;;  %7505 = vmatpush3.msra.mxu0 %v3903_v22  ;;  %v4104_v22 = vld [vmem:[#allocation3 + $0x490] sm:$0xff] }
 0xba8   :  { %7472 = vmatpush3.msra.mxu1 %v11779_v39  ;;  %7506 = vmatprep.subr.mxu0 %v11637_v0 }
 0xba9   :  { %7473 = vmatprep.subr.mxu1 %v11637_v0  ;;  %7507 = vmatpush3.msra.mxu0 %v3902_v32  ;;  %v4056_v32 = vld [vmem:[#allocation3 + $0x310] sm:$0xff] }
 0xbaa   :  { %7474 = vmatpush3.msra.mxu1 %v11780_v6  ;;  %7508 = vmatprep.subr.mxu0 %v11637_v0 }
 0xbab   :  { %7475 = vmatprep.subr.mxu1 %v11637_v0  ;;  %7509 = vmatpush3.msra.mxu0 %v3901_v1  ;;  %v4088_v1 = vld [vmem:[#allocation3 + $0x410] sm:$0xff] }
 0xbac   :  { %7476 = vmatpush3.msra.mxu1 %v11781_v3  ;;  %7510 = vmatprep.subr.mxu0 %v11637_v0 }
 0xbad   :  { %7477 = vmatprep.subr.mxu1 %v11637_v0  ;;  %7511 = vmatpush3.msra.mxu0 %v3900_v35  ;;  %v4071_v35 = vld [vmem:[#allocation3 + $0x388] sm:$0xff] }
 0xbae   :  { %7478 = vmatpush3.msra.mxu1 %v11782_v17  ;;  %7512 = vmatprep.subr.mxu0 %v11637_v0 }
 0xbaf   :  { %7479 = vmatprep.subr.mxu1 %v11637_v0  ;;  %7513 = vmatpush3.msra.mxu0 %v3899_v36  ;;  %v4103_v36 = vld [vmem:[#allocation3 + $0x488] sm:$0xff] }
 0xbb0   :  { %7480 = vmatpush3.msra.mxu1 %v11783_v12  ;;  %7514 = vmatprep.subr.mxu0 %v11637_v0 }
 0xbb1   :  { %7481 = vmatprep.subr.mxu1 %v11637_v0  ;;  %7515 = vmatpush3.msra.mxu0 %v3898_v23  ;;  %v4055_v23 = vld [vmem:[#allocation3 + $0x308] sm:$0xff] }
 0xbb2   :  { %7482 = vmatpush3.msra.mxu1 %v11784_v34  ;;  %7516 = vmatprep.subr.mxu0 %v11637_v0 }
 0xbb3   :  { %7483 = vmatprep.subr.mxu1 %v11637_v0  ;;  %7517 = vmatpush3.msra.mxu0 %v3897_v52  ;;  %v4087_v52 = vld [vmem:[#allocation3 + $0x408] sm:$0xff] }
 0xbb4   :  { %7484 = vmatpush3.msra.mxu1 %v11785_v2  ;;  %7518 = vmatprep.subr.mxu0 %v11637_v0 }
 0xbb5   :  { %7485 = vmatprep.subr.mxu1 %v11637_v0  ;;  %7519 = vmatpush3.msra.mxu0 %v3896_v53  ;;  %v4070_v53 = vld [vmem:[#allocation3 + $0x380] sm:$0xff] }
 0xbb6   :  { %7486 = vmatpush3.msra.mxu1 %v11786_v48  ;;  %7520 = vmatprep.subr.mxu0 %v11637_v0 }
 0xbb7   :  { %7487 = vmatprep.subr.mxu1 %v11637_v0  ;;  %7521 = vmatpush3.msra.mxu0 %v3895_v38  ;;  %v4102_v38 = vld [vmem:[#allocation3 + $0x480] sm:$0xff] }
 0xbb8   :  { %7488 = vmatpush3.msra.mxu1 %v11787_v19  ;;  %7522 = vmatprep.subr.mxu0 %v11637_v0 }
 0xbb9   :  { %7489 = vmatprep.subr.mxu1 %v11637_v0  ;;  %7523 = vmatpush3.msra.mxu0 %v3894_v54  ;;  %v4054_v54 = vld [vmem:[#allocation3 + $0x300] sm:$0xff] }
 0xbba   :  { %7490 = vmatpush3.msra.mxu1 %v11788_v20  ;;  %7524 = vmatprep.subr.mxu0 %v11637_v0 }
 0xbbb   :  { %7491 = vmatprep.subr.mxu1 %v11637_v0  ;;  %7525 = vmatpush3.msra.mxu0 %v3893_v46  ;;  %v4086_v46 = vld [vmem:[#allocation3 + $0x400] sm:$0xff] }
 0xbbc   :  { %7492 = vmatpush3.msra.mxu1 %v11789_v50  ;;  %7526 = vmatprep.subr.mxu0 %v11637_v0 }
 0xbbd   :  { %7493 = vmatprep.subr.mxu1 %v11637_v0  ;;  %7527 = vmatpush3.msra.mxu0 %v3892_v15  ;;  %v4069_v15 = vld [vmem:[#allocation3 + $0x378] sm:$0xff] }
 0xbbe   :  { %7494 = vmatpush3.msra.mxu1 %v11790_v51  ;;  %7528 = vmatprep.subr.mxu0 %v11637_v0  ;;  %v4073_v51 = vld [vmem:[#allocation3 + $0x398] sm:$0xff] }
 0xbbf   :  { %7495 = vmatprep.subr.mxu1 %v11637_v0  ;;  %7529 = vmatpush3.msra.mxu0 %v3891_v61  ;;  %v4101_v61 = vld [vmem:[#allocation3 + $0x478] sm:$0xff] }
 0xbc0   :  { %7496 = vmatpush3.msra.mxu1 %v11791_v37  ;;  %7530 = vmatprep.subr.mxu0 %v11637_v0  ;;  %v4105_v37 = vld [vmem:[#allocation3 + $0x498] sm:$0xff] }
 0xbc1   :  { %7497 = vmatprep.subr.mxu1 %v11637_v0  ;;  %7531 = vmatpush3.msra.mxu0 %v3890_v63  ;;  %v4053_v63 = vld [vmem:[#allocation3 + $0x2f8] sm:$0xff] }
 0xbc2   :  { %7498 = vmatpush3.msra.mxu1 %v11792_v49  ;;  %7532 = vmatprep.subr.mxu0 %v11637_v0  ;;  %v4089_v49 = vld [vmem:[#allocation3 + $0x418] sm:$0xff] }
 0xbc3   :  { %7499 = vmatprep.subr.mxu1 %v11637_v0  ;;  %7533 = vmatpush3.msra.mxu0 %v3889_v16  ;;  %v4085_v16 = vld [vmem:[#allocation3 + $0x3f8] sm:$0xff] }
 0xbc4   :  { %7500 = vmatpush3.msra.mxu1 %v11793_v21  ;;  %7534 = vmatprep.subr.mxu0 %v11637_v0  ;;  %v4072_v21 = vld [vmem:[#allocation3 + $0x390] sm:$0xff] }
 0xbc5   :  { %7502 = vmatmul.mubr.f32.vlgmr.msra.gmra.mxu1 %v3575_v18  ;;  %7535 = vmatpush3.msra.mxu0 %v3888_v13  ;;  %v4057_v18 = vld [vmem:[#allocation3 + $0x318] sm:$0xff]  ;;  %v4068_v13 = vld [vmem:[#allocation3 + $0x370] sm:$0xff] }
 0xbc6   :  { %7146 = vmatprep.subr.mxu1 %v4073_v51  ;;  %7181 = vmatprep.subr.mxu0 %v4105_v37  ;;  %v4075_v51 = vld [vmem:[#allocation3 + $0x3a8] sm:$0xff]  ;;  %v4058_v37 = vld [vmem:[#allocation3 + $0x320] sm:$0xff] }
 0xbc7   :  { %7147 = vmatpush3.msra.mxu1 %v4057_v18  ;;  %v4090_v18 = vld [vmem:[#allocation3 + $0x420] sm:$0xff] }
 0xbc8   :  { %7148 = vmatprep.subr.mxu1 %v4072_v21  ;;  %v4074_v21 = vld [vmem:[#allocation3 + $0x3a0] sm:$0xff] }
 0xbc9   :  { %7149 = vmatpush3.msra.mxu1 %v4056_v32  ;;  %v7799_v32 = vmov 1966171168  }
 0xbca   :  { %7150 = vmatprep.subr.mxu1 %v4071_v35 }
 0xbcb   :  { %7151 = vmatpush3.msra.mxu1 %v4055_v23  ;;  %v11794_v23 = vld [vmem:[#allocation161_spill] sm:$0xff] }
 0xbcc   :  { %7152 = vmatprep.subr.mxu1 %v4070_v53 }
 0xbcd   :  { %7153 = vmatpush3.msra.mxu1 %v4054_v54 }
 0xbce   :  { %7154 = vmatprep.subr.mxu1 %v4069_v15 }
 0xbcf   :  { %7155 = vmatpush3.msra.mxu1 %v4053_v63 }
 0xbd0   :  { %7156 = vmatprep.subr.mxu1 %v4068_v13 }
 0xbd1   :  { %7157 = vmatpush3.msra.mxu1 %v4052_v44 }
 0xc64   :  { %v7109_v30 = vpop.f32.mrf.mxu0 }
 0xc65   :  { %v7074_v33 = vpop.f32.mrf.mxu1 }
 0xc66   :  { %v7110_v10 = vpop.f32.mrf.mxu0 }
 0xc67   :  { %v7075_v11 = vpop.f32.mrf.mxu1  ;;  %v7111_v60 = vadd.f32 %v7110_v10, %v7109_v30  ;;  %v4099_v30 = vld [vmem:[#allocation3 + $0x468] sm:$0xff]  ;;  %v4066_v10 = vld [vmem:[#allocation3 + $0x360] sm:$0xff] }
 0xc68   :  { %v7076_v8 = vadd.f32 %v7075_v11, %v7074_v33  ;;  %v4084_v33 = vld [vmem:[#allocation3 + $0x3f0] sm:$0xff]  ;;  %v4067_v11 = vld [vmem:[#allocation3 + $0x368] sm:$0xff] }
 0xc69   :  { %7158 = vmatprep.subr.mxu1 %v4067_v11 }
 0xc6a   :  { %v3721_v28 = vadd.f32 %v7076_v8, %v7041_v4  ;;  %v4051_v8 = vld [vmem:[#allocation3 + $0x2e8] sm:$0xff] }
 0xc6b   :  { %v4083_v4 = vld [vmem:[#allocation3 + $0x3e8] sm:$0xff]  ;;  %7159 = vmatpush3.msra.mxu1 %v4051_v8 }
 0xc6c   :  { %v3791_v43 = vadd.f32 %v7111_v60, %v3721_v28  ;;  %v4098_v28 = vld [vmem:[#allocation3 + $0x460] sm:$0xff]  ;;  %7160 = vmatprep.subr.mxu1 %v4066_v10 }
 0xc6d   :  { %v4050_v60 = vld [vmem:[#allocation3 + $0x2e0] sm:$0xff] }
 0xc6e   :  { %7161 = vmatpush3.msra.mxu1 %v4050_v60 }
 0xc85   :  { %v3860_v47 = vpop.f32.mrf.mxu1 }
 0xc86   :  { %v3861_v27 = vadd.f32 %v3860_v47, %v3791_v43  ;;  %v4082_v43 = vld [vmem:[#allocation3 + $0x3e0] sm:$0xff]  ;;  %v4065_v47 = vld [vmem:[#allocation3 + $0x358] sm:$0xff] }
 0xc87   :  { %v7503_v42 = vpop.f32.mrf.mxu1  ;;  %7162 = vmatprep.subr.mxu1 %v4065_v47 }
 0xc88   :  { %v3864_v58 = vmax.f32 %v3861_v27, 0.0  ;;  %v4097_v27 = vld [vmem:[#allocation3 + $0x458] sm:$0xff] }
 0xc89   :  { %v4049_v42 = vld [vmem:[#allocation3 + $0x2d8] sm:$0xff] }
 0xc8a   :  { %v3865_v26 = vsel %vm3407_vm3, %v3864_v58, 0.0  ;;  %v3873_v7 = vmul.f32 %v3864_v58, %v3864_v58  ;;  %7163 = vmatpush3.msra.mxu1 %v4049_v42 }
 0xc8b   :  { %v3866_v41 = vrot.slane %v3865_v26, 4 }
 0xc8c   :  { %v3874_v57 = vsel %vm3407_vm3, %v3873_v7, 0.0  ;;  %v4096_v7 = vld [vmem:[#allocation3 + $0x450] sm:$0xff] }
 0xc8d   :  { %v3867_v25 = vadd.f32 %v3866_v41, %v3865_v26  ;;  %v3875_v40 = vrot.slane %v3874_v57, 4  ;;  %v4064_v26 = vld [vmem:[#allocation3 + $0x350] sm:$0xff] }
 0xc8e   :  { %7164 = vmatprep.subr.mxu1 %v4064_v26  ;;  %v4048_v41 = vld [vmem:[#allocation3 + $0x2d0] sm:$0xff] }
 0xc8f   :  { %v3868_v56 = vrot.slane %v3867_v25, 2  ;;  %v3876_v59 = vadd.f32 %v3875_v40, %v3874_v57  ;;  %v4080_v57 = vld [vmem:[#allocation3 + $0x3d0] sm:$0xff]  ;;  %7165 = vmatpush3.msra.mxu1 %v4048_v41  ;;  %v4095_v40 = vld [vmem:[#allocation3 + $0x448] sm:$0xff] }
 0xc90   :  { %v4136_v26 = vld [vmem:[#allocation3 + $0x590] sm:$0xff] }
 0xc91   :  { %v3869_v31 = vadd.f32 %v3868_v56, %v3867_v25  ;;  %v3877_v24 = vrot.slane %v3876_v59, 2  ;;  %v4063_v25 = vld [vmem:[#allocation3 + $0x348] sm:$0xff] }
 0xc92   :  { %7166 = vmatprep.subr.mxu1 %v4063_v25  ;;  %v4047_v56 = vld [vmem:[#allocation3 + $0x2c8] sm:$0xff]  ;;  %v4120_v25 = vld [vmem:[#allocation3 + $0x510] sm:$0xff] }
 0xc93   :  { %v3870_v55 = vrot.slane %v3869_v31, 1  ;;  %v3878_v39 = vadd.f32 %v3877_v24, %v3876_v59  ;;  %v4079_v59 = vld [vmem:[#allocation3 + $0x3c8] sm:$0xff]  ;;  %7167 = vmatpush3.msra.mxu1 %v4047_v56  ;;  %v4094_v24 = vld [vmem:[#allocation3 + $0x440] sm:$0xff] }
 0xc95   :  { %v3871_v6 = vadd.f32 %v3870_v55, %v3869_v31  ;;  %v3879_v3 = vrot.slane %v3878_v39, 1  ;;  %v4062_v31 = vld [vmem:[#allocation3 + $0x340] sm:$0xff] }
 0xc96   :  { %7168 = vmatprep.subr.mxu1 %v4062_v31  ;;  %v4046_v55 = vld [vmem:[#allocation3 + $0x2c0] sm:$0xff] }
 0xc97   :  { %v3872_v17 = vmul.f32 0.25, %v3871_v6  ;;  %v3880_v12 = vadd.f32 %v3879_v3, %v3878_v39  ;;  %v4078_v39 = vld [vmem:[#allocation3 + $0x3c0] sm:$0xff]  ;;  %7169 = vmatpush3.msra.mxu1 %v4046_v55  ;;  %v4061_v6 = vld [vmem:[#allocation3 + $0x338] sm:$0xff]  ;;  %v4119_v55 = vld [vmem:[#allocation3 + $0x508] sm:$0xff] }
 0xc98   :  { %v4093_v3 = vld [vmem:[#allocation3 + $0x438] sm:$0xff]  ;;  %7170 = vmatprep.subr.mxu1 %v4061_v6  ;;  %v4134_v6 = vld [vmem:[#allocation3 + $0x580] sm:$0xff] }
 0xc99   :  { %v3881_v34 = vmul.f32 0.25, %v3880_v12  ;;  %v3882_v2 = vmul.f32 %v3872_v17, %v3872_v17  ;;  %v3884_v20 = vsub.f32 %v3864_v58, %v3872_v17  ;;  %v4081_v58 = vld [vmem:[#allocation3 + $0x3d8] sm:$0xff] }
 0xc9a   :  { %v4045_v17 = vld [vmem:[#allocation3 + $0x2b8] sm:$0xff] }
 0xc9b   :  { %v3883_v48 = vsub.f32 %v3881_v34, %v3882_v2  ;;  %v4077_v12 = vld [vmem:[#allocation3 + $0x3b8] sm:$0xff]  ;;  %v4060_v34 = vld [vmem:[#allocation3 + $0x330] sm:$0xff]  ;;  %7171 = vmatpush3.msra.mxu1 %v4045_v17  ;;  %v4150_v17 = vld [vmem:[#allocation3 + $0x600] sm:$0xff] }
 0xc9c   :  { %v4092_v2 = vld [vmem:[#allocation3 + $0x430] sm:$0xff]  ;;  %7172 = vmatprep.subr.mxu1 %v4060_v34  ;;  %v4117_v34 = vld [vmem:[#allocation3 + $0x4f8] sm:$0xff] }
 0xc9d   :  { %v3885_v19 = vadd.f32 1e-05, %v3883_v48  ;;  %v4044_v48 = vld [vmem:[#allocation3 + $0x2b0] sm:$0xff] }
 0xc9e   :  { %7173 = vmatpush3.msra.mxu1 %v4044_v48  ;;  %v4132_v48 = vld [vmem:[#allocation3 + $0x570] sm:$0xff] }
 0xc9f   :  { %7766 = vrsqrt.f32 %v3885_v19  ;;  %v4076_v19 = vld [vmem:[#allocation3 + $0x3b0] sm:$0xff] }
 0xcac   :  { %v7767_v50 = vpop.eup %7766 }
 0xcad   :  { %v3887_v14 = vmul.f32 %v7767_v50, %v3884_v20  ;;  %v4059_v20 = vld [vmem:[#allocation3 + $0x328] sm:$0xff] }
 0xcae   :  { %v4091_v50 = vld [vmem:[#allocation3 + $0x428] sm:$0xff]  ;;  %7174 = vmatprep.subr.mxu1 %v4059_v20  ;;  %v4148_v20 = vld [vmem:[#allocation3 + $0x5f0] sm:$0xff] }
 0xcaf   :  { %7537 = vmatmul.mubr.f32.vlgmr.msra.gmra.mxu0 %v3887_v14  ;;  %v4043_v14 = vld [vmem:[#allocation3 + $0x2a8] sm:$0xff] }
 0xcb0   :  { %7182 = vmatpush3.msra.mxu0 %v4089_v49  ;;  %v4042_v49 = vld [vmem:[#allocation3 + $0x2a0] sm:$0xff]  ;;  %7175 = vmatpush3.msra.mxu1 %v4043_v14  ;;  %v4115_v14 = vld [vmem:[#allocation3 + $0x4e8] sm:$0xff] }
 0xcb1   :  { %7183 = vmatprep.subr.mxu0 %v4104_v22  ;;  %7176 = vmatprep.subr.mxu1 %v4058_v37  ;;  %v4137_v22 = vld [vmem:[#allocation3 + $0x598] sm:$0xff]  ;;  %v4130_v37 = vld [vmem:[#allocation3 + $0x560] sm:$0xff] }
 0xcb2   :  { %7184 = vmatpush3.msra.mxu0 %v4088_v1  ;;  %7177 = vmatpush3.msra.mxu1 %v4042_v49  ;;  %v3981_v1 = vunpack.c.l.s4 %v7799_v32  ;;  %v4146_v49 = vld [vmem:[#allocation3 + $0x5e0] sm:$0xff]  ;;  %v4145_v32 = vld [vmem:[#allocation3 + $0x5d8] sm:$0xff] }
 0xcb3   :  { %7185 = vmatprep.subr.mxu0 %v4103_v36  ;;  %7216 = vmatprep.subr.mxu1 %v4137_v22  ;;  %v6860_v36 = vld [vmem:[#allocation3 + $0x860] ss:$0 sm:$0xff]  ;;  %v4113_v22 = vld [vmem:[#allocation3 + $0x4d8] sm:$0xff] }
 0xcb4   :  { %7186 = vmatpush3.msra.mxu0 %v4087_v52  ;;  %v3982_v35 = vunpack.c.0.s8 %v3981_v1  ;;  %v4128_v1 = vld [vmem:[#allocation3 + $0x550] sm:$0xff] }
 0xcb5   :  { %7187 = vmatprep.subr.mxu0 %v4102_v38 }
 0xcb6   :  { %7188 = vmatpush3.msra.mxu0 %v4086_v46  ;;  %v10476_v52 = vsub.s32 %v3982_v35, %v11794_v23  ;;  %v4112_v35 = vld [vmem:[#allocation3 + $0x4d0] sm:$0xff]  ;;  %v4127_v23 = vld [vmem:[#allocation3 + $0x548] sm:$0xff] }
 0xcb7   :  { %7189 = vmatprep.subr.mxu0 %v4101_v61 }
 0xcb8   :  { %7190 = vmatpush3.msra.mxu0 %v4085_v16 }
 0xcb9   :  { %7191 = vmatprep.subr.mxu0 %v4100_v62 }
 0xcba   :  { %7192 = vmatpush3.msra.mxu0 %v4084_v33 }
 0xcbb   :  { %7193 = vmatprep.subr.mxu0 %v4099_v30 }
 0xcbc   :  { %7194 = vmatpush3.msra.mxu0 %v4083_v4 }
 0xcbd   :  { %7195 = vmatprep.subr.mxu0 %v4098_v28  ;;  %v4039_v28 = vpop.permute.xlu0 %4038 }
 0xcbe   :  { %7196 = vmatpush3.msra.mxu0 %v4082_v43 }
 0xcbf   :  { %7197 = vmatprep.subr.mxu0 %v4097_v27  ;;  %v4121_v27 = vld [vmem:[#allocation3 + $0x518] sm:$0xff] }
 0xcc0   :  { %7198 = vmatpush3.msra.mxu0 %v4081_v58  ;;  %v4153_v58 = vld [vmem:[#allocation3 + $0x618] sm:$0xff] }
 0xcc1   :  { %7199 = vmatprep.subr.mxu0 %v4096_v7 }
 0xcc2   :  { %7200 = vmatpush3.msra.mxu0 %v4080_v57 }
 0xcc3   :  { %7201 = vmatprep.subr.mxu0 %v4095_v40  ;;  %v4152_v40 = vld [vmem:[#allocation3 + $0x610] sm:$0xff] }
 0xcc4   :  { %7202 = vmatpush3.msra.mxu0 %v4079_v59 }
 0xcc5   :  { %7203 = vmatprep.subr.mxu0 %v4094_v24  ;;  %v4135_v24 = vld [vmem:[#allocation3 + $0x588] sm:$0xff] }
 0xcc6   :  { %7204 = vmatpush3.msra.mxu0 %v4078_v39  ;;  %v4151_v39 = vld [vmem:[#allocation3 + $0x608] sm:$0xff] }
 0xcc7   :  { %7205 = vmatprep.subr.mxu0 %v4093_v3  ;;  %v4118_v3 = vld [vmem:[#allocation3 + $0x500] sm:$0xff] }
 0xcc8   :  { %7206 = vmatpush3.msra.mxu0 %v4077_v12  ;;  %v4133_v12 = vld [vmem:[#allocation3 + $0x578] sm:$0xff] }
 0xcc9   :  { %7207 = vmatprep.subr.mxu0 %v4092_v2  ;;  %v4149_v2 = vld [vmem:[#allocation3 + $0x5f8] sm:$0xff] }
 0xcca   :  { %7208 = vmatpush3.msra.mxu0 %v4076_v19  ;;  %v4116_v19 = vld [vmem:[#allocation3 + $0x4f0] sm:$0xff] }
 0xccb   :  { %7209 = vmatprep.subr.mxu0 %v4091_v50  ;;  %v4131_v50 = vld [vmem:[#allocation3 + $0x568] sm:$0xff] }
 0xccc   :  { %7210 = vmatpush3.msra.mxu0 %v4075_v51  ;;  %v4147_v51 = vld [vmem:[#allocation3 + $0x5e8] sm:$0xff] }
 0xccd   :  { %7211 = vmatprep.subr.mxu0 %v4090_v18  ;;  %v4114_v18 = vld [vmem:[#allocation3 + $0x4e0] sm:$0xff] }
 0xcce   :  { %7212 = vmatpush3.msra.mxu0 %v4074_v21  ;;  %v4129_v21 = vld [vmem:[#allocation3 + $0x558] sm:$0xff] }
 0xccf   :  { %7539 = vmatprep.subr.mxu0 %v11637_v0 }
 0xd6f   :  { %v3975_v53 = vpop.f32.mrf.mxu0 }
 0xd70   :  { %v3976_v38 = vadd.f32 %v6860_v36, %v3975_v53  ;;  %v4144_v36 = vld [vmem:[#allocation3 + $0x5d0] sm:$0xff]  ;;  %v4111_v53 = vld [vmem:[#allocation3 + $0x4c8] sm:$0xff] }
 0xd71   :  { %v7538_v54 = vpop.f32.mrf.mxu0 }
 0xd72   :  { %v3986_v46 = vrot.slane %v3976_v38, %v10476_v52  ;;  %v4143_v38 = vld [vmem:[#allocation3 + $0x5c8] sm:$0xff]  ;;  %v4126_v54 = vld [vmem:[#allocation3 + $0x540] sm:$0xff] }
 0xd74   :  { %v3987_v15 = vcombine.high %v3986_v46, %v3986_v46  ;;  %v3994_v61 = vrot.slane %v3986_v46, %v10476_v52  ;;  %v4110_v46 = vld [vmem:[#allocation3 + $0x4c0] sm:$0xff] }
 0xd76   :  { %v4001_v63 = vrot.slane %v3987_v15, %v10476_v52  ;;  %v4002_v16 = vcombine.high %v3994_v61, %v3994_v61  ;;  %v4007_v13 = vrot.slane %v3994_v61, %v9754_v29  ;;  %v4142_v15 = vld [vmem:[#allocation3 + $0x5c0] sm:$0xff]  ;;  %v4125_v61 = vld [vmem:[#allocation3 + $0x538] sm:$0xff] }
 0xd78   :  { %v4003_v62 = vcombine.high %v4001_v63, %v4001_v63  ;;  %v4011_v44 = vrot.slane %v4001_v63, %v9754_v29  ;;  %v4015_v33 = vrot.slane %v4002_v16, %v9754_v29  ;;  %v4109_v63 = vld [vmem:[#allocation3 + $0x4b8] sm:$0xff] }
 0xd79   :  { %v4141_v16 = vld [vmem:[#allocation3 + $0x5b8] sm:$0xff] }
 0xd7a   :  { %v4019_v11 = vrot.slane %v4003_v62, %v9754_v29  ;;  %v4020_v30 = vcombine.low %v4007_v13, %v4011_v44  ;;  %v4124_v13 = vld [vmem:[#allocation3 + $0x530] sm:$0xff] }
 0xd7b   :  { %v4108_v62 = vld [vmem:[#allocation3 + $0x4b0] sm:$0xff] }
 0xd7c   :  { %v4021_v8 = vcombine.low %v4015_v33, %v4019_v11  ;;  %v4028_v4 = vrot.slane %v4020_v30, %v9723_v45  ;;  %v4140_v44 = vld [vmem:[#allocation3 + $0x5b0] sm:$0xff]  ;;  %v4123_v33 = vld [vmem:[#allocation3 + $0x528] sm:$0xff] }
 0xd7d   :  { %v4107_v11 = vld [vmem:[#allocation3 + $0x4a8] sm:$0xff] }
 0xd7e   :  { %v4035_v10 = vrot.slane %v4021_v8, %v9723_v45  ;;  %v4139_v30 = vld [vmem:[#allocation3 + $0x5a8] sm:$0xff]  ;;  %v4122_v8 = vld [vmem:[#allocation3 + $0x520] sm:$0xff] }
 0xd80   :  { %v4036_v60 = vcombine.low %v4028_v4, %v4035_v10  ;;  %v4106_v4 = vld [vmem:[#allocation3 + $0x4a0] sm:$0xff] }
 0xd81   :  { %v4138_v10 = vld [vmem:[#allocation3 + $0x5a0] sm:$0xff] }
 0xd82   :  { %v4041_v43 = vsel %vm1455_vm13, %v4036_v60, %v4039_v28  ;;  %v4201_v28 = vld [vmem:[#allocation3 + $0x798] sm:$0xff]  ;;  %v4200_v60 = vld [vmem:[#allocation3 + $0x790] sm:$0xff] }
 0xd83   :  { %v4215_v47 = vcombine.high %v4041_v43, %v4041_v43  ;;  %4217 = vst [vmem:[#allocation2 + $0x3] sm:$0xf] %v4041_v43  ;;  %v4199_v43 = vld [vmem:[#allocation3 + $0x788] sm:$0xff] }
 0xd85   :  { %4218 = vst [vmem:[#allocation2 + $0x1b] sm:$0xf] %v4215_v47  ;;  %v4185_v47 = vld [vmem:[#allocation3 + $0x718] sm:$0xff] }
 0xd8c   :  { %v7756_v42 = vld [vmem:[#allocation2 + $0x1] ss:$24 sps:$4 sm:$0xff]   ;;  %v7760_v56 = vld [vmem:[#allocation2 + $0x5] ss:$24 sps:$4 sm:$0xff]  }
 0xd8d   :  { %v7757_v7 = vld [vmem:[#allocation2 + $0x3] ss:$24 sps:$4 sm:$0xff]   ;;  %4331 = vmatprep.mubr.f32.mxu1 %v7756_v42 }
 0xd8e   :  { %v7758_v41 = vld [vmem:[#allocation2] ss:$24 sps:$4 sm:$0xff]   ;;  %4401 = vmatprep.mubr.f32.mxu0 %v7757_v7  ;;  %v10492_v59 = vld [vmem:[#allocation2 + $0x4] ss:$24 sps:$4 sm:$0xff]  }
 0xd8f   :  { %v7759_v57 = vld [vmem:[#allocation2 + $0x2] ss:$24 sps:$4 sm:$0xff]   ;;  %4332 = vmatmul.mubr.f32.vlgmr.msra.gmra.mxu1 %v7758_v41  ;;  %v10494_v31 = vld [vmem:[#allocation2 + $0x6] ss:$24 sps:$4 sm:$0xff]  }
 0xd90   :  { %4571 = vst.msk [vmem:[#allocation2] sm:$0x7] %vm2677_vm4, %v11637_v0  ;;  %4572 = vst.msk [vmem:[#allocation2 + $0x18] sm:$0x7] %vm2677_vm4, %v11637_v0  ;;  %4402 = vmatmul.mubr.f32.vlgmr.msra.gmra.mxu0 %v7759_v57  ;;  %7217 = vmatpush3.msra.mxu1 %v4121_v27  ;;  %v4169_v27 = vld [vmem:[#allocation3 + $0x698] sm:$0xff]  ;;  %v4184_v42 = vld [vmem:[#allocation3 + $0x710] sm:$0xff] }
 0xd91   :  { %7540 = vmatpush3.msra.mxu0 %v4153_v58  ;;  %7218 = vmatprep.subr.mxu1 %v4136_v26  ;;  %4573 = vst.msk [vmem:[#allocation2 + $0x7] sm:$0x7] %vm2677_vm4, %v11637_v0  ;;  %4574 = vst.msk [vmem:[#allocation2 + $0x1f] sm:$0x7] %vm2677_vm4, %v11637_v0  ;;  %v4168_v58 = vld [vmem:[#allocation3 + $0x690] sm:$0xff]  ;;  %v4198_v26 = vld [vmem:[#allocation3 + $0x780] sm:$0xff] }
 0xd92   :  { %4471 = vmatprep.mubr.f32.mxu1 %v7760_v56  ;;  %7541 = vmatprep.subr.mxu0 %v11637_v0  ;;  %v4183_v7 = vld [vmem:[#allocation3 + $0x708] sm:$0xff]  ;;  %v4197_v57 = vld [vmem:[#allocation3 + $0x778] sm:$0xff]  ;;  %v4196_v56 = vld [vmem:[#allocation3 + $0x770] sm:$0xff] }
 0xd93   :  { %7219 = vmatpush3.msra.mxu1 %v4120_v25  ;;  %7542 = vmatpush3.msra.mxu0 %v4152_v40  ;;  %v4167_v41 = vld [vmem:[#allocation3 + $0x688] sm:$0xff]  ;;  %v4182_v25 = vld [vmem:[#allocation3 + $0x700] sm:$0xff] }
 0xd94   :  { %7220 = vmatprep.subr.mxu1 %v4135_v24  ;;  %7543 = vmatprep.subr.mxu0 %v11637_v0  ;;  %v4166_v40 = vld [vmem:[#allocation3 + $0x680] sm:$0xff]  ;;  %v4195_v24 = vld [vmem:[#allocation3 + $0x768] sm:$0xff] }
 0xd95   :  { %7221 = vmatpush3.msra.mxu1 %v4119_v55  ;;  %7544 = vmatpush3.msra.mxu0 %v4151_v39  ;;  %v4180_v55 = vld [vmem:[#allocation3 + $0x6f0] sm:$0xff] }
 0xd96   :  { %7222 = vmatprep.subr.mxu1 %v4134_v6  ;;  %7545 = vmatprep.subr.mxu0 %v11637_v0  ;;  %v4164_v39 = vld [vmem:[#allocation3 + $0x670] sm:$0xff]  ;;  %v4194_v6 = vld [vmem:[#allocation3 + $0x760] sm:$0xff] }
 0xd97   :  { %7223 = vmatpush3.msra.mxu1 %v4118_v3  ;;  %7546 = vmatpush3.msra.mxu0 %v4150_v17  ;;  %v4179_v3 = vld [vmem:[#allocation3 + $0x6e8] sm:$0xff] }
 0xd98   :  { %7224 = vmatprep.subr.mxu1 %v4133_v12  ;;  %7547 = vmatprep.subr.mxu0 %v11637_v0  ;;  %v4163_v17 = vld [vmem:[#allocation3 + $0x668] sm:$0xff]  ;;  %v4193_v12 = vld [vmem:[#allocation3 + $0x758] sm:$0xff] }
 0xd99   :  { %7225 = vmatpush3.msra.mxu1 %v4117_v34  ;;  %7548 = vmatpush3.msra.mxu0 %v4149_v2  ;;  %v4178_v34 = vld [vmem:[#allocation3 + $0x6e0] sm:$0xff] }
 0xd9a   :  { %7226 = vmatprep.subr.mxu1 %v4132_v48  ;;  %7549 = vmatprep.subr.mxu0 %v11637_v0  ;;  %v4162_v2 = vld [vmem:[#allocation3 + $0x660] sm:$0xff]  ;;  %v4192_v48 = vld [vmem:[#allocation3 + $0x750] sm:$0xff] }
 0xd9b   :  { %7227 = vmatpush3.msra.mxu1 %v4116_v19  ;;  %7550 = vmatpush3.msra.mxu0 %v4148_v20  ;;  %v4177_v19 = vld [vmem:[#allocation3 + $0x6d8] sm:$0xff] }
 0xd9c   :  { %7228 = vmatprep.subr.mxu1 %v4131_v50  ;;  %7551 = vmatprep.subr.mxu0 %v11637_v0  ;;  %v4161_v20 = vld [vmem:[#allocation3 + $0x658] sm:$0xff]  ;;  %v4191_v50 = vld [vmem:[#allocation3 + $0x748] sm:$0xff] }
 0xd9d   :  { %7229 = vmatpush3.msra.mxu1 %v4115_v14  ;;  %7552 = vmatpush3.msra.mxu0 %v4147_v51  ;;  %v4176_v14 = vld [vmem:[#allocation3 + $0x6d0] sm:$0xff] }
 0xd9e   :  { %7230 = vmatprep.subr.mxu1 %v4130_v37  ;;  %7553 = vmatprep.subr.mxu0 %v11637_v0  ;;  %v4160_v51 = vld [vmem:[#allocation3 + $0x650] sm:$0xff]  ;;  %v4190_v37 = vld [vmem:[#allocation3 + $0x740] sm:$0xff] }
 0xd9f   :  { %7231 = vmatpush3.msra.mxu1 %v4114_v18  ;;  %7554 = vmatpush3.msra.mxu0 %v4146_v49  ;;  %v4175_v18 = vld [vmem:[#allocation3 + $0x6c8] sm:$0xff] }
 0xda0   :  { %7232 = vmatprep.subr.mxu1 %v4129_v21  ;;  %7555 = vmatprep.subr.mxu0 %v11637_v0  ;;  %v4159_v49 = vld [vmem:[#allocation3 + $0x648] sm:$0xff]  ;;  %v4189_v21 = vld [vmem:[#allocation3 + $0x738] sm:$0xff] }
 0xda1   :  { %7233 = vmatpush3.msra.mxu1 %v4113_v22  ;;  %7556 = vmatpush3.msra.mxu0 %v4145_v32  ;;  %v4174_v22 = vld [vmem:[#allocation3 + $0x6c0] sm:$0xff]  ;;  %v4188_v32 = vld [vmem:[#allocation3 + $0x730] sm:$0xff] }
 0xda2   :  { %7234 = vmatprep.subr.mxu1 %v4128_v1  ;;  %7557 = vmatprep.subr.mxu0 %v11637_v0  ;;  %v4187_v1 = vld [vmem:[#allocation3 + $0x728] sm:$0xff] }
 0xda3   :  { %7235 = vmatpush3.msra.mxu1 %v4112_v35  ;;  %7558 = vmatpush3.msra.mxu0 %v4144_v36  ;;  %v4186_v35 = vld [vmem:[#allocation3 + $0x720] sm:$0xff]  ;;  %v4209_v36 = vld [vmem:[#allocation3 + $0x7d8] sm:$0xff] }
 0xda4   :  { %7236 = vmatprep.subr.mxu1 %v4127_v23  ;;  %7559 = vmatprep.subr.mxu0 %v11637_v0 }
 0xda5   :  { %7237 = vmatpush3.msra.mxu1 %v4111_v53  ;;  %7560 = vmatpush3.msra.mxu0 %v4143_v38 }
 0xda6   :  { %7238 = vmatprep.subr.mxu1 %v4126_v54  ;;  %7561 = vmatprep.subr.mxu0 %v11637_v0 }
 0xda7   :  { %7239 = vmatpush3.msra.mxu1 %v4110_v46  ;;  %7562 = vmatpush3.msra.mxu0 %v4142_v15 }
 0xda8   :  { %7240 = vmatprep.subr.mxu1 %v4125_v61  ;;  %7563 = vmatprep.subr.mxu0 %v11637_v0 }
 0xda9   :  { %7241 = vmatpush3.msra.mxu1 %v4109_v63  ;;  %7564 = vmatpush3.msra.mxu0 %v4141_v16 }
 0xdaa   :  { %7242 = vmatprep.subr.mxu1 %v4124_v13  ;;  %7565 = vmatprep.subr.mxu0 %v11637_v0 }
 0xdab   :  { %7243 = vmatpush3.msra.mxu1 %v4108_v62  ;;  %7566 = vmatpush3.msra.mxu0 %v4140_v44 }
 0xdac   :  { %7244 = vmatprep.subr.mxu1 %v4123_v33  ;;  %7567 = vmatprep.subr.mxu0 %v11637_v0 }
 0xdad   :  { %7245 = vmatpush3.msra.mxu1 %v4107_v11  ;;  %7568 = vmatpush3.msra.mxu0 %v4139_v30 }
 0xdae   :  { %7246 = vmatprep.subr.mxu1 %v4122_v8  ;;  %7569 = vmatprep.subr.mxu0 %v11637_v0 }
 0xdaf   :  { %7247 = vmatpush3.msra.mxu1 %v4106_v4  ;;  %7570 = vmatpush3.msra.mxu0 %v4138_v10 }
 0xdb0   :  { %7571 = vmatprep.mubr.msk.f32.mxu0 %vm7798_vm9, %v11637_v0  ;;  %4472 = vmatmul.mubr.f32.vlgmr.msra.gmra.mxu1 %v10492_v59  ;;  %v4181_v59 = vld [vmem:[#allocation3 + $0x6f8] sm:$0xff] }
 0xdb1   :  { %7572 = vmatmul.mubr.f32.vlgmr.msra.gmra.mxu0 %v10494_v31  ;;  %4715 = vmatprep.subr.mxu0 %v11637_v0  ;;  %v4165_v31 = vld [vmem:[#allocation3 + $0x678] sm:$0xff] }
 0xdb2   :  { %4716 = vmatpush1.msra.mxu0 %v4201_v28  ;;  %7268 = vmatprep.subr.mxu1 %v4185_v47 }
 0xdb3   :  { %4717 = vmatprep.subr.mxu0 %v11637_v0  ;;  %7269 = vmatpush3.msra.mxu1 %v4169_v27 }
 0xdb4   :  { %4718 = vmatpush1.msra.mxu0 %v4200_v60  ;;  %7270 = vmatprep.subr.mxu1 %v4184_v42 }
 0xdb5   :  { %4719 = vmatprep.subr.mxu0 %v11637_v0  ;;  %7271 = vmatpush3.msra.mxu1 %v4168_v58 }
 0xdb6   :  { %4720 = vmatpush1.msra.mxu0 %v4199_v43  ;;  %7272 = vmatprep.subr.mxu1 %v4183_v7 }
 0xdb7   :  { %4721 = vmatprep.subr.mxu0 %v11637_v0  ;;  %7273 = vmatpush3.msra.mxu1 %v4167_v41 }
 0xdb8   :  { %4722 = vmatpush1.msra.mxu0 %v4198_v26  ;;  %7274 = vmatprep.subr.mxu1 %v4182_v25 }
 0xdb9   :  { %4723 = vmatprep.subr.mxu0 %v11637_v0  ;;  %7275 = vmatpush3.msra.mxu1 %v4166_v40 }
 0xdba   :  { %4724 = vmatpush1.msra.mxu0 %v4197_v57  ;;  %7276 = vmatprep.subr.mxu1 %v4181_v59 }
 0xdbb   :  { %4725 = vmatprep.subr.mxu0 %v11637_v0  ;;  %7277 = vmatpush3.msra.mxu1 %v4165_v31 }
 0xdbc   :  { %4726 = vmatpush1.msra.mxu0 %v4196_v56  ;;  %7278 = vmatprep.subr.mxu1 %v4180_v55  ;;  %v4158_v55 = vld [vmem:[#allocation3 + $0x640] sm:$0xff] }
 0xdbd   :  { %4727 = vmatprep.subr.mxu0 %v11637_v0  ;;  %7279 = vmatpush3.msra.mxu1 %v4164_v39  ;;  %v4208_v39 = vld [vmem:[#allocation3 + $0x7d0] sm:$0xff] }
 0xdbe   :  { %4728 = vmatpush1.msra.mxu0 %v4195_v24  ;;  %7280 = vmatprep.subr.mxu1 %v4179_v3 }
 0xdbf   :  { %4729 = vmatprep.subr.mxu0 %v11637_v0  ;;  %7281 = vmatpush3.msra.mxu1 %v4163_v17 }
 0xdc0   :  { %4730 = vmatpush1.msra.mxu0 %v4194_v6  ;;  %7282 = vmatprep.subr.mxu1 %v4178_v34  ;;  %v4173_v6 = vld [vmem:[#allocation3 + $0x6b8] sm:$0xff] }
 0xdc1   :  { %4731 = vmatprep.subr.mxu0 %v11637_v0  ;;  %7283 = vmatpush3.msra.mxu1 %v4162_v2  ;;  %v4157_v34 = vld [vmem:[#allocation3 + $0x638] sm:$0xff]  ;;  %v4207_v2 = vld [vmem:[#allocation3 + $0x7c8] sm:$0xff] }
 0xdc2   :  { %4732 = vmatpush1.msra.mxu0 %v4193_v12  ;;  %7284 = vmatprep.subr.mxu1 %v4177_v19  ;;  %v4156_v19 = vld [vmem:[#allocation3 + $0x630] sm:$0xff] }
 0xdc3   :  { %4733 = vmatprep.subr.mxu0 %v11637_v0  ;;  %7285 = vmatpush3.msra.mxu1 %v4161_v20  ;;  %v4206_v20 = vld [vmem:[#allocation3 + $0x7c0] sm:$0xff] }
 0xdc4   :  { %4734 = vmatpush1.msra.mxu0 %v4192_v48  ;;  %7286 = vmatprep.subr.mxu1 %v4176_v14  ;;  %v4172_v48 = vld [vmem:[#allocation3 + $0x6b0] sm:$0xff] }
 0xdc5   :  { %4735 = vmatprep.subr.mxu0 %v11637_v0  ;;  %7287 = vmatpush3.msra.mxu1 %v4160_v51  ;;  %v4155_v51 = vld [vmem:[#allocation3 + $0x628] sm:$0xff] }
 0xdc6   :  { %4736 = vmatpush1.msra.mxu0 %v4191_v50  ;;  %7288 = vmatprep.subr.mxu1 %v4175_v18  ;;  %v4171_v50 = vld [vmem:[#allocation3 + $0x6a8] sm:$0xff]  ;;  %v4170_v18 = vld [vmem:[#allocation3 + $0x6a0] sm:$0xff] }
 0xdc7   :  { %4737 = vmatprep.subr.mxu0 %v11637_v0  ;;  %7289 = vmatpush3.msra.mxu1 %v4159_v49  ;;  %v4154_v49 = vld [vmem:[#allocation3 + $0x620] sm:$0xff] }
 0xdc8   :  { %4738 = vmatpush1.msra.mxu0 %v4190_v37  ;;  %7290 = vmatprep.subr.mxu1 %v4174_v22  ;;  %v4205_v37 = vld [vmem:[#allocation3 + $0x7b8] sm:$0xff]  ;;  %v4203_v22 = vld [vmem:[#allocation3 + $0x7a8] sm:$0xff] }
 0xdc9   :  { %4739 = vmatprep.subr.mxu0 %v11637_v0  ;;  %7291 = vmatpush3.msra.mxu1 %v4158_v55 }
 0xdca   :  { %4740 = vmatpush1.msra.mxu0 %v4189_v21  ;;  %7292 = vmatprep.subr.mxu1 %v4173_v6  ;;  %v4204_v21 = vld [vmem:[#allocation3 + $0x7b0] sm:$0xff] }
 0xdcb   :  { %4741 = vmatprep.subr.mxu0 %v11637_v0  ;;  %7293 = vmatpush3.msra.mxu1 %v4157_v34 }
 0xdcc   :  { %4742 = vmatpush1.msra.mxu0 %v4188_v32  ;;  %7294 = vmatprep.subr.mxu1 %v4172_v48  ;;  %v4202_v32 = vld [vmem:[#allocation3 + $0x7a0] sm:$0xff] }
 0xdcd   :  { %4743 = vmatprep.subr.mxu0 %v11637_v0  ;;  %7295 = vmatpush3.msra.mxu1 %v4156_v19 }
 0xdce   :  { %4744 = vmatpush1.msra.mxu0 %v4187_v1  ;;  %7296 = vmatprep.subr.mxu1 %v4171_v50 }
 0xdcf   :  { %4745 = vmatprep.subr.mxu0 %v11637_v0  ;;  %7297 = vmatpush3.msra.mxu1 %v4155_v51 }
 0xdd0   :  { %4746 = vmatpush1.msra.mxu0 %v4186_v35  ;;  %7298 = vmatprep.subr.mxu1 %v4170_v18 }
 0xdd1   :  { %4763 = vmatprep.subr.mxu0 %v11637_v0  ;;  %7299 = vmatpush3.msra.mxu1 %v4154_v49 }
 0xdd2   :  { %4764 = vmatpush2.msra.mxu0 %v4209_v36 }
 0xdd3   :  { %4765 = vmatprep.subr.mxu0 %v11637_v0 }
 0xdd4   :  { %4766 = vmatpush2.msra.mxu0 %v4208_v39 }
 0xdd5   :  { %4767 = vmatprep.subr.mxu0 %v11637_v0 }
 0xdd6   :  { %4768 = vmatpush2.msra.mxu0 %v4207_v2 }
 0xdd7   :  { %4769 = vmatprep.subr.mxu0 %v11637_v0 }
 0xdd8   :  { %4770 = vmatpush2.msra.mxu0 %v4206_v20 }
 0xdd9   :  { %4771 = vmatprep.subr.mxu0 %v11637_v0 }
 0xdda   :  { %4772 = vmatpush2.msra.mxu0 %v4205_v37 }
 0xddb   :  { %4773 = vmatprep.subr.mxu0 %v11637_v0 }
 0xddc   :  { %4774 = vmatpush2.msra.mxu0 %v4204_v21 }
 0xddd   :  { %4775 = vmatprep.subr.mxu0 %v11637_v0 }
 0xdde   :  { %4776 = vmatpush2.msra.mxu0 %v4203_v22 }
 0xddf   :  { %4777 = vmatprep.subr.mxu0 %v11637_v0 }
 0xde0   :  { %4778 = vmatpush2.msra.mxu0 %v4202_v32 }
 0xde1   :  { %7574 = vmatprep.subr.mxu0 %v11637_v0 }
 0xe4f   :  { %v7178_v23 = vpop.f32.mrf.mxu1 }
 0xe50   :  { %v7213_v53 = vpop.f32.mrf.mxu0 }
 0xe51   :  { %v7179_v38 = vpop.f32.mrf.mxu1 }
 0xe52   :  { %v7214_v54 = vpop.f32.mrf.mxu0  ;;  %v7180_v46 = vadd.f32 %v7179_v38, %v7178_v23 }
 0xe53   :  { %v7215_v15 = vadd.f32 %v7214_v54, %v7213_v53 }
 0xe55   :  { %v4404_v13 = vadd.f32 %v7215_v15, %v7180_v46 }
 0xe70   :  { %v7248_v61 = vpop.f32.mrf.mxu1 }
 0xe71   :  { %v4543_v63 = vpop.f32.mrf.mxu0 }
 0xe72   :  { %v7249_v16 = vpop.f32.mrf.mxu1 }
 0xe73   :  { %v7250_v62 = vadd.f32 %v7249_v16, %v7248_v61  ;;  %v7573_v44 = vpop.f32.mrf.mxu0 }
 0xe75   :  { %v4474_v33 = vadd.f32 %v7250_v62, %v4404_v13 }
 0xe77   :  { %v4544_v11 = vadd.f32 %v4543_v63, %v4474_v33 }
 0xe79   :  { %v4547_v30 = vmax.f32 %v4544_v11, 0.0 }
 0xe7b   :  { %v4548_v8 = vsel %vm1455_vm13, %v4547_v30, 0.0  ;;  %v4556_v4 = vmul.f32 %v4547_v30, %v4547_v30 }
 0xe7c   :  { %v4549_v10 = vrot.slane %v4548_v8, 4 }
 0xe7d   :  { %v4557_v28 = vsel %vm1455_vm13, %v4556_v4, 0.0 }
 0xe7e   :  { %v4550_v60 = vadd.f32 %v4549_v10, %v4548_v8  ;;  %v4558_v43 = vrot.slane %v4557_v28, 4 }
 0xe80   :  { %v4551_v47 = vrot.slane %v4550_v60, 2  ;;  %v4559_v27 = vadd.f32 %v4558_v43, %v4557_v28 }
 0xe82   :  { %v4552_v42 = vadd.f32 %v4551_v47, %v4550_v60  ;;  %v4560_v58 = vrot.slane %v4559_v27, 2 }
 0xe84   :  { %v4553_v26 = vrot.slane %v4552_v42, 1  ;;  %v4561_v7 = vadd.f32 %v4560_v58, %v4559_v27  ;;  %v4815_v58 = vld [vmem:[%s11475_s2 + $0x420] sm:$0xff] }
 0xe86   :  { %v4554_v41 = vadd.f32 %v4553_v26, %v4552_v42  ;;  %v4562_v57 = vrot.slane %v4561_v7, 1  ;;  %v4816_v42 = vld [vmem:[%s11475_s2 + $0x428] sm:$0xff]  ;;  %v4814_v26 = vld [vmem:[%s11475_s2 + $0x418] sm:$0xff] }
 0xe88   :  { %v4555_v25 = vmul.f32 0.125, %v4554_v41  ;;  %v4563_v40 = vadd.f32 %v4562_v57, %v4561_v7  ;;  %v4813_v7 = vld [vmem:[%s11475_s2 + $0x410] sm:$0xff]  ;;  %v4812_v41 = vld [vmem:[%s11475_s2 + $0x408] sm:$0xff]  ;;  %v4811_v57 = vld [vmem:[%s11475_s2 + $0x400] sm:$0xff] }
 0xe8a   :  { %v4564_v56 = vmul.f32 0.125, %v4563_v40  ;;  %v4565_v59 = vmul.f32 %v4555_v25, %v4555_v25  ;;  %v4567_v3 = vsub.f32 %v4547_v30, %v4555_v25  ;;  %v4810_v25 = vld [vmem:[%s11475_s2 + $0x3f8] sm:$0xff]  ;;  %v4809_v40 = vld [vmem:[%s11475_s2 + $0x3f0] sm:$0xff] }
 0xe8c   :  { %v4566_v31 = vsub.f32 %v4564_v56, %v4565_v59 }
 0xe8e   :  { %v4568_v24 = vadd.f32 1e-05, %v4566_v31 }
 0xe90   :  { %7768 = vrsqrt.f32 %v4568_v24 }
 0xe9d   :  { %v7769_v17 = vpop.eup %7768 }
 0xe9e   :  { %v4570_v12 = vmul.f32 %v7769_v17, %v4567_v3 }
 0xea0   :  { %v4576_v14 = vcombine.high %v4570_v12, %v4570_v12  ;;  %4578 = vst.msk [vmem:[#allocation2 + $0x3] sm:$0xf] %vm2685_vm5, %v4570_v12 }
 0xea2   :  { %4579 = vst.msk [vmem:[#allocation2 + $0x1b] sm:$0xf] %vm2685_vm5, %v4576_v14 }
 0xea7   :  { %v4586_v1 = vld [vmem:[#allocation2 + $0x3] sm:$0xf] }
 0xea8   :  { %4604 = vrot.lane.b32.xlu1 %v4586_v1, %s7794_s12  ;;  %v4582_v35 = vld [vmem:[#allocation2 + $0x1] sm:$0xf]  ;;  %v4590_v61 = vld [vmem:[#allocation2 + $0x5] sm:$0xf] }
 0xea9   :  { %v4584_v36 = vld [vmem:[#allocation2 + $0x2] sm:$0xf]  ;;  %v4587_v53 = vld [vmem:[#allocation2 + $0x1b] sm:$0xf] }
 0xeaa   :  { %v4580_v23 = vld [vmem:[#allocation2] sm:$0xf]  ;;  %4606 = vrot.lane.b32.xlu0 %v4587_v53, %s7794_s12  ;;  %v4583_v54 = vld [vmem:[#allocation2 + $0x19] sm:$0xf] }
 0xeab   :  { %v7763_v38 = vld [vmem:[#allocation2 + $0x6] ss:$24 sps:$4 sm:$0xff]   ;;  %5105 = vst.msk [vmem:[#allocation2] sm:$0x7] %vm2677_vm4, %v11637_v0  ;;  %v4585_v46 = vld [vmem:[#allocation2 + $0x1a] sm:$0xf] }
 0xeac   :  { %6871 = vmatprep.mubr.msk.f32.mxu0 %vm1455_vm13, %v7763_v38  ;;  %v4581_v15 = vld [vmem:[#allocation2 + $0x18] sm:$0xf]  ;;  %4596 = vrot.lane.b32.xlu1 %v4582_v35, %s7794_s12  ;;  %v4591_v63 = vld [vmem:[#allocation2 + $0x1d] sm:$0xf] }
 0xead   :  { %5106 = vst.msk [vmem:[#allocation2 + $0x18] sm:$0x7] %vm2677_vm4, %v11637_v0  ;;  %v4589_v60 = vld [vmem:[#allocation2 + $0x1c] sm:$0xf] }
 0xeae   :  { %4598 = vrot.lane.b32.xlu0 %v4583_v54, %s7794_s12  ;;  %v5068_v54 = vld [vmem:[%s11475_s2 + $0x2c8] sm:$0xff] }
 0xeb0   :  { %4612 = vrot.lane.b32.xlu1 %v4590_v61, %s7794_s12  ;;  %v5052_v61 = vld [vmem:[%s11475_s2 + $0x248] sm:$0xff] }
 0xeb1   :  { %7312 = vmatprep.subr.mxu1 %v5052_v61 }
 0xeb2   :  { %4614 = vrot.lane.b32.xlu0 %v4591_v63, %s7794_s12  ;;  %v5036_v63 = vld [vmem:[%s11475_s2 + $0x1c8] sm:$0xff] }
 0xeb4   :  { %5013 = vrot.lane.b32.xlu1 %v9996_v9, %s7792_s30  ;;  %v4588_v9 = vld [vmem:[#allocation2 + $0x4] sm:$0xf] }
 0xeb6   :  { %5015 = vrot.lane.b32.xlu0 %v9998_v5, %s7792_s30 }
 0xf1a   :  { %v4605_v16 = vpop.permute.xlu1 %4604 }
 0xf1b   :  { %v4620_v62 = vsel %vm1455_vm13, %v4584_v36, %v4605_v16  ;;  %v5051_v16 = vld [vmem:[%s11475_s2 + $0x240] sm:$0xff] }
 0xf1c   :  { %v4607_v13 = vpop.permute.xlu0 %4606 }
 0xf1d   :  { %v4621_v44 = vsel %vm1455_vm13, %v4585_v46, %v4607_v13  ;;  %v5067_v46 = vld [vmem:[%s11475_s2 + $0x2c0] sm:$0xff]  ;;  %v5065_v13 = vld [vmem:[%s11475_s2 + $0x2b0] sm:$0xff] }
 0xf1e   :  { %v6868_v33 = vcombine.low %v4620_v62, %v4621_v44  ;;  %v4597_v11 = vpop.permute.xlu1 %4596  ;;  %v5035_v62 = vld [vmem:[%s11475_s2 + $0x1c0] sm:$0xff]  ;;  %v5050_v44 = vld [vmem:[%s11475_s2 + $0x238] sm:$0xff] }
 0xf1f   :  { %v4618_v8 = vsel %vm1455_vm13, %v4580_v23, %v4597_v11  ;;  %v5064_v11 = vld [vmem:[%s11475_s2 + $0x2a8] sm:$0xff] }
 0xf20   :  { %4709 = vmatprep.mubr.f32.mxu1 %v6868_v33  ;;  %v4599_v30 = vpop.permute.xlu0 %4598  ;;  %v5034_v33 = vld [vmem:[%s11475_s2 + $0x1b8] sm:$0xff] }
 0xf21   :  { %v4619_v4 = vsel %vm1455_vm13, %v4581_v15, %v4599_v30  ;;  %v5066_v15 = vld [vmem:[%s11475_s2 + $0x2b8] sm:$0xff]  ;;  %v5049_v30 = vld [vmem:[%s11475_s2 + $0x230] sm:$0xff] }
 0xf22   :  { %v6867_v10 = vcombine.low %v4618_v8, %v4619_v4  ;;  %v4613_v28 = vpop.permute.xlu1 %4612  ;;  %v5033_v8 = vld [vmem:[%s11475_s2 + $0x1b0] sm:$0xff]  ;;  %v5063_v4 = vld [vmem:[%s11475_s2 + $0x2a0] sm:$0xff] }
 0xf23   :  { %v4622_v5 = vsel %vm1455_vm13, %v4588_v9, %v4613_v28  ;;  %v5032_v28 = vld [vmem:[%s11475_s2 + $0x1a8] sm:$0xff]  ;;  %v5062_v9 = vld [vmem:[%s11475_s2 + $0x298] sm:$0xff] }
 0xf24   :  { %v4615_v43 = vpop.permute.xlu0 %4614  ;;  %4710 = vmatmul.mubr.f32.vlgmr.msra.gmra.mxu1 %v6867_v10  ;;  %v5048_v10 = vld [vmem:[%s11475_s2 + $0x228] sm:$0xff] }
 0xf25   :  { %v4623_v47 = vsel %vm1455_vm13, %v4589_v60, %v4615_v43  ;;  %7313 = vmatpush3.msra.mxu1 %v5036_v63  ;;  %v5047_v60 = vld [vmem:[%s11475_s2 + $0x220] sm:$0xff] }
 0xf26   :  { %v6869_v27 = vcombine.low %v4622_v5, %v4623_v47  ;;  %7314 = vmatprep.subr.mxu1 %v5051_v16  ;;  %v5031_v43 = vld [vmem:[%s11475_s2 + $0x1a0] sm:$0xff]  ;;  %v5061_v5 = vld [vmem:[%s11475_s2 + $0x290] sm:$0xff]  ;;  %v5046_v47 = vld [vmem:[%s11475_s2 + $0x218] sm:$0xff] }
 0xf27   :  { %7315 = vmatpush3.msra.mxu1 %v5035_v62 }
 0xf28   :  { %4780 = vmatmul.mubr.f32.vlgmr.msra.gmra.mxu0 %v6869_v27  ;;  %7316 = vmatprep.subr.mxu1 %v5050_v44  ;;  %v5030_v27 = vld [vmem:[%s11475_s2 + $0x198] sm:$0xff] }
 0xf29   :  { %7590 = vmatprep.mubr.msk.f32.mxu0 %vm7798_vm9, %v11637_v0  ;;  %7575 = vmatpush3.msra.mxu0 %v4816_v42  ;;  %v5060_v42 = vld [vmem:[%s11475_s2 + $0x288] sm:$0xff] }
 0xf2a   :  { %7576 = vmatprep.subr.mxu0 %v11637_v0  ;;  %7317 = vmatpush3.msra.mxu1 %v5034_v33 }
 0xf2b   :  { %7577 = vmatpush3.msra.mxu0 %v4815_v58  ;;  %7318 = vmatprep.subr.mxu1 %v5049_v30  ;;  %v5045_v58 = vld [vmem:[%s11475_s2 + $0x210] sm:$0xff] }
 0xf2c   :  { %7578 = vmatprep.subr.mxu0 %v11637_v0  ;;  %7319 = vmatpush3.msra.mxu1 %v5033_v8 }
 0xf2d   :  { %7579 = vmatpush3.msra.mxu0 %v4814_v26  ;;  %7320 = vmatprep.subr.mxu1 %v5048_v10  ;;  %v5029_v26 = vld [vmem:[%s11475_s2 + $0x190] sm:$0xff] }
 0xf2e   :  { %7580 = vmatprep.subr.mxu0 %v11637_v0  ;;  %7321 = vmatpush3.msra.mxu1 %v5032_v28 }
 0xf2f   :  { %7581 = vmatpush3.msra.mxu0 %v4813_v7  ;;  %7322 = vmatprep.subr.mxu1 %v5047_v60  ;;  %v5059_v7 = vld [vmem:[%s11475_s2 + $0x280] sm:$0xff] }
 0xf30   :  { %7582 = vmatprep.subr.mxu0 %v11637_v0  ;;  %7323 = vmatpush3.msra.mxu1 %v5031_v43 }
 0xf31   :  { %7583 = vmatpush3.msra.mxu0 %v4812_v41  ;;  %7324 = vmatprep.subr.mxu1 %v5046_v47  ;;  %v5044_v41 = vld [vmem:[%s11475_s2 + $0x208] sm:$0xff]  ;;  %v5014_v47 = vpop.permute.xlu1 %5013 }
 0xf32   :  { %7584 = vmatprep.subr.mxu0 %v11637_v0  ;;  %7325 = vmatpush3.msra.mxu1 %v5030_v27 }
 0xf33   :  { %7585 = vmatpush3.msra.mxu0 %v4811_v57  ;;  %7326 = vmatprep.subr.mxu1 %v5045_v58  ;;  %v5028_v57 = vld [vmem:[%s11475_s2 + $0x188] sm:$0xff] }
 0xf34   :  { %7586 = vmatprep.subr.mxu0 %v11637_v0  ;;  %7327 = vmatpush3.msra.mxu1 %v5029_v26  ;;  %v5038_v26 = vld [vmem:[%s11475_s2 + $0x1d8] sm:$0xff] }
 0xf35   :  { %7587 = vmatpush3.msra.mxu0 %v4810_v25  ;;  %v5058_v25 = vld [vmem:[%s11475_s2 + $0x278] sm:$0xff]  ;;  %7328 = vmatprep.subr.mxu1 %v5044_v41 }
 0xf36   :  { %7588 = vmatprep.subr.mxu0 %v11637_v0  ;;  %7329 = vmatpush3.msra.mxu1 %v5028_v57  ;;  %v5022_v41 = vld [vmem:[%s11475_s2 + $0x158] sm:$0xff]  ;;  %v5016_v57 = vpop.permute.xlu0 %5015 }
 0xf37   :  { %7589 = vmatpush3.msra.mxu0 %v4809_v40  ;;  %v5043_v40 = vld [vmem:[%s11475_s2 + $0x200] sm:$0xff] }
 0xf38   :  { %5236 = vmatprep.subr.mxu0 %v11637_v0  ;;  %7330 = vmatprep.subr.mxu1 %v5043_v40 }
 0xfe4   :  { %v7300_v56 = vpop.f32.mrf.mxu1 }
 0xfe6   :  { %v7301_v59 = vpop.f32.mrf.mxu1 }
 0xfe7   :  { %v7302_v31 = vadd.f32 %v7301_v59, %v7300_v56  ;;  %v5027_v56 = vld [vmem:[%s11475_s2 + $0x180] sm:$0xff]  ;;  %v5057_v59 = vld [vmem:[%s11475_s2 + $0x270] sm:$0xff] }
 0xfe8   :  { %v4781_v24 = vpop.f32.mrf.mxu0  ;;  %7331 = vmatpush3.msra.mxu1 %v5027_v56  ;;  %v5037_v56 = vld [vmem:[%s11475_s2 + $0x1d0] sm:$0xff] }
 0xfe9   :  { %v4782_v55 = vadd.f32 %v7302_v31, %v4781_v24  ;;  %v5042_v31 = vld [vmem:[%s11475_s2 + $0x1f8] sm:$0xff] }
 0xfea   :  { %v4783_v39 = vpop.f32.mrf.mxu0  ;;  %v5026_v24 = vld [vmem:[%s11475_s2 + $0x178] sm:$0xff]  ;;  %7332 = vmatprep.subr.mxu1 %v5042_v31  ;;  %v5021_v31 = vld [vmem:[%s11475_s2 + $0x150] sm:$0xff] }
 0xfeb   :  { %v4785_v6 = vmax.f32 %v4782_v55, 0.0  ;;  %v5056_v55 = vld [vmem:[%s11475_s2 + $0x268] sm:$0xff]  ;;  %v5041_v39 = vld [vmem:[%s11475_s2 + $0x1f0] sm:$0xff]  ;;  %7333 = vmatpush3.msra.mxu1 %v5026_v24 }
 0xfec   :  { %7334 = vmatprep.subr.mxu1 %v5041_v39 }
 0xfed   :  { %v4786_v3 = vsel %vm1455_vm13, %v4785_v6, 0.0  ;;  %v4794_v17 = vmul.f32 %v4785_v6, %v4785_v6 }
 0xfee   :  { %v4787_v12 = vrot.slane %v4786_v3, 4 }
 0xfef   :  { %v4795_v34 = vsel %vm1455_vm13, %v4794_v17, 0.0  ;;  %v5040_v17 = vld [vmem:[%s11475_s2 + $0x1e8] sm:$0xff] }
 0xff0   :  { %v4788_v2 = vadd.f32 %v4787_v12, %v4786_v3  ;;  %v4796_v48 = vrot.slane %v4795_v34, 4  ;;  %v5055_v3 = vld [vmem:[%s11475_s2 + $0x260] sm:$0xff]  ;;  %v5024_v12 = vld [vmem:[%s11475_s2 + $0x168] sm:$0xff] }
 0xff2   :  { %v4789_v19 = vrot.slane %v4788_v2, 2  ;;  %v4797_v20 = vadd.f32 %v4796_v48, %v4795_v34  ;;  %v5054_v34 = vld [vmem:[%s11475_s2 + $0x258] sm:$0xff]  ;;  %v5023_v48 = vld [vmem:[%s11475_s2 + $0x160] sm:$0xff] }
 0xff4   :  { %v4790_v50 = vadd.f32 %v4789_v19, %v4788_v2  ;;  %v4798_v14 = vrot.slane %v4797_v20, 2  ;;  %v5039_v2 = vld [vmem:[%s11475_s2 + $0x1e0] sm:$0xff]  ;;  %v5053_v19 = vld [vmem:[%s11475_s2 + $0x250] sm:$0xff] }
 0xff6   :  { %v4791_v51 = vrot.slane %v4790_v50, 1  ;;  %v4799_v37 = vadd.f32 %v4798_v14, %v4797_v20  ;;  %v5076_v20 = vld [vmem:[%s11475_s2 + $0x308] sm:$0xff]  ;;  %v5074_v14 = vld [vmem:[%s11475_s2 + $0x2f8] sm:$0xff] }
 0xff8   :  { %v4792_v18 = vadd.f32 %v4791_v51, %v4790_v50  ;;  %v4800_v49 = vrot.slane %v4799_v37, 1  ;;  %v5075_v50 = vld [vmem:[%s11475_s2 + $0x300] sm:$0xff]  ;;  %v5073_v51 = vld [vmem:[%s11475_s2 + $0x2f0] sm:$0xff] }
 0xffa   :  { %v4793_v21 = vmul.f32 0.125, %v4792_v18  ;;  %v4801_v22 = vadd.f32 %v4800_v49, %v4799_v37  ;;  %v5072_v37 = vld [vmem:[%s11475_s2 + $0x2e8] sm:$0xff]  ;;  %v6872_v18 = vld [vmem:[%s11475_s2 + $0x430] ss:$0 sm:$0xff] }
 0xffc   :  { %v4802_v32 = vmul.f32 0.125, %v4801_v22  ;;  %v4803_v1 = vmul.f32 %v4793_v21, %v4793_v21  ;;  %v4805_v23 = vsub.f32 %v4785_v6, %v4793_v21  ;;  %v5025_v6 = vld [vmem:[%s11475_s2 + $0x170] sm:$0xff] }
 0xffd   :  { %7335 = vmatpush3.msra.mxu1 %v5025_v6 }
 0xffe   :  { %v4804_v35 = vsub.f32 %v4802_v32, %v4803_v1  ;;  %7336 = vmatprep.subr.mxu1 %v5040_v17 }
 0xfff   :  { %7337 = vmatpush3.msra.mxu1 %v5024_v12 }
0x1000   :  { %v4806_v36 = vadd.f32 1e-05, %v4804_v35  ;;  %7338 = vmatprep.subr.mxu1 %v5039_v2 }
0x1001   :  { %7339 = vmatpush3.msra.mxu1 %v5023_v48 }
0x1002   :  { %7770 = vrsqrt.f32 %v4806_v36  ;;  %7340 = vmatprep.subr.mxu1 %v5038_v26  ;;  %v5101_v26 = vld [vmem:[%s11475_s2 + $0x3d0] sm:$0xff] }
0x1003   :  { %7341 = vmatpush3.msra.mxu1 %v5022_v41  ;;  %v5099_v41 = vld [vmem:[%s11475_s2 + $0x3c0] sm:$0xff] }
0x1004   :  { %7342 = vmatprep.subr.mxu1 %v5037_v56 }
0x1005   :  { %7343 = vmatpush3.msra.mxu1 %v5021_v31 }
0x1006   :  { %5419 = vmatprep.subr.mxu1 %v11637_v0 }
0x100f   :  { %v7771_v53 = vpop.eup %7770 }
0x1010   :  { %v4808_v38 = vmul.f32 %v7771_v53, %v4805_v23 }
0x1012   :  { %7591 = vmatmul.mubr.msk.f32.vlgmr.msra.gmra.mxu0 %vm1455_vm13, %v4808_v38 }
0x1013   :  { %5237 = vmatpush1.msra.mxu0 %v5068_v54 }
0x1014   :  { %5238 = vmatprep.subr.mxu0 %v11637_v0 }
0x1015   :  { %5239 = vmatpush1.msra.mxu0 %v5067_v46 }
0x1016   :  { %5240 = vmatprep.subr.mxu0 %v11637_v0 }
0x1017   :  { %5241 = vmatpush1.msra.mxu0 %v5066_v15 }
0x1018   :  { %5242 = vmatprep.subr.mxu0 %v11637_v0 }
0x1019   :  { %5243 = vmatpush1.msra.mxu0 %v5065_v13 }
0x101a   :  { %5244 = vmatprep.subr.mxu0 %v11637_v0 }
0x101b   :  { %5245 = vmatpush1.msra.mxu0 %v5064_v11 }
0x101c   :  { %5246 = vmatprep.subr.mxu0 %v11637_v0 }
0x101d   :  { %5247 = vmatpush1.msra.mxu0 %v5063_v4 }
0x101e   :  { %5248 = vmatprep.subr.mxu0 %v11637_v0 }
0x101f   :  { %5249 = vmatpush1.msra.mxu0 %v5062_v9 }
0x1020   :  { %5250 = vmatprep.subr.mxu0 %v11637_v0 }
0x1021   :  { %5251 = vmatpush1.msra.mxu0 %v5061_v5 }
0x1022   :  { %5252 = vmatprep.subr.mxu0 %v11637_v0 }
0x1023   :  { %5253 = vmatpush1.msra.mxu0 %v5060_v42 }
0x1024   :  { %5254 = vmatprep.subr.mxu0 %v11637_v0 }
0x1025   :  { %5255 = vmatpush1.msra.mxu0 %v5059_v7  ;;  %v5071_v7 = vld [vmem:[%s11475_s2 + $0x2e0] sm:$0xff] }
0x1026   :  { %5256 = vmatprep.subr.mxu0 %v11637_v0 }
0x1027   :  { %5257 = vmatpush1.msra.mxu0 %v5058_v25 }
0x1028   :  { %5258 = vmatprep.subr.mxu0 %v11637_v0 }
0x1029   :  { %5259 = vmatpush1.msra.mxu0 %v5057_v59  ;;  %v5070_v59 = vld [vmem:[%s11475_s2 + $0x2d8] sm:$0xff] }
0x102a   :  { %5260 = vmatprep.subr.mxu0 %v11637_v0 }
0x102b   :  { %5261 = vmatpush1.msra.mxu0 %v5056_v55  ;;  %v5069_v55 = vld [vmem:[%s11475_s2 + $0x2d0] sm:$0xff] }
0x102c   :  { %5262 = vmatprep.subr.mxu0 %v11637_v0 }
0x102d   :  { %5263 = vmatpush1.msra.mxu0 %v5055_v3 }
0x102e   :  { %5264 = vmatprep.subr.mxu0 %v11637_v0 }
0x102f   :  { %5265 = vmatpush1.msra.mxu0 %v5054_v34 }
0x1030   :  { %5266 = vmatprep.subr.mxu0 %v11637_v0 }
0x1031   :  { %5267 = vmatpush1.msra.mxu0 %v5053_v19 }
0x1032   :  { %5284 = vmatprep.subr.mxu0 %v11637_v0 }
0x1033   :  { %5285 = vmatpush2.msra.mxu0 %v5076_v20 }
0x1034   :  { %5286 = vmatprep.subr.mxu0 %v11637_v0 }
0x1035   :  { %5287 = vmatpush2.msra.mxu0 %v5075_v50 }
0x1036   :  { %5288 = vmatprep.subr.mxu0 %v11637_v0 }
0x1037   :  { %5289 = vmatpush2.msra.mxu0 %v5074_v14 }
0x1038   :  { %5290 = vmatprep.subr.mxu0 %v11637_v0 }
0x1039   :  { %5291 = vmatpush2.msra.mxu0 %v5073_v51 }
0x103a   :  { %5292 = vmatprep.subr.mxu0 %v11637_v0 }
0x103b   :  { %5293 = vmatpush2.msra.mxu0 %v5072_v37 }
0x103c   :  { %5294 = vmatprep.subr.mxu0 %v11637_v0 }
0x103d   :  { %5295 = vmatpush2.msra.mxu0 %v5071_v7  ;;  %v5100_v7 = vld [vmem:[%s11475_s2 + $0x3c8] sm:$0xff] }
0x103e   :  { %5296 = vmatprep.subr.mxu0 %v11637_v0 }
0x103f   :  { %5297 = vmatpush2.msra.mxu0 %v5070_v59 }
0x1040   :  { %5298 = vmatprep.subr.mxu0 %v11637_v0 }
0x1041   :  { %5299 = vmatpush2.msra.mxu0 %v5069_v55 }
0x10d2   :  { %v4891_v49 = vpop.f32.mrf.mxu0 }
0x10d3   :  { %v4892_v21 = vadd.f32 %v6872_v18, %v4891_v49 }
0x10d4   :  { %v7592_v22 = vpop.f32.mrf.mxu0 }
0x10d5   :  { %v4896_v32 = vcombine.high %v4892_v21, %v4892_v21  ;;  %v4903_v1 = vrot.slane %v4892_v21, %v10476_v52 }
0x10d7   :  { %v4910_v35 = vrot.slane %v4896_v32, %v10476_v52  ;;  %v4911_v36 = vcombine.high %v4903_v1, %v4903_v1  ;;  %v4919_v23 = vrot.slane %v4903_v1, %v10476_v52 }
0x10d9   :  { %v4912_v53 = vcombine.high %v4910_v35, %v4910_v35  ;;  %v4926_v38 = vrot.slane %v4910_v35, %v10476_v52  ;;  %v4933_v54 = vrot.slane %v4911_v36, %v10476_v52  ;;  %v4941_v46 = vcombine.high %v4919_v23, %v4919_v23 }
0x10da   :  { %v4948_v61 = vrot.slane %v4919_v23, %v9754_v29 }
0x10db   :  { %v4940_v15 = vrot.slane %v4912_v53, %v10476_v52  ;;  %v4943_v63 = vcombine.high %v4933_v54, %v4933_v54  ;;  %v4952_v16 = vrot.slane %v4933_v54, %v9754_v29  ;;  %v4956_v13 = vrot.slane %v4941_v46, %v9754_v29 }
0x10dc   :  { %v4942_v62 = vcombine.high %v4926_v38, %v4926_v38  ;;  %v4964_v44 = vrot.slane %v4926_v38, %v9754_v29 }
0x10dd   :  { %v4960_v33 = vrot.slane %v4943_v63, %v9754_v29  ;;  %v4977_v11 = vcombine.low %v4948_v61, %v4952_v16  ;;  %v4944_v30 = vcombine.high %v4940_v15, %v4940_v15  ;;  %v4968_v8 = vrot.slane %v4940_v15, %v9754_v29  ;;  %v5092_v16 = vld [vmem:[%s11475_s2 + $0x388] sm:$0xff] }
0x10de   :  { %v4972_v10 = vrot.slane %v4942_v62, %v9754_v29  ;;  %v5090_v62 = vld [vmem:[%s11475_s2 + $0x378] sm:$0xff] }
0x10df   :  { %v4978_v4 = vcombine.low %v4956_v13, %v4960_v33  ;;  %v4976_v28 = vrot.slane %v4944_v30, %v9754_v29  ;;  %v4994_v9 = vcombine.low %v4964_v44, %v4968_v8  ;;  %v4985_v60 = vrot.slane %v4977_v11, %v9723_v45  ;;  %v5091_v13 = vld [vmem:[%s11475_s2 + $0x380] sm:$0xff]  ;;  %v5089_v44 = vld [vmem:[%s11475_s2 + $0x370] sm:$0xff]  ;;  %v5088_v33 = vld [vmem:[%s11475_s2 + $0x368] sm:$0xff] }
0x10e0   :  { %v5087_v11 = vld [vmem:[%s11475_s2 + $0x360] sm:$0xff]  ;;  %v5086_v30 = vld [vmem:[%s11475_s2 + $0x358] sm:$0xff]  ;;  %v5085_v8 = vld [vmem:[%s11475_s2 + $0x350] sm:$0xff] }
0x10e1   :  { %v4992_v43 = vrot.slane %v4978_v4, %v9723_v45  ;;  %v4995_v5 = vcombine.low %v4972_v10, %v4976_v28  ;;  %v5002_v42 = vrot.slane %v4994_v9, %v9723_v45  ;;  %v5084_v4 = vld [vmem:[%s11475_s2 + $0x348] sm:$0xff]  ;;  %v5083_v10 = vld [vmem:[%s11475_s2 + $0x340] sm:$0xff]  ;;  %v5082_v28 = vld [vmem:[%s11475_s2 + $0x338] sm:$0xff] }
0x10e2   :  { %v5081_v9 = vld [vmem:[%s11475_s2 + $0x330] sm:$0xff] }
0x10e3   :  { %v4993_v27 = vcombine.low %v4985_v60, %v4992_v43  ;;  %v5009_v58 = vrot.slane %v4995_v5, %v9723_v45  ;;  %v5080_v60 = vld [vmem:[%s11475_s2 + $0x328] sm:$0xff]  ;;  %v5079_v43 = vld [vmem:[%s11475_s2 + $0x320] sm:$0xff]  ;;  %v5078_v5 = vld [vmem:[%s11475_s2 + $0x318] sm:$0xff] }
0x10e5   :  { %v5019_v25 = vsel %vm1445_vm11, %v4993_v27, %v5014_v47  ;;  %v5010_v40 = vcombine.low %v5002_v42, %v5009_v58  ;;  %v5077_v47 = vld [vmem:[%s11475_s2 + $0x310] sm:$0xff]  ;;  %v5104_v27 = vld [vmem:[%s11475_s2 + $0x3e8] sm:$0xff]  ;;  %v5103_v42 = vld [vmem:[%s11475_s2 + $0x3e0] sm:$0xff] }
0x10e6   :  { %5109 = vst.msk [vmem:[#allocation2 + $0x3] sm:$0xff] %vm1455_vm13, %v5019_v25  ;;  %v5102_v58 = vld [vmem:[%s11475_s2 + $0x3d8] sm:$0xff] }
0x10e7   :  { %v5020_v24 = vsel %vm1445_vm11, %v5010_v40, %v5016_v57 }
0x10e8   :  { %5110 = vst.msk [vmem:[#allocation2 + $0x1b] sm:$0xff] %vm1455_vm13, %v5020_v24 }
0x10ed   :  { %v5123_v39 = vld [vmem:[#allocation2 + $0x6] sm:$0xff] }
0x10ee   :  { %v5113_v6 = vld [vmem:[#allocation2 + $0x1] sm:$0xff]  ;;  %6874 = vmatprep.mubr.msk.f32.mxu0 %vm1455_vm13, %v5123_v39 }
0x10ef   :  { %v5117_v3 = vld [vmem:[#allocation2 + $0x3] sm:$0xff]  ;;  %v5114_v2 = vld [vmem:[#allocation2 + $0x19] sm:$0xff] }
0x10f0   :  { %v7711_v17 = vpack.i.bf16 %v5113_v6, %v5117_v3  ;;  %v5121_v12 = vld [vmem:[#allocation2 + $0x5] sm:$0xff]  ;;  %v5118_v48 = vld [vmem:[#allocation2 + $0x1b] sm:$0xff] }
0x10f1   :  { %v5119_v34 = vld [vmem:[#allocation2 + $0x4] sm:$0xff]  ;;  %v7716_v20 = vpack.i.bf16 %v5114_v2, %v5118_v48  ;;  %v5120_v51 = vld [vmem:[#allocation2 + $0x1c] sm:$0xff] }
0x10f2   :  { %5345 = vst.msk [vmem:[#allocation2 + $0xb] sm:$0x7] %vm2106_vm6, %v11637_v0  ;;  %v5115_v19 = vld [vmem:[#allocation2 + $0x2] sm:$0xff]  ;;  %7712 = vrot.lane.b32.xlu1 %v7711_v17, %s7794_s12  ;;  %v5116_v37 = vld [vmem:[#allocation2 + $0x1a] sm:$0xff] }
0x10f3   :  { %v5122_v50 = vld [vmem:[#allocation2 + $0x1d] sm:$0xff]  ;;  %7717 = vrot.lane.b32.xlu0 %v7716_v20, %s7794_s12 }
0x10f4   :  { %v5111_v14 = vld [vmem:[#allocation2] sm:$0xff]  ;;  %v5112_v49 = vld [vmem:[#allocation2 + $0x18] sm:$0xff] }
0x10f5   :  { %5343 = vst.msk [vmem:[#allocation2] sm:$0x7] %vm2106_vm6, %v11637_v0  ;;  %v5124_v18 = vld [vmem:[#allocation2 + $0x1e] sm:$0xff]  ;;  %5344 = vst.msk [vmem:[#allocation2 + $0x18] sm:$0x7] %vm2106_vm6, %v11637_v0 }
0x10f6   :  { %5346 = vst.msk [vmem:[#allocation2 + $0x23] sm:$0x7] %vm2106_vm6, %v11637_v0  ;;  %5143 = vrot.lane.b32.xlu1 %v5121_v12, %s7794_s12 }
0x10f7   :  { %5145 = vrot.lane.b32.xlu0 %v5122_v50, %s7794_s12 }
0x1164   :  { %v7713_v21 = vpop.permute.xlu1 %7712 }
0x1165   :  { %v7715_v22 = vunpack.i.h.bf16 %v7713_v21  ;;  %v7714_v32 = vunpack.i.l.bf16 %v7713_v21  ;;  %v7718_v1 = vpop.permute.xlu0 %7717 }
0x1166   :  { %v7719_v35 = vunpack.i.l.bf16 %v7718_v1  ;;  %v7720_v53 = vunpack.i.h.bf16 %v7718_v1 }
0x1167   :  { %v5151_v36 = vsel %vm1455_vm13, %v5115_v19, %v7714_v32  ;;  %v5149_v23 = vsel %vm1455_vm13, %v5111_v14, %v7715_v22 }
0x1168   :  { %v5144_v38 = vpop.permute.xlu1 %5143  ;;  %5225 = vmatprep.mubr.f32.mxu1 %v5151_v36  ;;  %v5152_v46 = vsel %vm1455_vm13, %v5116_v37, %v7719_v35  ;;  %v5150_v61 = vsel %vm1455_vm13, %v5112_v49, %v7720_v53 }
0x1169   :  { %v5153_v54 = vsel %vm1455_vm13, %v5119_v34, %v5144_v38  ;;  %5226 = vmatmul.mubr.f32.vlgmr.msra.gmra.mxu1 %v5149_v23  ;;  %v5146_v15 = vpop.permute.xlu0 %5145 }
0x116a   :  { %5301 = vmatmul.mubr.f32.vlgmr.msra.gmra.mxu0 %v5153_v54  ;;  %5230 = vmatprep.mubr.f32.mxu1 %v5152_v46  ;;  %v5154_v63 = vsel %vm1455_vm13, %v5120_v51, %v5146_v15 }
0x116b   :  { %6875 = vmatprep.mubr.msk.f32.mxu0 %vm1455_vm13, %v5124_v18  ;;  %5420 = vmatpush1.msra.mxu1 %v5092_v16 }
0x116c   :  { %5421 = vmatprep.subr.mxu1 %v11637_v0 }
0x116d   :  { %5231 = vmatmul.mubr.f32.gmra.mxu1 %v5150_v61 }
0x116e   :  { %5306 = vmatmul.mubr.f32.gmra.mxu0 %v5154_v63  ;;  %5422 = vmatpush1.msra.mxu1 %v5091_v13  ;;  %v5098_v13 = vld [vmem:[%s11475_s2 + $0x3b8] sm:$0xff] }
0x116f   :  { %5423 = vmatprep.subr.mxu1 %v11637_v0 }
0x1170   :  { %5424 = vmatpush1.msra.mxu1 %v5090_v62 }
0x1171   :  { %5425 = vmatprep.subr.mxu1 %v11637_v0 }
0x1172   :  { %5426 = vmatpush1.msra.mxu1 %v5089_v44 }
0x1173   :  { %5427 = vmatprep.subr.mxu1 %v11637_v0 }
0x1174   :  { %5428 = vmatpush1.msra.mxu1 %v5088_v33 }
0x1175   :  { %5429 = vmatprep.subr.mxu1 %v11637_v0 }
0x1176   :  { %5430 = vmatpush1.msra.mxu1 %v5087_v11  ;;  %v5097_v11 = vld [vmem:[%s11475_s2 + $0x3b0] sm:$0xff] }
0x1177   :  { %5431 = vmatprep.subr.mxu1 %v11637_v0 }
0x1178   :  { %5432 = vmatpush1.msra.mxu1 %v5086_v30 }
0x1179   :  { %5433 = vmatprep.subr.mxu1 %v11637_v0 }
0x117a   :  { %5434 = vmatpush1.msra.mxu1 %v5085_v8 }
0x117b   :  { %5435 = vmatprep.subr.mxu1 %v11637_v0 }
0x117c   :  { %5436 = vmatpush1.msra.mxu1 %v5084_v4  ;;  %v5096_v4 = vld [vmem:[%s11475_s2 + $0x3a8] sm:$0xff] }
0x117d   :  { %5437 = vmatprep.subr.mxu1 %v11637_v0 }
0x117e   :  { %5438 = vmatpush1.msra.mxu1 %v5083_v10  ;;  %v5095_v10 = vld [vmem:[%s11475_s2 + $0x3a0] sm:$0xff] }
0x117f   :  { %5439 = vmatprep.subr.mxu1 %v11637_v0 }
0x1180   :  { %5440 = vmatpush1.msra.mxu1 %v5082_v28  ;;  %v5094_v28 = vld [vmem:[%s11475_s2 + $0x398] sm:$0xff] }
0x1181   :  { %5441 = vmatprep.subr.mxu1 %v11637_v0 }
0x1182   :  { %5442 = vmatpush1.msra.mxu1 %v5081_v9  ;;  %v5093_v9 = vld [vmem:[%s11475_s2 + $0x390] sm:$0xff] }
0x1183   :  { %5443 = vmatprep.subr.mxu1 %v11637_v0 }
0x1184   :  { %5444 = vmatpush1.msra.mxu1 %v5080_v60 }
0x1185   :  { %5445 = vmatprep.subr.mxu1 %v11637_v0 }
0x1186   :  { %5446 = vmatpush1.msra.mxu1 %v5079_v43 }
0x1187   :  { %5447 = vmatprep.subr.mxu1 %v11637_v0 }
0x1188   :  { %5448 = vmatpush1.msra.mxu1 %v5078_v5 }
0x1189   :  { %5449 = vmatprep.subr.mxu1 %v11637_v0 }
0x118a   :  { %5450 = vmatpush1.msra.mxu1 %v5077_v47 }
0x118b   :  { %5459 = vmatprep.subr.mxu1 %v11637_v0 }
0x118c   :  { %5460 = vmatpush2.msra.mxu1 %v5104_v27 }
0x118d   :  { %5461 = vmatprep.subr.mxu1 %v11637_v0 }
0x118e   :  { %5462 = vmatpush2.msra.mxu1 %v5103_v42 }
0x118f   :  { %5463 = vmatprep.subr.mxu1 %v11637_v0 }
0x1190   :  { %5464 = vmatpush2.msra.mxu1 %v5102_v58 }
0x1191   :  { %5465 = vmatprep.subr.mxu1 %v11637_v0 }
0x1192   :  { %5466 = vmatpush2.msra.mxu1 %v5101_v26 }
0x1193   :  { %5467 = vmatprep.subr.mxu1 %v11637_v0 }
0x1194   :  { %5468 = vmatpush2.msra.mxu1 %v5100_v7 }
0x1195   :  { %5469 = vmatprep.subr.mxu1 %v11637_v0 }
0x1196   :  { %5470 = vmatpush2.msra.mxu1 %v5099_v41 }
0x1197   :  { %5471 = vmatprep.subr.mxu1 %v11637_v0 }
0x1198   :  { %5472 = vmatpush2.msra.mxu1 %v5098_v13 }
0x1199   :  { %5473 = vmatprep.subr.mxu1 %v11637_v0 }
0x119a   :  { %5474 = vmatpush2.msra.mxu1 %v5097_v11 }
0x119b   :  { %5475 = vmatprep.subr.mxu1 %v11637_v0 }
0x119c   :  { %5476 = vmatpush2.msra.mxu1 %v5096_v4 }
0x119d   :  { %5477 = vmatprep.subr.mxu1 %v11637_v0 }
0x119e   :  { %5478 = vmatpush2.msra.mxu1 %v5095_v10 }
0x119f   :  { %5479 = vmatprep.subr.mxu1 %v11637_v0 }
0x11a0   :  { %5480 = vmatpush2.msra.mxu1 %v5094_v28 }
0x11a1   :  { %5481 = vmatprep.subr.mxu1 %v11637_v0 }
0x11a2   :  { %5482 = vmatpush2.msra.mxu1 %v5093_v9 }
0x1229   :  { %v7344_v57 = vpop.f32.mrf.mxu1 }
0x122a   :  { %v5302_v25 = vpop.f32.mrf.mxu0 }
0x122b   :  { %v7345_v40 = vpop.f32.mrf.mxu1 }
0x122c   :  { %v7346_v56 = vadd.f32 %v7345_v40, %v7344_v57  ;;  %v5304_v59 = vpop.f32.mrf.mxu0 }
0x122d   :  { %v7347_v31 = vpop.f32.mrf.mxu1  ;;  %v11795_v59 = vld [vmem:[#allocation163_spill] sm:$0xff] }
0x122e   :  { %v5303_v24 = vadd.f32 %v7346_v56, %v5302_v25  ;;  %v5307_v55 = vpop.f32.mrf.mxu0 }
0x122f   :  { %v7348_v39 = vpop.f32.mrf.mxu1 }
0x1230   :  { %v5311_v6 = vmax.f32 %v5303_v24, 0.0  ;;  %v7349_v3 = vadd.f32 %v7348_v39, %v7347_v31  ;;  %v5309_v17 = vpop.f32.mrf.mxu0  ;;  %v11796_v31 = vld [vmem:[#allocation162_spill] sm:$0xff]  ;;  %v11797_v24 = vld [vmem:[#allocation165_spill] sm:$0xff] }
0x1232   :  { %v5308_v12 = vadd.f32 %v7349_v3, %v5307_v55  ;;  %v5323_v34 = vmul.f32 %v5311_v6, %v5311_v6  ;;  %v5313_v48 = vsel %vm1445_vm11, %v5311_v6, 0.0  ;;  %v11798_v55 = vld [vmem:[#allocation164_spill] sm:$0xff] }
0x1234   :  { %v5312_v2 = vmax.f32 %v5308_v12, 0.0  ;;  %v5325_v14 = vsel %vm1445_vm11, %v5323_v34, 0.0 }
0x1236   :  { %v5314_v19 = vsel %vm1445_vm11, %v5312_v2, 0.0  ;;  %v5324_v20 = vmul.f32 %v5312_v2, %v5312_v2 }
0x1237   :  { %v5315_v50 = vadd.f32 %v5314_v19, %v5313_v48 }
0x1238   :  { %v5326_v51 = vsel %vm1445_vm11, %v5324_v20, 0.0 }
0x1239   :  { %v5316_v37 = vrot.slane %v5315_v50, 4  ;;  %v5327_v18 = vadd.f32 %v5326_v51, %v5325_v14 }
0x123b   :  { %v5317_v49 = vadd.f32 %v5316_v37, %v5315_v50  ;;  %v5328_v21 = vrot.slane %v5327_v18, 4 }
0x123d   :  { %v5318_v22 = vrot.slane %v5317_v49, 2  ;;  %v5329_v32 = vadd.f32 %v5328_v21, %v5327_v18 }
0x123f   :  { %v5319_v1 = vadd.f32 %v5318_v22, %v5317_v49  ;;  %v5330_v35 = vrot.slane %v5329_v32, 2 }
0x1241   :  { %v5320_v36 = vrot.slane %v5319_v1, 1  ;;  %v5331_v23 = vadd.f32 %v5330_v35, %v5329_v32 }
0x1243   :  { %v5321_v53 = vadd.f32 %v5320_v36, %v5319_v1  ;;  %v5332_v38 = vrot.slane %v5331_v23, 1 }
0x1245   :  { %v5322_v54 = vmul.f32 0.0625, %v5321_v53  ;;  %v5333_v46 = vadd.f32 %v5332_v38, %v5331_v23  ;;  %v5529_v38 = vld [vmem:[%s11474_s1 + $0x1ed] sm:$0xff] }
0x1246   :  { %7593 = vmatprep.subr.mxu0 %v5529_v38 }
0x1247   :  { %v5334_v15 = vmul.f32 0.0625, %v5333_v46  ;;  %v5335_v61 = vmul.f32 %v5322_v54, %v5322_v54  ;;  %v5337_v62 = vsub.f32 %v5311_v6, %v5322_v54  ;;  %v5338_v44 = vsub.f32 %v5312_v2, %v5322_v54  ;;  %7594 = vmatpush3.msra.mxu0 %v5529_v38  ;;  %v5528_v54 = vld [vmem:[%s11474_s1 + $0x1e5] sm:$0xff]  ;;  %v5527_v46 = vld [vmem:[%s11474_s1 + $0x1dd] sm:$0xff]  ;;  %v6878_v38 = vld [vmem:[%s11474_s1 + $0x1f5] ss:$0 sm:$0xff] }
0x1248   :  { %7595 = vmatprep.subr.mxu0 %v5528_v54 }
0x1249   :  { %v5336_v63 = vsub.f32 %v5334_v15, %v5335_v61  ;;  %7596 = vmatpush3.msra.mxu0 %v5528_v54  ;;  %v5526_v15 = vld [vmem:[%s11474_s1 + $0x1d5] sm:$0xff] }
0x124a   :  { %7597 = vmatprep.subr.mxu0 %v5527_v46 }
0x124b   :  { %v5339_v16 = vadd.f32 1e-05, %v5336_v63  ;;  %7598 = vmatpush3.msra.mxu0 %v5527_v46 }
0x124c   :  { %7599 = vmatprep.subr.mxu0 %v5526_v15 }
0x124d   :  { %7772 = vrsqrt.f32 %v5339_v16  ;;  %7600 = vmatpush3.msra.mxu0 %v5526_v15 }
0x124e   :  { %6058 = vmatprep.subr.mxu0 %v11637_v0 }
0x125a   :  { %v7773_v33 = vpop.eup %7772 }
0x125b   :  { %v5341_v30 = vmul.f32 %v7773_v33, %v5337_v62  ;;  %v5342_v8 = vmul.f32 %v7773_v33, %v5338_v44 }
0x125d   :  { %5347 = vst.msk [vmem:[#allocation2 + $0x3] sm:$0xff] %vm1445_vm11, %v5341_v30  ;;  %5348 = vst.msk [vmem:[#allocation2 + $0x1b] sm:$0xff] %vm1445_vm11, %v5342_v8 }
0x1264   :  { %v5359_v60 = vld [vmem:[#allocation2 + $0x5] sm:$0xff]  ;;  %v5352_v5 = vld [vmem:[#allocation2 + $0x19] sm:$0xff] }
0x1265   :  { %v5351_v43 = vld [vmem:[#allocation2 + $0x1] sm:$0xff]  ;;  %5389 = vrot.lane.b32.xlu0 %v5359_v60, %s7792_s30  ;;  %v5350_v7 = vld [vmem:[#allocation2 + $0x18] sm:$0xff] }
0x1266   :  { %v7721_v47 = vpack.i.bf16 %v5352_v5, %v5351_v43  ;;  %v5353_v27 = vld [vmem:[#allocation2 + $0x2] sm:$0xff]  ;;  %v5354_v42 = vld [vmem:[#allocation2 + $0x1a] sm:$0xff] }
0x1267   :  { %v5361_v58 = vld [vmem:[#allocation2 + $0x6] sm:$0xff]  ;;  %v7726_v41 = vpack.i.bf16 %v5354_v42, %v5353_v27  ;;  %5911 = vst.msk [vmem:[#allocation2 + $0x18] sm:$0x7] %vm2106_vm6, %v11637_v0  ;;  %v5360_v57 = vld [vmem:[#allocation2 + $0x1d] sm:$0xff] }
0x1268   :  { %7722 = vrot.lane.b32.xlu1 %v7721_v47, %s7792_s30  ;;  %v5349_v26 = vld [vmem:[#allocation2] sm:$0xff] }
0x1269   :  { %5397 = vrot.lane.b32.xlu0 %v5361_v58, %s7794_s12  ;;  %5910 = vst.msk [vmem:[#allocation2] sm:$0x7] %vm2106_vm6, %v11637_v0  ;;  %v5355_v25 = vld [vmem:[#allocation2 + $0x3] sm:$0xff]  ;;  %v5356_v40 = vld [vmem:[#allocation2 + $0x1b] sm:$0xff] }
0x126a   :  { %v5362_v56 = vld [vmem:[#allocation2 + $0x1e] sm:$0xff] }
0x126b   :  { %v5357_v3 = vld [vmem:[#allocation2 + $0x4] sm:$0xff]  ;;  %v5358_v21 = vld [vmem:[#allocation2 + $0x1c] sm:$0xff] }
0x126c   :  { %7727 = vrot.lane.b32.xlu1 %v7726_v41, %s7794_s12 }
0x126d   :  { %5391 = vrot.lane.b32.xlu0 %v5360_v57, %s7792_s30 }
0x1270   :  { %5381 = vrot.lane.b32.xlu1 %v5355_v25, %s7796_s20 }
0x1271   :  { %5383 = vrot.lane.b32.xlu0 %v5356_v40, %s7796_s20 }
0x1274   :  { %5399 = vrot.lane.b32.xlu1 %v5362_v56, %s7794_s12 }
0x1275   :  { %5854 = vrot.lane.b32.xlu0 %v11795_v59, %s7791_s29 }
0x1278   :  { %5852 = vrot.lane.b32.xlu1 %v11796_v31, %s7791_s29 }
0x1279   :  { %5858 = vrot.lane.b32.xlu0 %v11797_v24, %s7791_s29 }
0x127c   :  { %5856 = vrot.lane.b32.xlu1 %v11798_v55, %s7791_s29 }
0x12d7   :  { %v5390_v39 = vpop.permute.xlu0 %5389 }
0x12d8   :  { %v5409_v17 = vsel %vm1445_vm11, %v5357_v3, %v5390_v39 }
0x12da   :  { %v7723_v6 = vpop.permute.xlu1 %7722 }
0x12db   :  { %v7724_v12 = vunpack.i.l.bf16 %v7723_v6  ;;  %v5398_v34 = vpop.permute.xlu0 %5397  ;;  %v7725_v51 = vunpack.i.h.bf16 %v7723_v6 }
0x12dc   :  { %v5411_v2 = vsel %vm1455_vm13, %v5409_v17, %v5398_v34  ;;  %v5882_v34 = vld [vmem:[%s11474_s1 + $0xf5] sm:$0xff] }
0x12dd   :  { %6876 = vmatprep.mubr.msk.f32.mxu1 %vm1465_vm15, %v5411_v2  ;;  %v5403_v50 = vsel %vm1445_vm11, %v5349_v26, %v7724_v12  ;;  %v5404_v1 = vsel %vm1445_vm11, %v5350_v7, %v7725_v51  ;;  %v5883_v12 = vld [vmem:[%s11474_s1 + $0xfd] sm:$0xff]  ;;  %v5881_v2 = vld [vmem:[%s11474_s1 + $0xed] sm:$0xff] }
0x12de   :  { %v7728_v48 = vpop.permute.xlu1 %7727  ;;  %v5875_v51 = vld [vmem:[%s11474_s1 + $0xbd] sm:$0xff] }
0x12df   :  { %v7729_v19 = vunpack.i.l.bf16 %v7728_v48  ;;  %v5392_v20 = vpop.permute.xlu0 %5391  ;;  %v7730_v18 = vunpack.i.h.bf16 %v7728_v48  ;;  %v5880_v48 = vld [vmem:[%s11474_s1 + $0xe5] sm:$0xff] }
0x12e0   :  { %v5410_v32 = vsel %vm1445_vm11, %v5358_v21, %v5392_v20  ;;  %v5878_v20 = vld [vmem:[%s11474_s1 + $0xd5] sm:$0xff]  ;;  %v5871_v21 = vld [vmem:[%s11474_s1 + $0x9d] sm:$0xff] }
0x12e1   :  { %v5405_v14 = vsel %vm1455_vm13, %v5403_v50, %v7729_v19  ;;  %v5406_v36 = vsel %vm1455_vm13, %v5404_v1, %v7730_v18  ;;  %v5879_v19 = vld [vmem:[%s11474_s1 + $0xdd] sm:$0xff]  ;;  %v5877_v50 = vld [vmem:[%s11474_s1 + $0xcd] sm:$0xff]  ;;  %v5868_v1 = vld [vmem:[%s11474_s1 + $0x85] sm:$0xff] }
0x12e2   :  { %v5382_v37 = vpop.permute.xlu1 %5381  ;;  %v5873_v18 = vld [vmem:[%s11474_s1 + $0xad] sm:$0xff] }
0x12e3   :  { %v5407_v49 = vsel %vm1465_vm15, %v5405_v14, %v5382_v37  ;;  %v5384_v22 = vpop.permute.xlu0 %5383  ;;  %v5876_v14 = vld [vmem:[%s11474_s1 + $0xc5] sm:$0xff]  ;;  %v5874_v37 = vld [vmem:[%s11474_s1 + $0xb5] sm:$0xff] }
0x12e4   :  { %5484 = vmatmul.mubr.f32.vlgmr.msra.gmra.mxu1 %v5407_v49  ;;  %v5408_v53 = vsel %vm1465_vm15, %v5406_v36, %v5384_v22  ;;  %v5872_v49 = vld [vmem:[%s11474_s1 + $0xa5] sm:$0xff]  ;;  %v5870_v22 = vld [vmem:[%s11474_s1 + $0x95] sm:$0xff] }
0x12e5   :  { %v5894_v36 = vld [vmem:[%s11474_s1 + $0x155] sm:$0xff] }
0x12e6   :  { %v5400_v35 = vpop.permute.xlu1 %5399 }
0x12e7   :  { %v5412_v23 = vsel %vm1455_vm13, %v5410_v32, %v5400_v35  ;;  %v5869_v32 = vld [vmem:[%s11474_s1 + $0x8d] sm:$0xff]  ;;  %v5895_v35 = vld [vmem:[%s11474_s1 + $0x15d] sm:$0xff] }
0x12e8   :  { %6877 = vmatprep.mubr.msk.f32.mxu1 %vm1465_vm15, %v5412_v23  ;;  %v5893_v23 = vld [vmem:[%s11474_s1 + $0x14d] sm:$0xff] }
0x12e9   :  { %5489 = vmatmul.mubr.f32.gmra.mxu1 %v5408_v53  ;;  %v5892_v53 = vld [vmem:[%s11474_s1 + $0x145] sm:$0xff] }
0x13a4   :  { %v5485_v61 = vpop.f32.mrf.mxu1 }
0x13a5   :  { %v5494_v63 = vmax.f32 %v5485_v61, 0.0 }
0x13a6   :  { %v5487_v16 = vpop.f32.mrf.mxu1 }
0x13a7   :  { %v5506_v62 = vmul.f32 %v5494_v63, %v5494_v63  ;;  %v5496_v11 = vsel %vm1445_vm11, %v5494_v63, 0.0 }
0x13a9   :  { %v5490_v13 = vpop.f32.mrf.mxu1  ;;  %v5508_v10 = vsel %vm1445_vm11, %v5506_v62, 0.0 }
0x13aa   :  { %v5495_v44 = vmax.f32 %v5490_v13, 0.0 }
0x13ab   :  { %v5492_v33 = vpop.f32.mrf.mxu1 }
0x13ac   :  { %v5497_v30 = vsel %vm1445_vm11, %v5495_v44, 0.0  ;;  %v5507_v8 = vmul.f32 %v5495_v44, %v5495_v44 }
0x13ad   :  { %v5498_v4 = vadd.f32 %v5497_v30, %v5496_v11 }
0x13ae   :  { %v5509_v28 = vsel %vm1445_vm11, %v5507_v8, 0.0 }
0x13af   :  { %v5499_v9 = vrot.slane %v5498_v4, 4  ;;  %v5510_v60 = vadd.f32 %v5509_v28, %v5508_v10 }
0x13b1   :  { %v5500_v43 = vadd.f32 %v5499_v9, %v5498_v4  ;;  %v5511_v5 = vrot.slane %v5510_v60, 4 }
0x13b3   :  { %v5501_v47 = vrot.slane %v5500_v43, 2  ;;  %v5512_v27 = vadd.f32 %v5511_v5, %v5510_v60 }
0x13b5   :  { %v5502_v42 = vadd.f32 %v5501_v47, %v5500_v43  ;;  %v5513_v58 = vrot.slane %v5512_v27, 2 }
0x13b7   :  { %v5503_v26 = vrot.slane %v5502_v42, 1  ;;  %v5514_v7 = vadd.f32 %v5513_v58, %v5512_v27 }
0x13b9   :  { %v5504_v41 = vadd.f32 %v5503_v26, %v5502_v42  ;;  %v5515_v57 = vrot.slane %v5514_v7, 1 }
0x13bb   :  { %v5505_v25 = vmul.f32 0.0625, %v5504_v41  ;;  %v5516_v40 = vadd.f32 %v5515_v57, %v5514_v7  ;;  %v5853_v41 = vpop.permute.xlu1 %5852 }
0x13bd   :  { %v5517_v56 = vmul.f32 0.0625, %v5516_v40  ;;  %v5518_v59 = vmul.f32 %v5505_v25, %v5505_v25  ;;  %v5521_v55 = vsub.f32 %v5495_v44, %v5505_v25  ;;  %v5520_v39 = vsub.f32 %v5494_v63, %v5505_v25 }
0x13bf   :  { %v5519_v31 = vsub.f32 %v5517_v56, %v5518_v59 }
0x13c1   :  { %v5522_v24 = vadd.f32 1e-05, %v5519_v31 }
0x13c3   :  { %7774 = vrsqrt.f32 %v5522_v24 }
0x13d0   :  { %v7775_v6 = vpop.eup %7774 }
0x13d1   :  { %v5525_v3 = vmul.f32 %v7775_v6, %v5521_v55  ;;  %v5524_v17 = vmul.f32 %v7775_v6, %v5520_v39 }
0x13d3   :  { %7601 = vmatprep.mubr.msk.f32.mxu0 %vm1445_vm11, %v5524_v17 }
0x13d4   :  { %7602 = vmatmul.mubr.msk.f32.vlgmr.msra.gmra.mxu0 %vm1445_vm11, %v5525_v3 }
0x13d5   :  { %6059 = vmatpush1.msra.mxu0 %v5883_v12 }
0x13d6   :  { %6060 = vmatprep.subr.mxu0 %v11637_v0 }
0x13d7   :  { %6061 = vmatpush1.msra.mxu0 %v5882_v34 }
0x13d8   :  { %6062 = vmatprep.subr.mxu0 %v11637_v0 }
0x13d9   :  { %6063 = vmatpush1.msra.mxu0 %v5881_v2 }
0x13da   :  { %6064 = vmatprep.subr.mxu0 %v11637_v0 }
0x13db   :  { %6065 = vmatpush1.msra.mxu0 %v5880_v48 }
0x13dc   :  { %6066 = vmatprep.subr.mxu0 %v11637_v0 }
0x13dd   :  { %6067 = vmatpush1.msra.mxu0 %v5879_v19 }
0x13de   :  { %6068 = vmatprep.subr.mxu0 %v11637_v0 }
0x13df   :  { %6069 = vmatpush1.msra.mxu0 %v5878_v20 }
0x13e0   :  { %6070 = vmatprep.subr.mxu0 %v11637_v0 }
0x13e1   :  { %6071 = vmatpush1.msra.mxu0 %v5877_v50 }
0x13e2   :  { %6072 = vmatprep.subr.mxu0 %v11637_v0 }
0x13e3   :  { %6073 = vmatpush1.msra.mxu0 %v5876_v14 }
0x13e4   :  { %6074 = vmatprep.subr.mxu0 %v11637_v0 }
0x13e5   :  { %6075 = vmatpush1.msra.mxu0 %v5875_v51  ;;  %v5855_v51 = vpop.permute.xlu0 %5854 }
0x13e6   :  { %6076 = vmatprep.subr.mxu0 %v11637_v0 }
0x13e7   :  { %6077 = vmatpush1.msra.mxu0 %v5874_v37 }
0x13e8   :  { %6078 = vmatprep.subr.mxu0 %v11637_v0 }
0x13e9   :  { %6079 = vmatpush1.msra.mxu0 %v5873_v18 }
0x13ea   :  { %6080 = vmatprep.subr.mxu0 %v11637_v0 }
0x13eb   :  { %6081 = vmatpush1.msra.mxu0 %v5872_v49  ;;  %v5857_v49 = vpop.permute.xlu1 %5856 }
0x13ec   :  { %6082 = vmatprep.subr.mxu0 %v11637_v0 }
0x13ed   :  { %6083 = vmatpush1.msra.mxu0 %v5871_v21 }
0x13ee   :  { %6084 = vmatprep.subr.mxu0 %v11637_v0 }
0x13ef   :  { %6085 = vmatpush1.msra.mxu0 %v5870_v22 }
0x13f0   :  { %6086 = vmatprep.subr.mxu0 %v11637_v0 }
0x13f1   :  { %6087 = vmatpush1.msra.mxu0 %v5869_v32 }
0x13f2   :  { %6088 = vmatprep.subr.mxu0 %v11637_v0 }
0x13f3   :  { %6089 = vmatpush1.msra.mxu0 %v5868_v1 }
0x13f4   :  { %6098 = vmatprep.subr.mxu0 %v11637_v0 }
0x13f5   :  { %6099 = vmatpush2.msra.mxu0 %v5895_v35 }
0x13f6   :  { %6100 = vmatprep.subr.mxu0 %v11637_v0 }
0x13f7   :  { %6101 = vmatpush2.msra.mxu0 %v5894_v36 }
0x13f8   :  { %6102 = vmatprep.subr.mxu0 %v11637_v0 }
0x13f9   :  { %6103 = vmatpush2.msra.mxu0 %v5893_v23 }
0x13fa   :  { %6104 = vmatprep.subr.mxu0 %v11637_v0 }
0x13fb   :  { %6105 = vmatpush2.msra.mxu0 %v5892_v53 }
0x13fc   :  { %6106 = vmatprep.subr.mxu0 %v11637_v0 }
0x1494   :  { %v7603_v54 = vpop.f32.mrf.mxu0 }
0x1495   :  { %v5613_v46 = vadd.f32 %v7603_v54, %v6878_v38 }
0x1496   :  { %v5607_v15 = vpop.f32.mrf.mxu0 }
0x1497   :  { %v5667_v61 = vcombine.high %v5613_v46, %v5613_v46  ;;  %v5674_v63 = vrot.slane %v5613_v46, %v10476_v52  ;;  %v5608_v16 = vadd.f32 %v6878_v38, %v5607_v15 }
0x1499   :  { %v5681_v13 = vrot.slane %v5667_v61, %v10476_v52  ;;  %v5682_v62 = vcombine.high %v5674_v63, %v5674_v63  ;;  %v5690_v44 = vrot.slane %v5674_v63, %v10476_v52  ;;  %v5618_v33 = vcombine.high %v5608_v16, %v5608_v16 }
0x149a   :  { %v5625_v11 = vrot.slane %v5608_v16, %v10476_v52 }
0x149b   :  { %v5683_v30 = vcombine.high %v5681_v13, %v5681_v13  ;;  %v5704_v8 = vrot.slane %v5682_v62, %v10476_v52  ;;  %v5712_v4 = vcombine.high %v5690_v44, %v5690_v44  ;;  %v5697_v10 = vrot.slane %v5681_v13, %v10476_v52  ;;  %v5891_v13 = vld [vmem:[%s11474_s1 + $0x13d] sm:$0xff] }
0x149c   :  { %v5632_v28 = vrot.slane %v5618_v33, %v10476_v52  ;;  %v5633_v9 = vcombine.high %v5625_v11, %v5625_v11  ;;  %v5641_v60 = vrot.slane %v5625_v11, %v10476_v52  ;;  %v5751_v5 = vrot.slane %v5690_v44, %v9754_v29  ;;  %v5859_v33 = vpop.permute.xlu0 %5858  ;;  %6107 = vmatpush2.msra.mxu0 %v5891_v13 }
0x149d   :  { %v5711_v43 = vrot.slane %v5683_v30, %v10476_v52  ;;  %v5714_v47 = vcombine.high %v5704_v8, %v5704_v8  ;;  %v5755_v27 = vrot.slane %v5704_v8, %v9754_v29  ;;  %v5759_v25 = vrot.slane %v5712_v4, %v9754_v29  ;;  %6108 = vmatprep.subr.mxu0 %v11637_v0  ;;  %v5890_v30 = vld [vmem:[%s11474_s1 + $0x135] sm:$0xff] }
0x149e   :  { %v5634_v42 = vcombine.high %v5632_v28, %v5632_v28  ;;  %v5648_v58 = vrot.slane %v5632_v28, %v10476_v52  ;;  %v5655_v26 = vrot.slane %v5633_v9, %v10476_v52  ;;  %v5663_v7 = vcombine.high %v5641_v60, %v5641_v60  ;;  %6109 = vmatpush2.msra.mxu0 %v5890_v30  ;;  %v5889_v28 = vld [vmem:[%s11474_s1 + $0x12d] sm:$0xff]  ;;  %v5888_v9 = vld [vmem:[%s11474_s1 + $0x125] sm:$0xff] }
0x149f   :  { %v5719_v57 = vrot.slane %v5641_v60, %v9754_v29  ;;  %v5763_v40 = vrot.slane %v5714_v47, %v9754_v29  ;;  %v5814_v56 = vcombine.low %v5751_v5, %v5755_v27  ;;  %v5713_v55 = vcombine.high %v5697_v10, %v5697_v10  ;;  %6110 = vmatprep.subr.mxu0 %v11637_v0  ;;  %v5887_v27 = vld [vmem:[%s11474_s1 + $0x11d] sm:$0xff] }
0x14a0   :  { %v5662_v59 = vrot.slane %v5634_v42, %v10476_v52  ;;  %v5665_v31 = vcombine.high %v5655_v26, %v5655_v26  ;;  %v5723_v24 = vrot.slane %v5655_v26, %v9754_v29  ;;  %v5727_v39 = vrot.slane %v5663_v7, %v9754_v29  ;;  %6111 = vmatpush2.msra.mxu0 %v5889_v28 }
0x14a1   :  { %v5664_v6 = vcombine.high %v5648_v58, %v5648_v58  ;;  %v5735_v3 = vrot.slane %v5648_v58, %v9754_v29  ;;  %v5815_v17 = vcombine.low %v5759_v25, %v5763_v40  ;;  %v5822_v52 = vrot.slane %v5814_v56, %v9723_v45  ;;  %6112 = vmatprep.subr.mxu0 %v11637_v0  ;;  %v5886_v58 = vld [vmem:[%s11474_s1 + $0x115] sm:$0xff] }
0x14a2   :  { %v5731_v12 = vrot.slane %v5665_v31, %v9754_v29  ;;  %v5780_v34 = vcombine.low %v5719_v57, %v5723_v24  ;;  %v5666_v2 = vcombine.high %v5662_v59, %v5662_v59  ;;  %v5739_v48 = vrot.slane %v5662_v59, %v9754_v29  ;;  %6113 = vmatpush2.msra.mxu0 %v5888_v9  ;;  %v5885_v31 = vld [vmem:[%s11474_s1 + $0x10d] sm:$0xff] }
0x14a3   :  { %v5743_v19 = vrot.slane %v5664_v6, %v9754_v29  ;;  %v5829_v20 = vrot.slane %v5815_v17, %v9723_v45  ;;  %v5715_v50 = vcombine.high %v5711_v43, %v5711_v43  ;;  %v5767_v21 = vrot.slane %v5697_v10, %v9754_v29  ;;  %6114 = vmatprep.subr.mxu0 %v11637_v0 }
0x14a4   :  { %v5781_v14 = vcombine.low %v5727_v39, %v5731_v12  ;;  %v5747_v37 = vrot.slane %v5666_v2, %v9754_v29  ;;  %v5797_v18 = vcombine.low %v5735_v3, %v5739_v48  ;;  %v5771_v32 = vrot.slane %v5711_v43, %v9754_v29  ;;  %6115 = vmatpush2.msra.mxu0 %v5887_v27  ;;  %v5884_v39 = vld [vmem:[%s11474_s1 + $0x105] sm:$0xff] }
0x14a5   :  { %v5830_v22 = vcombine.low %v5822_v52, %v5829_v20  ;;  %v5775_v1 = vrot.slane %v5713_v55, %v9754_v29  ;;  %v5779_v35 = vrot.slane %v5715_v50, %v9754_v29  ;;  %v5788_v36 = vrot.slane %v5780_v34, %v9723_v45  ;;  %6116 = vmatprep.subr.mxu0 %v11637_v0 }
0x14a6   :  { %v5795_v23 = vrot.slane %v5781_v14, %v9723_v45  ;;  %v5798_v53 = vcombine.low %v5743_v19, %v5747_v37  ;;  %v5831_v54 = vcombine.low %v5767_v21, %v5771_v32  ;;  %v5805_v61 = vrot.slane %v5797_v18, %v9723_v45  ;;  %6117 = vmatpush2.msra.mxu0 %v5886_v58 }
0x14a7   :  { %v5866_v38 = vsel %vm1263_vm10, %v5830_v22, %v5857_v49  ;;  %v5832_v46 = vcombine.low %v5775_v1, %v5779_v35  ;;  %6118 = vmatprep.subr.mxu0 %v11637_v0 }
0x14a8   :  { %v5796_v15 = vcombine.low %v5788_v36, %v5795_v23  ;;  %v5812_v63 = vrot.slane %v5798_v53, %v9723_v45  ;;  %5916 = vst.msk [vmem:[#allocation2 + $0x1b] sm:$0xff] %vm1445_vm11, %v5866_v38  ;;  %v5839_v16 = vrot.slane %v5831_v54, %v9723_v45  ;;  %6119 = vmatpush2.msra.mxu0 %v5885_v31 }
0x14a9   :  { %v5846_v29 = vrot.slane %v5832_v46, %v9723_v45  ;;  %6120 = vmatprep.subr.mxu0 %v11637_v0 }
0x14aa   :  { %v5864_v62 = vsel %vm1263_vm10, %v5796_v15, %v5853_v41  ;;  %v5813_v44 = vcombine.low %v5805_v61, %v5812_v63  ;;  %6121 = vmatpush2.msra.mxu0 %v5884_v39 }
0x14ab   :  { %5914 = vst.msk [vmem:[#allocation2 + $0x3] sm:$0xff] %vm1445_vm11, %v5864_v62  ;;  %v5847_v11 = vcombine.low %v5839_v16, %v5846_v29 }
0x14ac   :  { %v5865_v45 = vsel %vm1263_vm10, %v5813_v44, %v5855_v51 }
0x14ad   :  { %5915 = vst.msk [vmem:[#allocation2 + $0xb] sm:$0xff] %vm1445_vm11, %v5865_v45  ;;  %v5867_v8 = vsel %vm1263_vm10, %v5847_v11, %v5859_v33 }
0x14ae   :  { %5917 = vst.msk [vmem:[#allocation2 + $0x23] sm:$0xff] %vm1445_vm11, %v5867_v8 }
0x14af   :  { %v5924_v4 = vld [vmem:[#allocation2 + $0x19] sm:$0xff] }
0x14b0   :  { %v5928_v10 = vld [vmem:[#allocation2 + $0x1a] sm:$0xff] }
0x14b1   :  { %v11152_v60 = vld [vmem:[#allocation2 + $0x18] sm:$0xff] }
0x14b2   :  { %6192 = vst.msk [vmem:[#allocation2 + $0x18] sm:$0x7] %vm1308_vm2, %v11637_v0  ;;  %v5922_v43 = vld [vmem:[#allocation2 + $0x1] sm:$0xff] }
0x14b3   :  { %v5926_v5 = vld [vmem:[#allocation2 + $0x2] sm:$0xff] }
0x14b4   :  { %v11157_v47 = vld [vmem:[#allocation2] sm:$0xff]  ;;  %v5923_v42 = vld [vmem:[#allocation2 + $0x9] sm:$0xff] }
0x14b5   :  { %6191 = vst.msk [vmem:[#allocation2] sm:$0x7] %vm1308_vm2, %v11637_v0  ;;  %v5940_v26 = vld [vmem:[#allocation2 + $0x1d] sm:$0xff]  ;;  %v7736_v57 = vpack.i.bf16 %v5923_v42, %v5922_v43  ;;  %v5927_v25 = vld [vmem:[#allocation2 + $0xa] sm:$0xff] }
0x14b6   :  { %v5925_v7 = vld [vmem:[#allocation2 + $0x21] sm:$0xff]  ;;  %6002 = vrot.lane.b32.xlu1 %v5940_v26, %s7792_s30  ;;  %v5939_v40 = vld [vmem:[#allocation2 + $0xd] sm:$0xff]  ;;  %v7741_v17 = vpack.i.bf16 %v5927_v25, %v5926_v5 }
0x14b7   :  { %v7731_v41 = vpack.i.bf16 %v5925_v7, %v5924_v4  ;;  %v5943_v56 = vld [vmem:[#allocation2 + $0xe] sm:$0xff]  ;;  %v5941_v59 = vld [vmem:[#allocation2 + $0x25] sm:$0xff]  ;;  %v5932_v50 = vld [vmem:[#allocation2 + $0x1b] sm:$0xff] }
0x14b8   :  { %v5935_v24 = vld [vmem:[#allocation2 + $0xc] sm:$0xff]  ;;  %v11181_v6 = vld [vmem:[#allocation2 + $0x24] sm:$0xff]  ;;  %v5936_v4 = vld [vmem:[#allocation2 + $0x1c] sm:$0xff] }
0x14b9   :  { %7732 = vrot.lane.b32.xlu0 %v7731_v41, %s7792_s30  ;;  %v5945_v55 = vld [vmem:[#allocation2 + $0x26] sm:$0xff]  ;;  %6193 = vst.msk [vmem:[#allocation2 + $0x13] sm:$0x7] %vm1308_vm2, %v11637_v0  ;;  %v5944_v20 = vld [vmem:[#allocation2 + $0x1e] sm:$0xff] }
0x14ba   :  { %7737 = vrot.lane.b32.xlu1 %v7736_v57, %s7792_s30  ;;  %v5938_v3 = vld [vmem:[#allocation2 + $0x5] sm:$0xff]  ;;  %6194 = vst.msk [vmem:[#allocation2 + $0x2b] sm:$0x7] %vm1308_vm2, %v11637_v0 }
0x14bb   :  { %v5931_v12 = vld [vmem:[#allocation2 + $0xb] sm:$0xff]  ;;  %v5930_v2 = vld [vmem:[#allocation2 + $0x3] sm:$0xff] }
0x14bc   :  { %v5942_v34 = vld [vmem:[#allocation2 + $0x6] sm:$0xff]  ;;  %v7746_v48 = vpack.i.bf16 %v5931_v12, %v5930_v2 }
0x14bd   :  { %5998 = vrot.lane.b32.xlu0 %v5938_v3, %s7792_s30  ;;  %v5929_v19 = vld [vmem:[#allocation2 + $0x22] sm:$0xff] }
0x14be   :  { %7742 = vrot.lane.b32.xlu1 %v7741_v17, %s7794_s12  ;;  %v7751_v52 = vpack.i.bf16 %v5929_v19, %v5928_v10  ;;  %v5933_v14 = vld [vmem:[#allocation2 + $0x23] sm:$0xff] }
0x14bf   :  { %v5934_v32 = vld [vmem:[#allocation2 + $0x4] sm:$0xff] }
0x14c0   :  { %v5919_v33 = vld [vmem:[#allocation2 + $0x8] sm:$0xff] }
0x14c1   :  { %6014 = vrot.lane.b32.xlu0 %v5942_v34, %s7794_s12 }
0x14c2   :  { %7747 = vrot.lane.b32.xlu1 %v7746_v48, %s7796_s20 }
0x14c5   :  { %6000 = vrot.lane.b32.xlu0 %v5939_v40, %s7792_s30  ;;  %v5921_v40 = vld [vmem:[#allocation2 + $0x20] sm:$0xff] }
0x14c6   :  { %6016 = vrot.lane.b32.xlu1 %v5943_v56, %s7794_s12 }
0x14c9   :  { %7752 = vrot.lane.b32.xlu0 %v7751_v52, %s7794_s12 }
0x14ca   :  { %6018 = vrot.lane.b32.xlu1 %v5944_v20, %s7794_s12 }
0x14cd   :  { %5986 = vrot.lane.b32.xlu0 %v5932_v50, %s7796_s20 }
0x14ce   :  { %6004 = vrot.lane.b32.xlu1 %v5941_v59, %s7792_s30 }
0x14d1   :  { %6020 = vrot.lane.b32.xlu0 %v5945_v55, %s7794_s12 }
0x14d2   :  { %5988 = vrot.lane.b32.xlu1 %v5933_v14, %s7796_s20 }
0x1528   :  { %v6003_v51 = vpop.permute.xlu1 %6002 }
0x1529   :  { %v6040_v9 = vsel %vm1445_vm11, %v5936_v4, %v6003_v51 }
0x152b   :  { %v7733_v37 = vpop.permute.xlu0 %7732 }
0x152c   :  { %v7738_v18 = vpop.permute.xlu1 %7737  ;;  %v7734_v62 = vunpack.i.l.bf16 %v7733_v37  ;;  %v7735_v58 = vunpack.i.h.bf16 %v7733_v37 }
0x152d   :  { %v7739_v22 = vunpack.i.l.bf16 %v7738_v18  ;;  %v7740_v38 = vunpack.i.h.bf16 %v7738_v18 }
0x152e   :  { %v6028_v5 = vsel %vm1445_vm11, %v11152_v60, %v7734_v62  ;;  %v6029_v56 = vsel %vm1445_vm11, %v5921_v40, %v7735_v58  ;;  %v5908_v40 = vld [vmem:[%s11474_s1 + $0x1c5] sm:$0xff] }
0x152f   :  { %v5999_v49 = vpop.permute.xlu0 %5998  ;;  %v6026_v54 = vsel %vm1445_vm11, %v11157_v47, %v7739_v22  ;;  %v6027_v30 = vsel %vm1445_vm11, %v5919_v33, %v7740_v38 }
0x1530   :  { %v7743_v21 = vpop.permute.xlu1 %7742  ;;  %v6038_v1 = vsel %vm1445_vm11, %v5934_v32, %v5999_v49 }
0x1531   :  { %v7744_v35 = vunpack.i.l.bf16 %v7743_v21  ;;  %v7745_v15 = vunpack.i.h.bf16 %v7743_v21 }
0x1533   :  { %v6015_v36 = vpop.permute.xlu0 %6014  ;;  %v6030_v61 = vsel %vm1455_vm13, %v6026_v54, %v7744_v35  ;;  %v6031_v8 = vsel %vm1455_vm13, %v6027_v30, %v7745_v15 }
0x1534   :  { %v6042_v23 = vsel %vm1455_vm13, %v6038_v1, %v6015_v36  ;;  %v7748_v53 = vpop.permute.xlu1 %7747 }
0x1535   :  { %6881 = vmatprep.mubr.msk.f32.mxu0 %vm1465_vm15, %v6042_v23  ;;  %v7749_v46 = vunpack.i.l.bf16 %v7748_v53  ;;  %v7750_v16 = vunpack.i.h.bf16 %v7748_v53 }
0x1537   :  { %v6001_v63 = vpop.permute.xlu0 %6000  ;;  %v6034_v13 = vsel %vm1465_vm15, %v6030_v61, %v7749_v46  ;;  %v6035_v28 = vsel %vm1465_vm15, %v6031_v8, %v7750_v16 }
0x1538   :  { %v6039_v29 = vsel %vm1445_vm11, %v5935_v24, %v6001_v63  ;;  %v6017_v44 = vpop.permute.xlu1 %6016  ;;  %6123 = vmatmul.mubr.f32.vlgmr.msra.gmra.mxu0 %v6034_v13 }
0x1539   :  { %v6043_v11 = vsel %vm1455_vm13, %v6039_v29, %v6017_v44 }
0x153a   :  { %6882 = vmatprep.mubr.msk.f32.mxu0 %vm1465_vm15, %v6043_v11 }
0x153b   :  { %v7753_v45 = vpop.permute.xlu0 %7752 }
0x153c   :  { %v7754_v10 = vunpack.i.l.bf16 %v7753_v45  ;;  %v6019_v43 = vpop.permute.xlu1 %6018  ;;  %6128 = vmatmul.mubr.f32.gmra.mxu0 %v6035_v28  ;;  %v7755_v7 = vunpack.i.h.bf16 %v7753_v45 }
0x153d   :  { %v6044_v47 = vsel %vm1455_vm13, %v6040_v9, %v6019_v43 }
0x153e   :  { %v6032_v27 = vsel %vm1455_vm13, %v6028_v5, %v7754_v10  ;;  %6883 = vmatprep.mubr.msk.f32.mxu0 %vm1465_vm15, %v6044_v47  ;;  %v6033_v59 = vsel %vm1455_vm13, %v6029_v56, %v7755_v7  ;;  %v5906_v56 = vld [vmem:[%s11474_s1 + $0x1b5] sm:$0xff] }
0x153f   :  { %v5987_v42 = vpop.permute.xlu0 %5986 }
0x1540   :  { %v6036_v26 = vsel %vm1465_vm15, %v6032_v27, %v5987_v42  ;;  %v6005_v41 = vpop.permute.xlu1 %6004 }
0x1541   :  { %6133 = vmatmul.mubr.f32.gmra.mxu0 %v6036_v26  ;;  %v6041_v57 = vsel %vm1445_vm11, %v11181_v6, %v6005_v41 }
0x1543   :  { %v6021_v25 = vpop.permute.xlu0 %6020 }
0x1544   :  { %v6045_v60 = vsel %vm1455_vm13, %v6041_v57, %v6021_v25  ;;  %v5989_v31 = vpop.permute.xlu1 %5988  ;;  %v5909_v25 = vld [vmem:[%s11474_s1 + $0x1cd] sm:$0xff] }
0x1545   :  { %6884 = vmatprep.mubr.msk.f32.mxu0 %vm1465_vm15, %v6045_v60  ;;  %v6037_v24 = vsel %vm1465_vm15, %v6033_v59, %v5989_v31  ;;  %7604 = vmatprep.subr.mxu1 %v5909_v25  ;;  %v5907_v60 = vld [vmem:[%s11474_s1 + $0x1bd] sm:$0xff] }
0x1546   :  { %6138 = vmatmul.mubr.f32.gmra.mxu0 %v6037_v24  ;;  %7605 = vmatpush3.msra.mxu1 %v5909_v25 }
0x1547   :  { %7606 = vmatprep.subr.mxu1 %v5908_v40 }
0x1548   :  { %7607 = vmatpush3.msra.mxu1 %v5908_v40 }
0x1549   :  { %7608 = vmatprep.subr.mxu1 %v5907_v60 }
0x154a   :  { %7609 = vmatpush3.msra.mxu1 %v5907_v60 }
0x154b   :  { %7610 = vmatprep.subr.mxu1 %v5906_v56 }
0x154c   :  { %7611 = vmatpush3.msra.mxu1 %v5906_v56 }
0x15f8   :  { %v6124_v55 = vpop.f32.mrf.mxu0 }
0x15f9   :  { %v6143_v6 = vmax.f32 %v6124_v55, 0.0 }
0x15fa   :  { %v6126_v39 = vpop.f32.mrf.mxu0 }
0x15fb   :  { %v6161_v52 = vmul.f32 %v6143_v6, %v6143_v6  ;;  %v6147_v14 = vsel %vm1263_vm10, %v6143_v6, 0.0 }
0x15fc   :  { %v6129_v3 = vpop.f32.mrf.mxu0 }
0x15fd   :  { %v6144_v17 = vmax.f32 %v6129_v3, 0.0  ;;  %v6165_v21 = vsel %vm1263_vm10, %v6161_v52, 0.0 }
0x15fe   :  { %v6131_v12 = vpop.f32.mrf.mxu0 }
0x15ff   :  { %v6162_v2 = vmul.f32 %v6144_v17, %v6144_v17  ;;  %v6148_v20 = vsel %vm1263_vm10, %v6144_v17, 0.0 }
0x1600   :  { %v6149_v18 = vadd.f32 %v6148_v20, %v6147_v14  ;;  %v5905_v14 = vld [vmem:[%s11474_s1 + $0x1ad] sm:$0xff] }
0x1601   :  { %v6134_v34 = vpop.f32.mrf.mxu0  ;;  %v6166_v51 = vsel %vm1263_vm10, %v6162_v2, 0.0  ;;  %7612 = vmatprep.subr.mxu1 %v5905_v14 }
0x1602   :  { %v6145_v48 = vmax.f32 %v6134_v34, 0.0  ;;  %v6167_v1 = vadd.f32 %v6166_v51, %v6165_v21  ;;  %v5904_v51 = vld [vmem:[%s11474_s1 + $0x1a5] sm:$0xff]  ;;  %7613 = vmatpush3.msra.mxu1 %v5905_v14  ;;  %v5901_v21 = vld [vmem:[%s11474_s1 + $0x18d] sm:$0xff] }
0x1603   :  { %v6136_v19 = vpop.f32.mrf.mxu0  ;;  %7614 = vmatprep.subr.mxu1 %v5904_v51 }
0x1604   :  { %v6163_v50 = vmul.f32 %v6145_v48, %v6145_v48  ;;  %v6150_v37 = vsel %vm1263_vm10, %v6145_v48, 0.0  ;;  %7615 = vmatpush3.msra.mxu1 %v5904_v51 }
0x1605   :  { %v6151_v35 = vadd.f32 %v6150_v37, %v6149_v18  ;;  %v5903_v18 = vld [vmem:[%s11474_s1 + $0x19d] sm:$0xff] }
0x1606   :  { %v6139_v49 = vpop.f32.mrf.mxu0  ;;  %v6168_v22 = vsel %vm1263_vm10, %v6163_v50, 0.0  ;;  %7616 = vmatprep.subr.mxu1 %v5903_v18 }
0x1607   :  { %v6146_v32 = vmax.f32 %v6139_v49, 0.0  ;;  %v6169_v38 = vadd.f32 %v6168_v22, %v6167_v1  ;;  %7617 = vmatpush3.msra.mxu1 %v5903_v18  ;;  %v5899_v1 = vld [vmem:[%s11474_s1 + $0x17d] sm:$0xff] }
0x1608   :  { %v6141_v36 = vpop.f32.mrf.mxu0 }
0x1609   :  { %v6152_v23 = vsel %vm1263_vm10, %v6146_v32, 0.0  ;;  %v6164_v53 = vmul.f32 %v6146_v32, %v6146_v32  ;;  %v5898_v36 = vld [vmem:[%s11474_s1 + $0x175] sm:$0xff] }
0x160a   :  { %v6153_v54 = vadd.f32 %v6152_v23, %v6151_v35 }
0x160b   :  { %v6170_v46 = vsel %vm1263_vm10, %v6164_v53, 0.0 }
0x160c   :  { %v6154_v15 = vrot.slane %v6153_v54, 4  ;;  %v6171_v61 = vadd.f32 %v6170_v46, %v6169_v38  ;;  %v5897_v38 = vld [vmem:[%s11474_s1 + $0x16d] sm:$0xff] }
0x160e   :  { %v6155_v63 = vadd.f32 %v6154_v15, %v6153_v54  ;;  %v6172_v16 = vrot.slane %v6171_v61, 4  ;;  %v5896_v54 = vld [vmem:[%s11474_s1 + $0x165] sm:$0xff] }
0x1610   :  { %v6156_v29 = vrot.slane %v6155_v63, 2  ;;  %v6173_v13 = vadd.f32 %v6172_v16, %v6171_v61 }
0x1612   :  { %v6157_v62 = vadd.f32 %v6156_v29, %v6155_v63  ;;  %v6174_v44 = vrot.slane %v6173_v13, 2 }
0x1614   :  { %v6158_v33 = vrot.slane %v6157_v62, 1  ;;  %v6175_v11 = vadd.f32 %v6174_v44, %v6173_v13 }
0x1616   :  { %v6159_v30 = vadd.f32 %v6158_v33, %v6157_v62  ;;  %v6176_v45 = vrot.slane %v6175_v11, 1 }
0x1618   :  { %v6160_v8 = vmul.f32 0.03125, %v6159_v30  ;;  %v6177_v4 = vadd.f32 %v6176_v45, %v6175_v11 }
0x161a   :  { %v6178_v10 = vmul.f32 0.03125, %v6177_v4  ;;  %v6179_v28 = vmul.f32 %v6160_v8, %v6160_v8  ;;  %v6181_v5 = vsub.f32 %v6143_v6, %v6160_v8  ;;  %v6182_v47 = vsub.f32 %v6144_v17, %v6160_v8 }
0x161b   :  { %v6183_v27 = vsub.f32 %v6145_v48, %v6160_v8  ;;  %v6184_v42 = vsub.f32 %v6146_v32, %v6160_v8  ;;  %v5900_v32 = vld [vmem:[%s11474_s1 + $0x185] sm:$0xff] }
0x161c   :  { %v6180_v9 = vsub.f32 %v6178_v10, %v6179_v28 }
0x161e   :  { %v6185_v43 = vadd.f32 1e-05, %v6180_v9 }
0x1620   :  { %7776 = vrsqrt.f32 %v6185_v43 }
0x162d   :  { %v7777_v58 = vpop.eup %7776 }
0x162e   :  { %v6187_v26 = vmul.f32 %v7777_v58, %v6181_v5  ;;  %v6188_v7 = vmul.f32 %v7777_v58, %v6182_v47  ;;  %v6189_v41 = vmul.f32 %v7777_v58, %v6183_v27  ;;  %v6190_v57 = vmul.f32 %v7777_v58, %v6184_v42 }
0x1630   :  { %6195 = vst.msk [vmem:[#allocation2 + $0x3] sm:$0xff] %vm1263_vm10, %v6187_v26  ;;  %6196 = vst.msk [vmem:[#allocation2 + $0xb] sm:$0xff] %vm1263_vm10, %v6188_v7 }
0x1631   :  { %6197 = vst.msk [vmem:[#allocation2 + $0x1b] sm:$0xff] %vm1263_vm10, %v6189_v41  ;;  %6198 = vst.msk [vmem:[#allocation2 + $0x23] sm:$0xff] %vm1263_vm10, %v6190_v57 }
0x1637   :  { %v6204_v59 = vld [vmem:[#allocation2 + $0x9] sm:$0xff]  ;;  %v6203_v31 = vld [vmem:[#allocation2 + $0x1] sm:$0xff] }
0x1638   :  { %6233 = vrot.lane.b32.xlu1 %v6204_v59, %s7791_s29  ;;  %6231 = vrot.lane.b32.xlu0 %v6203_v31, %s7791_s29  ;;  %v6208_v24 = vld [vmem:[#allocation2 + $0xa] sm:$0xff]  ;;  %v6207_v55 = vld [vmem:[#allocation2 + $0x2] sm:$0xff]  ;;  %v6205_v34 = vld [vmem:[#allocation2 + $0x19] sm:$0xff] }
0x1639   :  { %v6216_v39 = vld [vmem:[#allocation2 + $0xc] sm:$0xff]  ;;  %v6211_v6 = vld [vmem:[#allocation2 + $0x3] sm:$0xff]  ;;  %v6209_v52 = vld [vmem:[#allocation2 + $0x1a] sm:$0xff] }
0x163a   :  { %v6220_v3 = vld [vmem:[#allocation2 + $0xd] sm:$0xff]  ;;  %v6218_v2 = vld [vmem:[#allocation2 + $0x24] sm:$0xff]  ;;  %v11261_v50 = vld [vmem:[#allocation2 + $0x18] sm:$0xff] }
0x163b   :  { %v6224_v17 = vld [vmem:[#allocation2 + $0xe] sm:$0xff]  ;;  %v6222_v48 = vld [vmem:[#allocation2 + $0x25] sm:$0xff]  ;;  %6508 = vst.msk [vmem:[#allocation2 + $0x18] sm:$0x7] %vm1308_vm2, %v11637_v0  ;;  %v6213_v23 = vld [vmem:[#allocation2 + $0x1b] sm:$0xff] }
0x163c   :  { %6249 = vrot.lane.b32.xlu1 %v6208_v24, %s7792_s30  ;;  %6247 = vrot.lane.b32.xlu0 %v6207_v55, %s7792_s30  ;;  %v6212_v12 = vld [vmem:[#allocation2 + $0xb] sm:$0xff]  ;;  %6509 = vst.msk [vmem:[#allocation2 + $0x13] sm:$0x7] %vm1308_vm2, %v11637_v0  ;;  %v11259_v20 = vld [vmem:[#allocation2] sm:$0xff] }
0x163d   :  { %v11255_v19 = vld [vmem:[#allocation2 + $0x26] sm:$0xff]  ;;  %6507 = vst.msk [vmem:[#allocation2] sm:$0x7] %vm1308_vm2, %v11637_v0  ;;  %v6217_v15 = vld [vmem:[#allocation2 + $0x1c] sm:$0xff] }
0x163e   :  { %6510 = vst.msk [vmem:[#allocation2 + $0x2b] sm:$0x7] %vm1308_vm2, %v11637_v0  ;;  %v6215_v37 = vld [vmem:[#allocation2 + $0x4] sm:$0xff]  ;;  %v5902_v0 = vld [vmem:[%s11474_s1 + $0x195] sm:$0xff] }
0x163f   :  { %v6219_v49 = vld [vmem:[#allocation2 + $0x5] sm:$0xff]  ;;  %7618 = vmatprep.subr.mxu1 %v5902_v0  ;;  %v6221_v61 = vld [vmem:[#allocation2 + $0x1d] sm:$0xff] }
0x1640   :  { %6265 = vrot.lane.b32.xlu1 %v6212_v12, %s7793_s6  ;;  %6263 = vrot.lane.b32.xlu0 %v6211_v6, %s7793_s6  ;;  %v6206_v22 = vld [vmem:[#allocation2 + $0x21] sm:$0xff] }
0x1641   :  { %7619 = vmatpush3.msra.mxu1 %v5902_v0  ;;  %v6223_v35 = vld [vmem:[#allocation2 + $0x6] sm:$0xff]  ;;  %v6225_v63 = vld [vmem:[#allocation2 + $0x1e] sm:$0xff] }
0x1642   :  { %7620 = vmatprep.subr.mxu1 %v5901_v21  ;;  %v6210_v53 = vld [vmem:[#allocation2 + $0x22] sm:$0xff] }
0x1643   :  { %7621 = vmatpush3.msra.mxu1 %v5901_v21  ;;  %v6214_v46 = vld [vmem:[#allocation2 + $0x23] sm:$0xff] }
0x1644   :  { %6235 = vrot.lane.b32.xlu1 %v6205_v34, %s7791_s29  ;;  %6279 = vrot.lane.b32.xlu0 %v6215_v37, %s7794_s12  ;;  %v6200_v26 = vld [vmem:[#allocation2 + $0x8] sm:$0xff] }
0x1645   :  { %7622 = vmatprep.subr.mxu1 %v5900_v32 }
0x1646   :  { %7623 = vmatpush3.msra.mxu1 %v5900_v32 }
0x1647   :  { %7624 = vmatprep.subr.mxu1 %v5899_v1 }
0x1648   :  { %6295 = vrot.lane.b32.xlu1 %v6219_v49, %s7795_s13  ;;  %6281 = vrot.lane.b32.xlu0 %v6216_v39, %s7794_s12 }
0x1649   :  { %7625 = vmatpush3.msra.mxu1 %v5899_v1 }
0x164a   :  { %7626 = vmatprep.subr.mxu1 %v5898_v36 }
0x164b   :  { %7627 = vmatpush3.msra.mxu1 %v5898_v36 }
0x164c   :  { %6251 = vrot.lane.b32.xlu1 %v6209_v52, %s7792_s30  ;;  %6237 = vrot.lane.b32.xlu0 %v6206_v22, %s7791_s29 }
0x164d   :  { %7628 = vmatprep.subr.mxu1 %v5897_v38 }
0x164e   :  { %7629 = vmatpush3.msra.mxu1 %v5897_v38 }
0x164f   :  { %7630 = vmatprep.subr.mxu1 %v5896_v54 }
0x1650   :  { %6311 = vrot.lane.b32.xlu1 %v6223_v35, %s7796_s20  ;;  %6297 = vrot.lane.b32.xlu0 %v6220_v3, %s7795_s13  ;;  %v6202_v3 = vld [vmem:[#allocation2 + $0x20] sm:$0xff] }
0x1651   :  { %7631 = vmatpush3.msra.mxu1 %v5896_v54 }
0x1654   :  { %6267 = vrot.lane.b32.xlu1 %v6213_v23, %s7793_s6  ;;  %6253 = vrot.lane.b32.xlu0 %v6210_v53, %s7792_s30 }
0x1658   :  { %6269 = vrot.lane.b32.xlu1 %v6214_v46, %s7793_s6  ;;  %6313 = vrot.lane.b32.xlu0 %v6224_v17, %s7796_s20 }
0x165c   :  { %6285 = vrot.lane.b32.xlu1 %v6218_v2, %s7794_s12  ;;  %6283 = vrot.lane.b32.xlu0 %v6217_v15, %s7794_s12 }
0x1660   :  { %6301 = vrot.lane.b32.xlu1 %v6222_v48, %s7795_s13  ;;  %6299 = vrot.lane.b32.xlu0 %v6221_v61, %s7795_s13 }
0x1664   :  { %6317 = vrot.lane.b32.xlu1 %v11255_v19, %s7796_s20  ;;  %6315 = vrot.lane.b32.xlu0 %v6225_v63, %s7796_s20 }
0x16aa   :  { %v6234_v16 = vpop.permute.xlu1 %6233  ;;  %v6232_v29 = vpop.permute.xlu0 %6231 }
0x16ab   :  { %v6323_v4 = vsel %vm1263_vm10, %v11259_v20, %v6232_v29  ;;  %v6324_v7 = vsel %vm1263_vm10, %v6200_v26, %v6234_v16 }
0x16ae   :  { %v6250_v13 = vpop.permute.xlu1 %6249  ;;  %v6248_v62 = vpop.permute.xlu0 %6247 }
0x16af   :  { %v6327_v9 = vsel %vm1445_vm11, %v6323_v4, %v6248_v62  ;;  %v6328_v25 = vsel %vm1445_vm11, %v6324_v7, %v6250_v13 }
0x16b2   :  { %v6266_v44 = vpop.permute.xlu1 %6265  ;;  %v6264_v33 = vpop.permute.xlu0 %6263 }
0x16b3   :  { %v6331_v43 = vsel %vm1450_vm12, %v6327_v9, %v6264_v33  ;;  %v6332_v40 = vsel %vm1450_vm12, %v6328_v25, %v6266_v44 }
0x16b6   :  { %v6236_v11 = vpop.permute.xlu1 %6235  ;;  %v6280_v30 = vpop.permute.xlu0 %6279 }
0x16b7   :  { %v6335_v5 = vsel %vm1455_vm13, %v6331_v43, %v6280_v30  ;;  %v6325_v17 = vsel %vm1263_vm10, %v11261_v50, %v6236_v11 }
0x16ba   :  { %v6296_v45 = vpop.permute.xlu1 %6295  ;;  %v6282_v8 = vpop.permute.xlu0 %6281 }
0x16bb   :  { %v6339_v47 = vsel %vm1460_vm14, %v6335_v5, %v6296_v45  ;;  %v6336_v60 = vsel %vm1455_vm13, %v6332_v40, %v6282_v8 }
0x16be   :  { %v6252_v10 = vpop.permute.xlu1 %6251  ;;  %v6238_v28 = vpop.permute.xlu0 %6237 }
0x16bf   :  { %v6326_v12 = vsel %vm1263_vm10, %v6202_v3, %v6238_v28  ;;  %v6329_v2 = vsel %vm1445_vm11, %v6325_v17, %v6252_v10 }
0x16c2   :  { %v6312_v27 = vpop.permute.xlu1 %6311  ;;  %v6298_v42 = vpop.permute.xlu0 %6297 }
0x16c3   :  { %v6343_v58 = vsel %vm1465_vm15, %v6339_v47, %v6312_v27  ;;  %v6340_v56 = vsel %vm1460_vm14, %v6336_v60, %v6298_v42 }
0x16c4   :  { %7632 = vmatprep.mubr.msk.f32.mxu1 %vm1470_vm0, %v6343_v58 }
0x16c6   :  { %v6268_v41 = vpop.permute.xlu1 %6267  ;;  %v6254_v57 = vpop.permute.xlu0 %6253 }
0x16c7   :  { %v6330_v48 = vsel %vm1445_vm11, %v6326_v12, %v6254_v57  ;;  %v6333_v19 = vsel %vm1450_vm12, %v6329_v2, %v6268_v41  ;;  %v6505_v2 = vld [vmem:[%s11474_s1 + $0x25e] sm:$0xff] }
0x16c8   :  { %7638 = vmatprep.subr.mxu1 %v6505_v2 }
0x16ca   :  { %v6270_v59 = vpop.permute.xlu1 %6269  ;;  %v6314_v31 = vpop.permute.xlu0 %6313 }
0x16cb   :  { %v6344_v24 = vsel %vm1465_vm15, %v6340_v56, %v6314_v31  ;;  %v6334_v52 = vsel %vm1450_vm12, %v6330_v48, %v6270_v59  ;;  %v6504_v48 = vld [vmem:[%s11474_s1 + $0x256] sm:$0xff] }
0x16cc   :  { %7633 = vmatmul.mubr.msk.f32.vlgmr.msra.gmra.mxu1 %vm1470_vm0, %v6344_v24 }
0x16cd   :  { %7639 = vmatpush3.msra.mxu1 %v6505_v2 }
0x16ce   :  { %v6286_v55 = vpop.permute.xlu1 %6285  ;;  %v6284_v39 = vpop.permute.xlu0 %6283  ;;  %7640 = vmatprep.subr.mxu1 %v6504_v48 }
0x16cf   :  { %v6338_v20 = vsel %vm1455_vm13, %v6334_v52, %v6286_v55  ;;  %v6337_v14 = vsel %vm1455_vm13, %v6333_v19, %v6284_v39  ;;  %7641 = vmatpush3.msra.mxu1 %v6504_v48  ;;  %v6503_v19 = vld [vmem:[%s11474_s1 + $0x24e] sm:$0xff]  ;;  %v6502_v52 = vld [vmem:[%s11474_s1 + $0x246] sm:$0xff] }
0x16d0   :  { %7642 = vmatprep.subr.mxu1 %v6503_v19 }
0x16d1   :  { %7643 = vmatpush3.msra.mxu1 %v6503_v19 }
0x16d2   :  { %v6302_v6 = vpop.permute.xlu1 %6301  ;;  %v6300_v34 = vpop.permute.xlu0 %6299  ;;  %7644 = vmatprep.subr.mxu1 %v6502_v52 }
0x16d3   :  { %v6342_v51 = vsel %vm1460_vm14, %v6338_v20, %v6302_v6  ;;  %v6341_v50 = vsel %vm1460_vm14, %v6337_v14, %v6300_v34  ;;  %7645 = vmatpush3.msra.mxu1 %v6502_v52 }
0x16d6   :  { %v6318_v37 = vpop.permute.xlu1 %6317  ;;  %v6316_v18 = vpop.permute.xlu0 %6315 }
0x16d7   :  { %v6346_v0 = vsel %vm1465_vm15, %v6342_v51, %v6318_v37  ;;  %v6345_v49 = vsel %vm1465_vm15, %v6341_v50, %v6316_v18 }
0x16d8   :  { %7635 = vmatprep.mubr.msk.f32.mxu1 %vm1470_vm0, %v6345_v49  ;;  %v6500_v49 = vld [vmem:[%s11474_s1 + $0x236] sm:$0xff] }
0x16d9   :  { %7636 = vmatmul.mubr.msk.f32.gmra.mxu1 %vm1470_vm0, %v6346_v0  ;;  %v6501_v0 = vld [vmem:[%s11474_s1 + $0x23e] sm:$0xff] }
0x16da   :  { %7646 = vmatprep.subr.mxu1 %v6501_v0 }
0x16db   :  { %7647 = vmatpush3.msra.mxu1 %v6501_v0 }
0x16dc   :  { %7648 = vmatprep.subr.mxu1 %v6500_v49 }
0x16dd   :  { %7649 = vmatpush3.msra.mxu1 %v6500_v49 }
0x178c   :  { %v7634_v21 = vpop.f32.mrf.mxu1 }
0x178d   :  { %v6445_v1 = vmax.f32 %v7634_v21, 0.0 }
0x178e   :  { %v6425_v22 = vpop.f32.mrf.mxu1 }
0x178f   :  { %v6444_v32 = vmax.f32 %v6425_v22, 0.0  ;;  %v6463_v23 = vmul.f32 %v6445_v1, %v6445_v1  ;;  %v6449_v46 = vsel %vm1263_vm10, %v6445_v1, 0.0 }
0x1791   :  { %v6462_v35 = vmul.f32 %v6444_v32, %v6444_v32  ;;  %v6448_v53 = vsel %vm1263_vm10, %v6444_v32, 0.0  ;;  %v6467_v16 = vsel %vm1263_vm10, %v6463_v23, 0.0  ;;  %v6497_v23 = vld [vmem:[%s11474_s1 + $0x21e] sm:$0xff] }
0x1792   :  { %v6450_v63 = vadd.f32 %v6449_v46, %v6448_v53  ;;  %v6495_v46 = vld [vmem:[%s11474_s1 + $0x20e] sm:$0xff] }
0x1793   :  { %v6466_v15 = vsel %vm1263_vm10, %v6462_v35, 0.0 }
0x1794   :  { %v6468_v44 = vadd.f32 %v6467_v16, %v6466_v15 }
0x1799   :  { %v7637_v36 = vpop.f32.mrf.mxu1 }
0x179a   :  { %v6447_v38 = vmax.f32 %v7637_v36, 0.0 }
0x179b   :  { %v6435_v54 = vpop.f32.mrf.mxu1 }
0x179c   :  { %v6446_v61 = vmax.f32 %v6435_v54, 0.0  ;;  %v6465_v29 = vmul.f32 %v6447_v38, %v6447_v38  ;;  %v6453_v11 = vsel %vm1263_vm10, %v6447_v38, 0.0  ;;  %v6496_v54 = vld [vmem:[%s11474_s1 + $0x216] sm:$0xff] }
0x179e   :  { %v6451_v13 = vsel %vm1263_vm10, %v6446_v61, 0.0  ;;  %v6464_v62 = vmul.f32 %v6446_v61, %v6446_v61  ;;  %v6471_v4 = vsel %vm1263_vm10, %v6465_v29, 0.0 }
0x179f   :  { %v6452_v33 = vadd.f32 %v6451_v13, %v6450_v63  ;;  %v6494_v63 = vld [vmem:[%s11474_s1 + $0x206] sm:$0xff]  ;;  %v6493_v13 = vld [vmem:[%s11474_s1 + $0x1fe] sm:$0xff] }
0x17a0   :  { %v6469_v30 = vsel %vm1263_vm10, %v6464_v62, 0.0  ;;  %v6492_v62 = vld [vmem:[%s11474_s1 + $0x1f6] sm:$0xff] }
0x17a1   :  { %v6454_v45 = vadd.f32 %v6453_v11, %v6452_v33  ;;  %v6470_v8 = vadd.f32 %v6469_v30, %v6468_v44 }
0x17a3   :  { %v6455_v10 = vrot.slane %v6454_v45, 4  ;;  %v6472_v28 = vadd.f32 %v6471_v4, %v6470_v8 }
0x17a5   :  { %v6456_v9 = vadd.f32 %v6455_v10, %v6454_v45  ;;  %v6473_v43 = vrot.slane %v6472_v28, 4 }
0x17a7   :  { %v6457_v5 = vrot.slane %v6456_v9, 2  ;;  %v6474_v47 = vadd.f32 %v6473_v43, %v6472_v28 }
0x17a9   :  { %v6458_v27 = vadd.f32 %v6457_v5, %v6456_v9  ;;  %v6475_v42 = vrot.slane %v6474_v47, 2 }
0x17ab   :  { %v6459_v58 = vrot.slane %v6458_v27, 1  ;;  %v6476_v26 = vadd.f32 %v6475_v42, %v6474_v47 }
0x17ad   :  { %v6460_v7 = vadd.f32 %v6459_v58, %v6458_v27  ;;  %v6477_v41 = vrot.slane %v6476_v26, 1 }
0x17af   :  { %v6461_v57 = vmul.f32 0.03125, %v6460_v7  ;;  %v6478_v25 = vadd.f32 %v6477_v41, %v6476_v26 }
0x17b1   :  { %v6479_v40 = vmul.f32 0.03125, %v6478_v25  ;;  %v6480_v60 = vmul.f32 %v6461_v57, %v6461_v57  ;;  %v6482_v31 = vsub.f32 %v6444_v32, %v6461_v57  ;;  %v6483_v24 = vsub.f32 %v6445_v1, %v6461_v57  ;;  %v6499_v32 = vld [vmem:[%s11474_s1 + $0x22e] sm:$0xff]  ;;  %v6498_v1 = vld [vmem:[%s11474_s1 + $0x226] sm:$0xff] }
0x17b2   :  { %v6484_v55 = vsub.f32 %v6446_v61, %v6461_v57  ;;  %v6485_v39 = vsub.f32 %v6447_v38, %v6461_v57  ;;  %7650 = vmatprep.subr.mxu1 %v6499_v32 }
0x17b3   :  { %v6481_v56 = vsub.f32 %v6479_v40, %v6480_v60  ;;  %7651 = vmatpush3.msra.mxu1 %v6499_v32 }
0x17b4   :  { %7652 = vmatprep.subr.mxu1 %v6498_v1 }
0x17b5   :  { %v6486_v59 = vadd.f32 1e-05, %v6481_v56  ;;  %7653 = vmatpush3.msra.mxu1 %v6498_v1 }
0x17b6   :  { %7654 = vmatprep.subr.mxu1 %v6497_v23 }
0x17b7   :  { %7778 = vrsqrt.f32 %v6486_v59  ;;  %7655 = vmatpush3.msra.mxu1 %v6497_v23 }
0x17b8   :  { %7656 = vmatprep.subr.mxu1 %v6496_v54 }
0x17b9   :  { %7657 = vmatpush3.msra.mxu1 %v6496_v54 }
0x17ba   :  { %7658 = vmatprep.subr.mxu1 %v6495_v46 }
0x17bb   :  { %7659 = vmatpush3.msra.mxu1 %v6495_v46 }
0x17bc   :  { %7660 = vmatprep.subr.mxu1 %v6494_v63 }
0x17bd   :  { %7661 = vmatpush3.msra.mxu1 %v6494_v63 }
0x17be   :  { %7662 = vmatprep.subr.mxu1 %v6493_v13 }
0x17bf   :  { %7663 = vmatpush3.msra.mxu1 %v6493_v13 }
0x17c0   :  { %7664 = vmatprep.subr.mxu1 %v6492_v62 }
0x17c1   :  { %7665 = vmatpush3.msra.mxu1 %v6492_v62 }
0x17c4   :  { %v7779_v3 = vpop.eup %7778 }
0x17c5   :  { %v6488_v17 = vmul.f32 %v7779_v3, %v6482_v31  ;;  %v6489_v12 = vmul.f32 %v7779_v3, %v6483_v24  ;;  %v6490_v6 = vmul.f32 %v7779_v3, %v6484_v55  ;;  %v6491_v34 = vmul.f32 %v7779_v3, %v6485_v39 }
0x17c7   :  { %6511 = vst.msk [vmem:[#allocation2 + $0x3] sm:$0xff] %vm1263_vm10, %v6488_v17  ;;  %6512 = vst.msk [vmem:[#allocation2 + $0xb] sm:$0xff] %vm1263_vm10, %v6489_v12 }
0x17c8   :  { %6513 = vst.msk [vmem:[#allocation2 + $0x1b] sm:$0xff] %vm1263_vm10, %v6490_v6  ;;  %6514 = vst.msk [vmem:[#allocation2 + $0x23] sm:$0xff] %vm1263_vm10, %v6491_v34 }
0x17ce   :  { %v6520_v20 = vld [vmem:[#allocation2 + $0x9] sm:$0xff]  ;;  %v6519_v14 = vld [vmem:[#allocation2 + $0x1] sm:$0xff] }
0x17cf   :  { %6549 = vrot.lane.b32.xlu1 %v6520_v20, %s7791_s29  ;;  %6547 = vrot.lane.b32.xlu0 %v6519_v14, %s7791_s29  ;;  %v6524_v51 = vld [vmem:[#allocation2 + $0xa] sm:$0xff]  ;;  %v6523_v50 = vld [vmem:[#allocation2 + $0x2] sm:$0xff]  ;;  %v6521_v21 = vld [vmem:[#allocation2 + $0x19] sm:$0xff] }
0x17d0   :  { %v6528_v37 = vld [vmem:[#allocation2 + $0xb] sm:$0xff]  ;;  %v6527_v18 = vld [vmem:[#allocation2 + $0x3] sm:$0xff]  ;;  %v6525_v53 = vld [vmem:[#allocation2 + $0x1a] sm:$0xff] }
0x17d1   :  { %v6531_v22 = vld [vmem:[#allocation2 + $0x4] sm:$0xff]  ;;  %v6532_v36 = vld [vmem:[#allocation2 + $0xc] sm:$0xff]  ;;  %v6529_v16 = vld [vmem:[#allocation2 + $0x1b] sm:$0xff] }
0x17d2   :  { %v6535_v35 = vld [vmem:[#allocation2 + $0x5] sm:$0xff]  ;;  %v6536_v61 = vld [vmem:[#allocation2 + $0xd] sm:$0xff]  ;;  %v6533_v30 = vld [vmem:[#allocation2 + $0x1c] sm:$0xff] }
0x17d3   :  { %6565 = vrot.lane.b32.xlu1 %v6524_v51, %s7792_s30  ;;  %6563 = vrot.lane.b32.xlu0 %v6523_v50, %s7792_s30  ;;  %v6522_v38 = vld [vmem:[#allocation2 + $0x21] sm:$0xff]  ;;  %v6540_v33 = vld [vmem:[#allocation2 + $0xe] sm:$0xff] }
0x17d4   :  { %v6539_v15 = vld [vmem:[#allocation2 + $0x6] sm:$0xff]  ;;  %v6537_v8 = vld [vmem:[#allocation2 + $0x1d] sm:$0xff] }
0x17d5   :  { %v6526_v29 = vld [vmem:[#allocation2 + $0x22] sm:$0xff] }
0x17d6   :  { %v6530_v44 = vld [vmem:[#allocation2 + $0x23] sm:$0xff] }
0x17d7   :  { %6581 = vrot.lane.b32.xlu1 %v6528_v37, %s7793_s6  ;;  %6579 = vrot.lane.b32.xlu0 %v6527_v18, %s7793_s6  ;;  %v6534_v11 = vld [vmem:[#allocation2 + $0x24] sm:$0xff]  ;;  %v6517_v37 = vld [vmem:[#allocation2 + $0x18] sm:$0xff] }
0x17d8   :  { %v6538_v45 = vld [vmem:[#allocation2 + $0x25] sm:$0xff] }
0x17d9   :  { %v6542_v4 = vld [vmem:[#allocation2 + $0x26] sm:$0xff]  ;;  %v6541_v10 = vld [vmem:[#allocation2 + $0x1e] sm:$0xff] }
0x17da   :  { %v6515_v41 = vld [vmem:[#allocation2] sm:$0xff]  ;;  %v6516_v3 = vld [vmem:[#allocation2 + $0x8] sm:$0xff] }
0x17db   :  { %6551 = vrot.lane.b32.xlu1 %v6521_v21, %s7791_s29  ;;  %6595 = vrot.lane.b32.xlu0 %v6531_v22, %s7794_s12  ;;  %v6518_v18 = vld [vmem:[#allocation2 + $0x20] sm:$0xff] }
0x17df   :  { %6611 = vrot.lane.b32.xlu1 %v6535_v35, %s7795_s13  ;;  %6597 = vrot.lane.b32.xlu0 %v6532_v36, %s7794_s12 }
0x17e3   :  { %6567 = vrot.lane.b32.xlu1 %v6525_v53, %s7792_s30  ;;  %6553 = vrot.lane.b32.xlu0 %v6522_v38, %s7791_s29 }
0x17e7   :  { %6627 = vrot.lane.b32.xlu1 %v6539_v15, %s7796_s20  ;;  %6613 = vrot.lane.b32.xlu0 %v6536_v61, %s7795_s13 }
0x17eb   :  { %6583 = vrot.lane.b32.xlu1 %v6529_v16, %s7793_s6  ;;  %6569 = vrot.lane.b32.xlu0 %v6526_v29, %s7792_s30  ;;  %v6889_v16 = vld [vmem:[%s11474_s1 + $0x266] ss:$0 sm:$0xff] }
0x17ef   :  { %6585 = vrot.lane.b32.xlu1 %v6530_v44, %s7793_s6  ;;  %6629 = vrot.lane.b32.xlu0 %v6540_v33, %s7796_s20 }
0x17f3   :  { %6601 = vrot.lane.b32.xlu1 %v6534_v11, %s7794_s12  ;;  %6599 = vrot.lane.b32.xlu0 %v6533_v30, %s7794_s12 }
0x17f7   :  { %6617 = vrot.lane.b32.xlu1 %v6538_v45, %s7795_s13  ;;  %6615 = vrot.lane.b32.xlu0 %v6537_v8, %s7795_s13 }
0x17fb   :  { %6633 = vrot.lane.b32.xlu1 %v6542_v4, %s7796_s20  ;;  %6631 = vrot.lane.b32.xlu0 %v6541_v10, %s7796_s20 }
0x1841   :  { %v6550_v28 = vpop.permute.xlu1 %6549  ;;  %v6548_v9 = vpop.permute.xlu0 %6547 }
0x1842   :  { %v6639_v57 = vsel %vm1263_vm10, %v6515_v41, %v6548_v9  ;;  %v6640_v17 = vsel %vm1263_vm10, %v6516_v3, %v6550_v28 }
0x1845   :  { %v6566_v43 = vpop.permute.xlu1 %6565  ;;  %v6564_v5 = vpop.permute.xlu0 %6563 }
0x1846   :  { %v6643_v60 = vsel %vm1445_vm11, %v6639_v57, %v6564_v5  ;;  %v6644_v34 = vsel %vm1445_vm11, %v6640_v17, %v6566_v43 }
0x1849   :  { %v6582_v47 = vpop.permute.xlu1 %6581  ;;  %v6580_v27 = vpop.permute.xlu0 %6579 }
0x184a   :  { %v6647_v56 = vsel %vm1450_vm12, %v6643_v60, %v6580_v27  ;;  %v6648_v2 = vsel %vm1450_vm12, %v6644_v34, %v6582_v47 }
0x184d   :  { %v6552_v42 = vpop.permute.xlu1 %6551  ;;  %v6596_v58 = vpop.permute.xlu0 %6595 }
0x184e   :  { %v6651_v59 = vsel %vm1455_vm13, %v6647_v56, %v6596_v58  ;;  %v6641_v0 = vsel %vm1263_vm10, %v6517_v37, %v6552_v42 }
0x1851   :  { %v6612_v26 = vpop.permute.xlu1 %6611  ;;  %v6598_v7 = vpop.permute.xlu0 %6597 }
0x1852   :  { %v6655_v31 = vsel %vm1460_vm14, %v6651_v59, %v6612_v26  ;;  %v6652_v48 = vsel %vm1455_vm13, %v6648_v2, %v6598_v7 }
0x1855   :  { %v6568_v25 = vpop.permute.xlu1 %6567  ;;  %v6554_v40 = vpop.permute.xlu0 %6553 }
0x1856   :  { %v6642_v49 = vsel %vm1263_vm10, %v6518_v18, %v6554_v40  ;;  %v6645_v32 = vsel %vm1445_vm11, %v6641_v0, %v6568_v25 }
0x1859   :  { %v6628_v24 = vpop.permute.xlu1 %6627  ;;  %v6614_v55 = vpop.permute.xlu0 %6613 }
0x185a   :  { %v6659_v39 = vsel %vm1465_vm15, %v6655_v31, %v6628_v24  ;;  %v6656_v19 = vsel %vm1460_vm14, %v6652_v48, %v6614_v55 }
0x185b   :  { %7666 = vmatprep.mubr.msk.f32.mxu1 %vm1470_vm0, %v6659_v39 }
0x185d   :  { %v6584_v12 = vpop.permute.xlu1 %6583  ;;  %v6570_v6 = vpop.permute.xlu0 %6569 }
0x185e   :  { %v6646_v1 = vsel %vm1445_vm11, %v6642_v49, %v6570_v6  ;;  %v6649_v35 = vsel %vm1450_vm12, %v6645_v32, %v6584_v12 }
0x1861   :  { %v6586_v52 = vpop.permute.xlu1 %6585  ;;  %v6630_v20 = vpop.permute.xlu0 %6629 }
0x1862   :  { %v6660_v14 = vsel %vm1465_vm15, %v6656_v19, %v6630_v20  ;;  %v6650_v36 = vsel %vm1450_vm12, %v6646_v1, %v6586_v52 }
0x1863   :  { %7667 = vmatmul.mubr.msk.f32.vlgmr.msra.gmra.mxu1 %vm1470_vm0, %v6660_v14 }
0x1865   :  { %v6602_v51 = vpop.permute.xlu1 %6601  ;;  %v6600_v50 = vpop.permute.xlu0 %6599 }
0x1866   :  { %v6654_v23 = vsel %vm1455_vm13, %v6650_v36, %v6602_v51  ;;  %v6653_v53 = vsel %vm1455_vm13, %v6649_v35, %v6600_v50 }
0x1869   :  { %v6618_v21 = vpop.permute.xlu1 %6617  ;;  %v6616_v22 = vpop.permute.xlu0 %6615 }
0x186a   :  { %v6658_v38 = vsel %vm1460_vm14, %v6654_v23, %v6618_v21  ;;  %v6657_v54 = vsel %vm1460_vm14, %v6653_v53, %v6616_v22 }
0x186d   :  { %v6634_v46 = vpop.permute.xlu1 %6633  ;;  %v6632_v15 = vpop.permute.xlu0 %6631 }
0x186e   :  { %v6662_v61 = vsel %vm1465_vm15, %v6658_v38, %v6634_v46  ;;  %v6661_v63 = vsel %vm1465_vm15, %v6657_v54, %v6632_v15 }
0x186f   :  { %7669 = vmatprep.mubr.msk.f32.mxu1 %vm1470_vm0, %v6661_v63 }
0x1870   :  { %7670 = vmatmul.mubr.msk.f32.gmra.mxu1 %vm1470_vm0, %v6662_v61 }
0x1923   :  { %v7668_v29 = vpop.f32.mrf.mxu1 }
0x1924   :  { %v6751_v13 = vadd.f32 %v7668_v29, %v6889_v16 }
0x1925   :  { %v6745_v62 = vpop.f32.mrf.mxu1 }
0x1926   :  { %6765 = vst.msk [vmem:[%s11478_s5 + $0x8] sm:$0xff] %vm999_vm1, %v6751_v13  ;;  %v6746_v44 = vadd.f32 %v6889_v16, %v6745_v62 }
0x1928   :  { %6764 = vst.msk [vmem:[%s11478_s5] sm:$0xff] %vm999_vm1, %v6746_v44 }
0x1930   :  { %v7671_v33 = vpop.f32.mrf.mxu1 }
0x1931   :  { %v6761_v11 = vadd.f32 %v7671_v33, %v6889_v16 }
0x1932   :  { %v6755_v30 = vpop.f32.mrf.mxu1 }
0x1933   :  { %6767 = vst.msk [vmem:[%s11478_s5 + $0x18] sm:$0xff] %vm999_vm1, %v6761_v11  ;;  %v6756_v45 = vadd.f32 %v6889_v16, %v6755_v30 }
0x1935   :  { %6766 = vst.msk [vmem:[%s11478_s5 + $0x10] sm:$0xff] %vm999_vm1, %v6756_v45 }
0x1936   :  { %6772 = vsyncmov [#allocation5] }
0x1939   :  { %s6773_s19 = vpop.sfrf %6772 }
0x193a   :  { %p6894_p0 = scmp.ne.s32.totalorder %s6773_s19, 0 }
0x193c   :  { %6777 = shalt.err (%p6894_p0)  }
0x193d   :  { %6779 = vsyncmov [#allocation5 + $0x1] }
0x1940   :  { %s6780_s21 = vpop.sfrf %6779 }
0x1941   :  { %p6895_p1 = scmp.ne.s32.totalorder %s6780_s21, 0 }
0x1943   :  { %6784 = shalt.err (%p6895_p1)  }

</bundles_post_ra>
